<compile_context>
chip_gen: v7x
topology: tpu7x:2x2x1
jax: 0.10.0
libtpu: 0.0.40
codegen_flags: <defaults>
</compile_context>

<pallas_src>
import functools

import jax
import jax.numpy as jnp
import numpy as np
from jax import lax
from jax.experimental import pallas as pl
from jax.experimental.pallas import tpu as pltpu

N_QUBITS = 4
DEPTH = 1
LANE = 128
SUB = 8                       # sublanes per vreg / rows per strip
MAX_BLOCK_UNITS = 32          # <=32 strips (256 rows) per grid step -> ~7 MB VMEM 2x-buffered
NEG_SLOPE = 0.1
INV_SQRT2 = 0.7071067811865476


# ----------------------------- Pallas kernels ------------------------------

def inception_kernel(xp_ref, weff_ref, beff_ref, qtab_ref, o_ref, *, n_strips):
    """Fused inception block on one block of `n_strips * 8` sublane-rows of patches.

    xp_ref   : VMEM (16, n_strips*8, 128)  patch-pixel planes (angles / conv inputs)
    weff_ref : SMEM (128,)  flat folded conv weights, index p*8 + c
    beff_ref : SMEM (8,)    folded conv bias
    qtab_ref : SMEM (32,)   per-qubit q (stride 8):
                 [cos(w_q/2), -sin(w_q/2), cos(w_{q-1}), sin(w_{q-1}), cos(v_q), 2*sin(v_q), 0, 0]
    o_ref    : VMEM (12, n_strips*8, 128)  ch 0..7 classic conv, ch 8..11 quantum <Z_q>
    """
    # Hoist all scalar (SMEM) reads out of the strip loop: read once per grid step.
    weff = [[weff_ref[p * 8 + c] for c in range(8)] for p in range(16)]
    beff = [beff_ref[c] for c in range(8)]
    qtab = [[qtab_ref[q * 8 + j] for j in range(6)] for q in range(N_QUBITS)]

    def process_strip(row):
        xs = [xp_ref[p, pl.ds(row, SUB), :] for p in range(16)]

        # ---- classic branch: folded Conv2d(1,4,1) o Conv2d(4,8,4,s=2) (one 16->8 map) ----
        # TODO(synk): ~256 VALU ops/strip; could move to the idle MXU with a lane-padded
        # W_eff tile if the classic branch ever becomes the binding slot.
        for c in range(8):
            acc = weff[0][c] * xs[0]
            for p in range(1, 16):
                acc = acc + weff[p][c] * xs[p]
            o_ref[c, pl.ds(row, SUB), :] = acc + beff[c]

        # ---- quantum branch: exact 4-qubit circuit (product state + diagonal CRZ) ----
        # Per qubit: H then gates [RZ,RY,RZ,RY,RZ] with data angles (idx = q*5+i < 16).
        # RZ is applied as diag(e^{-i th}, 1): the dropped global phase leaves p0/p1 and
        # conj(a0)*a1 (all we use) invariant, and halves the RZ cost.
        psi = []
        for q in range(N_QUBITS):
            th = xs[q * 5]
            cth = jnp.cos(th)
            sth = jnp.sin(th)
            re0 = INV_SQRT2 * cth
            im0 = (-INV_SQRT2) * sth
            re1 = jnp.full_like(cth, INV_SQRT2)
            im1 = jnp.zeros_like(cth)
            for i in range(1, 5):
                idx = q * 5 + i
                if idx >= 16:
                    break
                th = xs[idx]
                if i % 2 == 1:                      # RY(th)
                    c = jnp.cos(0.5 * th)
                    s = jnp.sin(0.5 * th)
                    re0, im0, re1, im1 = (c * re0 - s * re1, c * im0 - s * im1,
                                          s * re0 + c * re1, s * im0 + c * im1)
                else:                               # RZ(th), global phase dropped
                    c = jnp.cos(th)
                    s = jnp.sin(th)
                    re0, im0 = re0 * c + im0 * s, im0 * c - re0 * s
            psi.append((re0, im0, re1, im1))

        p0, p1, zq, nq, xre, xim = [], [], [], [], [], []
        for q in range(N_QUBITS):
            re0, im0, re1, im1 = psi[q]
            a = re0 * re0 + im0 * im0
            b = re1 * re1 + im1 * im1
            p0.append(a)
            p1.append(b)
            zq.append(a - b)                         # <Z_q> before the trainable RY
            nq.append(a + b)
            xre.append(re0 * re1 + im0 * im1)        # Re / Im of conj(a0_q) * a1_q
            xim.append(re0 * im1 - im0 * re1)

        # CRZ cross-term factorization:
        #   dphi(q, b) = w_q*(2*b_{q+1}-1)/2 + w_{q-1}*b_{q-1}
        # so sum_{other bits} e^{i dphi} prod p factorizes into
        #   A_q = n_{q+1} cos(w_q/2) - i z_{q+1} sin(w_q/2)
        #   B_q = p0_{q-1} + p1_{q-1} e^{i w_{q-1}}
        # (the remaining qubit's p0+p1 == 1 drops out).
        # <Z_q>_out = cos(v_q) z_q - sin(v_q) * 2*Re[conj(a0)a1 * A_q B_q]
        for q in range(N_QUBITS):
            ch, msh, c1, s1, cv, sv2 = qtab[q]
            qn = (q + 1) % N_QUBITS
            qp = (q - 1) % N_QUBITS
            a_re = nq[qn] * ch
            a_im = zq[qn] * msh
            b_re = p0[qp] + p1[qp] * c1
            b_im = p1[qp] * s1
            s_re = a_re * b_re - a_im * b_im
            s_im = a_re * b_im + a_im * b_re
            half_x = xre[q] * s_re - xim[q] * s_im   # <X_q>/2 on the phased state
            o_ref[8 + q, pl.ds(row, SUB), :] = cv * zq[q] - sv2 * half_x

    if n_strips == 1:
        process_strip(0)
    else:
        def body(s, carry):
            process_strip(pl.multiple_of(s * SUB, SUB))
            return carry
        lax.fori_loop(0, n_strips, body, 0)


def fc_kernel(feat_ref, w1_ref, b1_ref, w2_ref, b2_ref, o_ref):
    """LeakyReLU -> fc1 -> LeakyReLU -> fc2 head on channel-major features (no transpose).

    feat_ref : (12, bs, 169)  inception output, channel-major
    w1_ref   : (12, 169, 64)  fc1 weight regrouped per channel
    b1_ref   : (1, 64)
    w2_ref   : (64, 128)      fc2 weight zero-padded to 128 output lanes
    b2_ref   : (1, 128)
    o_ref    : (bs, 128)
    """
    f = feat_ref[...]
    f = jnp.where(f > 0, f, NEG_SLOPE * f)          # LeakyReLU(0.1) on inception output
    w1 = w1_ref[...]
    acc = jnp.zeros((f.shape[1], w1.shape[-1]), jnp.float32)
    for c in range(f.shape[0]):
        acc = acc + jnp.dot(f[c], w1[c], preferred_element_type=jnp.float32)
    h = acc + b1_ref[...]
    h = jnp.where(h > 0, h, NEG_SLOPE * h)
    o_ref[...] = jnp.dot(h, w2_ref[...], preferred_element_type=jnp.float32) + b2_ref[...]


# ------------------------------ wrappers ------------------------------------

def im2col_4x4_s2(x):
    """x: (bs, 1, 28, 28) -> (bs, 13, 13, 16); feature order kh*4+kw matches torch.flatten."""
    cols = []
    for kh in range(4):
        for kw in range(4):
            cols.append(x[:, 0, kh:kh + 25:2, kw:kw + 25:2])
    return jnp.stack(cols, axis=-1)


def quantum_tables(qweights):
    """Weight-only table for the quantum branch (flat 1-D SMEM, stride 8 per qubit)."""
    w = qweights[0]                                  # (2 * n_qubits,)
    crz = w[:N_QUBITS]
    ry = w[N_QUBITS:2 * N_QUBITS]
    rows = []
    for q in range(N_QUBITS):
        wq = crz[q]
        wp = crz[(q - 1) % N_QUBITS]
        rows.append(jnp.stack([
            jnp.cos(0.5 * wq), -jnp.sin(0.5 * wq),   # A_q factor (uses qubit q+1)
            jnp.cos(wp), jnp.sin(wp),                # B_q factor (uses qubit q-1)
            jnp.cos(ry[q]), 2.0 * jnp.sin(ry[q]),    # final RY combine (2x folded in)
            jnp.zeros(()), jnp.zeros(()),
        ]))
    return jnp.concatenate(rows).astype(jnp.float32)  # (32,)


def run_inception(xp3, weff_flat, beff, qtab, r_pad, blk_rows):
    n_strips = blk_rows // SUB
    return pl.pallas_call(
        functools.partial(inception_kernel, n_strips=n_strips),
        out_shape=jax.ShapeDtypeStruct((12, r_pad, LANE), jnp.float32),
        grid=(r_pad // blk_rows,),
        in_specs=[
            pl.BlockSpec((16, blk_rows, LANE), lambda r: (0, r, 0)),
            pl.BlockSpec(memory_space=pltpu.MemorySpace.SMEM),
            pl.BlockSpec(memory_space=pltpu.MemorySpace.SMEM),
            pl.BlockSpec(memory_space=pltpu.MemorySpace.SMEM),
        ],
        out_specs=pl.BlockSpec((12, blk_rows, LANE), lambda r: (0, r, 0)),
        # patch blocks are fully independent -> parallel (v7x can split across its 2 TCs)
        compiler_params=pltpu.CompilerParams(dimension_semantics=("parallel",)),
    )(xp3, weff_flat, beff, qtab)


def run_fc(feat3, w1_3, b1, w2p, b2p):
    n_ch, bs, npos = feat3.shape
    hdim = w1_3.shape[-1]
    cpad = w2p.shape[-1]
    # TODO(synk): single-block head; add a batch grid (block ~256 rows, 'parallel') if bs grows large.
    return pl.pallas_call(
        fc_kernel,
        out_shape=jax.ShapeDtypeStruct((bs, cpad), jnp.float32),
        grid=(1,),
        in_specs=[
            pl.BlockSpec((n_ch, bs, npos), lambda i: (0, 0, 0)),
            pl.BlockSpec((n_ch, npos, hdim), lambda i: (0, 0, 0)),
            pl.BlockSpec((1, hdim), lambda i: (0, 0)),
            pl.BlockSpec((hdim, cpad), lambda i: (0, 0)),
            pl.BlockSpec((1, cpad), lambda i: (0, 0)),
        ],
        out_specs=pl.BlockSpec((bs, cpad), lambda i: (0, 0)),
    )(feat3, w1_3, b1.reshape(1, hdim), w2p, b2p.reshape(1, cpad))


def inception_net_forward(x, params):
    bs = x.shape[0]
    x = x.reshape(bs, 1, 28, 28).astype(jnp.float32)

    patches = im2col_4x4_s2(x)                       # (bs, 13, 13, 16)
    M = bs * 13 * 13
    rows = -(-M // LANE)                             # sublane rows of 128 patches
    units = -(-rows // SUB)                          # 8-row strips
    # Big blocks (<=256 rows) to amortize per-step overhead and enlarge DMAs, but keep
    # >=2 grid steps when possible so both v7x TensorCores get work.
    blk_units = max(1, min(MAX_BLOCK_UNITS, (units + 1) // 2))
    n_blocks = -(-units // blk_units)
    r_pad = n_blocks * blk_units * SUB
    m_pad = r_pad * LANE
    blk_rows = blk_units * SUB

    xp_t = patches.reshape(M, 16).T                  # (16, M) sublane-major patches
    xp3 = jnp.zeros((16, m_pad), jnp.float32).at[:, :M].set(xp_t).reshape(16, r_pad, LANE)

    # Fold the 1x1 conv into the 4x4 conv: c2(c1(x)) == xp @ W_eff + b_eff.
    w1c = params['conv1_w'].reshape(4)
    w2c = params['conv2_w'].reshape(8, 4, 16)                                  # (co, ci, kh*4+kw)
    weff_flat = jnp.einsum('c,ocp->po', w1c, w2c).reshape(16 * 8)              # flat idx p*8 + c
    beff = params['conv2_b'] + jnp.einsum('c,ocp->o', params['conv1_b'], w2c)  # (8,)

    qtab = quantum_tables(params['qweights'])

    out = run_inception(xp3, weff_flat, beff, qtab, r_pad, blk_rows)           # (12, r_pad, 128)

    # TODO(synk): original torch.cat(classic 4-D, quantum 2-D) is shape-inconsistent and the
    # 14x14 partial-window loop contradicts fc1=12*13*13; we use the 13x13 full patches and a
    # (bs, 4, 13, 13) channel map, matching the declared fc1 dimensions.
    # Channel-major features straight into the FC head: no (12,bs,169)->(bs,12,169)
    # transpose through HBM; the channel regrouping is folded into fc1_w.
    feat3 = out.reshape(12, m_pad)[:, :M].reshape(12, bs, 13 * 13)
    w1_3 = params['fc1_w'].reshape(12, 13 * 13, params['fc1_w'].shape[1])
    num_classes = params['fc2_w'].shape[1]
    w2p = jnp.zeros((params['fc2_w'].shape[0], LANE), jnp.float32).at[:, :num_classes].set(params['fc2_w'])
    b2p = jnp.zeros((LANE,), jnp.float32).at[:num_classes].set(params['fc2_b'])

    logits = run_fc(feat3, w1_3, params['fc1_b'], w2p, b2p)                    # (bs, 128)
    return logits[:, :num_classes]


# ------------------------ pure-JAX reference (check) -------------------------

def _quantum_ref_statevector(xp, qweights):
    """Exact statevector simulation of the circuit. xp: (M, 16) -> (M, 4)."""
    M = xp.shape[0]
    state = jnp.zeros((M, 16), jnp.complex64).at[:, 0].set(1.0).reshape(M, 2, 2, 2, 2)

    def apply_1q(st, U, q):
        U = jnp.broadcast_to(U, (st.shape[0], 2, 2))
        st = jnp.moveaxis(st, 1 + q, 4)
        st = jnp.einsum('mij,mabcj->mabci', U, st)
        return jnp.moveaxis(st, 4, 1 + q)

    H = jnp.array([[1, 1], [1, -1]], jnp.complex64) * (1.0 / np.sqrt(2.0))

    def RZ(theta):
        e0 = jnp.exp(-0.5j * theta)
        e1 = jnp.exp(0.5j * theta)
        z = jnp.zeros_like(e0)
        return jnp.stack([jnp.stack([e0, z], -1), jnp.stack([z, e1], -1)], -2)

    def RY(theta):
        c = jnp.cos(theta / 2).astype(jnp.complex64)
        s = jnp.sin(theta / 2).astype(jnp.complex64)
        return jnp.stack([jnp.stack([c, -s], -1), jnp.stack([s, c], -1)], -2)

    gates = ['RZ', 'RY', 'RZ', 'RY', 'RZ']
    for q in range(N_QUBITS):
        state = apply_1q(state, H, q)
        for i in range(5):
            idx = q * 5 + i
            if idx < 16:
                th = xp[:, idx]
                state = apply_1q(state, RZ(th) if gates[i] == 'RZ' else RY(th), q)
    for i in range(N_QUBITS):
        c, t = i, (i + 1) % N_QUBITS
        bc = jnp.arange(2).reshape([2 if a == c else 1 for a in range(4)])
        bt = jnp.arange(2).reshape([2 if a == t else 1 for a in range(4)])
        phase = jnp.where(bc == 1, jnp.exp(0.5j * qweights[0, i] * (2 * bt - 1)), 1.0 + 0j)
        state = state * jnp.broadcast_to(phase, (2, 2, 2, 2))[None]
    for q in range(N_QUBITS):
        state = apply_1q(state, RY(jnp.full((M,), qweights[0, N_QUBITS + q])), q)
    outs = []
    p = jnp.abs(state) ** 2
    for q in range(N_QUBITS):
        bq = jnp.arange(2).reshape([2 if a == q else 1 for a in range(4)])
        sign = jnp.broadcast_to(1 - 2 * bq, (2, 2, 2, 2)).astype(jnp.float32)
        outs.append(jnp.sum(p * sign[None], axis=(1, 2, 3, 4)))
    return jnp.stack(outs, axis=1)


def reference_forward(x, params):
    bs = x.shape[0]
    x = x.reshape(bs, 1, 28, 28).astype(jnp.float32)
    dn = ('NCHW', 'OIHW', 'NCHW')
    hp = lax.Precision.HIGHEST
    c1 = lax.conv_general_dilated(x, params['conv1_w'], (1, 1), 'VALID',
                                  dimension_numbers=dn, precision=hp) + params['conv1_b'].reshape(1, 4, 1, 1)
    c2 = lax.conv_general_dilated(c1, params['conv2_w'], (2, 2), 'VALID',
                                  dimension_numbers=dn, precision=hp) + params['conv2_b'].reshape(1, 8, 1, 1)
    patches = im2col_4x4_s2(x).reshape(bs * 169, 16)
    qo = _quantum_ref_statevector(patches, params['qweights'])
    qmap = qo.reshape(bs, 13, 13, 4).transpose(0, 3, 1, 2)
    inc = jnp.concatenate([c2, qmap], axis=1)
    lr = lambda t: jnp.where(t > 0, t, NEG_SLOPE * t)
    feat = lr(inc).reshape(bs, -1)
    h = lr(jnp.dot(feat, params['fc1_w'], precision=hp) + params['fc1_b'])
    return jnp.dot(h, params['fc2_w'], precision=hp) + params['fc2_b']


# ------------------------------ params & main --------------------------------

def init_params(key, num_classes):
    ks = jax.random.split(key, 8)
    return {
        'conv1_w': jax.random.normal(ks[0], (4, 1, 1, 1), jnp.float32) * 0.5,
        'conv1_b': jax.random.normal(ks[1], (4,), jnp.float32) * 0.1,
        'conv2_w': jax.random.normal(ks[2], (8, 4, 4, 4), jnp.float32) * 0.1,
        'conv2_b': jax.random.normal(ks[3], (8,), jnp.float32) * 0.1,
        'qweights': jax.random.normal(ks[4], (DEPTH, 2 * N_QUBITS), jnp.float32),
        'fc1_w': jax.random.normal(ks[5], (12 * 13 * 13, 64), jnp.float32) * 0.02,
        'fc1_b': jnp.zeros((64,), jnp.float32),
        'fc2_w': jax.random.normal(ks[6], (64, 10), jnp.float32) * 0.1,
        'fc2_b': jnp.zeros((10,), jnp.float32),
    }


if __name__ == "__main__":
    key = jax.random.PRNGKey(0)
    kx, kp = jax.random.split(key)
    num_classes = 10
    params = init_params(kp, num_classes)
    fwd = jax.jit(inception_net_forward)

    # Primary small-shape check (bs=2: single grid step, single strip).
    bs = 2
    x = jax.random.normal(kx, (bs, 1, 28, 28), jnp.float32)
    out = jax.block_until_ready(fwd(x, params))
    assert out.shape == (bs, num_classes)
    ref = reference_forward(x, params)
    np.testing.assert_allclose(np.asarray(out), np.asarray(ref), rtol=2e-2, atol=2e-2)

    # Secondary check exercising the multi-block grid + in-kernel strip loop (bs=16).
    bs2 = 16
    x2 = jax.random.normal(jax.random.PRNGKey(1), (bs2, 1, 28, 28), jnp.float32)
    out2 = jax.block_until_ready(fwd(x2, params))
    ref2 = reference_forward(x2, params)
    np.testing.assert_allclose(np.asarray(out2), np.asarray(ref2), rtol=2e-2, atol=2e-2)

    print("KERNEL_OK")
</pallas_src>

<mosaic_0001>
module attributes {stable_mosaic.version = 11 : i64} {
  func.func @inception_kernel(%arg0: i32, %arg1: memref<16x8x128xf32, #tpu.memory_space<vmem>>, %arg2: memref<128xf32, #tpu.memory_space<smem>>, %arg3: memref<8xf32, #tpu.memory_space<smem>>, %arg4: memref<32xf32, #tpu.memory_space<smem>>, %arg5: memref<12x8x128xf32, #tpu.memory_space<vmem>>) attributes {dimension_semantics = [#tpu.dimension_semantics<parallel>], iteration_bounds = array<i64: 1>, scalar_prefetch = 0 : i64, scratch_operands = 0 : i64, tpu.core_type = #tpu.core_type<tc>, window_params = [{transform_indices = @transform_0, window_bounds = array<i64: 16, 8, 128>}, {transform_indices = @transform_1, window_bounds = array<i64: 128>}, {transform_indices = @transform_2, window_bounds = array<i64: 8>}, {transform_indices = @transform_3, window_bounds = array<i64: 32>}, {transform_indices = @transform_4, window_bounds = array<i64: 12, 8, 128>}]} {
    %c0 = arith.constant 0 : index
    %0 = memref.load %arg2[%c0] : memref<128xf32, #tpu.memory_space<smem>>
    %c1 = arith.constant 1 : index
    %1 = memref.load %arg2[%c1] : memref<128xf32, #tpu.memory_space<smem>>
    %c2 = arith.constant 2 : index
    %2 = memref.load %arg2[%c2] : memref<128xf32, #tpu.memory_space<smem>>
    %c3 = arith.constant 3 : index
    %3 = memref.load %arg2[%c3] : memref<128xf32, #tpu.memory_space<smem>>
    %c4 = arith.constant 4 : index
    %4 = memref.load %arg2[%c4] : memref<128xf32, #tpu.memory_space<smem>>
    %c5 = arith.constant 5 : index
    %5 = memref.load %arg2[%c5] : memref<128xf32, #tpu.memory_space<smem>>
    %c6 = arith.constant 6 : index
    %6 = memref.load %arg2[%c6] : memref<128xf32, #tpu.memory_space<smem>>
    %c7 = arith.constant 7 : index
    %7 = memref.load %arg2[%c7] : memref<128xf32, #tpu.memory_space<smem>>
    %c8 = arith.constant 8 : index
    %8 = memref.load %arg2[%c8] : memref<128xf32, #tpu.memory_space<smem>>
    %c9 = arith.constant 9 : index
    %9 = memref.load %arg2[%c9] : memref<128xf32, #tpu.memory_space<smem>>
    %c10 = arith.constant 10 : index
    %10 = memref.load %arg2[%c10] : memref<128xf32, #tpu.memory_space<smem>>
    %c11 = arith.constant 11 : index
    %11 = memref.load %arg2[%c11] : memref<128xf32, #tpu.memory_space<smem>>
    %c12 = arith.constant 12 : index
    %12 = memref.load %arg2[%c12] : memref<128xf32, #tpu.memory_space<smem>>
    %c13 = arith.constant 13 : index
    %13 = memref.load %arg2[%c13] : memref<128xf32, #tpu.memory_space<smem>>
    %c14 = arith.constant 14 : index
    %14 = memref.load %arg2[%c14] : memref<128xf32, #tpu.memory_space<smem>>
    %c15 = arith.constant 15 : index
    %15 = memref.load %arg2[%c15] : memref<128xf32, #tpu.memory_space<smem>>
    %c16 = arith.constant 16 : index
    %16 = memref.load %arg2[%c16] : memref<128xf32, #tpu.memory_space<smem>>
    %c17 = arith.constant 17 : index
    %17 = memref.load %arg2[%c17] : memref<128xf32, #tpu.memory_space<smem>>
    %c18 = arith.constant 18 : index
    %18 = memref.load %arg2[%c18] : memref<128xf32, #tpu.memory_space<smem>>
    %c19 = arith.constant 19 : index
    %19 = memref.load %arg2[%c19] : memref<128xf32, #tpu.memory_space<smem>>
    %c20 = arith.constant 20 : index
    %20 = memref.load %arg2[%c20] : memref<128xf32, #tpu.memory_space<smem>>
    %c21 = arith.constant 21 : index
    %21 = memref.load %arg2[%c21] : memref<128xf32, #tpu.memory_space<smem>>
    %c22 = arith.constant 22 : index
    %22 = memref.load %arg2[%c22] : memref<128xf32, #tpu.memory_space<smem>>
    %c23 = arith.constant 23 : index
    %23 = memref.load %arg2[%c23] : memref<128xf32, #tpu.memory_space<smem>>
    %c24 = arith.constant 24 : index
    %24 = memref.load %arg2[%c24] : memref<128xf32, #tpu.memory_space<smem>>
    %c25 = arith.constant 25 : index
    %25 = memref.load %arg2[%c25] : memref<128xf32, #tpu.memory_space<smem>>
    %c26 = arith.constant 26 : index
    %26 = memref.load %arg2[%c26] : memref<128xf32, #tpu.memory_space<smem>>
    %c27 = arith.constant 27 : index
    %27 = memref.load %arg2[%c27] : memref<128xf32, #tpu.memory_space<smem>>
    %c28 = arith.constant 28 : index
    %28 = memref.load %arg2[%c28] : memref<128xf32, #tpu.memory_space<smem>>
    %c29 = arith.constant 29 : index
    %29 = memref.load %arg2[%c29] : memref<128xf32, #tpu.memory_space<smem>>
    %c30 = arith.constant 30 : index
    %30 = memref.load %arg2[%c30] : memref<128xf32, #tpu.memory_space<smem>>
    %c31 = arith.constant 31 : index
    %31 = memref.load %arg2[%c31] : memref<128xf32, #tpu.memory_space<smem>>
    %c32 = arith.constant 32 : index
    %32 = memref.load %arg2[%c32] : memref<128xf32, #tpu.memory_space<smem>>
    %c33 = arith.constant 33 : index
    %33 = memref.load %arg2[%c33] : memref<128xf32, #tpu.memory_space<smem>>
    %c34 = arith.constant 34 : index
    %34 = memref.load %arg2[%c34] : memref<128xf32, #tpu.memory_space<smem>>
    %c35 = arith.constant 35 : index
    %35 = memref.load %arg2[%c35] : memref<128xf32, #tpu.memory_space<smem>>
    %c36 = arith.constant 36 : index
    %36 = memref.load %arg2[%c36] : memref<128xf32, #tpu.memory_space<smem>>
    %c37 = arith.constant 37 : index
    %37 = memref.load %arg2[%c37] : memref<128xf32, #tpu.memory_space<smem>>
    %c38 = arith.constant 38 : index
    %38 = memref.load %arg2[%c38] : memref<128xf32, #tpu.memory_space<smem>>
    %c39 = arith.constant 39 : index
    %39 = memref.load %arg2[%c39] : memref<128xf32, #tpu.memory_space<smem>>
    %c40 = arith.constant 40 : index
    %40 = memref.load %arg2[%c40] : memref<128xf32, #tpu.memory_space<smem>>
    %c41 = arith.constant 41 : index
    %41 = memref.load %arg2[%c41] : memref<128xf32, #tpu.memory_space<smem>>
    %c42 = arith.constant 42 : index
    %42 = memref.load %arg2[%c42] : memref<128xf32, #tpu.memory_space<smem>>
    %c43 = arith.constant 43 : index
    %43 = memref.load %arg2[%c43] : memref<128xf32, #tpu.memory_space<smem>>
    %c44 = arith.constant 44 : index
    %44 = memref.load %arg2[%c44] : memref<128xf32, #tpu.memory_space<smem>>
    %c45 = arith.constant 45 : index
    %45 = memref.load %arg2[%c45] : memref<128xf32, #tpu.memory_space<smem>>
    %c46 = arith.constant 46 : index
    %46 = memref.load %arg2[%c46] : memref<128xf32, #tpu.memory_space<smem>>
    %c47 = arith.constant 47 : index
    %47 = memref.load %arg2[%c47] : memref<128xf32, #tpu.memory_space<smem>>
    %c48 = arith.constant 48 : index
    %48 = memref.load %arg2[%c48] : memref<128xf32, #tpu.memory_space<smem>>
    %c49 = arith.constant 49 : index
    %49 = memref.load %arg2[%c49] : memref<128xf32, #tpu.memory_space<smem>>
    %c50 = arith.constant 50 : index
    %50 = memref.load %arg2[%c50] : memref<128xf32, #tpu.memory_space<smem>>
    %c51 = arith.constant 51 : index
    %51 = memref.load %arg2[%c51] : memref<128xf32, #tpu.memory_space<smem>>
    %c52 = arith.constant 52 : index
    %52 = memref.load %arg2[%c52] : memref<128xf32, #tpu.memory_space<smem>>
    %c53 = arith.constant 53 : index
    %53 = memref.load %arg2[%c53] : memref<128xf32, #tpu.memory_space<smem>>
    %c54 = arith.constant 54 : index
    %54 = memref.load %arg2[%c54] : memref<128xf32, #tpu.memory_space<smem>>
    %c55 = arith.constant 55 : index
    %55 = memref.load %arg2[%c55] : memref<128xf32, #tpu.memory_space<smem>>
    %c56 = arith.constant 56 : index
    %56 = memref.load %arg2[%c56] : memref<128xf32, #tpu.memory_space<smem>>
    %c57 = arith.constant 57 : index
    %57 = memref.load %arg2[%c57] : memref<128xf32, #tpu.memory_space<smem>>
    %c58 = arith.constant 58 : index
    %58 = memref.load %arg2[%c58] : memref<128xf32, #tpu.memory_space<smem>>
    %c59 = arith.constant 59 : index
    %59 = memref.load %arg2[%c59] : memref<128xf32, #tpu.memory_space<smem>>
    %c60 = arith.constant 60 : index
    %60 = memref.load %arg2[%c60] : memref<128xf32, #tpu.memory_space<smem>>
    %c61 = arith.constant 61 : index
    %61 = memref.load %arg2[%c61] : memref<128xf32, #tpu.memory_space<smem>>
    %c62 = arith.constant 62 : index
    %62 = memref.load %arg2[%c62] : memref<128xf32, #tpu.memory_space<smem>>
    %c63 = arith.constant 63 : index
    %63 = memref.load %arg2[%c63] : memref<128xf32, #tpu.memory_space<smem>>
    %c64 = arith.constant 64 : index
    %64 = memref.load %arg2[%c64] : memref<128xf32, #tpu.memory_space<smem>>
    %c65 = arith.constant 65 : index
    %65 = memref.load %arg2[%c65] : memref<128xf32, #tpu.memory_space<smem>>
    %c66 = arith.constant 66 : index
    %66 = memref.load %arg2[%c66] : memref<128xf32, #tpu.memory_space<smem>>
    %c67 = arith.constant 67 : index
    %67 = memref.load %arg2[%c67] : memref<128xf32, #tpu.memory_space<smem>>
    %c68 = arith.constant 68 : index
    %68 = memref.load %arg2[%c68] : memref<128xf32, #tpu.memory_space<smem>>
    %c69 = arith.constant 69 : index
    %69 = memref.load %arg2[%c69] : memref<128xf32, #tpu.memory_space<smem>>
    %c70 = arith.constant 70 : index
    %70 = memref.load %arg2[%c70] : memref<128xf32, #tpu.memory_space<smem>>
    %c71 = arith.constant 71 : index
    %71 = memref.load %arg2[%c71] : memref<128xf32, #tpu.memory_space<smem>>
    %c72 = arith.constant 72 : index
    %72 = memref.load %arg2[%c72] : memref<128xf32, #tpu.memory_space<smem>>
    %c73 = arith.constant 73 : index
    %73 = memref.load %arg2[%c73] : memref<128xf32, #tpu.memory_space<smem>>
    %c74 = arith.constant 74 : index
    %74 = memref.load %arg2[%c74] : memref<128xf32, #tpu.memory_space<smem>>
    %c75 = arith.constant 75 : index
    %75 = memref.load %arg2[%c75] : memref<128xf32, #tpu.memory_space<smem>>
    %c76 = arith.constant 76 : index
    %76 = memref.load %arg2[%c76] : memref<128xf32, #tpu.memory_space<smem>>
    %c77 = arith.constant 77 : index
    %77 = memref.load %arg2[%c77] : memref<128xf32, #tpu.memory_space<smem>>
    %c78 = arith.constant 78 : index
    %78 = memref.load %arg2[%c78] : memref<128xf32, #tpu.memory_space<smem>>
    %c79 = arith.constant 79 : index
    %79 = memref.load %arg2[%c79] : memref<128xf32, #tpu.memory_space<smem>>
    %c80 = arith.constant 80 : index
    %80 = memref.load %arg2[%c80] : memref<128xf32, #tpu.memory_space<smem>>
    %c81 = arith.constant 81 : index
    %81 = memref.load %arg2[%c81] : memref<128xf32, #tpu.memory_space<smem>>
    %c82 = arith.constant 82 : index
    %82 = memref.load %arg2[%c82] : memref<128xf32, #tpu.memory_space<smem>>
    %c83 = arith.constant 83 : index
    %83 = memref.load %arg2[%c83] : memref<128xf32, #tpu.memory_space<smem>>
    %c84 = arith.constant 84 : index
    %84 = memref.load %arg2[%c84] : memref<128xf32, #tpu.memory_space<smem>>
    %c85 = arith.constant 85 : index
    %85 = memref.load %arg2[%c85] : memref<128xf32, #tpu.memory_space<smem>>
    %c86 = arith.constant 86 : index
    %86 = memref.load %arg2[%c86] : memref<128xf32, #tpu.memory_space<smem>>
    %c87 = arith.constant 87 : index
    %87 = memref.load %arg2[%c87] : memref<128xf32, #tpu.memory_space<smem>>
    %c88 = arith.constant 88 : index
    %88 = memref.load %arg2[%c88] : memref<128xf32, #tpu.memory_space<smem>>
    %c89 = arith.constant 89 : index
    %89 = memref.load %arg2[%c89] : memref<128xf32, #tpu.memory_space<smem>>
    %c90 = arith.constant 90 : index
    %90 = memref.load %arg2[%c90] : memref<128xf32, #tpu.memory_space<smem>>
    %c91 = arith.constant 91 : index
    %91 = memref.load %arg2[%c91] : memref<128xf32, #tpu.memory_space<smem>>
    %c92 = arith.constant 92 : index
    %92 = memref.load %arg2[%c92] : memref<128xf32, #tpu.memory_space<smem>>
    %c93 = arith.constant 93 : index
    %93 = memref.load %arg2[%c93] : memref<128xf32, #tpu.memory_space<smem>>
    %c94 = arith.constant 94 : index
    %94 = memref.load %arg2[%c94] : memref<128xf32, #tpu.memory_space<smem>>
    %c95 = arith.constant 95 : index
    %95 = memref.load %arg2[%c95] : memref<128xf32, #tpu.memory_space<smem>>
    %c96 = arith.constant 96 : index
    %96 = memref.load %arg2[%c96] : memref<128xf32, #tpu.memory_space<smem>>
    %c97 = arith.constant 97 : index
    %97 = memref.load %arg2[%c97] : memref<128xf32, #tpu.memory_space<smem>>
    %c98 = arith.constant 98 : index
    %98 = memref.load %arg2[%c98] : memref<128xf32, #tpu.memory_space<smem>>
    %c99 = arith.constant 99 : index
    %99 = memref.load %arg2[%c99] : memref<128xf32, #tpu.memory_space<smem>>
    %c100 = arith.constant 100 : index
    %100 = memref.load %arg2[%c100] : memref<128xf32, #tpu.memory_space<smem>>
    %c101 = arith.constant 101 : index
    %101 = memref.load %arg2[%c101] : memref<128xf32, #tpu.memory_space<smem>>
    %c102 = arith.constant 102 : index
    %102 = memref.load %arg2[%c102] : memref<128xf32, #tpu.memory_space<smem>>
    %c103 = arith.constant 103 : index
    %103 = memref.load %arg2[%c103] : memref<128xf32, #tpu.memory_space<smem>>
    %c104 = arith.constant 104 : index
    %104 = memref.load %arg2[%c104] : memref<128xf32, #tpu.memory_space<smem>>
    %c105 = arith.constant 105 : index
    %105 = memref.load %arg2[%c105] : memref<128xf32, #tpu.memory_space<smem>>
    %c106 = arith.constant 106 : index
    %106 = memref.load %arg2[%c106] : memref<128xf32, #tpu.memory_space<smem>>
    %c107 = arith.constant 107 : index
    %107 = memref.load %arg2[%c107] : memref<128xf32, #tpu.memory_space<smem>>
    %c108 = arith.constant 108 : index
    %108 = memref.load %arg2[%c108] : memref<128xf32, #tpu.memory_space<smem>>
    %c109 = arith.constant 109 : index
    %109 = memref.load %arg2[%c109] : memref<128xf32, #tpu.memory_space<smem>>
    %c110 = arith.constant 110 : index
    %110 = memref.load %arg2[%c110] : memref<128xf32, #tpu.memory_space<smem>>
    %c111 = arith.constant 111 : index
    %111 = memref.load %arg2[%c111] : memref<128xf32, #tpu.memory_space<smem>>
    %c112 = arith.constant 112 : index
    %112 = memref.load %arg2[%c112] : memref<128xf32, #tpu.memory_space<smem>>
    %c113 = arith.constant 113 : index
    %113 = memref.load %arg2[%c113] : memref<128xf32, #tpu.memory_space<smem>>
    %c114 = arith.constant 114 : index
    %114 = memref.load %arg2[%c114] : memref<128xf32, #tpu.memory_space<smem>>
    %c115 = arith.constant 115 : index
    %115 = memref.load %arg2[%c115] : memref<128xf32, #tpu.memory_space<smem>>
    %c116 = arith.constant 116 : index
    %116 = memref.load %arg2[%c116] : memref<128xf32, #tpu.memory_space<smem>>
    %c117 = arith.constant 117 : index
    %117 = memref.load %arg2[%c117] : memref<128xf32, #tpu.memory_space<smem>>
    %c118 = arith.constant 118 : index
    %118 = memref.load %arg2[%c118] : memref<128xf32, #tpu.memory_space<smem>>
    %c119 = arith.constant 119 : index
    %119 = memref.load %arg2[%c119] : memref<128xf32, #tpu.memory_space<smem>>
    %c120 = arith.constant 120 : index
    %120 = memref.load %arg2[%c120] : memref<128xf32, #tpu.memory_space<smem>>
    %c121 = arith.constant 121 : index
    %121 = memref.load %arg2[%c121] : memref<128xf32, #tpu.memory_space<smem>>
    %c122 = arith.constant 122 : index
    %122 = memref.load %arg2[%c122] : memref<128xf32, #tpu.memory_space<smem>>
    %c123 = arith.constant 123 : index
    %123 = memref.load %arg2[%c123] : memref<128xf32, #tpu.memory_space<smem>>
    %c124 = arith.constant 124 : index
    %124 = memref.load %arg2[%c124] : memref<128xf32, #tpu.memory_space<smem>>
    %c125 = arith.constant 125 : index
    %125 = memref.load %arg2[%c125] : memref<128xf32, #tpu.memory_space<smem>>
    %c126 = arith.constant 126 : index
    %126 = memref.load %arg2[%c126] : memref<128xf32, #tpu.memory_space<smem>>
    %c127 = arith.constant 127 : index
    %127 = memref.load %arg2[%c127] : memref<128xf32, #tpu.memory_space<smem>>
    %c0_0 = arith.constant 0 : index
    %128 = memref.load %arg3[%c0_0] : memref<8xf32, #tpu.memory_space<smem>>
    %c1_1 = arith.constant 1 : index
    %129 = memref.load %arg3[%c1_1] : memref<8xf32, #tpu.memory_space<smem>>
    %c2_2 = arith.constant 2 : index
    %130 = memref.load %arg3[%c2_2] : memref<8xf32, #tpu.memory_space<smem>>
    %c3_3 = arith.constant 3 : index
    %131 = memref.load %arg3[%c3_3] : memref<8xf32, #tpu.memory_space<smem>>
    %c4_4 = arith.constant 4 : index
    %132 = memref.load %arg3[%c4_4] : memref<8xf32, #tpu.memory_space<smem>>
    %c5_5 = arith.constant 5 : index
    %133 = memref.load %arg3[%c5_5] : memref<8xf32, #tpu.memory_space<smem>>
    %c6_6 = arith.constant 6 : index
    %134 = memref.load %arg3[%c6_6] : memref<8xf32, #tpu.memory_space<smem>>
    %c7_7 = arith.constant 7 : index
    %135 = memref.load %arg3[%c7_7] : memref<8xf32, #tpu.memory_space<smem>>
    %c0_8 = arith.constant 0 : index
    %136 = memref.load %arg4[%c0_8] : memref<32xf32, #tpu.memory_space<smem>>
    %c1_9 = arith.constant 1 : index
    %137 = memref.load %arg4[%c1_9] : memref<32xf32, #tpu.memory_space<smem>>
    %c2_10 = arith.constant 2 : index
    %138 = memref.load %arg4[%c2_10] : memref<32xf32, #tpu.memory_space<smem>>
    %c3_11 = arith.constant 3 : index
    %139 = memref.load %arg4[%c3_11] : memref<32xf32, #tpu.memory_space<smem>>
    %c4_12 = arith.constant 4 : index
    %140 = memref.load %arg4[%c4_12] : memref<32xf32, #tpu.memory_space<smem>>
    %c5_13 = arith.constant 5 : index
    %141 = memref.load %arg4[%c5_13] : memref<32xf32, #tpu.memory_space<smem>>
    %c8_14 = arith.constant 8 : index
    %142 = memref.load %arg4[%c8_14] : memref<32xf32, #tpu.memory_space<smem>>
    %c9_15 = arith.constant 9 : index
    %143 = memref.load %arg4[%c9_15] : memref<32xf32, #tpu.memory_space<smem>>
    %c10_16 = arith.constant 10 : index
    %144 = memref.load %arg4[%c10_16] : memref<32xf32, #tpu.memory_space<smem>>
    %c11_17 = arith.constant 11 : index
    %145 = memref.load %arg4[%c11_17] : memref<32xf32, #tpu.memory_space<smem>>
    %c12_18 = arith.constant 12 : index
    %146 = memref.load %arg4[%c12_18] : memref<32xf32, #tpu.memory_space<smem>>
    %c13_19 = arith.constant 13 : index
    %147 = memref.load %arg4[%c13_19] : memref<32xf32, #tpu.memory_space<smem>>
    %c16_20 = arith.constant 16 : index
    %148 = memref.load %arg4[%c16_20] : memref<32xf32, #tpu.memory_space<smem>>
    %c17_21 = arith.constant 17 : index
    %149 = memref.load %arg4[%c17_21] : memref<32xf32, #tpu.memory_space<smem>>
    %c18_22 = arith.constant 18 : index
    %150 = memref.load %arg4[%c18_22] : memref<32xf32, #tpu.memory_space<smem>>
    %c19_23 = arith.constant 19 : index
    %151 = memref.load %arg4[%c19_23] : memref<32xf32, #tpu.memory_space<smem>>
    %c20_24 = arith.constant 20 : index
    %152 = memref.load %arg4[%c20_24] : memref<32xf32, #tpu.memory_space<smem>>
    %c21_25 = arith.constant 21 : index
    %153 = memref.load %arg4[%c21_25] : memref<32xf32, #tpu.memory_space<smem>>
    %c24_26 = arith.constant 24 : index
    %154 = memref.load %arg4[%c24_26] : memref<32xf32, #tpu.memory_space<smem>>
    %c25_27 = arith.constant 25 : index
    %155 = memref.load %arg4[%c25_27] : memref<32xf32, #tpu.memory_space<smem>>
    %c26_28 = arith.constant 26 : index
    %156 = memref.load %arg4[%c26_28] : memref<32xf32, #tpu.memory_space<smem>>
    %c27_29 = arith.constant 27 : index
    %157 = memref.load %arg4[%c27_29] : memref<32xf32, #tpu.memory_space<smem>>
    %c28_30 = arith.constant 28 : index
    %158 = memref.load %arg4[%c28_30] : memref<32xf32, #tpu.memory_space<smem>>
    %c29_31 = arith.constant 29 : index
    %159 = memref.load %arg4[%c29_31] : memref<32xf32, #tpu.memory_space<smem>>
    %c0_32 = arith.constant 0 : index
    %c0_33 = arith.constant 0 : index
    %c0_34 = arith.constant 0 : index
    %160 = vector.load %arg1[%c0_32, %c0_33, %c0_34] : memref<16x8x128xf32, #tpu.memory_space<vmem>>, vector<1x8x128xf32>
    %161 = vector.shape_cast %160 : vector<1x8x128xf32> to vector<8x128xf32>
    %c1_35 = arith.constant 1 : index
    %c0_36 = arith.constant 0 : index
    %c0_37 = arith.constant 0 : index
    %162 = vector.load %arg1[%c1_35, %c0_36, %c0_37] : memref<16x8x128xf32, #tpu.memory_space<vmem>>, vector<1x8x128xf32>
    %163 = vector.shape_cast %162 : vector<1x8x128xf32> to vector<8x128xf32>
    %c2_38 = arith.constant 2 : index
    %c0_39 = arith.constant 0 : index
    %c0_40 = arith.constant 0 : index
    %164 = vector.load %arg1[%c2_38, %c0_39, %c0_40] : memref<16x8x128xf32, #tpu.memory_space<vmem>>, vector<1x8x128xf32>
    %165 = vector.shape_cast %164 : vector<1x8x128xf32> to vector<8x128xf32>
    %c3_41 = arith.constant 3 : index
    %c0_42 = arith.constant 0 : index
    %c0_43 = arith.constant 0 : index
    %166 = vector.load %arg1[%c3_41, %c0_42, %c0_43] : memref<16x8x128xf32, #tpu.memory_space<vmem>>, vector<1x8x128xf32>
    %167 = vector.shape_cast %166 : vector<1x8x128xf32> to vector<8x128xf32>
    %c4_44 = arith.constant 4 : index
    %c0_45 = arith.constant 0 : index
    %c0_46 = arith.constant 0 : index
    %168 = vector.load %arg1[%c4_44, %c0_45, %c0_46] : memref<16x8x128xf32, #tpu.memory_space<vmem>>, vector<1x8x128xf32>
    %169 = vector.shape_cast %168 : vector<1x8x128xf32> to vector<8x128xf32>
    %c5_47 = arith.constant 5 : index
    %c0_48 = arith.constant 0 : index
    %c0_49 = arith.constant 0 : index
    %170 = vector.load %arg1[%c5_47, %c0_48, %c0_49] : memref<16x8x128xf32, #tpu.memory_space<vmem>>, vector<1x8x128xf32>
    %171 = vector.shape_cast %170 : vector<1x8x128xf32> to vector<8x128xf32>
    %c6_50 = arith.constant 6 : index
    %c0_51 = arith.constant 0 : index
    %c0_52 = arith.constant 0 : index
    %172 = vector.load %arg1[%c6_50, %c0_51, %c0_52] : memref<16x8x128xf32, #tpu.memory_space<vmem>>, vector<1x8x128xf32>
    %173 = vector.shape_cast %172 : vector<1x8x128xf32> to vector<8x128xf32>
    %c7_53 = arith.constant 7 : index
    %c0_54 = arith.constant 0 : index
    %c0_55 = arith.constant 0 : index
    %174 = vector.load %arg1[%c7_53, %c0_54, %c0_55] : memref<16x8x128xf32, #tpu.memory_space<vmem>>, vector<1x8x128xf32>
    %175 = vector.shape_cast %174 : vector<1x8x128xf32> to vector<8x128xf32>
    %c8_56 = arith.constant 8 : index
    %c0_57 = arith.constant 0 : index
    %c0_58 = arith.constant 0 : index
    %176 = vector.load %arg1[%c8_56, %c0_57, %c0_58] : memref<16x8x128xf32, #tpu.memory_space<vmem>>, vector<1x8x128xf32>
    %177 = vector.shape_cast %176 : vector<1x8x128xf32> to vector<8x128xf32>
    %c9_59 = arith.constant 9 : index
    %c0_60 = arith.constant 0 : index
    %c0_61 = arith.constant 0 : index
    %178 = vector.load %arg1[%c9_59, %c0_60, %c0_61] : memref<16x8x128xf32, #tpu.memory_space<vmem>>, vector<1x8x128xf32>
    %179 = vector.shape_cast %178 : vector<1x8x128xf32> to vector<8x128xf32>
    %c10_62 = arith.constant 10 : index
    %c0_63 = arith.constant 0 : index
    %c0_64 = arith.constant 0 : index
    %180 = vector.load %arg1[%c10_62, %c0_63, %c0_64] : memref<16x8x128xf32, #tpu.memory_space<vmem>>, vector<1x8x128xf32>
    %181 = vector.shape_cast %180 : vector<1x8x128xf32> to vector<8x128xf32>
    %c11_65 = arith.constant 11 : index
    %c0_66 = arith.constant 0 : index
    %c0_67 = arith.constant 0 : index
    %182 = vector.load %arg1[%c11_65, %c0_66, %c0_67] : memref<16x8x128xf32, #tpu.memory_space<vmem>>, vector<1x8x128xf32>
    %183 = vector.shape_cast %182 : vector<1x8x128xf32> to vector<8x128xf32>
    %c12_68 = arith.constant 12 : index
    %c0_69 = arith.constant 0 : index
    %c0_70 = arith.constant 0 : index
    %184 = vector.load %arg1[%c12_68, %c0_69, %c0_70] : memref<16x8x128xf32, #tpu.memory_space<vmem>>, vector<1x8x128xf32>
    %185 = vector.shape_cast %184 : vector<1x8x128xf32> to vector<8x128xf32>
    %c13_71 = arith.constant 13 : index
    %c0_72 = arith.constant 0 : index
    %c0_73 = arith.constant 0 : index
    %186 = vector.load %arg1[%c13_71, %c0_72, %c0_73] : memref<16x8x128xf32, #tpu.memory_space<vmem>>, vector<1x8x128xf32>
    %187 = vector.shape_cast %186 : vector<1x8x128xf32> to vector<8x128xf32>
    %c14_74 = arith.constant 14 : index
    %c0_75 = arith.constant 0 : index
    %c0_76 = arith.constant 0 : index
    %188 = vector.load %arg1[%c14_74, %c0_75, %c0_76] : memref<16x8x128xf32, #tpu.memory_space<vmem>>, vector<1x8x128xf32>
    %189 = vector.shape_cast %188 : vector<1x8x128xf32> to vector<8x128xf32>
    %c15_77 = arith.constant 15 : index
    %c0_78 = arith.constant 0 : index
    %c0_79 = arith.constant 0 : index
    %190 = vector.load %arg1[%c15_77, %c0_78, %c0_79] : memref<16x8x128xf32, #tpu.memory_space<vmem>>, vector<1x8x128xf32>
    %191 = vector.shape_cast %190 : vector<1x8x128xf32> to vector<8x128xf32>
    %192 = vector.broadcast %0 : f32 to vector<8x128xf32>
    %193 = arith.mulf %192, %161 : vector<8x128xf32>
    %194 = vector.broadcast %8 : f32 to vector<8x128xf32>
    %195 = arith.mulf %194, %163 : vector<8x128xf32>
    %196 = arith.addf %193, %195 : vector<8x128xf32>
    %197 = vector.broadcast %16 : f32 to vector<8x128xf32>
    %198 = arith.mulf %197, %165 : vector<8x128xf32>
    %199 = arith.addf %196, %198 : vector<8x128xf32>
    %200 = vector.broadcast %24 : f32 to vector<8x128xf32>
    %201 = arith.mulf %200, %167 : vector<8x128xf32>
    %202 = arith.addf %199, %201 : vector<8x128xf32>
    %203 = vector.broadcast %32 : f32 to vector<8x128xf32>
    %204 = arith.mulf %203, %169 : vector<8x128xf32>
    %205 = arith.addf %202, %204 : vector<8x128xf32>
    %206 = vector.broadcast %40 : f32 to vector<8x128xf32>
    %207 = arith.mulf %206, %171 : vector<8x128xf32>
    %208 = arith.addf %205, %207 : vector<8x128xf32>
    %209 = vector.broadcast %48 : f32 to vector<8x128xf32>
    %210 = arith.mulf %209, %173 : vector<8x128xf32>
    %211 = arith.addf %208, %210 : vector<8x128xf32>
    %212 = vector.broadcast %56 : f32 to vector<8x128xf32>
    %213 = arith.mulf %212, %175 : vector<8x128xf32>
    %214 = arith.addf %211, %213 : vector<8x128xf32>
    %215 = vector.broadcast %64 : f32 to vector<8x128xf32>
    %216 = arith.mulf %215, %177 : vector<8x128xf32>
    %217 = arith.addf %214, %216 : vector<8x128xf32>
    %218 = vector.broadcast %72 : f32 to vector<8x128xf32>
    %219 = arith.mulf %218, %179 : vector<8x128xf32>
    %220 = arith.addf %217, %219 : vector<8x128xf32>
    %221 = vector.broadcast %80 : f32 to vector<8x128xf32>
    %222 = arith.mulf %221, %181 : vector<8x128xf32>
    %223 = arith.addf %220, %222 : vector<8x128xf32>
    %224 = vector.broadcast %88 : f32 to vector<8x128xf32>
    %225 = arith.mulf %224, %183 : vector<8x128xf32>
    %226 = arith.addf %223, %225 : vector<8x128xf32>
    %227 = vector.broadcast %96 : f32 to vector<8x128xf32>
    %228 = arith.mulf %227, %185 : vector<8x128xf32>
    %229 = arith.addf %226, %228 : vector<8x128xf32>
    %230 = vector.broadcast %104 : f32 to vector<8x128xf32>
    %231 = arith.mulf %230, %187 : vector<8x128xf32>
    %232 = arith.addf %229, %231 : vector<8x128xf32>
    %233 = vector.broadcast %112 : f32 to vector<8x128xf32>
    %234 = arith.mulf %233, %189 : vector<8x128xf32>
    %235 = arith.addf %232, %234 : vector<8x128xf32>
    %236 = vector.broadcast %120 : f32 to vector<8x128xf32>
    %237 = arith.mulf %236, %191 : vector<8x128xf32>
    %238 = arith.addf %235, %237 : vector<8x128xf32>
    %239 = vector.broadcast %128 : f32 to vector<8x128xf32>
    %240 = arith.addf %238, %239 : vector<8x128xf32>
    %c0_80 = arith.constant 0 : index
    %c0_81 = arith.constant 0 : index
    %c0_82 = arith.constant 0 : index
    %241 = vector.load %arg5[%c0_80, %c0_81, %c0_82] : memref<12x8x128xf32, #tpu.memory_space<vmem>>, vector<1x8x128xf32>
    %242 = vector.shape_cast %241 : vector<1x8x128xf32> to vector<8x128xf32>
    %243 = vector.shape_cast %240 : vector<8x128xf32> to vector<1x8x128xf32>
    tpu.vector_store %arg5[%c0_80, %c0_81, %c0_82], %243 {strides = array<i32>} : memref<12x8x128xf32, #tpu.memory_space<vmem>>, vector<1x8x128xf32>,
    %244 = vector.broadcast %1 : f32 to vector<8x128xf32>
    %245 = arith.mulf %244, %161 : vector<8x128xf32>
    %246 = vector.broadcast %9 : f32 to vector<8x128xf32>
    %247 = arith.mulf %246, %163 : vector<8x128xf32>
    %248 = arith.addf %245, %247 : vector<8x128xf32>
    %249 = vector.broadcast %17 : f32 to vector<8x128xf32>
    %250 = arith.mulf %249, %165 : vector<8x128xf32>
    %251 = arith.addf %248, %250 : vector<8x128xf32>
    %252 = vector.broadcast %25 : f32 to vector<8x128xf32>
    %253 = arith.mulf %252, %167 : vector<8x128xf32>
    %254 = arith.addf %251, %253 : vector<8x128xf32>
    %255 = vector.broadcast %33 : f32 to vector<8x128xf32>
    %256 = arith.mulf %255, %169 : vector<8x128xf32>
    %257 = arith.addf %254, %256 : vector<8x128xf32>
    %258 = vector.broadcast %41 : f32 to vector<8x128xf32>
    %259 = arith.mulf %258, %171 : vector<8x128xf32>
    %260 = arith.addf %257, %259 : vector<8x128xf32>
    %261 = vector.broadcast %49 : f32 to vector<8x128xf32>
    %262 = arith.mulf %261, %173 : vector<8x128xf32>
    %263 = arith.addf %260, %262 : vector<8x128xf32>
    %264 = vector.broadcast %57 : f32 to vector<8x128xf32>
    %265 = arith.mulf %264, %175 : vector<8x128xf32>
    %266 = arith.addf %263, %265 : vector<8x128xf32>
    %267 = vector.broadcast %65 : f32 to vector<8x128xf32>
    %268 = arith.mulf %267, %177 : vector<8x128xf32>
    %269 = arith.addf %266, %268 : vector<8x128xf32>
    %270 = vector.broadcast %73 : f32 to vector<8x128xf32>
    %271 = arith.mulf %270, %179 : vector<8x128xf32>
    %272 = arith.addf %269, %271 : vector<8x128xf32>
    %273 = vector.broadcast %81 : f32 to vector<8x128xf32>
    %274 = arith.mulf %273, %181 : vector<8x128xf32>
    %275 = arith.addf %272, %274 : vector<8x128xf32>
    %276 = vector.broadcast %89 : f32 to vector<8x128xf32>
    %277 = arith.mulf %276, %183 : vector<8x128xf32>
    %278 = arith.addf %275, %277 : vector<8x128xf32>
    %279 = vector.broadcast %97 : f32 to vector<8x128xf32>
    %280 = arith.mulf %279, %185 : vector<8x128xf32>
    %281 = arith.addf %278, %280 : vector<8x128xf32>
    %282 = vector.broadcast %105 : f32 to vector<8x128xf32>
    %283 = arith.mulf %282, %187 : vector<8x128xf32>
    %284 = arith.addf %281, %283 : vector<8x128xf32>
    %285 = vector.broadcast %113 : f32 to vector<8x128xf32>
    %286 = arith.mulf %285, %189 : vector<8x128xf32>
    %287 = arith.addf %284, %286 : vector<8x128xf32>
    %288 = vector.broadcast %121 : f32 to vector<8x128xf32>
    %289 = arith.mulf %288, %191 : vector<8x128xf32>
    %290 = arith.addf %287, %289 : vector<8x128xf32>
    %291 = vector.broadcast %129 : f32 to vector<8x128xf32>
    %292 = arith.addf %290, %291 : vector<8x128xf32>
    %c1_83 = arith.constant 1 : index
    %c0_84 = arith.constant 0 : index
    %c0_85 = arith.constant 0 : index
    %293 = vector.load %arg5[%c1_83, %c0_84, %c0_85] : memref<12x8x128xf32, #tpu.memory_space<vmem>>, vector<1x8x128xf32>
    %294 = vector.shape_cast %293 : vector<1x8x128xf32> to vector<8x128xf32>
    %295 = vector.shape_cast %292 : vector<8x128xf32> to vector<1x8x128xf32>
    tpu.vector_store %arg5[%c1_83, %c0_84, %c0_85], %295 {strides = array<i32>} : memref<12x8x128xf32, #tpu.memory_space<vmem>>, vector<1x8x128xf32>,
    %296 = vector.broadcast %2 : f32 to vector<8x128xf32>
    %297 = arith.mulf %296, %161 : vector<8x128xf32>
    %298 = vector.broadcast %10 : f32 to vector<8x128xf32>
    %299 = arith.mulf %298, %163 : vector<8x128xf32>
    %300 = arith.addf %297, %299 : vector<8x128xf32>
    %301 = vector.broadcast %18 : f32 to vector<8x128xf32>
    %302 = arith.mulf %301, %165 : vector<8x128xf32>
    %303 = arith.addf %300, %302 : vector<8x128xf32>
    %304 = vector.broadcast %26 : f32 to vector<8x128xf32>
    %305 = arith.mulf %304, %167 : vector<8x128xf32>
    %306 = arith.addf %303, %305 : vector<8x128xf32>
    %307 = vector.broadcast %34 : f32 to vector<8x128xf32>
    %308 = arith.mulf %307, %169 : vector<8x128xf32>
    %309 = arith.addf %306, %308 : vector<8x128xf32>
    %310 = vector.broadcast %42 : f32 to vector<8x128xf32>
    %311 = arith.mulf %310, %171 : vector<8x128xf32>
    %312 = arith.addf %309, %311 : vector<8x128xf32>
    %313 = vector.broadcast %50 : f32 to vector<8x128xf32>
    %314 = arith.mulf %313, %173 : vector<8x128xf32>
    %315 = arith.addf %312, %314 : vector<8x128xf32>
    %316 = vector.broadcast %58 : f32 to vector<8x128xf32>
    %317 = arith.mulf %316, %175 : vector<8x128xf32>
    %318 = arith.addf %315, %317 : vector<8x128xf32>
    %319 = vector.broadcast %66 : f32 to vector<8x128xf32>
    %320 = arith.mulf %319, %177 : vector<8x128xf32>
    %321 = arith.addf %318, %320 : vector<8x128xf32>
    %322 = vector.broadcast %74 : f32 to vector<8x128xf32>
    %323 = arith.mulf %322, %179 : vector<8x128xf32>
    %324 = arith.addf %321, %323 : vector<8x128xf32>
    %325 = vector.broadcast %82 : f32 to vector<8x128xf32>
    %326 = arith.mulf %325, %181 : vector<8x128xf32>
    %327 = arith.addf %324, %326 : vector<8x128xf32>
    %328 = vector.broadcast %90 : f32 to vector<8x128xf32>
    %329 = arith.mulf %328, %183 : vector<8x128xf32>
    %330 = arith.addf %327, %329 : vector<8x128xf32>
    %331 = vector.broadcast %98 : f32 to vector<8x128xf32>
    %332 = arith.mulf %331, %185 : vector<8x128xf32>
    %333 = arith.addf %330, %332 : vector<8x128xf32>
    %334 = vector.broadcast %106 : f32 to vector<8x128xf32>
    %335 = arith.mulf %334, %187 : vector<8x128xf32>
    %336 = arith.addf %333, %335 : vector<8x128xf32>
    %337 = vector.broadcast %114 : f32 to vector<8x128xf32>
    %338 = arith.mulf %337, %189 : vector<8x128xf32>
    %339 = arith.addf %336, %338 : vector<8x128xf32>
    %340 = vector.broadcast %122 : f32 to vector<8x128xf32>
    %341 = arith.mulf %340, %191 : vector<8x128xf32>
    %342 = arith.addf %339, %341 : vector<8x128xf32>
    %343 = vector.broadcast %130 : f32 to vector<8x128xf32>
    %344 = arith.addf %342, %343 : vector<8x128xf32>
    %c2_86 = arith.constant 2 : index
    %c0_87 = arith.constant 0 : index
    %c0_88 = arith.constant 0 : index
    %345 = vector.load %arg5[%c2_86, %c0_87, %c0_88] : memref<12x8x128xf32, #tpu.memory_space<vmem>>, vector<1x8x128xf32>
    %346 = vector.shape_cast %345 : vector<1x8x128xf32> to vector<8x128xf32>
    %347 = vector.shape_cast %344 : vector<8x128xf32> to vector<1x8x128xf32>
    tpu.vector_store %arg5[%c2_86, %c0_87, %c0_88], %347 {strides = array<i32>} : memref<12x8x128xf32, #tpu.memory_space<vmem>>, vector<1x8x128xf32>,
    %348 = vector.broadcast %3 : f32 to vector<8x128xf32>
    %349 = arith.mulf %348, %161 : vector<8x128xf32>
    %350 = vector.broadcast %11 : f32 to vector<8x128xf32>
    %351 = arith.mulf %350, %163 : vector<8x128xf32>
    %352 = arith.addf %349, %351 : vector<8x128xf32>
    %353 = vector.broadcast %19 : f32 to vector<8x128xf32>
    %354 = arith.mulf %353, %165 : vector<8x128xf32>
    %355 = arith.addf %352, %354 : vector<8x128xf32>
    %356 = vector.broadcast %27 : f32 to vector<8x128xf32>
    %357 = arith.mulf %356, %167 : vector<8x128xf32>
    %358 = arith.addf %355, %357 : vector<8x128xf32>
    %359 = vector.broadcast %35 : f32 to vector<8x128xf32>
    %360 = arith.mulf %359, %169 : vector<8x128xf32>
    %361 = arith.addf %358, %360 : vector<8x128xf32>
    %362 = vector.broadcast %43 : f32 to vector<8x128xf32>
    %363 = arith.mulf %362, %171 : vector<8x128xf32>
    %364 = arith.addf %361, %363 : vector<8x128xf32>
    %365 = vector.broadcast %51 : f32 to vector<8x128xf32>
    %366 = arith.mulf %365, %173 : vector<8x128xf32>
    %367 = arith.addf %364, %366 : vector<8x128xf32>
    %368 = vector.broadcast %59 : f32 to vector<8x128xf32>
    %369 = arith.mulf %368, %175 : vector<8x128xf32>
    %370 = arith.addf %367, %369 : vector<8x128xf32>
    %371 = vector.broadcast %67 : f32 to vector<8x128xf32>
    %372 = arith.mulf %371, %177 : vector<8x128xf32>
    %373 = arith.addf %370, %372 : vector<8x128xf32>
    %374 = vector.broadcast %75 : f32 to vector<8x128xf32>
    %375 = arith.mulf %374, %179 : vector<8x128xf32>
    %376 = arith.addf %373, %375 : vector<8x128xf32>
    %377 = vector.broadcast %83 : f32 to vector<8x128xf32>
    %378 = arith.mulf %377, %181 : vector<8x128xf32>
    %379 = arith.addf %376, %378 : vector<8x128xf32>
    %380 = vector.broadcast %91 : f32 to vector<8x128xf32>
    %381 = arith.mulf %380, %183 : vector<8x128xf32>
    %382 = arith.addf %379, %381 : vector<8x128xf32>
    %383 = vector.broadcast %99 : f32 to vector<8x128xf32>
    %384 = arith.mulf %383, %185 : vector<8x128xf32>
    %385 = arith.addf %382, %384 : vector<8x128xf32>
    %386 = vector.broadcast %107 : f32 to vector<8x128xf32>
    %387 = arith.mulf %386, %187 : vector<8x128xf32>
    %388 = arith.addf %385, %387 : vector<8x128xf32>
    %389 = vector.broadcast %115 : f32 to vector<8x128xf32>
    %390 = arith.mulf %389, %189 : vector<8x128xf32>
    %391 = arith.addf %388, %390 : vector<8x128xf32>
    %392 = vector.broadcast %123 : f32 to vector<8x128xf32>
    %393 = arith.mulf %392, %191 : vector<8x128xf32>
    %394 = arith.addf %391, %393 : vector<8x128xf32>
    %395 = vector.broadcast %131 : f32 to vector<8x128xf32>
    %396 = arith.addf %394, %395 : vector<8x128xf32>
    %c3_89 = arith.constant 3 : index
    %c0_90 = arith.constant 0 : index
    %c0_91 = arith.constant 0 : index
    %397 = vector.load %arg5[%c3_89, %c0_90, %c0_91] : memref<12x8x128xf32, #tpu.memory_space<vmem>>, vector<1x8x128xf32>
    %398 = vector.shape_cast %397 : vector<1x8x128xf32> to vector<8x128xf32>
    %399 = vector.shape_cast %396 : vector<8x128xf32> to vector<1x8x128xf32>
    tpu.vector_store %arg5[%c3_89, %c0_90, %c0_91], %399 {strides = array<i32>} : memref<12x8x128xf32, #tpu.memory_space<vmem>>, vector<1x8x128xf32>,
    %400 = vector.broadcast %4 : f32 to vector<8x128xf32>
    %401 = arith.mulf %400, %161 : vector<8x128xf32>
    %402 = vector.broadcast %12 : f32 to vector<8x128xf32>
    %403 = arith.mulf %402, %163 : vector<8x128xf32>
    %404 = arith.addf %401, %403 : vector<8x128xf32>
    %405 = vector.broadcast %20 : f32 to vector<8x128xf32>
    %406 = arith.mulf %405, %165 : vector<8x128xf32>
    %407 = arith.addf %404, %406 : vector<8x128xf32>
    %408 = vector.broadcast %28 : f32 to vector<8x128xf32>
    %409 = arith.mulf %408, %167 : vector<8x128xf32>
    %410 = arith.addf %407, %409 : vector<8x128xf32>
    %411 = vector.broadcast %36 : f32 to vector<8x128xf32>
    %412 = arith.mulf %411, %169 : vector<8x128xf32>
    %413 = arith.addf %410, %412 : vector<8x128xf32>
    %414 = vector.broadcast %44 : f32 to vector<8x128xf32>
    %415 = arith.mulf %414, %171 : vector<8x128xf32>
    %416 = arith.addf %413, %415 : vector<8x128xf32>
    %417 = vector.broadcast %52 : f32 to vector<8x128xf32>
    %418 = arith.mulf %417, %173 : vector<8x128xf32>
    %419 = arith.addf %416, %418 : vector<8x128xf32>
    %420 = vector.broadcast %60 : f32 to vector<8x128xf32>
    %421 = arith.mulf %420, %175 : vector<8x128xf32>
    %422 = arith.addf %419, %421 : vector<8x128xf32>
    %423 = vector.broadcast %68 : f32 to vector<8x128xf32>
    %424 = arith.mulf %423, %177 : vector<8x128xf32>
    %425 = arith.addf %422, %424 : vector<8x128xf32>
    %426 = vector.broadcast %76 : f32 to vector<8x128xf32>
    %427 = arith.mulf %426, %179 : vector<8x128xf32>
    %428 = arith.addf %425, %427 : vector<8x128xf32>
    %429 = vector.broadcast %84 : f32 to vector<8x128xf32>
    %430 = arith.mulf %429, %181 : vector<8x128xf32>
    %431 = arith.addf %428, %430 : vector<8x128xf32>
    %432 = vector.broadcast %92 : f32 to vector<8x128xf32>
    %433 = arith.mulf %432, %183 : vector<8x128xf32>
    %434 = arith.addf %431, %433 : vector<8x128xf32>
    %435 = vector.broadcast %100 : f32 to vector<8x128xf32>
    %436 = arith.mulf %435, %185 : vector<8x128xf32>
    %437 = arith.addf %434, %436 : vector<8x128xf32>
    %438 = vector.broadcast %108 : f32 to vector<8x128xf32>
    %439 = arith.mulf %438, %187 : vector<8x128xf32>
    %440 = arith.addf %437, %439 : vector<8x128xf32>
    %441 = vector.broadcast %116 : f32 to vector<8x128xf32>
    %442 = arith.mulf %441, %189 : vector<8x128xf32>
    %443 = arith.addf %440, %442 : vector<8x128xf32>
    %444 = vector.broadcast %124 : f32 to vector<8x128xf32>
    %445 = arith.mulf %444, %191 : vector<8x128xf32>
    %446 = arith.addf %443, %445 : vector<8x128xf32>
    %447 = vector.broadcast %132 : f32 to vector<8x128xf32>
    %448 = arith.addf %446, %447 : vector<8x128xf32>
    %c4_92 = arith.constant 4 : index
    %c0_93 = arith.constant 0 : index
    %c0_94 = arith.constant 0 : index
    %449 = vector.load %arg5[%c4_92, %c0_93, %c0_94] : memref<12x8x128xf32, #tpu.memory_space<vmem>>, vector<1x8x128xf32>
    %450 = vector.shape_cast %449 : vector<1x8x128xf32> to vector<8x128xf32>
    %451 = vector.shape_cast %448 : vector<8x128xf32> to vector<1x8x128xf32>
    tpu.vector_store %arg5[%c4_92, %c0_93, %c0_94], %451 {strides = array<i32>} : memref<12x8x128xf32, #tpu.memory_space<vmem>>, vector<1x8x128xf32>,
    %452 = vector.broadcast %5 : f32 to vector<8x128xf32>
    %453 = arith.mulf %452, %161 : vector<8x128xf32>
    %454 = vector.broadcast %13 : f32 to vector<8x128xf32>
    %455 = arith.mulf %454, %163 : vector<8x128xf32>
    %456 = arith.addf %453, %455 : vector<8x128xf32>
    %457 = vector.broadcast %21 : f32 to vector<8x128xf32>
    %458 = arith.mulf %457, %165 : vector<8x128xf32>
    %459 = arith.addf %456, %458 : vector<8x128xf32>
    %460 = vector.broadcast %29 : f32 to vector<8x128xf32>
    %461 = arith.mulf %460, %167 : vector<8x128xf32>
    %462 = arith.addf %459, %461 : vector<8x128xf32>
    %463 = vector.broadcast %37 : f32 to vector<8x128xf32>
    %464 = arith.mulf %463, %169 : vector<8x128xf32>
    %465 = arith.addf %462, %464 : vector<8x128xf32>
    %466 = vector.broadcast %45 : f32 to vector<8x128xf32>
    %467 = arith.mulf %466, %171 : vector<8x128xf32>
    %468 = arith.addf %465, %467 : vector<8x128xf32>
    %469 = vector.broadcast %53 : f32 to vector<8x128xf32>
    %470 = arith.mulf %469, %173 : vector<8x128xf32>
    %471 = arith.addf %468, %470 : vector<8x128xf32>
    %472 = vector.broadcast %61 : f32 to vector<8x128xf32>
    %473 = arith.mulf %472, %175 : vector<8x128xf32>
    %474 = arith.addf %471, %473 : vector<8x128xf32>
    %475 = vector.broadcast %69 : f32 to vector<8x128xf32>
    %476 = arith.mulf %475, %177 : vector<8x128xf32>
    %477 = arith.addf %474, %476 : vector<8x128xf32>
    %478 = vector.broadcast %77 : f32 to vector<8x128xf32>
    %479 = arith.mulf %478, %179 : vector<8x128xf32>
    %480 = arith.addf %477, %479 : vector<8x128xf32>
    %481 = vector.broadcast %85 : f32 to vector<8x128xf32>
    %482 = arith.mulf %481, %181 : vector<8x128xf32>
    %483 = arith.addf %480, %482 : vector<8x128xf32>
    %484 = vector.broadcast %93 : f32 to vector<8x128xf32>
    %485 = arith.mulf %484, %183 : vector<8x128xf32>
    %486 = arith.addf %483, %485 : vector<8x128xf32>
    %487 = vector.broadcast %101 : f32 to vector<8x128xf32>
    %488 = arith.mulf %487, %185 : vector<8x128xf32>
    %489 = arith.addf %486, %488 : vector<8x128xf32>
    %490 = vector.broadcast %109 : f32 to vector<8x128xf32>
    %491 = arith.mulf %490, %187 : vector<8x128xf32>
    %492 = arith.addf %489, %491 : vector<8x128xf32>
    %493 = vector.broadcast %117 : f32 to vector<8x128xf32>
    %494 = arith.mulf %493, %189 : vector<8x128xf32>
    %495 = arith.addf %492, %494 : vector<8x128xf32>
    %496 = vector.broadcast %125 : f32 to vector<8x128xf32>
    %497 = arith.mulf %496, %191 : vector<8x128xf32>
    %498 = arith.addf %495, %497 : vector<8x128xf32>
    %499 = vector.broadcast %133 : f32 to vector<8x128xf32>
    %500 = arith.addf %498, %499 : vector<8x128xf32>
    %c5_95 = arith.constant 5 : index
    %c0_96 = arith.constant 0 : index
    %c0_97 = arith.constant 0 : index
    %501 = vector.load %arg5[%c5_95, %c0_96, %c0_97] : memref<12x8x128xf32, #tpu.memory_space<vmem>>, vector<1x8x128xf32>
    %502 = vector.shape_cast %501 : vector<1x8x128xf32> to vector<8x128xf32>
    %503 = vector.shape_cast %500 : vector<8x128xf32> to vector<1x8x128xf32>
    tpu.vector_store %arg5[%c5_95, %c0_96, %c0_97], %503 {strides = array<i32>} : memref<12x8x128xf32, #tpu.memory_space<vmem>>, vector<1x8x128xf32>,
    %504 = vector.broadcast %6 : f32 to vector<8x128xf32>
    %505 = arith.mulf %504, %161 : vector<8x128xf32>
    %506 = vector.broadcast %14 : f32 to vector<8x128xf32>
    %507 = arith.mulf %506, %163 : vector<8x128xf32>
    %508 = arith.addf %505, %507 : vector<8x128xf32>
    %509 = vector.broadcast %22 : f32 to vector<8x128xf32>
    %510 = arith.mulf %509, %165 : vector<8x128xf32>
    %511 = arith.addf %508, %510 : vector<8x128xf32>
    %512 = vector.broadcast %30 : f32 to vector<8x128xf32>
    %513 = arith.mulf %512, %167 : vector<8x128xf32>
    %514 = arith.addf %511, %513 : vector<8x128xf32>
    %515 = vector.broadcast %38 : f32 to vector<8x128xf32>
    %516 = arith.mulf %515, %169 : vector<8x128xf32>
    %517 = arith.addf %514, %516 : vector<8x128xf32>
    %518 = vector.broadcast %46 : f32 to vector<8x128xf32>
    %519 = arith.mulf %518, %171 : vector<8x128xf32>
    %520 = arith.addf %517, %519 : vector<8x128xf32>
    %521 = vector.broadcast %54 : f32 to vector<8x128xf32>
    %522 = arith.mulf %521, %173 : vector<8x128xf32>
    %523 = arith.addf %520, %522 : vector<8x128xf32>
    %524 = vector.broadcast %62 : f32 to vector<8x128xf32>
    %525 = arith.mulf %524, %175 : vector<8x128xf32>
    %526 = arith.addf %523, %525 : vector<8x128xf32>
    %527 = vector.broadcast %70 : f32 to vector<8x128xf32>
    %528 = arith.mulf %527, %177 : vector<8x128xf32>
    %529 = arith.addf %526, %528 : vector<8x128xf32>
    %530 = vector.broadcast %78 : f32 to vector<8x128xf32>
    %531 = arith.mulf %530, %179 : vector<8x128xf32>
    %532 = arith.addf %529, %531 : vector<8x128xf32>
    %533 = vector.broadcast %86 : f32 to vector<8x128xf32>
    %534 = arith.mulf %533, %181 : vector<8x128xf32>
    %535 = arith.addf %532, %534 : vector<8x128xf32>
    %536 = vector.broadcast %94 : f32 to vector<8x128xf32>
    %537 = arith.mulf %536, %183 : vector<8x128xf32>
    %538 = arith.addf %535, %537 : vector<8x128xf32>
    %539 = vector.broadcast %102 : f32 to vector<8x128xf32>
    %540 = arith.mulf %539, %185 : vector<8x128xf32>
    %541 = arith.addf %538, %540 : vector<8x128xf32>
    %542 = vector.broadcast %110 : f32 to vector<8x128xf32>
    %543 = arith.mulf %542, %187 : vector<8x128xf32>
    %544 = arith.addf %541, %543 : vector<8x128xf32>
    %545 = vector.broadcast %118 : f32 to vector<8x128xf32>
    %546 = arith.mulf %545, %189 : vector<8x128xf32>
    %547 = arith.addf %544, %546 : vector<8x128xf32>
    %548 = vector.broadcast %126 : f32 to vector<8x128xf32>
    %549 = arith.mulf %548, %191 : vector<8x128xf32>
    %550 = arith.addf %547, %549 : vector<8x128xf32>
    %551 = vector.broadcast %134 : f32 to vector<8x128xf32>
    %552 = arith.addf %550, %551 : vector<8x128xf32>
    %c6_98 = arith.constant 6 : index
    %c0_99 = arith.constant 0 : index
    %c0_100 = arith.constant 0 : index
    %553 = vector.load %arg5[%c6_98, %c0_99, %c0_100] : memref<12x8x128xf32, #tpu.memory_space<vmem>>, vector<1x8x128xf32>
    %554 = vector.shape_cast %553 : vector<1x8x128xf32> to vector<8x128xf32>
    %555 = vector.shape_cast %552 : vector<8x128xf32> to vector<1x8x128xf32>
    tpu.vector_store %arg5[%c6_98, %c0_99, %c0_100], %555 {strides = array<i32>} : memref<12x8x128xf32, #tpu.memory_space<vmem>>, vector<1x8x128xf32>,
    %556 = vector.broadcast %7 : f32 to vector<8x128xf32>
    %557 = arith.mulf %556, %161 : vector<8x128xf32>
    %558 = vector.broadcast %15 : f32 to vector<8x128xf32>
    %559 = arith.mulf %558, %163 : vector<8x128xf32>
    %560 = arith.addf %557, %559 : vector<8x128xf32>
    %561 = vector.broadcast %23 : f32 to vector<8x128xf32>
    %562 = arith.mulf %561, %165 : vector<8x128xf32>
    %563 = arith.addf %560, %562 : vector<8x128xf32>
    %564 = vector.broadcast %31 : f32 to vector<8x128xf32>
    %565 = arith.mulf %564, %167 : vector<8x128xf32>
    %566 = arith.addf %563, %565 : vector<8x128xf32>
    %567 = vector.broadcast %39 : f32 to vector<8x128xf32>
    %568 = arith.mulf %567, %169 : vector<8x128xf32>
    %569 = arith.addf %566, %568 : vector<8x128xf32>
    %570 = vector.broadcast %47 : f32 to vector<8x128xf32>
    %571 = arith.mulf %570, %171 : vector<8x128xf32>
    %572 = arith.addf %569, %571 : vector<8x128xf32>
    %573 = vector.broadcast %55 : f32 to vector<8x128xf32>
    %574 = arith.mulf %573, %173 : vector<8x128xf32>
    %575 = arith.addf %572, %574 : vector<8x128xf32>
    %576 = vector.broadcast %63 : f32 to vector<8x128xf32>
    %577 = arith.mulf %576, %175 : vector<8x128xf32>
    %578 = arith.addf %575, %577 : vector<8x128xf32>
    %579 = vector.broadcast %71 : f32 to vector<8x128xf32>
    %580 = arith.mulf %579, %177 : vector<8x128xf32>
    %581 = arith.addf %578, %580 : vector<8x128xf32>
    %582 = vector.broadcast %79 : f32 to vector<8x128xf32>
    %583 = arith.mulf %582, %179 : vector<8x128xf32>
    %584 = arith.addf %581, %583 : vector<8x128xf32>
    %585 = vector.broadcast %87 : f32 to vector<8x128xf32>
    %586 = arith.mulf %585, %181 : vector<8x128xf32>
    %587 = arith.addf %584, %586 : vector<8x128xf32>
    %588 = vector.broadcast %95 : f32 to vector<8x128xf32>
    %589 = arith.mulf %588, %183 : vector<8x128xf32>
    %590 = arith.addf %587, %589 : vector<8x128xf32>
    %591 = vector.broadcast %103 : f32 to vector<8x128xf32>
    %592 = arith.mulf %591, %185 : vector<8x128xf32>
    %593 = arith.addf %590, %592 : vector<8x128xf32>
    %594 = vector.broadcast %111 : f32 to vector<8x128xf32>
    %595 = arith.mulf %594, %187 : vector<8x128xf32>
    %596 = arith.addf %593, %595 : vector<8x128xf32>
    %597 = vector.broadcast %119 : f32 to vector<8x128xf32>
    %598 = arith.mulf %597, %189 : vector<8x128xf32>
    %599 = arith.addf %596, %598 : vector<8x128xf32>
    %600 = vector.broadcast %127 : f32 to vector<8x128xf32>
    %601 = arith.mulf %600, %191 : vector<8x128xf32>
    %602 = arith.addf %599, %601 : vector<8x128xf32>
    %603 = vector.broadcast %135 : f32 to vector<8x128xf32>
    %604 = arith.addf %602, %603 : vector<8x128xf32>
    %c7_101 = arith.constant 7 : index
    %c0_102 = arith.constant 0 : index
    %c0_103 = arith.constant 0 : index
    %605 = vector.load %arg5[%c7_101, %c0_102, %c0_103] : memref<12x8x128xf32, #tpu.memory_space<vmem>>, vector<1x8x128xf32>
    %606 = vector.shape_cast %605 : vector<1x8x128xf32> to vector<8x128xf32>
    %607 = vector.shape_cast %604 : vector<8x128xf32> to vector<1x8x128xf32>
    tpu.vector_store %arg5[%c7_101, %c0_102, %c0_103], %607 {strides = array<i32>} : memref<12x8x128xf32, #tpu.memory_space<vmem>>, vector<1x8x128xf32>,
    %608 = math.cos %161 : vector<8x128xf32>
    %609 = math.sin %161 : vector<8x128xf32>
    %cst = arith.constant 0.707106769 : f32
    %610 = vector.broadcast %cst : f32 to vector<8x128xf32>
    %611 = arith.mulf %610, %608 : vector<8x128xf32>
    %cst_104 = arith.constant -0.707106769 : f32
    %612 = vector.broadcast %cst_104 : f32 to vector<8x128xf32>
    %613 = arith.mulf %612, %609 : vector<8x128xf32>
    %cst_105 = arith.constant 0.707106769 : f32
    %614 = vector.broadcast %cst_105 : f32 to vector<8x128xf32>
    %cst_106 = arith.constant 0.000000e+00 : f32
    %615 = vector.broadcast %cst_106 : f32 to vector<8x128xf32>
    %cst_107 = arith.constant 5.000000e-01 : f32
    %616 = vector.broadcast %cst_107 : f32 to vector<8x128xf32>
    %617 = arith.mulf %616, %163 : vector<8x128xf32>
    %618 = math.cos %617 : vector<8x128xf32>
    %cst_108 = arith.constant 5.000000e-01 : f32
    %619 = vector.broadcast %cst_108 : f32 to vector<8x128xf32>
    %620 = arith.mulf %619, %163 : vector<8x128xf32>
    %621 = math.sin %620 : vector<8x128xf32>
    %622 = arith.mulf %618, %611 : vector<8x128xf32>
    %623 = arith.mulf %621, %614 : vector<8x128xf32>
    %624 = arith.subf %622, %623 : vector<8x128xf32>
    %625 = arith.mulf %618, %613 : vector<8x128xf32>
    %626 = arith.mulf %621, %615 : vector<8x128xf32>
    %627 = arith.subf %625, %626 : vector<8x128xf32>
    %628 = arith.mulf %621, %611 : vector<8x128xf32>
    %629 = arith.mulf %618, %614 : vector<8x128xf32>
    %630 = arith.addf %628, %629 : vector<8x128xf32>
    %631 = arith.mulf %621, %613 : vector<8x128xf32>
    %632 = arith.mulf %618, %615 : vector<8x128xf32>
    %633 = arith.addf %631, %632 : vector<8x128xf32>
    %634 = math.cos %165 : vector<8x128xf32>
    %635 = math.sin %165 : vector<8x128xf32>
    %636 = arith.mulf %624, %634 : vector<8x128xf32>
    %637 = arith.mulf %627, %635 : vector<8x128xf32>
    %638 = arith.addf %636, %637 : vector<8x128xf32>
    %639 = arith.mulf %627, %634 : vector<8x128xf32>
    %640 = arith.mulf %624, %635 : vector<8x128xf32>
    %641 = arith.subf %639, %640 : vector<8x128xf32>
    %cst_109 = arith.constant 5.000000e-01 : f32
    %642 = vector.broadcast %cst_109 : f32 to vector<8x128xf32>
    %643 = arith.mulf %642, %167 : vector<8x128xf32>
    %644 = math.cos %643 : vector<8x128xf32>
    %cst_110 = arith.constant 5.000000e-01 : f32
    %645 = vector.broadcast %cst_110 : f32 to vector<8x128xf32>
    %646 = arith.mulf %645, %167 : vector<8x128xf32>
    %647 = math.sin %646 : vector<8x128xf32>
    %648 = arith.mulf %644, %638 : vector<8x128xf32>
    %649 = arith.mulf %647, %630 : vector<8x128xf32>
    %650 = arith.subf %648, %649 : vector<8x128xf32>
    %651 = arith.mulf %644, %641 : vector<8x128xf32>
    %652 = arith.mulf %647, %633 : vector<8x128xf32>
    %653 = arith.subf %651, %652 : vector<8x128xf32>
    %654 = arith.mulf %647, %638 : vector<8x128xf32>
    %655 = arith.mulf %644, %630 : vector<8x128xf32>
    %656 = arith.addf %654, %655 : vector<8x128xf32>
    %657 = arith.mulf %647, %641 : vector<8x128xf32>
    %658 = arith.mulf %644, %633 : vector<8x128xf32>
    %659 = arith.addf %657, %658 : vector<8x128xf32>
    %660 = math.cos %169 : vector<8x128xf32>
    %661 = math.sin %169 : vector<8x128xf32>
    %662 = arith.mulf %650, %660 : vector<8x128xf32>
    %663 = arith.mulf %653, %661 : vector<8x128xf32>
    %664 = arith.addf %662, %663 : vector<8x128xf32>
    %665 = arith.mulf %653, %660 : vector<8x128xf32>
    %666 = arith.mulf %650, %661 : vector<8x128xf32>
    %667 = arith.subf %665, %666 : vector<8x128xf32>
    %668 = math.cos %171 : vector<8x128xf32>
    %669 = math.sin %171 : vector<8x128xf32>
    %cst_111 = arith.constant 0.707106769 : f32
    %670 = vector.broadcast %cst_111 : f32 to vector<8x128xf32>
    %671 = arith.mulf %670, %668 : vector<8x128xf32>
    %cst_112 = arith.constant -0.707106769 : f32
    %672 = vector.broadcast %cst_112 : f32 to vector<8x128xf32>
    %673 = arith.mulf %672, %669 : vector<8x128xf32>
    %cst_113 = arith.constant 0.707106769 : f32
    %674 = vector.broadcast %cst_113 : f32 to vector<8x128xf32>
    %cst_114 = arith.constant 0.000000e+00 : f32
    %675 = vector.broadcast %cst_114 : f32 to vector<8x128xf32>
    %cst_115 = arith.constant 5.000000e-01 : f32
    %676 = vector.broadcast %cst_115 : f32 to vector<8x128xf32>
    %677 = arith.mulf %676, %173 : vector<8x128xf32>
    %678 = math.cos %677 : vector<8x128xf32>
    %cst_116 = arith.constant 5.000000e-01 : f32
    %679 = vector.broadcast %cst_116 : f32 to vector<8x128xf32>
    %680 = arith.mulf %679, %173 : vector<8x128xf32>
    %681 = math.sin %680 : vector<8x128xf32>
    %682 = arith.mulf %678, %671 : vector<8x128xf32>
    %683 = arith.mulf %681, %674 : vector<8x128xf32>
    %684 = arith.subf %682, %683 : vector<8x128xf32>
    %685 = arith.mulf %678, %673 : vector<8x128xf32>
    %686 = arith.mulf %681, %675 : vector<8x128xf32>
    %687 = arith.subf %685, %686 : vector<8x128xf32>
    %688 = arith.mulf %681, %671 : vector<8x128xf32>
    %689 = arith.mulf %678, %674 : vector<8x128xf32>
    %690 = arith.addf %688, %689 : vector<8x128xf32>
    %691 = arith.mulf %681, %673 : vector<8x128xf32>
    %692 = arith.mulf %678, %675 : vector<8x128xf32>
    %693 = arith.addf %691, %692 : vector<8x128xf32>
    %694 = math.cos %175 : vector<8x128xf32>
    %695 = math.sin %175 : vector<8x128xf32>
    %696 = arith.mulf %684, %694 : vector<8x128xf32>
    %697 = arith.mulf %687, %695 : vector<8x128xf32>
    %698 = arith.addf %696, %697 : vector<8x128xf32>
    %699 = arith.mulf %687, %694 : vector<8x128xf32>
    %700 = arith.mulf %684, %695 : vector<8x128xf32>
    %701 = arith.subf %699, %700 : vector<8x128xf32>
    %cst_117 = arith.constant 5.000000e-01 : f32
    %702 = vector.broadcast %cst_117 : f32 to vector<8x128xf32>
    %703 = arith.mulf %702, %177 : vector<8x128xf32>
    %704 = math.cos %703 : vector<8x128xf32>
    %cst_118 = arith.constant 5.000000e-01 : f32
    %705 = vector.broadcast %cst_118 : f32 to vector<8x128xf32>
    %706 = arith.mulf %705, %177 : vector<8x128xf32>
    %707 = math.sin %706 : vector<8x128xf32>
    %708 = arith.mulf %704, %698 : vector<8x128xf32>
    %709 = arith.mulf %707, %690 : vector<8x128xf32>
    %710 = arith.subf %708, %709 : vector<8x128xf32>
    %711 = arith.mulf %704, %701 : vector<8x128xf32>
    %712 = arith.mulf %707, %693 : vector<8x128xf32>
    %713 = arith.subf %711, %712 : vector<8x128xf32>
    %714 = arith.mulf %707, %698 : vector<8x128xf32>
    %715 = arith.mulf %704, %690 : vector<8x128xf32>
    %716 = arith.addf %714, %715 : vector<8x128xf32>
    %717 = arith.mulf %707, %701 : vector<8x128xf32>
    %718 = arith.mulf %704, %693 : vector<8x128xf32>
    %719 = arith.addf %717, %718 : vector<8x128xf32>
    %720 = math.cos %179 : vector<8x128xf32>
    %721 = math.sin %179 : vector<8x128xf32>
    %722 = arith.mulf %710, %720 : vector<8x128xf32>
    %723 = arith.mulf %713, %721 : vector<8x128xf32>
    %724 = arith.addf %722, %723 : vector<8x128xf32>
    %725 = arith.mulf %713, %720 : vector<8x128xf32>
    %726 = arith.mulf %710, %721 : vector<8x128xf32>
    %727 = arith.subf %725, %726 : vector<8x128xf32>
    %728 = math.cos %181 : vector<8x128xf32>
    %729 = math.sin %181 : vector<8x128xf32>
    %cst_119 = arith.constant 0.707106769 : f32
    %730 = vector.broadcast %cst_119 : f32 to vector<8x128xf32>
    %731 = arith.mulf %730, %728 : vector<8x128xf32>
    %cst_120 = arith.constant -0.707106769 : f32
    %732 = vector.broadcast %cst_120 : f32 to vector<8x128xf32>
    %733 = arith.mulf %732, %729 : vector<8x128xf32>
    %cst_121 = arith.constant 0.707106769 : f32
    %734 = vector.broadcast %cst_121 : f32 to vector<8x128xf32>
    %cst_122 = arith.constant 0.000000e+00 : f32
    %735 = vector.broadcast %cst_122 : f32 to vector<8x128xf32>
    %cst_123 = arith.constant 5.000000e-01 : f32
    %736 = vector.broadcast %cst_123 : f32 to vector<8x128xf32>
    %737 = arith.mulf %736, %183 : vector<8x128xf32>
    %738 = math.cos %737 : vector<8x128xf32>
    %cst_124 = arith.constant 5.000000e-01 : f32
    %739 = vector.broadcast %cst_124 : f32 to vector<8x128xf32>
    %740 = arith.mulf %739, %183 : vector<8x128xf32>
    %741 = math.sin %740 : vector<8x128xf32>
    %742 = arith.mulf %738, %731 : vector<8x128xf32>
    %743 = arith.mulf %741, %734 : vector<8x128xf32>
    %744 = arith.subf %742, %743 : vector<8x128xf32>
    %745 = arith.mulf %738, %733 : vector<8x128xf32>
    %746 = arith.mulf %741, %735 : vector<8x128xf32>
    %747 = arith.subf %745, %746 : vector<8x128xf32>
    %748 = arith.mulf %741, %731 : vector<8x128xf32>
    %749 = arith.mulf %738, %734 : vector<8x128xf32>
    %750 = arith.addf %748, %749 : vector<8x128xf32>
    %751 = arith.mulf %741, %733 : vector<8x128xf32>
    %752 = arith.mulf %738, %735 : vector<8x128xf32>
    %753 = arith.addf %751, %752 : vector<8x128xf32>
    %754 = math.cos %185 : vector<8x128xf32>
    %755 = math.sin %185 : vector<8x128xf32>
    %756 = arith.mulf %744, %754 : vector<8x128xf32>
    %757 = arith.mulf %747, %755 : vector<8x128xf32>
    %758 = arith.addf %756, %757 : vector<8x128xf32>
    %759 = arith.mulf %747, %754 : vector<8x128xf32>
    %760 = arith.mulf %744, %755 : vector<8x128xf32>
    %761 = arith.subf %759, %760 : vector<8x128xf32>
    %cst_125 = arith.constant 5.000000e-01 : f32
    %762 = vector.broadcast %cst_125 : f32 to vector<8x128xf32>
    %763 = arith.mulf %762, %187 : vector<8x128xf32>
    %764 = math.cos %763 : vector<8x128xf32>
    %cst_126 = arith.constant 5.000000e-01 : f32
    %765 = vector.broadcast %cst_126 : f32 to vector<8x128xf32>
    %766 = arith.mulf %765, %187 : vector<8x128xf32>
    %767 = math.sin %766 : vector<8x128xf32>
    %768 = arith.mulf %764, %758 : vector<8x128xf32>
    %769 = arith.mulf %767, %750 : vector<8x128xf32>
    %770 = arith.subf %768, %769 : vector<8x128xf32>
    %771 = arith.mulf %764, %761 : vector<8x128xf32>
    %772 = arith.mulf %767, %753 : vector<8x128xf32>
    %773 = arith.subf %771, %772 : vector<8x128xf32>
    %774 = arith.mulf %767, %758 : vector<8x128xf32>
    %775 = arith.mulf %764, %750 : vector<8x128xf32>
    %776 = arith.addf %774, %775 : vector<8x128xf32>
    %777 = arith.mulf %767, %761 : vector<8x128xf32>
    %778 = arith.mulf %764, %753 : vector<8x128xf32>
    %779 = arith.addf %777, %778 : vector<8x128xf32>
    %780 = math.cos %189 : vector<8x128xf32>
    %781 = math.sin %189 : vector<8x128xf32>
    %782 = arith.mulf %770, %780 : vector<8x128xf32>
    %783 = arith.mulf %773, %781 : vector<8x128xf32>
    %784 = arith.addf %782, %783 : vector<8x128xf32>
    %785 = arith.mulf %773, %780 : vector<8x128xf32>
    %786 = arith.mulf %770, %781 : vector<8x128xf32>
    %787 = arith.subf %785, %786 : vector<8x128xf32>
    %788 = math.cos %191 : vector<8x128xf32>
    %789 = math.sin %191 : vector<8x128xf32>
    %cst_127 = arith.constant 0.707106769 : f32
    %790 = vector.broadcast %cst_127 : f32 to vector<8x128xf32>
    %791 = arith.mulf %790, %788 : vector<8x128xf32>
    %cst_128 = arith.constant -0.707106769 : f32
    %792 = vector.broadcast %cst_128 : f32 to vector<8x128xf32>
    %793 = arith.mulf %792, %789 : vector<8x128xf32>
    %cst_129 = arith.constant 0.707106769 : f32
    %794 = vector.broadcast %cst_129 : f32 to vector<8x128xf32>
    %cst_130 = arith.constant 0.000000e+00 : f32
    %795 = vector.broadcast %cst_130 : f32 to vector<8x128xf32>
    %796 = arith.mulf %664, %664 : vector<8x128xf32>
    %797 = arith.mulf %667, %667 : vector<8x128xf32>
    %798 = arith.addf %796, %797 : vector<8x128xf32>
    %799 = arith.mulf %656, %656 : vector<8x128xf32>
    %800 = arith.mulf %659, %659 : vector<8x128xf32>
    %801 = arith.addf %799, %800 : vector<8x128xf32>
    %802 = arith.subf %798, %801 : vector<8x128xf32>
    %803 = arith.addf %798, %801 : vector<8x128xf32>
    %804 = arith.mulf %664, %656 : vector<8x128xf32>
    %805 = arith.mulf %667, %659 : vector<8x128xf32>
    %806 = arith.addf %804, %805 : vector<8x128xf32>
    %807 = arith.mulf %664, %659 : vector<8x128xf32>
    %808 = arith.mulf %667, %656 : vector<8x128xf32>
    %809 = arith.subf %807, %808 : vector<8x128xf32>
    %810 = arith.mulf %724, %724 : vector<8x128xf32>
    %811 = arith.mulf %727, %727 : vector<8x128xf32>
    %812 = arith.addf %810, %811 : vector<8x128xf32>
    %813 = arith.mulf %716, %716 : vector<8x128xf32>
    %814 = arith.mulf %719, %719 : vector<8x128xf32>
    %815 = arith.addf %813, %814 : vector<8x128xf32>
    %816 = arith.subf %812, %815 : vector<8x128xf32>
    %817 = arith.addf %812, %815 : vector<8x128xf32>
    %818 = arith.mulf %724, %716 : vector<8x128xf32>
    %819 = arith.mulf %727, %719 : vector<8x128xf32>
    %820 = arith.addf %818, %819 : vector<8x128xf32>
    %821 = arith.mulf %724, %719 : vector<8x128xf32>
    %822 = arith.mulf %727, %716 : vector<8x128xf32>
    %823 = arith.subf %821, %822 : vector<8x128xf32>
    %824 = arith.mulf %784, %784 : vector<8x128xf32>
    %825 = arith.mulf %787, %787 : vector<8x128xf32>
    %826 = arith.addf %824, %825 : vector<8x128xf32>
    %827 = arith.mulf %776, %776 : vector<8x128xf32>
    %828 = arith.mulf %779, %779 : vector<8x128xf32>
    %829 = arith.addf %827, %828 : vector<8x128xf32>
    %830 = arith.subf %826, %829 : vector<8x128xf32>
    %831 = arith.addf %826, %829 : vector<8x128xf32>
    %832 = arith.mulf %784, %776 : vector<8x128xf32>
    %833 = arith.mulf %787, %779 : vector<8x128xf32>
    %834 = arith.addf %832, %833 : vector<8x128xf32>
    %835 = arith.mulf %784, %779 : vector<8x128xf32>
    %836 = arith.mulf %787, %776 : vector<8x128xf32>
    %837 = arith.subf %835, %836 : vector<8x128xf32>
    %838 = arith.mulf %791, %791 : vector<8x128xf32>
    %839 = arith.mulf %793, %793 : vector<8x128xf32>
    %840 = arith.addf %838, %839 : vector<8x128xf32>
    %841 = arith.mulf %794, %794 : vector<8x128xf32>
    %842 = arith.mulf %795, %795 : vector<8x128xf32>
    %843 = arith.addf %841, %842 : vector<8x128xf32>
    %844 = arith.subf %840, %843 : vector<8x128xf32>
    %845 = arith.addf %840, %843 : vector<8x128xf32>
    %846 = arith.mulf %791, %794 : vector<8x128xf32>
    %847 = arith.mulf %793, %795 : vector<8x128xf32>
    %848 = arith.addf %846, %847 : vector<8x128xf32>
    %849 = arith.mulf %791, %795 : vector<8x128xf32>
    %850 = arith.mulf %793, %794 : vector<8x128xf32>
    %851 = arith.subf %849, %850 : vector<8x128xf32>
    %852 = vector.broadcast %136 : f32 to vector<8x128xf32>
    %853 = arith.mulf %817, %852 : vector<8x128xf32>
    %854 = vector.broadcast %137 : f32 to vector<8x128xf32>
    %855 = arith.mulf %816, %854 : vector<8x128xf32>
    %856 = vector.broadcast %138 : f32 to vector<8x128xf32>
    %857 = arith.mulf %843, %856 : vector<8x128xf32>
    %858 = arith.addf %840, %857 : vector<8x128xf32>
    %859 = vector.broadcast %139 : f32 to vector<8x128xf32>
    %860 = arith.mulf %843, %859 : vector<8x128xf32>
    %861 = arith.mulf %853, %858 : vector<8x128xf32>
    %862 = arith.mulf %855, %860 : vector<8x128xf32>
    %863 = arith.subf %861, %862 : vector<8x128xf32>
    %864 = arith.mulf %853, %860 : vector<8x128xf32>
    %865 = arith.mulf %855, %858 : vector<8x128xf32>
    %866 = arith.addf %864, %865 : vector<8x128xf32>
    %867 = arith.mulf %806, %863 : vector<8x128xf32>
    %868 = arith.mulf %809, %866 : vector<8x128xf32>
    %869 = arith.subf %867, %868 : vector<8x128xf32>
    %870 = vector.broadcast %140 : f32 to vector<8x128xf32>
    %871 = arith.mulf %870, %802 : vector<8x128xf32>
    %872 = vector.broadcast %141 : f32 to vector<8x128xf32>
    %873 = arith.mulf %872, %869 : vector<8x128xf32>
    %874 = arith.subf %871, %873 : vector<8x128xf32>
    %c8_131 = arith.constant 8 : index
    %c0_132 = arith.constant 0 : index
    %c0_133 = arith.constant 0 : index
    %875 = vector.load %arg5[%c8_131, %c0_132, %c0_133] : memref<12x8x128xf32, #tpu.memory_space<vmem>>, vector<1x8x128xf32>
    %876 = vector.shape_cast %875 : vector<1x8x128xf32> to vector<8x128xf32>
    %877 = vector.shape_cast %874 : vector<8x128xf32> to vector<1x8x128xf32>
    tpu.vector_store %arg5[%c8_131, %c0_132, %c0_133], %877 {strides = array<i32>} : memref<12x8x128xf32, #tpu.memory_space<vmem>>, vector<1x8x128xf32>,
    %878 = vector.broadcast %142 : f32 to vector<8x128xf32>
    %879 = arith.mulf %831, %878 : vector<8x128xf32>
    %880 = vector.broadcast %143 : f32 to vector<8x128xf32>
    %881 = arith.mulf %830, %880 : vector<8x128xf32>
    %882 = vector.broadcast %144 : f32 to vector<8x128xf32>
    %883 = arith.mulf %801, %882 : vector<8x128xf32>
    %884 = arith.addf %798, %883 : vector<8x128xf32>
    %885 = vector.broadcast %145 : f32 to vector<8x128xf32>
    %886 = arith.mulf %801, %885 : vector<8x128xf32>
    %887 = arith.mulf %879, %884 : vector<8x128xf32>
    %888 = arith.mulf %881, %886 : vector<8x128xf32>
    %889 = arith.subf %887, %888 : vector<8x128xf32>
    %890 = arith.mulf %879, %886 : vector<8x128xf32>
    %891 = arith.mulf %881, %884 : vector<8x128xf32>
    %892 = arith.addf %890, %891 : vector<8x128xf32>
    %893 = arith.mulf %820, %889 : vector<8x128xf32>
    %894 = arith.mulf %823, %892 : vector<8x128xf32>
    %895 = arith.subf %893, %894 : vector<8x128xf32>
    %896 = vector.broadcast %146 : f32 to vector<8x128xf32>
    %897 = arith.mulf %896, %816 : vector<8x128xf32>
    %898 = vector.broadcast %147 : f32 to vector<8x128xf32>
    %899 = arith.mulf %898, %895 : vector<8x128xf32>
    %900 = arith.subf %897, %899 : vector<8x128xf32>
    %c9_134 = arith.constant 9 : index
    %c0_135 = arith.constant 0 : index
    %c0_136 = arith.constant 0 : index
    %901 = vector.load %arg5[%c9_134, %c0_135, %c0_136] : memref<12x8x128xf32, #tpu.memory_space<vmem>>, vector<1x8x128xf32>
    %902 = vector.shape_cast %901 : vector<1x8x128xf32> to vector<8x128xf32>
    %903 = vector.shape_cast %900 : vector<8x128xf32> to vector<1x8x128xf32>
    tpu.vector_store %arg5[%c9_134, %c0_135, %c0_136], %903 {strides = array<i32>} : memref<12x8x128xf32, #tpu.memory_space<vmem>>, vector<1x8x128xf32>,
    %904 = vector.broadcast %148 : f32 to vector<8x128xf32>
    %905 = arith.mulf %845, %904 : vector<8x128xf32>
    %906 = vector.broadcast %149 : f32 to vector<8x128xf32>
    %907 = arith.mulf %844, %906 : vector<8x128xf32>
    %908 = vector.broadcast %150 : f32 to vector<8x128xf32>
    %909 = arith.mulf %815, %908 : vector<8x128xf32>
    %910 = arith.addf %812, %909 : vector<8x128xf32>
    %911 = vector.broadcast %151 : f32 to vector<8x128xf32>
    %912 = arith.mulf %815, %911 : vector<8x128xf32>
    %913 = arith.mulf %905, %910 : vector<8x128xf32>
    %914 = arith.mulf %907, %912 : vector<8x128xf32>
    %915 = arith.subf %913, %914 : vector<8x128xf32>
    %916 = arith.mulf %905, %912 : vector<8x128xf32>
    %917 = arith.mulf %907, %910 : vector<8x128xf32>
    %918 = arith.addf %916, %917 : vector<8x128xf32>
    %919 = arith.mulf %834, %915 : vector<8x128xf32>
    %920 = arith.mulf %837, %918 : vector<8x128xf32>
    %921 = arith.subf %919, %920 : vector<8x128xf32>
    %922 = vector.broadcast %152 : f32 to vector<8x128xf32>
    %923 = arith.mulf %922, %830 : vector<8x128xf32>
    %924 = vector.broadcast %153 : f32 to vector<8x128xf32>
    %925 = arith.mulf %924, %921 : vector<8x128xf32>
    %926 = arith.subf %923, %925 : vector<8x128xf32>
    %c10_137 = arith.constant 10 : index
    %c0_138 = arith.constant 0 : index
    %c0_139 = arith.constant 0 : index
    %927 = vector.load %arg5[%c10_137, %c0_138, %c0_139] : memref<12x8x128xf32, #tpu.memory_space<vmem>>, vector<1x8x128xf32>
    %928 = vector.shape_cast %927 : vector<1x8x128xf32> to vector<8x128xf32>
    %929 = vector.shape_cast %926 : vector<8x128xf32> to vector<1x8x128xf32>
    tpu.vector_store %arg5[%c10_137, %c0_138, %c0_139], %929 {strides = array<i32>} : memref<12x8x128xf32, #tpu.memory_space<vmem>>, vector<1x8x128xf32>,
    %930 = vector.broadcast %154 : f32 to vector<8x128xf32>
    %931 = arith.mulf %803, %930 : vector<8x128xf32>
    %932 = vector.broadcast %155 : f32 to vector<8x128xf32>
    %933 = arith.mulf %802, %932 : vector<8x128xf32>
    %934 = vector.broadcast %156 : f32 to vector<8x128xf32>
    %935 = arith.mulf %829, %934 : vector<8x128xf32>
    %936 = arith.addf %826, %935 : vector<8x128xf32>
    %937 = vector.broadcast %157 : f32 to vector<8x128xf32>
    %938 = arith.mulf %829, %937 : vector<8x128xf32>
    %939 = arith.mulf %931, %936 : vector<8x128xf32>
    %940 = arith.mulf %933, %938 : vector<8x128xf32>
    %941 = arith.subf %939, %940 : vector<8x128xf32>
    %942 = arith.mulf %931, %938 : vector<8x128xf32>
    %943 = arith.mulf %933, %936 : vector<8x128xf32>
    %944 = arith.addf %942, %943 : vector<8x128xf32>
    %945 = arith.mulf %848, %941 : vector<8x128xf32>
    %946 = arith.mulf %851, %944 : vector<8x128xf32>
    %947 = arith.subf %945, %946 : vector<8x128xf32>
    %948 = vector.broadcast %158 : f32 to vector<8x128xf32>
    %949 = arith.mulf %948, %844 : vector<8x128xf32>
    %950 = vector.broadcast %159 : f32 to vector<8x128xf32>
    %951 = arith.mulf %950, %947 : vector<8x128xf32>
    %952 = arith.subf %949, %951 : vector<8x128xf32>
    %c11_140 = arith.constant 11 : index
    %c0_141 = arith.constant 0 : index
    %c0_142 = arith.constant 0 : index
    %953 = vector.load %arg5[%c11_140, %c0_141, %c0_142] : memref<12x8x128xf32, #tpu.memory_space<vmem>>, vector<1x8x128xf32>
    %954 = vector.shape_cast %953 : vector<1x8x128xf32> to vector<8x128xf32>
    %955 = vector.shape_cast %952 : vector<8x128xf32> to vector<1x8x128xf32>
    tpu.vector_store %arg5[%c11_140, %c0_141, %c0_142], %955 {strides = array<i32>} : memref<12x8x128xf32, #tpu.memory_space<vmem>>, vector<1x8x128xf32>,
    return
  }
  func.func @transform_0(%arg0: i32) -> (i32, i32, i32) {
    %c0_i32 = arith.constant 0 : i32
    %c0_i32_0 = arith.constant 0 : i32
    %c0_i32_1 = arith.constant 0 : i32
    return %c0_i32, %arg0, %c0_i32_0 : i32, i32, i32
  }
  func.func @transform_1(%arg0: i32) -> i32 {
    %c0_i32 = arith.constant 0 : i32
    %c0_i32_0 = arith.constant 0 : i32
    return %c0_i32 : i32
  }
  func.func @transform_2(%arg0: i32) -> i32 {
    %c0_i32 = arith.constant 0 : i32
    %c0_i32_0 = arith.constant 0 : i32
    return %c0_i32 : i32
  }
  func.func @transform_3(%arg0: i32) -> i32 {
    %c0_i32 = arith.constant 0 : i32
    %c0_i32_0 = arith.constant 0 : i32
    return %c0_i32 : i32
  }
  func.func @transform_4(%arg0: i32) -> (i32, i32, i32) {
    %c0_i32 = arith.constant 0 : i32
    %c0_i32_0 = arith.constant 0 : i32
    %c0_i32_1 = arith.constant 0 : i32
    return %c0_i32, %arg0, %c0_i32_0 : i32, i32, i32
  }
}

module attributes {stable_mosaic.version = 11 : i64} {
  func.func @fc_kernel(%arg0: i32, %arg1: memref<12x2x169xf32, #tpu.memory_space<vmem>>, %arg2: memref<12x169x64xf32, #tpu.memory_space<vmem>>, %arg3: memref<1x64xf32, #tpu.memory_space<vmem>>, %arg4: memref<64x128xf32, #tpu.memory_space<vmem>>, %arg5: memref<1x128xf32, #tpu.memory_space<vmem>>, %arg6: memref<2x128xf32, #tpu.memory_space<vmem>>) attributes {dimension_semantics = [#tpu.dimension_semantics<arbitrary>], iteration_bounds = array<i64: 1>, scalar_prefetch = 0 : i64, scratch_operands = 0 : i64, tpu.core_type = #tpu.core_type<tc>, window_params = [{pipeline_mode = #tpu.pipeline_mode<synchronous>, transform_indices = @transform_0, window_bounds = array<i64: 12, 2, 169>}, {pipeline_mode = #tpu.pipeline_mode<synchronous>, transform_indices = @transform_1, window_bounds = array<i64: 12, 169, 64>}, {pipeline_mode = #tpu.pipeline_mode<synchronous>, transform_indices = @transform_2, window_bounds = array<i64: 1, 64>}, {pipeline_mode = #tpu.pipeline_mode<synchronous>, transform_indices = @transform_3, window_bounds = array<i64: 64, 128>}, {pipeline_mode = #tpu.pipeline_mode<synchronous>, transform_indices = @transform_4, window_bounds = array<i64: 1, 128>}, {pipeline_mode = #tpu.pipeline_mode<synchronous>, transform_indices = @transform_5, window_bounds = array<i64: 2, 128>}]} {
    %c0 = arith.constant 0 : index
    %c0_0 = arith.constant 0 : index
    %c0_1 = arith.constant 0 : index
    %0 = vector.load %arg1[%c0, %c0_0, %c0_1] : memref<12x2x169xf32, #tpu.memory_space<vmem>>, vector<12x2x169xf32>
    %cst = arith.constant 0.000000e+00 : f32
    %1 = vector.broadcast %cst : f32 to vector<12x2x169xf32>
    %2 = arith.cmpf ogt, %0, %1 : vector<12x2x169xf32>
    %cst_2 = arith.constant 1.000000e-01 : f32
    %3 = vector.broadcast %cst_2 : f32 to vector<12x2x169xf32>
    %4 = arith.mulf %3, %0 : vector<12x2x169xf32>
    %5 = arith.select %2, %0, %4 : vector<12x2x169xi1>, vector<12x2x169xf32>
    %c0_3 = arith.constant 0 : index
    %c0_4 = arith.constant 0 : index
    %c0_5 = arith.constant 0 : index
    %6 = vector.load %arg2[%c0_3, %c0_4, %c0_5] : memref<12x169x64xf32, #tpu.memory_space<vmem>>, vector<12x169x64xf32>
    %cst_6 = arith.constant 0.000000e+00 : f32
    %7 = vector.broadcast %cst_6 : f32 to vector<2x64xf32>
    %8 = vector.extract_strided_slice %5 {offsets = [0, 0, 0], sizes = [1, 2, 169], strides = [1, 1, 1]} : vector<12x2x169xf32> to vector<1x2x169xf32>
    %9 = vector.shape_cast %8 : vector<1x2x169xf32> to vector<2x169xf32>
    %10 = vector.extract_strided_slice %6 {offsets = [0, 0, 0], sizes = [1, 169, 64], strides = [1, 1, 1]} : vector<12x169x64xf32> to vector<1x169x64xf32>
    %11 = vector.shape_cast %10 : vector<1x169x64xf32> to vector<169x64xf32>
    %cst_7 = arith.constant dense<0.000000e+00> : vector<2x64xf32>
    %12 = tpu.matmul %9, %11, %cst_7 {dimension_numbers = #tpu.dot_dimension_numbers<[1], [0], [0], [1], [0, 0, 1, 1], [], []>} : vector<2x169xf32>, vector<169x64xf32>, vector<2x64xf32> -> vector<2x64xf32>
    %13 = arith.addf %7, %12 : vector<2x64xf32>
    %14 = vector.extract_strided_slice %5 {offsets = [1, 0, 0], sizes = [1, 2, 169], strides = [1, 1, 1]} : vector<12x2x169xf32> to vector<1x2x169xf32>
    %15 = vector.shape_cast %14 : vector<1x2x169xf32> to vector<2x169xf32>
    %16 = vector.extract_strided_slice %6 {offsets = [1, 0, 0], sizes = [1, 169, 64], strides = [1, 1, 1]} : vector<12x169x64xf32> to vector<1x169x64xf32>
    %17 = vector.shape_cast %16 : vector<1x169x64xf32> to vector<169x64xf32>
    %cst_8 = arith.constant dense<0.000000e+00> : vector<2x64xf32>
    %18 = tpu.matmul %15, %17, %cst_8 {dimension_numbers = #tpu.dot_dimension_numbers<[1], [0], [0], [1], [0, 0, 1, 1], [], []>} : vector<2x169xf32>, vector<169x64xf32>, vector<2x64xf32> -> vector<2x64xf32>
    %19 = arith.addf %13, %18 : vector<2x64xf32>
    %20 = vector.extract_strided_slice %5 {offsets = [2, 0, 0], sizes = [1, 2, 169], strides = [1, 1, 1]} : vector<12x2x169xf32> to vector<1x2x169xf32>
    %21 = vector.shape_cast %20 : vector<1x2x169xf32> to vector<2x169xf32>
    %22 = vector.extract_strided_slice %6 {offsets = [2, 0, 0], sizes = [1, 169, 64], strides = [1, 1, 1]} : vector<12x169x64xf32> to vector<1x169x64xf32>
    %23 = vector.shape_cast %22 : vector<1x169x64xf32> to vector<169x64xf32>
    %cst_9 = arith.constant dense<0.000000e+00> : vector<2x64xf32>
    %24 = tpu.matmul %21, %23, %cst_9 {dimension_numbers = #tpu.dot_dimension_numbers<[1], [0], [0], [1], [0, 0, 1, 1], [], []>} : vector<2x169xf32>, vector<169x64xf32>, vector<2x64xf32> -> vector<2x64xf32>
    %25 = arith.addf %19, %24 : vector<2x64xf32>
    %26 = vector.extract_strided_slice %5 {offsets = [3, 0, 0], sizes = [1, 2, 169], strides = [1, 1, 1]} : vector<12x2x169xf32> to vector<1x2x169xf32>
    %27 = vector.shape_cast %26 : vector<1x2x169xf32> to vector<2x169xf32>
    %28 = vector.extract_strided_slice %6 {offsets = [3, 0, 0], sizes = [1, 169, 64], strides = [1, 1, 1]} : vector<12x169x64xf32> to vector<1x169x64xf32>
    %29 = vector.shape_cast %28 : vector<1x169x64xf32> to vector<169x64xf32>
    %cst_10 = arith.constant dense<0.000000e+00> : vector<2x64xf32>
    %30 = tpu.matmul %27, %29, %cst_10 {dimension_numbers = #tpu.dot_dimension_numbers<[1], [0], [0], [1], [0, 0, 1, 1], [], []>} : vector<2x169xf32>, vector<169x64xf32>, vector<2x64xf32> -> vector<2x64xf32>
    %31 = arith.addf %25, %30 : vector<2x64xf32>
    %32 = vector.extract_strided_slice %5 {offsets = [4, 0, 0], sizes = [1, 2, 169], strides = [1, 1, 1]} : vector<12x2x169xf32> to vector<1x2x169xf32>
    %33 = vector.shape_cast %32 : vector<1x2x169xf32> to vector<2x169xf32>
    %34 = vector.extract_strided_slice %6 {offsets = [4, 0, 0], sizes = [1, 169, 64], strides = [1, 1, 1]} : vector<12x169x64xf32> to vector<1x169x64xf32>
    %35 = vector.shape_cast %34 : vector<1x169x64xf32> to vector<169x64xf32>
    %cst_11 = arith.constant dense<0.000000e+00> : vector<2x64xf32>
    %36 = tpu.matmul %33, %35, %cst_11 {dimension_numbers = #tpu.dot_dimension_numbers<[1], [0], [0], [1], [0, 0, 1, 1], [], []>} : vector<2x169xf32>, vector<169x64xf32>, vector<2x64xf32> -> vector<2x64xf32>
    %37 = arith.addf %31, %36 : vector<2x64xf32>
    %38 = vector.extract_strided_slice %5 {offsets = [5, 0, 0], sizes = [1, 2, 169], strides = [1, 1, 1]} : vector<12x2x169xf32> to vector<1x2x169xf32>
    %39 = vector.shape_cast %38 : vector<1x2x169xf32> to vector<2x169xf32>
    %40 = vector.extract_strided_slice %6 {offsets = [5, 0, 0], sizes = [1, 169, 64], strides = [1, 1, 1]} : vector<12x169x64xf32> to vector<1x169x64xf32>
    %41 = vector.shape_cast %40 : vector<1x169x64xf32> to vector<169x64xf32>
    %cst_12 = arith.constant dense<0.000000e+00> : vector<2x64xf32>
    %42 = tpu.matmul %39, %41, %cst_12 {dimension_numbers = #tpu.dot_dimension_numbers<[1], [0], [0], [1], [0, 0, 1, 1], [], []>} : vector<2x169xf32>, vector<169x64xf32>, vector<2x64xf32> -> vector<2x64xf32>
    %43 = arith.addf %37, %42 : vector<2x64xf32>
    %44 = vector.extract_strided_slice %5 {offsets = [6, 0, 0], sizes = [1, 2, 169], strides = [1, 1, 1]} : vector<12x2x169xf32> to vector<1x2x169xf32>
    %45 = vector.shape_cast %44 : vector<1x2x169xf32> to vector<2x169xf32>
    %46 = vector.extract_strided_slice %6 {offsets = [6, 0, 0], sizes = [1, 169, 64], strides = [1, 1, 1]} : vector<12x169x64xf32> to vector<1x169x64xf32>
    %47 = vector.shape_cast %46 : vector<1x169x64xf32> to vector<169x64xf32>
    %cst_13 = arith.constant dense<0.000000e+00> : vector<2x64xf32>
    %48 = tpu.matmul %45, %47, %cst_13 {dimension_numbers = #tpu.dot_dimension_numbers<[1], [0], [0], [1], [0, 0, 1, 1], [], []>} : vector<2x169xf32>, vector<169x64xf32>, vector<2x64xf32> -> vector<2x64xf32>
    %49 = arith.addf %43, %48 : vector<2x64xf32>
    %50 = vector.extract_strided_slice %5 {offsets = [7, 0, 0], sizes = [1, 2, 169], strides = [1, 1, 1]} : vector<12x2x169xf32> to vector<1x2x169xf32>
    %51 = vector.shape_cast %50 : vector<1x2x169xf32> to vector<2x169xf32>
    %52 = vector.extract_strided_slice %6 {offsets = [7, 0, 0], sizes = [1, 169, 64], strides = [1, 1, 1]} : vector<12x169x64xf32> to vector<1x169x64xf32>
    %53 = vector.shape_cast %52 : vector<1x169x64xf32> to vector<169x64xf32>
    %cst_14 = arith.constant dense<0.000000e+00> : vector<2x64xf32>
    %54 = tpu.matmul %51, %53, %cst_14 {dimension_numbers = #tpu.dot_dimension_numbers<[1], [0], [0], [1], [0, 0, 1, 1], [], []>} : vector<2x169xf32>, vector<169x64xf32>, vector<2x64xf32> -> vector<2x64xf32>
    %55 = arith.addf %49, %54 : vector<2x64xf32>
    %56 = vector.extract_strided_slice %5 {offsets = [8, 0, 0], sizes = [1, 2, 169], strides = [1, 1, 1]} : vector<12x2x169xf32> to vector<1x2x169xf32>
    %57 = vector.shape_cast %56 : vector<1x2x169xf32> to vector<2x169xf32>
    %58 = vector.extract_strided_slice %6 {offsets = [8, 0, 0], sizes = [1, 169, 64], strides = [1, 1, 1]} : vector<12x169x64xf32> to vector<1x169x64xf32>
    %59 = vector.shape_cast %58 : vector<1x169x64xf32> to vector<169x64xf32>
    %cst_15 = arith.constant dense<0.000000e+00> : vector<2x64xf32>
    %60 = tpu.matmul %57, %59, %cst_15 {dimension_numbers = #tpu.dot_dimension_numbers<[1], [0], [0], [1], [0, 0, 1, 1], [], []>} : vector<2x169xf32>, vector<169x64xf32>, vector<2x64xf32> -> vector<2x64xf32>
    %61 = arith.addf %55, %60 : vector<2x64xf32>
    %62 = vector.extract_strided_slice %5 {offsets = [9, 0, 0], sizes = [1, 2, 169], strides = [1, 1, 1]} : vector<12x2x169xf32> to vector<1x2x169xf32>
    %63 = vector.shape_cast %62 : vector<1x2x169xf32> to vector<2x169xf32>
    %64 = vector.extract_strided_slice %6 {offsets = [9, 0, 0], sizes = [1, 169, 64], strides = [1, 1, 1]} : vector<12x169x64xf32> to vector<1x169x64xf32>
    %65 = vector.shape_cast %64 : vector<1x169x64xf32> to vector<169x64xf32>
    %cst_16 = arith.constant dense<0.000000e+00> : vector<2x64xf32>
    %66 = tpu.matmul %63, %65, %cst_16 {dimension_numbers = #tpu.dot_dimension_numbers<[1], [0], [0], [1], [0, 0, 1, 1], [], []>} : vector<2x169xf32>, vector<169x64xf32>, vector<2x64xf32> -> vector<2x64xf32>
    %67 = arith.addf %61, %66 : vector<2x64xf32>
    %68 = vector.extract_strided_slice %5 {offsets = [10, 0, 0], sizes = [1, 2, 169], strides = [1, 1, 1]} : vector<12x2x169xf32> to vector<1x2x169xf32>
    %69 = vector.shape_cast %68 : vector<1x2x169xf32> to vector<2x169xf32>
    %70 = vector.extract_strided_slice %6 {offsets = [10, 0, 0], sizes = [1, 169, 64], strides = [1, 1, 1]} : vector<12x169x64xf32> to vector<1x169x64xf32>
    %71 = vector.shape_cast %70 : vector<1x169x64xf32> to vector<169x64xf32>
    %cst_17 = arith.constant dense<0.000000e+00> : vector<2x64xf32>
    %72 = tpu.matmul %69, %71, %cst_17 {dimension_numbers = #tpu.dot_dimension_numbers<[1], [0], [0], [1], [0, 0, 1, 1], [], []>} : vector<2x169xf32>, vector<169x64xf32>, vector<2x64xf32> -> vector<2x64xf32>
    %73 = arith.addf %67, %72 : vector<2x64xf32>
    %74 = vector.extract_strided_slice %5 {offsets = [11, 0, 0], sizes = [1, 2, 169], strides = [1, 1, 1]} : vector<12x2x169xf32> to vector<1x2x169xf32>
    %75 = vector.shape_cast %74 : vector<1x2x169xf32> to vector<2x169xf32>
    %76 = vector.extract_strided_slice %6 {offsets = [11, 0, 0], sizes = [1, 169, 64], strides = [1, 1, 1]} : vector<12x169x64xf32> to vector<1x169x64xf32>
    %77 = vector.shape_cast %76 : vector<1x169x64xf32> to vector<169x64xf32>
    %cst_18 = arith.constant dense<0.000000e+00> : vector<2x64xf32>
    %78 = tpu.matmul %75, %77, %cst_18 {dimension_numbers = #tpu.dot_dimension_numbers<[1], [0], [0], [1], [0, 0, 1, 1], [], []>} : vector<2x169xf32>, vector<169x64xf32>, vector<2x64xf32> -> vector<2x64xf32>
    %79 = arith.addf %73, %78 : vector<2x64xf32>
    %c0_19 = arith.constant 0 : index
    %c0_20 = arith.constant 0 : index
    %80 = vector.load %arg3[%c0_19, %c0_20] : memref<1x64xf32, #tpu.memory_space<vmem>>, vector<1x64xf32>
    %81 = vector.broadcast %80 : vector<1x64xf32> to vector<2x64xf32>
    %82 = arith.addf %79, %81 : vector<2x64xf32>
    %cst_21 = arith.constant 0.000000e+00 : f32
    %83 = vector.broadcast %cst_21 : f32 to vector<2x64xf32>
    %84 = arith.cmpf ogt, %82, %83 : vector<2x64xf32>
    %cst_22 = arith.constant 1.000000e-01 : f32
    %85 = vector.broadcast %cst_22 : f32 to vector<2x64xf32>
    %86 = arith.mulf %85, %82 : vector<2x64xf32>
    %87 = arith.select %84, %82, %86 : vector<2x64xi1>, vector<2x64xf32>
    %c0_23 = arith.constant 0 : index
    %c0_24 = arith.constant 0 : index
    %88 = vector.load %arg4[%c0_23, %c0_24] : memref<64x128xf32, #tpu.memory_space<vmem>>, vector<64x128xf32>
    %cst_25 = arith.constant dense<0.000000e+00> : vector<2x128xf32>
    %89 = tpu.matmul %87, %88, %cst_25 {dimension_numbers = #tpu.dot_dimension_numbers<[1], [0], [0], [1], [0, 0, 1, 1], [], []>} : vector<2x64xf32>, vector<64x128xf32>, vector<2x128xf32> -> vector<2x128xf32>
    %c0_26 = arith.constant 0 : index
    %c0_27 = arith.constant 0 : index
    %90 = vector.load %arg5[%c0_26, %c0_27] : memref<1x128xf32, #tpu.memory_space<vmem>>, vector<1x128xf32>
    %91 = vector.broadcast %90 : vector<1x128xf32> to vector<2x128xf32>
    %92 = arith.addf %89, %91 : vector<2x128xf32>
    %c0_28 = arith.constant 0 : index
    %c0_29 = arith.constant 0 : index
    %93 = vector.load %arg6[%c0_28, %c0_29] : memref<2x128xf32, #tpu.memory_space<vmem>>, vector<2x128xf32>
    tpu.vector_store %arg6[%c0_28, %c0_29], %92 {strides = array<i32>} : memref<2x128xf32, #tpu.memory_space<vmem>>, vector<2x128xf32>,
    return
  }
  func.func @transform_0(%arg0: i32) -> (i32, i32, i32) {
    %c0_i32 = arith.constant 0 : i32
    %c0_i32_0 = arith.constant 0 : i32
    %c0_i32_1 = arith.constant 0 : i32
    %c0_i32_2 = arith.constant 0 : i32
    return %c0_i32, %c0_i32_0, %c0_i32_1 : i32, i32, i32
  }
  func.func @transform_1(%arg0: i32) -> (i32, i32, i32) {
    %c0_i32 = arith.constant 0 : i32
    %c0_i32_0 = arith.constant 0 : i32
    %c0_i32_1 = arith.constant 0 : i32
    %c0_i32_2 = arith.constant 0 : i32
    return %c0_i32, %c0_i32_0, %c0_i32_1 : i32, i32, i32
  }
  func.func @transform_2(%arg0: i32) -> (i32, i32) {
    %c0_i32 = arith.constant 0 : i32
    %c0_i32_0 = arith.constant 0 : i32
    %c0_i32_1 = arith.constant 0 : i32
    return %c0_i32, %c0_i32_0 : i32, i32
  }
  func.func @transform_3(%arg0: i32) -> (i32, i32) {
    %c0_i32 = arith.constant 0 : i32
    %c0_i32_0 = arith.constant 0 : i32
    %c0_i32_1 = arith.constant 0 : i32
    return %c0_i32, %c0_i32_0 : i32, i32
  }
  func.func @transform_4(%arg0: i32) -> (i32, i32) {
    %c0_i32 = arith.constant 0 : i32
    %c0_i32_0 = arith.constant 0 : i32
    %c0_i32_1 = arith.constant 0 : i32
    return %c0_i32, %c0_i32_0 : i32, i32
  }
  func.func @transform_5(%arg0: i32) -> (i32, i32) {
    %c0_i32 = arith.constant 0 : i32
    %c0_i32_0 = arith.constant 0 : i32
    %c0_i32_1 = arith.constant 0 : i32
    return %c0_i32, %c0_i32_0 : i32, i32
  }
}

</mosaic_0001>

<bundles_post_ra>
// kernel: inception_net_forward.2
= control target key start
LH: loop header
LB: loop body
LE: loop exit
PB: predicated region body
PF: predicated region fallthrough
CT: control target
= control target key end

     0   :  { %9 = vsyncpa [#allocation3], 0  ;;  %s7797_s0 = inlined_call_operand.vmem [shape: f32[16,8,128], index: 0, kind: input, shape index: {}]   ;;  %s7798_s1 = inlined_call_operand.vmem [shape: f32[128], index: 1, kind: input, shape index: {}]   ;;  %s7799_s2 = inlined_call_operand.vmem [shape: f32[8], index: 2, kind: input, shape index: {}]   ;;  %s7800_s3 = inlined_call_operand.vmem [shape: f32[32], index: 3, kind: input, shape index: {}]   ;;  %s7801_s4 = inlined_call_operand.vmem [shape: f32[12,8,128], index: 4, kind: output, shape index: {}]  }
   0x1   :  { %10 = vsyncpa [#allocation5], 0  ;;  %s29_s17 = sshll.u32 %s7799_s2, 4  ;;  %s19_s20 = sshll.u32 %s7798_s1, 4  ;;  %s30_s17 = int_to_ptr.vmem [resolvable:$true] %s29_s17  ;;  %s20_s20 = int_to_ptr.vmem [resolvable:$true] %s19_s20 }
   0x2   :  { %s4715_s21 = scalar_lea.vmem %s30_s17, 16  ;;  %p4720_p1 = scmp.lt.s32.totalorder %s30_s17, %s30_s17 }
   0x3   :  { %p4716_p0 = scmp.ne.s32.totalorder %s30_s17, %s4715_s21  ;;  %p4721_p2 = scmp.lt.s32.totalorder %s4715_s21, %s4715_s21 }
   0x5   :  { %p4722_p3 = por %p4721_p2, %p4720_p1 }
   0x7   :  { %p4723_p4 = pnand %p4722_p3, %p4716_p0 }
   0x9   :  { %4726 = shalt.err (!%p4723_p4)
}
   0xa   :  { %s4755_s22 = smov [#allocation4]   ;;  %s4727_s23 = scalar_lea.vmem %s20_s20, 16 }
   0xb   :  { %32 = dma.vmem_to_smem %s30_s17, 16, %s4755_s22, [#allocation5]  }
   0xc   :  { %p4728_p5 = scmp.ne.s32.totalorder %s20_s20, %s4727_s23  ;;  %p4732_p6 = scmp.lt.s32.totalorder %s20_s20, %s20_s20 }
   0xd   :  { %p4733_p7 = scmp.lt.s32.totalorder %s4727_s23, %s4727_s23 }
   0xf   :  { %p4734_p8 = por %p4733_p7, %p4732_p6 }
  0x11   :  { %p4735_p9 = pnand %p4734_p8, %p4728_p5 }
  0x13   :  { %4738 = shalt.err (!%p4735_p9)
}
  0x14   :  { %s4756_s2 = smov [#allocation2]   ;;  %s39_s25 = sshll.u32 %s7800_s3, 4  ;;  %s40_s25 = int_to_ptr.vmem [resolvable:$true] %s39_s25 }
  0x15   :  { %22 = dma.vmem_to_smem %s20_s20, 16, %s4756_s2, [#allocation3]  }
  0x16   :  { %s4739_s26 = scalar_lea.vmem %s40_s25, 16  ;;  %p4744_p11 = scmp.lt.s32.totalorder %s40_s25, %s40_s25 }
  0x17   :  { %p4740_p10 = scmp.ne.s32.totalorder %s40_s25, %s4739_s26  ;;  %p4745_p12 = scmp.lt.s32.totalorder %s4739_s26, %s4739_s26 }
  0x19   :  { %p4746_p13 = por %p4745_p12, %p4744_p11 }
  0x1b   :  { %p4747_p0 = pnand %p4746_p13, %p4740_p10 }
  0x1d   :  { %4750 = shalt.err (!%p4747_p0)
}
  0x1e   :  { %s4757_s27 = smov [#allocation6]  }
  0x1f   :  { %42 = dma.vmem_to_smem %s40_s25, 16, %s4757_s27, [#allocation5]  }
  0x20   :  { %4751 = dma.done.wait [#allocation3], 16  }
  0x21   :  { %4752 = vsyncadd [#allocation3], 4294967280 }
  0x22   :  { %4753 = dma.done.wait [#allocation5], 32  }
  0x23   :  { %4754 = vsyncadd [#allocation5], 4294967264 }
  0x24   :  { %52 = sfence }
  0x25   :  { %s53_s28 = sld [smem:[#allocation2]]  ;;  %s4244_s29 = sld [smem:[#allocation2 + $0x1]]  ;;  %v4813_v4 = vld [vmem:[%s7797_s0] sm:$0xff]  ;;  %v4828_v11 = vld [vmem:[%s7797_s0 + $0x8] sm:$0xff]  ;;  %v4857_v28 = vld [vmem:[%s7797_s0 + $0x10] sm:$0xff] }
  0x26   :  { %s4245_s30 = sld [smem:[#allocation2 + $0x2]]  ;;  %s4246_s5 = sld [smem:[#allocation2 + $0x3]]  ;;  %v4884_v45 = vld [vmem:[%s7797_s0 + $0x18] sm:$0xff]  ;;  %v4910_v62 = vld [vmem:[%s7797_s0 + $0x20] sm:$0xff] }
  0x27   :  { %s4247_s3 = sld [smem:[#allocation2 + $0x4]]  ;;  %s4248_s6 = sld [smem:[#allocation2 + $0x5]] }
  0x28   :  { %s4251_s7 = sld [smem:[#allocation2 + $0x8]]  ;;  %s4252_s8 = sld [smem:[#allocation2 + $0x9]] }
  0x29   :  { %s4798_s9 = sld [smem:[#allocation2 + $0xa]]  ;;  %s4800_s10 = sld [smem:[#allocation2 + $0xb]] }
  0x2a   :  { %s4802_s11 = sld [smem:[#allocation2 + $0xc]]  ;;  %s4804_s12 = sld [smem:[#allocation2 + $0xd]] }
  0x2b   :  { %v244_v0 = vstv %s53_s28  ;;  %v294_v1 = vstv %s4244_s29  ;;  %s4806_s13 = sld [smem:[#allocation2 + $0x10]]  ;;  %s4808_s14 = sld [smem:[#allocation2 + $0x11]] }
  0x2c   :  { %v345_v2 = vstv %s4245_s30  ;;  %v396_v3 = vstv %s4246_s5  ;;  %s4815_s17 = sld [smem:[#allocation2 + $0x12]]  ;;  %s4817_s18 = sld [smem:[#allocation2 + $0x13]]  ;;  %v245_v7 = vmul.f32 %v244_v0, %v4813_v4  ;;  %v295_v8 = vmul.f32 %v294_v1, %v4813_v4 }
  0x2d   :  { %v447_v5 = vstv %s4247_s3  ;;  %v498_v6 = vstv %s4248_s6  ;;  %v346_v9 = vmul.f32 %v345_v2, %v4813_v4  ;;  %v397_v10 = vmul.f32 %v396_v3, %v4813_v4  ;;  %s4823_s19 = sld [smem:[#allocation2 + $0x14]]  ;;  %s4832_s22 = sld [smem:[#allocation2 + $0x15]] }
  0x2e   :  { %v246_v12 = vstv %s4251_s7  ;;  %v296_v13 = vstv %s4252_s8  ;;  %v448_v14 = vmul.f32 %v447_v5, %v4813_v4  ;;  %v499_v15 = vmul.f32 %v498_v6, %v4813_v4  ;;  %s4838_s23 = sld [smem:[#allocation2 + $0x18]]  ;;  %s4840_s2 = sld [smem:[#allocation2 + $0x19]] }
  0x2f   :  { %v247_v16 = vmul.f32 %v4828_v11, %v246_v12  ;;  %v297_v17 = vmul.f32 %v4828_v11, %v296_v13  ;;  %v347_v18 = vstv %s4798_s9  ;;  %v398_v19 = vstv %s4800_s10  ;;  %s4846_s1 = sld [smem:[#allocation2 + $0x1a]]  ;;  %s4848_s24 = sld [smem:[#allocation2 + $0x1b]] }
  0x30   :  { %v348_v20 = vmul.f32 %v4828_v11, %v347_v18  ;;  %v399_v21 = vmul.f32 %v4828_v11, %v398_v19  ;;  %v449_v22 = vstv %s4802_s11  ;;  %v500_v23 = vstv %s4804_s12  ;;  %s4852_s25 = sld [smem:[#allocation2 + $0x1c]]  ;;  %s4865_s28 = sld [smem:[#allocation2 + $0x20]] }
  0x31   :  { %v248_v24 = vadd.f32 %v247_v16, %v245_v7  ;;  %v298_v25 = vadd.f32 %v297_v17, %v295_v8  ;;  %v450_v26 = vmul.f32 %v4828_v11, %v449_v22  ;;  %v501_v27 = vmul.f32 %v4828_v11, %v500_v23  ;;  %s4867_s29 = sld [smem:[#allocation2 + $0x21]]  ;;  %s4872_s30 = sld [smem:[#allocation2 + $0x22]]  ;;  %v4938_v17 = vld [vmem:[%s7797_s0 + $0x28] sm:$0xff] }
  0x32   :  { %v249_v29 = vstv %s4806_s13  ;;  %v299_v30 = vstv %s4808_s14  ;;  %v349_v31 = vadd.f32 %v348_v20, %v346_v9  ;;  %v400_v32 = vadd.f32 %v399_v21, %v397_v10  ;;  %s4874_s5 = sld [smem:[#allocation2 + $0x23]]  ;;  %s4879_s3 = sld [smem:[#allocation2 + $0x24]] }
  0x33   :  { %v250_v33 = vmul.f32 %v4857_v28, %v249_v29  ;;  %v300_v34 = vmul.f32 %v4857_v28, %v299_v30  ;;  %v350_v35 = vstv %s4815_s17  ;;  %v401_v36 = vstv %s4817_s18  ;;  %s4892_s8 = sld [smem:[#allocation2 + $0x28]]  ;;  %s4894_s9 = sld [smem:[#allocation2 + $0x29]] }
  0x34   :  { %v351_v37 = vmul.f32 %v4857_v28, %v350_v35  ;;  %v402_v38 = vmul.f32 %v4857_v28, %v401_v36  ;;  %v451_v39 = vadd.f32 %v450_v26, %v448_v14  ;;  %v452_v40 = vstv %s4823_s19  ;;  %s4899_s10 = sld [smem:[#allocation2 + $0x2a]]  ;;  %s4901_s11 = sld [smem:[#allocation2 + $0x2b]]  ;;  %v4966_v35 = vld [vmem:[%s7797_s0 + $0x30] sm:$0xff] }
  0x35   :  { %v251_v41 = vadd.f32 %v250_v33, %v248_v24  ;;  %v301_v42 = vadd.f32 %v300_v34, %v298_v25  ;;  %v453_v43 = vmul.f32 %v4857_v28, %v452_v40  ;;  %v4877_v44 = vadd.f32 %v501_v27, %v499_v15  ;;  %s4905_s12 = sld [smem:[#allocation2 + $0x2c]]  ;;  %s4914_s15 = sld [smem:[#allocation2 + $0x1d]] }
  0x36   :  { %v252_v46 = vstv %s4838_s23  ;;  %v302_v47 = vstv %s4840_s2  ;;  %v352_v48 = vadd.f32 %v351_v37, %v349_v31  ;;  %v403_v49 = vadd.f32 %v402_v38, %v400_v32  ;;  %s4920_s16 = sld [smem:[#allocation2 + $0x30]]  ;;  %s4922_s17 = sld [smem:[#allocation2 + $0x31]] }
  0x37   :  { %v253_v50 = vmul.f32 %v4884_v45, %v252_v46  ;;  %v303_v51 = vmul.f32 %v4884_v45, %v302_v47  ;;  %v353_v52 = vstv %s4846_s1  ;;  %v404_v53 = vstv %s4848_s24  ;;  %s4927_s18 = sld [smem:[#allocation2 + $0x32]]  ;;  %s4929_s19 = sld [smem:[#allocation2 + $0x33]] }
  0x38   :  { %v354_v54 = vmul.f32 %v4884_v45, %v353_v52  ;;  %v405_v55 = vmul.f32 %v4884_v45, %v404_v53  ;;  %v454_v56 = vadd.f32 %v453_v43, %v451_v39  ;;  %v455_v57 = vstv %s4852_s25  ;;  %s4933_s20 = sld [smem:[#allocation2 + $0x34]]  ;;  %s4946_s23 = sld [smem:[#allocation2 + $0x38]]  ;;  %v4992_v53 = vld [vmem:[%s7797_s0 + $0x38] sm:$0xff] }
  0x39   :  { %v254_v58 = vadd.f32 %v253_v50, %v251_v41  ;;  %v304_v59 = vadd.f32 %v303_v51, %v301_v42  ;;  %v456_v60 = vmul.f32 %v4884_v45, %v455_v57  ;;  %v503_v61 = vstv %s4832_s22  ;;  %s4948_s2 = sld [smem:[#allocation2 + $0x39]]  ;;  %s4953_s1 = sld [smem:[#allocation2 + $0x3a]] }
  0x3a   :  { %v255_v63 = vstv %s4865_s28  ;;  %v305_v0 = vstv %s4867_s29  ;;  %v355_v1 = vadd.f32 %v354_v54, %v352_v48  ;;  %v406_v2 = vadd.f32 %v405_v55, %v403_v49  ;;  %s4955_s24 = sld [smem:[#allocation2 + $0x3b]]  ;;  %s4961_s25 = sld [smem:[#allocation2 + $0x3c]] }
  0x3b   :  { %v256_v3 = vmul.f32 %v4910_v62, %v255_v63  ;;  %v306_v5 = vmul.f32 %v4910_v62, %v305_v0  ;;  %v356_v6 = vstv %s4872_s30  ;;  %v407_v7 = vstv %s4874_s5  ;;  %s4974_s28 = sld [smem:[#allocation2 + $0x40]]  ;;  %s4976_s29 = sld [smem:[#allocation2 + $0x41]] }
  0x3c   :  { %v357_v8 = vmul.f32 %v4910_v62, %v356_v6  ;;  %v408_v9 = vmul.f32 %v4910_v62, %v407_v7  ;;  %v457_v10 = vadd.f32 %v456_v60, %v454_v56  ;;  %v458_v12 = vstv %s4879_s3  ;;  %s4981_s30 = sld [smem:[#allocation2 + $0x42]]  ;;  %s4983_s5 = sld [smem:[#allocation2 + $0x43]] }
  0x3d   :  { %v257_v13 = vadd.f32 %v256_v3, %v254_v58  ;;  %v307_v14 = vadd.f32 %v306_v5, %v304_v59  ;;  %v459_v15 = vmul.f32 %v4910_v62, %v458_v12  ;;  %v504_v16 = vmul.f32 %v4857_v28, %v503_v61  ;;  %s4987_s3 = sld [smem:[#allocation2 + $0x44]]  ;;  %s5179_s26 = sld [smem:[#allocation2 + $0x6]] }
  0x3e   :  { %v258_v18 = vstv %s4892_s8  ;;  %v308_v19 = vstv %s4894_s9  ;;  %v358_v20 = vadd.f32 %v357_v8, %v355_v1  ;;  %v409_v21 = vadd.f32 %v408_v9, %v406_v2  ;;  %s4996_s8 = sld [smem:[#allocation2 + $0x25]]  ;;  %s5002_s9 = sld [smem:[#allocation2 + $0x48]]  ;;  %v5020_v8 = vld [vmem:[%s7797_s0 + $0x40] sm:$0xff] }
  0x3f   :  { %v259_v22 = vmul.f32 %v4938_v17, %v258_v18  ;;  %v309_v23 = vmul.f32 %v4938_v17, %v308_v19  ;;  %v359_v24 = vstv %s4899_s10  ;;  %v410_v25 = vstv %s4901_s11  ;;  %s5004_s10 = sld [smem:[#allocation2 + $0x49]]  ;;  %s5009_s11 = sld [smem:[#allocation2 + $0x4a]] }
  0x40   :  { %v360_v26 = vmul.f32 %v4938_v17, %v359_v24  ;;  %v411_v27 = vmul.f32 %v4938_v17, %v410_v25  ;;  %v460_v29 = vadd.f32 %v459_v15, %v457_v10  ;;  %v461_v30 = vstv %s4905_s12  ;;  %s5011_s12 = sld [smem:[#allocation2 + $0x4b]]  ;;  %s5015_s13 = sld [smem:[#allocation2 + $0x4c]] }
  0x41   :  { %v260_v31 = vadd.f32 %v259_v22, %v257_v13  ;;  %v310_v32 = vadd.f32 %v309_v23, %v307_v14  ;;  %v462_v33 = vmul.f32 %v4938_v17, %v461_v30  ;;  %v4959_v34 = vadd.f32 %v504_v16, %v4877_v44  ;;  %s5097_s6 = sld [smem:[#allocation2 + $0x64]]  ;;  %s5205_s7 = sld [smem:[#allocation4 + $0x2]] }
  0x42   :  { %v261_v36 = vstv %s4920_s16  ;;  %v311_v37 = vstv %s4922_s17  ;;  %v361_v38 = vadd.f32 %v360_v26, %v358_v20  ;;  %v412_v39 = vadd.f32 %v411_v27, %v409_v21  ;;  %s5028_s16 = sld [smem:[#allocation2 + $0x50]]  ;;  %s5030_s17 = sld [smem:[#allocation2 + $0x51]]  ;;  %v5048_v27 = vld [vmem:[%s7797_s0 + $0x48] sm:$0xff] }
  0x43   :  { %v262_v40 = vmul.f32 %v4966_v35, %v261_v36  ;;  %v312_v41 = vmul.f32 %v4966_v35, %v311_v37  ;;  %v362_v42 = vstv %s4927_s18  ;;  %v413_v43 = vstv %s4929_s19  ;;  %s5035_s18 = sld [smem:[#allocation2 + $0x52]]  ;;  %s5037_s19 = sld [smem:[#allocation2 + $0x53]] }
  0x44   :  { %v363_v44 = vmul.f32 %v4966_v35, %v362_v42  ;;  %v414_v46 = vmul.f32 %v4966_v35, %v413_v43  ;;  %v463_v47 = vadd.f32 %v462_v33, %v460_v29  ;;  %v464_v48 = vstv %s4933_s20  ;;  %s5043_s20 = sld [smem:[#allocation2 + $0x54]]  ;;  %s5231_s14 = sld [smem:[#allocation2 + $0x5d]] }
  0x45   :  { %v263_v49 = vadd.f32 %v262_v40, %v260_v31  ;;  %v313_v50 = vadd.f32 %v312_v41, %v310_v32  ;;  %v465_v51 = vmul.f32 %v4966_v35, %v464_v48  ;;  %v506_v52 = vstv %s4914_s15  ;;  %s5181_s27 = sld [smem:[#allocation2 + $0x7c]]  ;;  %s5235_s15 = sld [smem:[#allocation2 + $0xe]] }
  0x46   :  { %v264_v54 = vstv %s4946_s23  ;;  %v314_v55 = vstv %s4948_s2  ;;  %v364_v56 = vadd.f32 %v363_v44, %v361_v38  ;;  %v415_v57 = vadd.f32 %v414_v46, %v412_v39  ;;  %s5056_s23 = sld [smem:[#allocation2 + $0x58]]  ;;  %s5058_s2 = sld [smem:[#allocation2 + $0x59]] }
  0x47   :  { %v265_v58 = vmul.f32 %v4992_v53, %v264_v54  ;;  %v315_v59 = vmul.f32 %v4992_v53, %v314_v55  ;;  %v365_v60 = vstv %s4953_s1  ;;  %v416_v61 = vstv %s4955_s24  ;;  %s5063_s1 = sld [smem:[#allocation2 + $0x5a]]  ;;  %s5065_s24 = sld [smem:[#allocation2 + $0x5b]] }
  0x48   :  { %v366_v63 = vmul.f32 %v4992_v53, %v365_v60  ;;  %v417_v0 = vmul.f32 %v4992_v53, %v416_v61  ;;  %v466_v1 = vadd.f32 %v465_v51, %v463_v47  ;;  %v467_v2 = vstv %s4961_s25  ;;  %s5069_s25 = sld [smem:[#allocation2 + $0x5c]]  ;;  %v5074_v47 = vld [vmem:[%s7797_s0 + $0x50] sm:$0xff]  ;;  %s5252_s21 = sld [smem:[#allocation2 + $0x2e]] }
  0x49   :  { %v266_v3 = vadd.f32 %v265_v58, %v263_v49  ;;  %v316_v5 = vadd.f32 %v315_v59, %v313_v50  ;;  %v468_v6 = vmul.f32 %v4992_v53, %v467_v2  ;;  %v507_v7 = vmul.f32 %v4884_v45, %v506_v52  ;;  %v5102_v2 = vld [vmem:[%s7797_s0 + $0x58] sm:$0xff]  ;;  %s5340_s22 = sld [smem:[#allocation2 + $0x7e]] }
  0x4a   :  { %v267_v9 = vstv %s4974_s28  ;;  %v317_v10 = vstv %s4976_s29  ;;  %v367_v12 = vadd.f32 %v366_v63, %v364_v56  ;;  %v418_v13 = vadd.f32 %v417_v0, %v415_v57  ;;  %s5078_s28 = sld [smem:[#allocation2 + $0x2d]]  ;;  %s5084_s29 = sld [smem:[#allocation2 + $0x60]] }
  0x4b   :  { %v268_v14 = vmul.f32 %v5020_v8, %v267_v9  ;;  %v318_v15 = vmul.f32 %v5020_v8, %v317_v10  ;;  %v368_v16 = vstv %s4981_s30  ;;  %v419_v18 = vstv %s4983_s5  ;;  %s5086_s30 = sld [smem:[#allocation2 + $0x61]]  ;;  %s5091_s5 = sld [smem:[#allocation2 + $0x62]] }
  0x4c   :  { %v369_v19 = vmul.f32 %v5020_v8, %v368_v16  ;;  %v420_v20 = vmul.f32 %v5020_v8, %v419_v18  ;;  %v469_v21 = vadd.f32 %v468_v6, %v466_v1  ;;  %v470_v22 = vstv %s4987_s3  ;;  %s5093_s3 = sld [smem:[#allocation2 + $0x63]] }
  0x4d   :  { %v269_v23 = vadd.f32 %v268_v14, %v266_v3  ;;  %v319_v24 = vadd.f32 %v318_v15, %v316_v5  ;;  %v471_v25 = vmul.f32 %v5020_v8, %v470_v22  ;;  %v5041_v26 = vadd.f32 %v507_v7, %v4959_v34 }
  0x4e   :  { %v270_v29 = vstv %s5002_s9  ;;  %v320_v30 = vstv %s5004_s10  ;;  %v370_v31 = vadd.f32 %v369_v19, %v367_v12  ;;  %v421_v32 = vadd.f32 %v420_v20, %v418_v13  ;;  %s5110_s9 = sld [smem:[#allocation2 + $0x68]]  ;;  %s5112_s10 = sld [smem:[#allocation2 + $0x69]] }
  0x4f   :  { %v271_v33 = vmul.f32 %v5048_v27, %v270_v29  ;;  %v321_v36 = vmul.f32 %v5048_v27, %v320_v30  ;;  %v371_v37 = vstv %s5009_s11  ;;  %v422_v34 = vstv %s5011_s12  ;;  %s5117_s11 = sld [smem:[#allocation2 + $0x6a]]  ;;  %s5119_s12 = sld [smem:[#allocation2 + $0x6b]] }
  0x50   :  { %v372_v38 = vmul.f32 %v5048_v27, %v371_v37  ;;  %v423_v39 = vmul.f32 %v5048_v27, %v422_v34  ;;  %v472_v40 = vadd.f32 %v471_v25, %v469_v21  ;;  %v473_v41 = vstv %s5015_s13  ;;  %s5125_s13 = sld [smem:[#allocation2 + $0x6c]] }
  0x51   :  { %v272_v42 = vadd.f32 %v271_v33, %v269_v23  ;;  %v322_v43 = vadd.f32 %v321_v36, %v319_v24  ;;  %v474_v44 = vmul.f32 %v5048_v27, %v473_v41  ;;  %v509_v46 = vstv %s4996_s8  ;;  %v5130_v23 = vld [vmem:[%s7797_s0 + $0x60] sm:$0xff]  ;;  %s5207_s8 = sld [smem:[#allocation4 + $0x3]] }
  0x52   :  { %v273_v48 = vstv %s5028_s16  ;;  %v323_v49 = vstv %s5030_s17  ;;  %v373_v50 = vadd.f32 %v372_v38, %v370_v31  ;;  %v424_v51 = vadd.f32 %v423_v39, %v421_v32  ;;  %s5138_s16 = sld [smem:[#allocation2 + $0x70]]  ;;  %s5140_s17 = sld [smem:[#allocation2 + $0x71]] }
  0x53   :  { %v274_v52 = vmul.f32 %v5074_v47, %v273_v48  ;;  %v324_v54 = vmul.f32 %v5074_v47, %v323_v49  ;;  %v374_v55 = vstv %s5035_s18  ;;  %v425_v56 = vstv %s5037_s19  ;;  %s5145_s18 = sld [smem:[#allocation2 + $0x72]]  ;;  %s5147_s19 = sld [smem:[#allocation2 + $0x73]] }
  0x54   :  { %v375_v57 = vmul.f32 %v5074_v47, %v374_v55  ;;  %v426_v58 = vmul.f32 %v5074_v47, %v425_v56  ;;  %v475_v59 = vadd.f32 %v474_v44, %v472_v40  ;;  %v476_v60 = vstv %s5043_s20  ;;  %s5151_s20 = sld [smem:[#allocation2 + $0x74]] }
  0x55   :  { %v275_v61 = vadd.f32 %v274_v52, %v272_v42  ;;  %v325_v63 = vadd.f32 %v324_v54, %v322_v43  ;;  %v477_v0 = vmul.f32 %v5074_v47, %v476_v60  ;;  %v510_v1 = vmul.f32 %v4910_v62, %v509_v46  ;;  %v5156_v43 = vld [vmem:[%s7797_s0 + $0x68] sm:$0xff] }
  0x56   :  { %v276_v3 = vstv %s5056_s23  ;;  %v326_v5 = vstv %s5058_s2  ;;  %v376_v6 = vadd.f32 %v375_v57, %v373_v50  ;;  %v427_v7 = vadd.f32 %v426_v58, %v424_v51  ;;  %s5160_s23 = sld [smem:[#allocation2 + $0x35]]  ;;  %s5166_s2 = sld [smem:[#allocation2 + $0x78]] }
  0x57   :  { %v277_v9 = vmul.f32 %v5102_v2, %v276_v3  ;;  %v327_v10 = vmul.f32 %v5102_v2, %v326_v5  ;;  %v377_v12 = vstv %s5063_s1  ;;  %v428_v13 = vstv %s5065_s24  ;;  %s5168_s1 = sld [smem:[#allocation2 + $0x79]]  ;;  %s5173_s24 = sld [smem:[#allocation2 + $0x7a]] }
  0x58   :  { %v378_v14 = vmul.f32 %v5102_v2, %v377_v12  ;;  %v429_v15 = vmul.f32 %v5102_v2, %v428_v13  ;;  %v478_v16 = vadd.f32 %v477_v0, %v475_v59  ;;  %v479_v18 = vstv %s5069_s25  ;;  %s5175_s25 = sld [smem:[#allocation2 + $0x7b]]  ;;  %v5186_v0 = vld [vmem:[%s7797_s0 + $0x70] sm:$0xff] }
  0x59   :  { %v278_v19 = vadd.f32 %v277_v9, %v275_v61  ;;  %v328_v20 = vadd.f32 %v327_v10, %v325_v63  ;;  %v480_v21 = vmul.f32 %v5102_v2, %v479_v18  ;;  %v5123_v22 = vadd.f32 %v510_v1, %v5041_v26 }
  0x5a   :  { %v279_v24 = vstv %s5084_s29  ;;  %v329_v25 = vstv %s5086_s30  ;;  %v379_v29 = vadd.f32 %v378_v14, %v376_v6  ;;  %v430_v30 = vadd.f32 %v429_v15, %v427_v7  ;;  %s5190_s30 = sld [smem:[#allocation2 + $0x3d]]  ;;  %s5378_s29 = sld [smem:[#allocation4 + $0x6]] }
  0x5b   :  { %v280_v31 = vmul.f32 %v5130_v23, %v279_v24  ;;  %v330_v32 = vmul.f32 %v5130_v23, %v329_v25  ;;  %v380_v33 = vstv %s5091_s5  ;;  %v431_v26 = vstv %s5093_s3  ;;  %s5192_s5 = sld [smem:[#allocation2 + $0x45]]  ;;  %s5198_s3 = sld [smem:[#allocation4]]  ;;  %v5218_v24 = vld [vmem:[%s7797_s0 + $0x78] sm:$0xff] }
  0x5c   :  { %v381_v36 = vmul.f32 %v5130_v23, %v380_v33  ;;  %v432_v37 = vmul.f32 %v5130_v23, %v431_v26  ;;  %v481_v34 = vadd.f32 %v480_v21, %v478_v16  ;;  %v482_v38 = vstv %s5097_s6  ;;  %s5200_s6 = sld [smem:[#allocation4 + $0x1]] }
  0x5d   :  { %v281_v39 = vadd.f32 %v280_v31, %v278_v19  ;;  %v331_v40 = vadd.f32 %v330_v32, %v328_v20  ;;  %v483_v41 = vmul.f32 %v5130_v23, %v482_v38  ;;  %v512_v42 = vstv %s5078_s28  ;;  %s5376_s28 = sld [smem:[#allocation2 + $0x6f]] }
  0x5e   :  { %v282_v44 = vstv %s5110_s9  ;;  %v332_v46 = vstv %s5112_s10  ;;  %v382_v48 = vadd.f32 %v381_v36, %v379_v29  ;;  %v433_v49 = vadd.f32 %v432_v37, %v430_v30  ;;  %s5211_s9 = sld [smem:[#allocation2 + $0x4d]]  ;;  %s5213_s10 = sld [smem:[#allocation4 + $0x4]] }
  0x5f   :  { %v283_v50 = vmul.f32 %v5156_v43, %v282_v44  ;;  %v333_v51 = vmul.f32 %v5156_v43, %v332_v46  ;;  %v383_v52 = vstv %s5117_s11  ;;  %v434_v54 = vstv %s5119_s12  ;;  %s5302_s11 = sld [smem:[#allocation2 + $0xf]]  ;;  %s5304_s12 = sld [smem:[#allocation2 + $0x56]] }
  0x60   :  { %v384_v55 = vmul.f32 %v5156_v43, %v383_v52  ;;  %v435_v56 = vmul.f32 %v5156_v43, %v434_v54  ;;  %v484_v57 = vadd.f32 %v483_v41, %v481_v34  ;;  %v485_v58 = vstv %s5125_s13  ;;  %s5222_s13 = sld [smem:[#allocation2 + $0x55]] }
  0x61   :  { %v284_v59 = vadd.f32 %v283_v50, %v281_v39  ;;  %v334_v60 = vadd.f32 %v333_v51, %v331_v40  ;;  %v486_v61 = vmul.f32 %v5156_v43, %v485_v58  ;;  %v513_v63 = vmul.f32 %v4938_v17, %v512_v42 }
  0x62   :  { %v285_v1 = vstv %s5138_s16  ;;  %v335_v3 = vstv %s5140_s17  ;;  %v385_v5 = vadd.f32 %v384_v55, %v382_v48  ;;  %v436_v6 = vadd.f32 %v435_v56, %v433_v49  ;;  %s5237_s16 = sld [smem:[#allocation2 + $0x65]]  ;;  %s5241_s17 = sld [smem:[#allocation2 + $0x16]] }
  0x63   :  { %v286_v7 = vmul.f32 %v5186_v0, %v285_v1  ;;  %v336_v9 = vmul.f32 %v5186_v0, %v335_v3  ;;  %v386_v10 = vstv %s5145_s18  ;;  %v437_v12 = vstv %s5147_s19  ;;  %s5243_s18 = sld [smem:[#allocation2 + $0x1e]] }
  0x64   :  { %v387_v13 = vmul.f32 %v5186_v0, %v386_v10  ;;  %v438_v14 = vmul.f32 %v5186_v0, %v437_v12  ;;  %v487_v15 = vadd.f32 %v486_v61, %v484_v57  ;;  %v488_v16 = vstv %s5151_s20  ;;  %s5247_s19 = sld [smem:[#allocation2 + $0x26]]  ;;  %s5249_s20 = sld [smem:[#allocation2 + $0x6d]] }
  0x65   :  { %v287_v18 = vadd.f32 %v286_v7, %v284_v59  ;;  %v337_v19 = vadd.f32 %v336_v9, %v334_v60  ;;  %v489_v20 = vmul.f32 %v5186_v0, %v488_v16  ;;  %v514_v21 = vadd.f32 %v513_v63, %v5123_v22 }
  0x66   :  { %v288_v25 = vstv %s5166_s2  ;;  %v338_v29 = vstv %s5168_s1  ;;  %v388_v30 = vadd.f32 %v387_v13, %v385_v5  ;;  %v439_v31 = vadd.f32 %v438_v14, %v436_v6  ;;  %s5354_s2 = sld [smem:[#allocation2 + $0x47]] }
  0x67   :  { %v289_v22 = vmul.f32 %v5218_v24, %v288_v25  ;;  %v339_v32 = vmul.f32 %v5218_v24, %v338_v29  ;;  %v389_v33 = vstv %s5173_s24  ;;  %v440_v26 = vstv %s5175_s25  ;;  %s5263_s24 = sld [smem:[#allocation2 + $0x7]]  ;;  %s5265_s25 = sld [smem:[#allocation2 + $0x75]] }
  0x68   :  { %v390_v36 = vmul.f32 %v5218_v24, %v389_v33  ;;  %v441_v37 = vmul.f32 %v5218_v24, %v440_v26  ;;  %v490_v34 = vadd.f32 %v489_v20, %v487_v15  ;;  %v491_v38 = vstv %s5181_s27  ;;  %s5362_s1 = sld [smem:[#allocation2 + $0x4f]] }
  0x69   :  { %v290_v39 = vadd.f32 %v289_v22, %v287_v18  ;;  %v340_v40 = vadd.f32 %v339_v32, %v337_v19  ;;  %v492_v41 = vmul.f32 %v5218_v24, %v491_v38  ;;  %v515_v42 = vstv %s5160_s23  ;;  %s5348_s23 = sld [smem:[#allocation2 + $0x3f]] }
  0x6a   :  { %v291_v44 = vstv %s5198_s3  ;;  %v341_v46 = vstv %s5200_s6  ;;  %v391_v48 = vadd.f32 %v390_v36, %v388_v30  ;;  %v442_v49 = vadd.f32 %v441_v37, %v439_v31  ;;  %s5373_s27 = sld [smem:[#allocation2 + $0x67]]  ;;  %s7681_s6 = sld [smem:[#allocation6 + $0x1b]] }
  0x6b   :  { %v292_v50 = vadd.f32 %v291_v44, %v290_v39  ;;  %v342_v51 = vadd.f32 %v341_v46, %v340_v40  ;;  %v392_v52 = vstv %s5205_s7  ;;  %v443_v54 = vstv %s5207_s8  ;;  %s5285_s8 = sld [smem:[#allocation2 + $0x3e]]  ;;  %s5384_s3 = sld [smem:[#allocation2 + $0x77]] }
  0x6c   :  { %v393_v55 = vadd.f32 %v392_v52, %v391_v48  ;;  %v444_v56 = vadd.f32 %v443_v54, %v442_v49  ;;  %v493_v57 = vadd.f32 %v492_v41, %v490_v34  ;;  %v494_v58 = vstv %s5213_s10  ;;  %s5297_s10 = sld [smem:[#allocation2 + $0x4e]]  ;;  %s5396_s7 = sld [smem:[#allocation4 + $0x7]] }
  0x6d   :  { %293 = vst [vmem:[%s7801_s4] sm:$0xff] %v292_v50  ;;  %4416 = vst [vmem:[%s7801_s4 + $0x8] sm:$0xff] %v342_v51  ;;  %v516_v59 = vmul.f32 %v4966_v35, %v515_v42  ;;  %v518_v60 = vstv %s5190_s30  ;;  %v521_v61 = vstv %s5192_s5  ;;  %s5276_s30 = sld [smem:[#allocation2 + $0x7d]]  ;;  %s5280_s5 = sld [smem:[#allocation2 + $0x36]] }
  0x6e   :  { %4417 = vst [vmem:[%s7801_s4 + $0x10] sm:$0xff] %v393_v55  ;;  %4418 = vst [vmem:[%s7801_s4 + $0x18] sm:$0xff] %v444_v56  ;;  %v495_v63 = vadd.f32 %v494_v58, %v493_v57  ;;  %v519_v1 = vmul.f32 %v4992_v53, %v518_v60  ;;  %v524_v3 = vstv %s5211_s9  ;;  %v549_v5 = vstv %s5179_s26  ;;  %s5287_s9 = sld [smem:[#allocation2 + $0x46]]  ;;  %s5292_s26 = sld [smem:[#allocation4 + $0x5]] }
  0x6f   :  { %v517_v6 = vadd.f32 %v516_v59, %v514_v21  ;;  %v522_v7 = vmul.f32 %v5020_v8, %v521_v61  ;;  %v527_v9 = vstv %s5222_s13  ;;  %v525_v12 = vmul.f32 %v5048_v27, %v524_v3  ;;  %s5310_s13 = sld [smem:[#allocation2 + $0x17]] }
  0x70   :  { %4419 = vst [vmem:[%s7801_s4 + $0x20] sm:$0xff] %v495_v63  ;;  %v530_v13 = vstv %s5231_s14  ;;  %v550_v14 = vmul.f32 %v549_v5, %v4813_v4  ;;  %v528_v15 = vmul.f32 %v5074_v47, %v527_v9  ;;  %v533_v16 = vstv %s5237_s16  ;;  %s5314_s14 = sld [smem:[#allocation2 + $0x1f]] }
  0x71   :  { %v520_v10 = vadd.f32 %v519_v1, %v517_v6  ;;  %v551_v18 = vstv %s5235_s15  ;;  %v554_v21 = vstv %s5241_s17  ;;  %v557_v25 = vstv %s5243_s18  ;;  %s5316_s15 = sld [smem:[#allocation2 + $0x27]]  ;;  %s5325_s17 = sld [smem:[#allocation2 + $0x5e]] }
  0x72   :  { %v552_v20 = vmul.f32 %v4828_v11, %v551_v18  ;;  %v531_v29 = vmul.f32 %v5102_v2, %v530_v13  ;;  %v536_v30 = vstv %s5249_s20  ;;  %v555_v31 = vmul.f32 %v4857_v28, %v554_v21  ;;  %s5321_s16 = sld [smem:[#allocation2 + $0x2f]]  ;;  %s5327_s18 = sld [smem:[#allocation2 + $0x66]] }
  0x73   :  { %v523_v19 = vadd.f32 %v522_v7, %v520_v10  ;;  %v560_v22 = vstv %s5247_s19  ;;  %v558_v26 = vmul.f32 %v4884_v45, %v557_v25  ;;  %v563_v36 = vstv %s5252_s21  ;;  %s5332_s19 = sld [smem:[#allocation2 + $0x37]]  ;;  %s5334_s20 = sld [smem:[#allocation2 + $0x6e]] }
  0x74   :  { %v553_v33 = vadd.f32 %v552_v20, %v550_v14  ;;  %v534_v37 = vmul.f32 %v5130_v23, %v533_v16  ;;  %v539_v34 = vstv %s5265_s25  ;;  %v600_v38 = vstv %s5263_s24  ;;  %s5338_s21 = sld [smem:[#allocation2 + $0x76]]  ;;  %s5365_s24 = sld [smem:[#allocation2 + $0x57]] }
  0x75   :  { %v526_v32 = vadd.f32 %v525_v12, %v523_v19  ;;  %v542_v40 = vstv %s5276_s30  ;;  %v561_v42 = vmul.f32 %v4910_v62, %v560_v22  ;;  %v537_v44 = vmul.f32 %v5156_v43, %v536_v30  ;;  %s5371_s25 = sld [smem:[#allocation2 + $0x5f]] }
  0x76   :  { %v556_v41 = vadd.f32 %v555_v31, %v553_v33  ;;  %v564_v46 = vmul.f32 %v4938_v17, %v563_v36  ;;  %v566_v48 = vstv %s5280_s5  ;;  %v569_v51 = vstv %s5285_s8  ;;  %s5389_s30 = sld [smem:[#allocation2 + $0x7f]]  ;;  %s7679_s5 = sld [smem:[#allocation6 + $0x19]] }
  0x77   :  { %v529_v39 = vadd.f32 %v528_v15, %v526_v32  ;;  %v572_v52 = vstv %s5287_s9  ;;  %v540_v54 = vmul.f32 %v5186_v0, %v539_v34  ;;  %v543_v55 = vmul.f32 %v5218_v24, %v542_v40  ;;  %s7689_s8 = sld [smem:[#allocation6 + $0x1]]  ;;  %s7691_s9 = sld [smem:[#allocation6 + $0x3]] }
  0x78   :  { %v559_v50 = vadd.f32 %v558_v26, %v556_v41  ;;  %v545_v56 = vstv %s5292_s26  ;;  %v601_v57 = vmul.f32 %v600_v38, %v4813_v4  ;;  %v567_v60 = vmul.f32 %v4966_v35, %v566_v48  ;;  %s7694_s26 = sld [smem:[#allocation6 + $0x2]] }
  0x79   :  { %v532_v49 = vadd.f32 %v531_v29, %v529_v39  ;;  %v575_v61 = vstv %s5297_s10  ;;  %v570_v63 = vmul.f32 %v4992_v53, %v569_v51  ;;  %v573_v1 = vmul.f32 %v5020_v8, %v572_v52  ;;  %s7715_s10 = sld [smem:[#allocation6 + $0x12]] }
  0x7a   :  { %v562_v59 = vadd.f32 %v561_v42, %v559_v50  ;;  %v578_v3 = vstv %s5304_s12  ;;  %v602_v5 = vstv %s5302_s11  ;;  %v605_v10 = vstv %s5310_s13  ;;  %s7733_s13 = sld [smem:[#allocation6 + $0x10]] }
  0x7b   :  { %v535_v58 = vadd.f32 %v534_v37, %v532_v49  ;;  %v603_v9 = vmul.f32 %v4828_v11, %v602_v5  ;;  %v576_v12 = vmul.f32 %v5048_v27, %v575_v61  ;;  %v606_v13 = vmul.f32 %v4857_v28, %v605_v10 }
  0x7c   :  { %v565_v7 = vadd.f32 %v564_v46, %v562_v59  ;;  %v608_v14 = vstv %s5314_s14  ;;  %v611_v15 = vstv %s5316_s15  ;;  %v579_v11 = vmul.f32 %v5074_v47, %v578_v3  ;;  %s7735_s14 = sld [smem:[#allocation6 + $0x13]]  ;;  %s7740_s15 = sld [smem:[#allocation6 + $0x11]] }
  0x7d   :  { %v538_v6 = vadd.f32 %v537_v44, %v535_v58  ;;  %v604_v19 = vadd.f32 %v603_v9, %v601_v57  ;;  %v609_v20 = vmul.f32 %v4884_v45, %v608_v14  ;;  %v581_v21 = vstv %s5325_s17  ;;  %s7748_s17 = sld [smem:[#allocation6 + $0x1d]] }
  0x7e   :  { %v568_v18 = vadd.f32 %v567_v60, %v565_v7  ;;  %v584_v25 = vstv %s5327_s18  ;;  %v614_v28 = vstv %s5321_s16  ;;  %v612_v22 = vmul.f32 %v4910_v62, %v611_v15  ;;  %s7745_s16 = sld [smem:[#allocation6 + $0x1c]] }
  0x7f   :  { %v541_v16 = vadd.f32 %v540_v54, %v538_v6  ;;  %v607_v31 = vadd.f32 %v606_v13, %v604_v19  ;;  %v587_v45 = vstv %s5334_s20  ;;  %v590_v32 = vstv %s5338_s21  ;;  %s7754_s18 = sld [smem:[#allocation6 + $0x4]]  ;;  %s7776_s21 = sld [smem:[#allocation6 + $0x15]] }
  0x80   :  { %v571_v30 = vadd.f32 %v570_v63, %v568_v18  ;;  %v593_v33 = vstv %s5340_s22  ;;  %v617_v26 = vstv %s5332_s19  ;;  %v615_v38 = vmul.f32 %v4938_v17, %v614_v28  ;;  %s7763_s19 = sld [smem:[#allocation6 + $0x5]]  ;;  %s7769_s20 = sld [smem:[#allocation6 + $0x14]] }
  0x81   :  { %v544_v29 = vadd.f32 %v543_v55, %v541_v16  ;;  %v610_v34 = vadd.f32 %v609_v20, %v607_v31  ;;  %v582_v39 = vmul.f32 %v5102_v2, %v581_v21  ;;  %v620_v62 = vstv %s5348_s23 }
  0x82   :  { %v574_v37 = vadd.f32 %v573_v1, %v571_v30  ;;  %v618_v42 = vmul.f32 %v4966_v35, %v617_v26  ;;  %v623_v44 = vstv %s5354_s2  ;;  %v585_v17 = vmul.f32 %v5130_v23, %v584_v25 }
  0x83   :  { %v546_v36 = vadd.f32 %v545_v56, %v544_v29  ;;  %v613_v41 = vadd.f32 %v612_v22, %v610_v34  ;;  %v588_v46 = vmul.f32 %v5156_v43, %v587_v45  ;;  %v591_v48 = vmul.f32 %v5186_v0, %v590_v32 }
  0x84   :  { %v577_v40 = vadd.f32 %v576_v12, %v574_v37  ;;  %v594_v49 = vmul.f32 %v5218_v24, %v593_v33  ;;  %v621_v52 = vmul.f32 %v4992_v53, %v620_v62  ;;  %v626_v35 = vstv %s5362_s1 }
  0x85   :  { %4420 = vst [vmem:[%s7801_s4 + $0x28] sm:$0xff] %v546_v36  ;;  %v616_v51 = vadd.f32 %v615_v38, %v613_v41  ;;  %v624_v54 = vmul.f32 %v5020_v8, %v623_v44  ;;  %v629_v55 = vstv %s5365_s24  ;;  %v651_v56 = vand.u32 2147483647, %v4813_v4  ;;  %s7595_s24 = sld [smem:[#allocation6 + $0xb]] }
  0x86   :  { %v580_v50 = vadd.f32 %v579_v11, %v577_v40  ;;  %v654_v57 = vand.u32 2139095040, %v4813_v4  ;;  %v632_v60 = vstv %s5371_s25  ;;  %v635_v61 = vstv %s5373_s27  ;;  %s7602_s25 = sld [smem:[#allocation6 + $0x8]]  ;;  %s7608_s27 = sld [smem:[#allocation6 + $0x9]] }
  0x87   :  { %v619_v59 = vadd.f32 %v618_v42, %v616_v51  ;;  %v596_v63 = vstv %s5378_s29  ;;  %v627_v1 = vmul.f32 %v5048_v27, %v626_v35  ;;  %v638_v3 = vstv %s5376_s28  ;;  %v4693_v27 = vld [vmem:[%s7797_s0 + $0x8] sm:$0xff]  ;;  %s7647_s28 = sld [smem:[#allocation6 + $0xc]]  ;;  %s7659_s29 = sld [smem:[#allocation6 + $0xd]] }
  0x88   :  { %v583_v58 = vadd.f32 %v582_v39, %v580_v50  ;;  %v655_v5 = vshrl.u32 %v654_v57, 23  ;;  %v641_v7 = vstv %s5384_s3  ;;  %v658_v8 = vand.u32 8388607, %v651_v56  ;;  %s7670_s3 = sld [smem:[#allocation6 + $0x1a]] }
  0x89   :  { %v622_v6 = vadd.f32 %v621_v52, %v619_v59  ;;  %v630_v9 = vmul.f32 %v5074_v47, %v629_v55  ;;  %v633_v10 = vmul.f32 %v5102_v2, %v632_v60  ;;  %v636_v12 = vmul.f32 %v5130_v23, %v635_v61 }
  0x8a   :  { %v586_v53 = vadd.f32 %v585_v17, %v583_v58  ;;  %v4423_v13 = vadd.s32 4294967169, %v655_v5  ;;  %v644_v16 = vstv %s5389_s30  ;;  %v5423_v18 = vmul.f32 0.5, %v4693_v27  ;;  %s7674_s30 = sld [smem:[#allocation6 + $0x18]] }
  0x8b   :  { %v625_v15 = vadd.f32 %v624_v54, %v622_v6  ;;  %v639_v19 = vmul.f32 %v5156_v43, %v638_v3  ;;  %v642_v20 = vmul.f32 %v5186_v0, %v641_v7  ;;  %v647_v11 = vstv %s5396_s7  ;;  %v5451_v6 = vld [vmem:[%s7797_s0 + $0x10] sm:$0xff]  ;;  %s7686_s7 = sld [smem:[#allocation6]] }
  0x8c   :  { %v589_v14 = vadd.f32 %v588_v46, %v586_v53  ;;  %v661_v47 = vadd.s32 1, %v4423_v13  ;;  %v659_v25 = vor.u32 8388608, %v658_v8  ;;  %v645_v23 = vmul.f32 %v5218_v24, %v644_v16 }
  0x8d   :  { %v628_v2 = vadd.f32 %v627_v1, %v625_v15  ;;  %v864_v31 = vand.u32 2139095040, %v5423_v18  ;;  %v4758_v26 = vmov 683565275   ;;  %v4759_v37 = vmov 2475754826  }
  0x8e   :  { %v592_v21 = vadd.f32 %v591_v48, %v589_v14  ;;  %vm662_vm0 = vcmp.gt.s32.totalorder %v661_v47, 0  ;;  %v5430_v43 = vshll.u32 %v659_v25, 8  ;;  %v4760_v24 = vmov 2131351028  }
  0x8f   :  { %v631_v29 = vadd.f32 %v630_v9, %v628_v2  ;;  %v663_v30 = vsel %vm662_vm0, %v661_v47, 0  ;;  %v4761_v62 = vmov 2102212464   ;;  %v4762_v41 = vmov 920167782  }
  0x90   :  { %v595_v28 = vadd.f32 %v594_v49, %v592_v21  ;;  %v664_v22 = vshrl.u32 %v663_v30, 5  ;;  %v665_v45 = vand.u32 31, %v663_v30  ;;  %v865_v44 = vshrl.u32 %v864_v31, 23 }
  0x91   :  { %v634_v33 = vadd.f32 %v633_v10, %v631_v29  ;;  %v4763_v52 = vmov 1326507024   ;;  %v1083_v7 = vand.u32 2139095040, %v5451_v6 }
  0x92   :  { %v597_v32 = vadd.f32 %v596_v63, %v595_v28  ;;  %v666_v0 = vsub.s32 32, %v665_v45  ;;  %v668_v36 = vshll.u32 %v4758_v26, %v665_v45  ;;  %v671_v34 = vshll.u32 %v4759_v37, %v665_v45 }
  0x93   :  { %v674_v38 = vshll.u32 %v4760_v24, %v665_v45  ;;  %v637_v39 = vadd.f32 %v636_v12, %v634_v33  ;;  %v677_v40 = vshll.u32 %v4761_v62, %v665_v45  ;;  %v680_v42 = vshll.u32 %v4762_v41, %v665_v45 }
  0x94   :  { %4421 = vst [vmem:[%s7801_s4 + $0x30] sm:$0xff] %v597_v32  ;;  %v669_v17 = vshrl.u32 %v4759_v37, %v666_v0  ;;  %v672_v46 = vshrl.u32 %v4760_v24, %v666_v0  ;;  %v675_v48 = vshrl.u32 %v4761_v62, %v666_v0  ;;  %vm683_vm1 = vcmp.lt.s32.totalorder %v664_v22, 1 }
  0x95   :  { %v640_v49 = vadd.f32 %v639_v19, %v637_v39  ;;  %v667_v50 = vshrl.u32 %v4758_v26, %v666_v0  ;;  %v678_v51 = vshrl.u32 %v4762_v41, %v666_v0  ;;  %v681_v35 = vshrl.u32 %v4763_v52, %v666_v0 }
  0x96   :  { %v670_v54 = vor.u32 %v669_v17, %v668_v36  ;;  %v673_v55 = vor.u32 %v672_v46, %v671_v34  ;;  %v676_v57 = vor.u32 %v675_v48, %v674_v38  ;;  %vm685_vm2 = vcmp.lt.s32.totalorder %v664_v22, 3 }
  0x97   :  { %v643_v58 = vadd.f32 %v642_v20, %v640_v49  ;;  %v679_v59 = vor.u32 %v678_v51, %v677_v40  ;;  %v682_v60 = vor.u32 %v681_v35, %v680_v42  ;;  %vm686_vm3 = vcmp.lt.s32.totalorder %v664_v22, 4 }
  0x98   :  { %vm684_vm4 = vcmp.lt.s32.totalorder %v664_v22, 2  ;;  %v688_v61 = vsel %vm686_vm3, %v676_v57, 2102212464  ;;  %v691_v63 = vsel %vm683_vm1, %v670_v54, %v673_v55  ;;  %v695_v1 = vsel %vm683_vm1, %v673_v55, %v676_v57 }
  0x99   :  { %v646_v3 = vadd.f32 %v645_v23, %v643_v58  ;;  %v692_v5 = vsel %vm686_vm3, %v679_v59, 920167782  ;;  %v696_v53 = vsel %vm686_vm3, %v682_v60, 1326507024  ;;  %v687_v8 = vsel %vm683_vm1, %v667_v50, %v670_v54 }
  0x9a   :  { %v693_v9 = vsel %vm685_vm2, %v676_v57, %v692_v5  ;;  %v697_v10 = vsel %vm685_vm2, %v679_v59, %v696_v53  ;;  %v4431_v12 = vadd.s32 4294967169, %v865_v44  ;;  %v689_v14 = vsel %vm685_vm2, %v673_v55, %v688_v61 }
  0x9b   :  { %v648_v13 = vadd.f32 %v647_v11, %v646_v3  ;;  %v694_v15 = vsel %vm684_vm4, %v691_v63, %v693_v9  ;;  %v698_v16 = vsel %vm684_vm4, %v695_v1, %v697_v10  ;;  %v1084_v21 = vshrl.u32 %v1083_v7, 23 }
  0x9c   :  { %v5461_v27 = vmul.u32.u64.low %v5430_v43, %v698_v16  ;;  %v5462_v19 = vmul.u32.u64.high %v5430_v43, %v698_v16, %v5461_v27  ;;  %v5465_v20 = vmul.u32.u64.low %v5430_v43, %v694_v15  ;;  %v5466_v47 = vmul.u32.u64.high %v5430_v43, %v694_v15, %v5465_v20 }
  0x9d   :  { %4422 = vst [vmem:[%s7801_s4 + $0x38] sm:$0xff] %v648_v13  ;;  %v871_v11 = vadd.s32 1, %v4431_v12  ;;  %v690_v2 = vsel %vm684_vm4, %v687_v8, %v689_v14  ;;  %v861_v28 = vand.u32 2147483647, %v5423_v18  ;;  %v4439_v30 = vadd.s32 4294967169, %v1084_v21  ;;  %v4695_v21 = vld [vmem:[%s7797_s0 + $0x18] sm:$0xff] }
  0x9e   :  { %vm708_vm6 = vc.u32 %v5462_v19, %v5465_v20  ;;  %v709_v25 = vadd.s32 1, %v5466_v47  ;;  %v706_v31 = vmul.u32 %v5430_v43, %v690_v2  ;;  %v5530_v2 = vmul.f32 0.5, %v4695_v21 }
  0x9f   :  { %vm872_vm5 = vcmp.gt.s32.totalorder %v871_v11, 0  ;;  %v868_v39 = vand.u32 8388607, %v861_v28  ;;  %v1090_v42 = vadd.s32 1, %v4439_v30 }
  0xa0   :  { %v873_v23 = vsel %vm872_vm5, %v871_v11, 0  ;;  %v710_v45 = vsel %vm708_vm6, %v709_v25, %v5466_v47  ;;  %v1080_v11 = vand.u32 2147483647, %v5451_v6 }
  0xa1   :  { %v875_v29 = vand.u32 31, %v873_v23  ;;  %v5481_v0 = vshrl.u32 %v873_v23, 5  ;;  %v711_v44 = vadd.s32 %v710_v45, %v706_v31  ;;  %v869_v55 = vor.u32 8388608, %v868_v39 }
  0xa2   :  { %vm1091_vm10 = vcmp.gt.s32.totalorder %v1090_v42, 0  ;;  %v1087_v39 = vand.u32 8388607, %v1080_v11 }
  0xa3   :  { %v876_v32 = vsub.s32 32, %v875_v29  ;;  %v878_v33 = vshll.u32 %v4758_v26, %v875_v29  ;;  %v881_v22 = vshll.u32 %v4759_v37, %v875_v29  ;;  %v884_v36 = vshll.u32 %v4760_v24, %v875_v29 }
  0xa4   :  { %v887_v34 = vshll.u32 %v4761_v62, %v875_v29  ;;  %v890_v38 = vshll.u32 %v4762_v41, %v875_v29  ;;  %vm896_vm7 = vcmp.lt.s32.totalorder %v5481_v0, 4  ;;  %vm893_vm8 = vcmp.lt.s32.totalorder %v5481_v0, 1 }
  0xa5   :  { %v879_v43 = vshrl.u32 %v4759_v37, %v876_v32  ;;  %v882_v40 = vshrl.u32 %v4760_v24, %v876_v32  ;;  %v885_v17 = vshrl.u32 %v4761_v62, %v876_v32  ;;  %v888_v46 = vshrl.u32 %v4762_v41, %v876_v32 }
  0xa6   :  { %v891_v48 = vshrl.u32 %v4763_v52, %v876_v32  ;;  %vm895_vm9 = vcmp.lt.s32.totalorder %v5481_v0, 3  ;;  %v712_v57 = vadd.s32 536870912, %v711_v44  ;;  %vm894_vm11 = vcmp.lt.s32.totalorder %v5481_v0, 2 }
  0xa7   :  { %v880_v49 = vor.u32 %v879_v43, %v878_v33  ;;  %v883_v50 = vor.u32 %v882_v40, %v881_v22  ;;  %v886_v51 = vor.u32 %v885_v17, %v884_v36  ;;  %v889_v35 = vor.u32 %v888_v46, %v887_v34 }
  0xa8   :  { %v892_v54 = vor.u32 %v891_v48, %v890_v38  ;;  %v1092_v3 = vsel %vm1091_vm10, %v1090_v42, 0  ;;  %v5509_v5 = vshrl.u32 %v712_v57, 30  ;;  %v909_v53 = vshll.u32 %v869_v55, 8 }
  0xa9   :  { %v902_v58 = vsel %vm896_vm7, %v889_v35, 920167782  ;;  %v901_v60 = vsel %vm893_vm8, %v880_v49, %v883_v50  ;;  %v905_v63 = vsel %vm893_vm8, %v883_v50, %v886_v51  ;;  %v1094_v9 = vand.u32 31, %v1092_v3 }
  0xaa   :  { %v906_v59 = vsel %vm896_vm7, %v892_v54, 1326507024  ;;  %v903_v61 = vsel %vm895_vm9, %v886_v51, %v902_v58  ;;  %v714_v10 = vshll.u32 %v5509_v5, 30  ;;  %v877_v12 = vshrl.u32 %v4758_v26, %v876_v32 }
  0xab   :  { %v907_v1 = vsel %vm895_vm9, %v889_v35, %v906_v59  ;;  %v904_v7 = vsel %vm894_vm11, %v901_v60, %v903_v61  ;;  %v898_v15 = vsel %vm896_vm7, %v886_v51, 2102212464  ;;  %v1095_v47 = vsub.s32 32, %v1094_v9 }
  0xac   :  { %v908_v8 = vsel %vm894_vm11, %v905_v63, %v907_v1  ;;  %v5517_v13 = vmul.u32.u64.low %v909_v53, %v904_v7  ;;  %v5518_v14 = vmul.u32.u64.high %v909_v53, %v904_v7, %v5517_v13  ;;  %v5532_v25 = vsub.s32 %v711_v44, %v714_v10 }
  0xad   :  { %v5523_v16 = vmul.u32.u64.low %v909_v53, %v908_v8  ;;  %v5524_v27 = vmul.u32.u64.high %v909_v53, %v908_v8, %v5523_v16  ;;  %v897_v23 = vsel %vm893_vm8, %v877_v12, %v880_v49  ;;  %v899_v29 = vsel %vm895_vm9, %v883_v50, %v898_v15 }
  0xae   :  { %v1106_v30 = vshll.u32 %v4761_v62, %v1094_v9  ;;  %v1093_v31 = vshrl.u32 %v1092_v3, 5  ;;  %v1097_v45 = vshll.u32 %v4758_v26, %v1094_v9  ;;  %v1100_v32 = vshll.u32 %v4759_v37, %v1094_v9 }
  0xaf   :  { %v1103_v33 = vshll.u32 %v4760_v24, %v1094_v9  ;;  %v1098_v22 = vshrl.u32 %v4759_v37, %v1095_v47  ;;  %v1101_v36 = vshrl.u32 %v4760_v24, %v1095_v47  ;;  %v1104_v34 = vshrl.u32 %v4761_v62, %v1095_v47 }
  0xb0   :  { %v1107_v38 = vshrl.u32 %v4762_v41, %v1095_v47  ;;  %v1109_v43 = vshll.u32 %v4762_v41, %v1094_v9  ;;  %v1110_v40 = vshrl.u32 %v4763_v52, %v1095_v47  ;;  %v717_v42 = vsub.s32 0, %v5532_v25 }
  0xb1   :  { %v900_v44 = vsel %vm894_vm11, %v897_v23, %v899_v29  ;;  %v919_v17 = vadd.s32 1, %v5518_v14  ;;  %vm918_vm12 = vc.u32 %v5524_v27, %v5517_v13  ;;  %v1297_v48 = vand.u32 2139095040, %v5530_v2 }
  0xb2   :  { %v1108_v46 = vor.u32 %v1107_v38, %v1106_v30  ;;  %v1099_v49 = vor.u32 %v1098_v22, %v1097_v45  ;;  %v1102_v50 = vor.u32 %v1101_v36, %v1100_v32  ;;  %v1105_v51 = vor.u32 %v1104_v34, %v1103_v33 }
  0xb3   :  { %vm1115_vm13 = vcmp.lt.s32.totalorder %v1093_v31, 4  ;;  %v916_v35 = vmul.u32 %v909_v53, %v900_v44  ;;  %v1111_v54 = vor.u32 %v1110_v40, %v1109_v43  ;;  %vm1112_vm14 = vcmp.lt.s32.totalorder %v1093_v31, 1 }
  0xb4   :  { %vm1114_vm15 = vcmp.lt.s32.totalorder %v1093_v31, 3  ;;  %v4424_v55 = vmin.u32 %v717_v42, %v5532_v25  ;;  %v920_v0 = vsel %vm918_vm12, %v919_v17, %v5518_v14  ;;  %v1088_v57 = vor.u32 8388608, %v1087_v39 }
  0xb5   :  { %v1121_v58 = vsel %vm1115_vm13, %v1108_v46, 920167782  ;;  %v1298_v59 = vshrl.u32 %v1297_v48, 23  ;;  %vm1113_vm0 = vcmp.lt.s32.totalorder %v1093_v31, 2  ;;  %v1120_v60 = vsel %vm1112_vm14, %v1099_v49, %v1102_v50 }
  0xb6   :  { %v1122_v61 = vsel %vm1114_vm15, %v1105_v51, %v1121_v58  ;;  %v921_v63 = vadd.s32 %v920_v0, %v916_v35  ;;  %v1124_v1 = vsel %vm1112_vm14, %v1102_v50, %v1105_v51  ;;  %v1125_v3 = vsel %vm1115_vm13, %v1111_v54, 1326507024 }
  0xb7   :  { %v719_v53 = vclz %v4424_v55  ;;  %v1128_v7 = vshll.u32 %v1088_v57, 8  ;;  %v1123_v8 = vsel %vm1113_vm0, %v1120_v60, %v1122_v61  ;;  %v1126_v9 = vsel %vm1114_vm15, %v1108_v46, %v1125_v3 }
  0xb8   :  { %v4447_v10 = vadd.s32 4294967169, %v1298_v59  ;;  %v1127_v12 = vsel %vm1113_vm0, %v1124_v1, %v1126_v9  ;;  %v922_v14 = vadd.s32 536870912, %v921_v63  ;;  %v1096_v23 = vshrl.u32 %v4758_v26, %v1095_v47 }
  0xb9   :  { %v4425_v15 = vadd.s32 4294967294, %v719_v53  ;;  %v5567_v16 = vmul.u32.u64.low %v1128_v7, %v1123_v8  ;;  %v5568_v21 = vmul.u32.u64.high %v1128_v7, %v1123_v8, %v5567_v16  ;;  %v1117_v32 = vsel %vm1115_vm13, %v1105_v51, 2102212464 }
  0xba   :  { %v5572_v29 = vmul.u32.u64.low %v1128_v7, %v1127_v12  ;;  %v5573_v30 = vmul.u32.u64.high %v1128_v7, %v1127_v12, %v5572_v29  ;;  %v1304_v45 = vadd.s32 1, %v4447_v10  ;;  %v5576_v33 = vshrl.u32 %v922_v14, 30 }
  0xbb   :  { %vm4426_vm2 = vcmp.lt.s32.totalorder %v4425_v15, 0  ;;  %v1116_v22 = vsel %vm1112_vm14, %v1096_v23, %v1099_v49  ;;  %v1118_v36 = vsel %vm1114_vm15, %v1102_v50, %v1117_v32  ;;  %v1138_v43 = vadd.s32 1, %v5568_v21 }
  0xbc   :  { %vm1305_vm1 = vcmp.gt.s32.totalorder %v1304_v45, 0  ;;  %v924_v38 = vshll.u32 %v5576_v33, 30  ;;  %v722_v39 = vsel %vm4426_vm2, 0, %v4425_v15  ;;  %v1119_v47 = vsel %vm1113_vm0, %v1116_v22, %v1118_v36 }
  0xbd   :  { %v1306_v34 = vsel %vm1305_vm1, %v1304_v45, 0  ;;  %vm1137_vm3 = vc.u32 %v5573_v30, %v5567_v16  ;;  %v727_v42 = vsub.s32 4294967266, %v722_v39  ;;  %v1135_v17 = vmul.u32 %v1128_v7, %v1119_v47 }
  0xbe   :  { %v1308_v40 = vand.u32 31, %v1306_v34  ;;  %v5585_v44 = vsub.s32 %v921_v63, %v924_v38  ;;  %v1139_v46 = vsel %vm1137_vm3, %v1138_v43, %v5568_v21  ;;  %v707_v49 = vadd.s32 %v5465_v20, %v5462_v19  ;;  %v5605_v63 = vld [vmem:[%s7797_s0 + $0x20] sm:$0xff] }
  0xbf   :  { %v1294_v50 = vand.u32 2147483647, %v5530_v2  ;;  %v723_v31 = vsub.s32 32, %v722_v39  ;;  %v728_v51 = vadd.s32 127, %v727_v42  ;;  %v1140_v54 = vadd.s32 %v1139_v46, %v1135_v17 }
  0xc0   :  { %v1309_v48 = vsub.s32 32, %v1308_v40  ;;  %v927_v35 = vsub.s32 0, %v5585_v44  ;;  %v1311_v55 = vshll.u32 %v4758_v26, %v1308_v40  ;;  %v1314_v57 = vshll.u32 %v4759_v37, %v1308_v40 }
  0xc1   :  { %v1317_v58 = vshll.u32 %v4760_v24, %v1308_v40  ;;  %v1320_v19 = vshll.u32 %v4761_v62, %v1308_v40  ;;  %v5600_v61 = vshrl.u32 %v1306_v34, 5  ;;  %v1516_v1 = vand.u32 2139095040, %v5605_v63 }
  0xc2   :  { %v1312_v0 = vshrl.u32 %v4759_v37, %v1309_v48  ;;  %v1315_v59 = vshrl.u32 %v4760_v24, %v1309_v48  ;;  %v1318_v60 = vshrl.u32 %v4761_v62, %v1309_v48  ;;  %v1321_v20 = vshrl.u32 %v4762_v41, %v1309_v48 }
  0xc3   :  { %v724_v3 = vshll.u32 %v5532_v25, %v722_v39  ;;  %v4432_v53 = vmin.u32 %v927_v35, %v5585_v44  ;;  %v1301_v7 = vand.u32 8388607, %v1294_v50  ;;  %v725_v8 = vshrl.u32 %v707_v49, %v723_v31 }
  0xc4   :  { %v729_v9 = vshll.u32 %v728_v51, 23  ;;  %v1141_v10 = vadd.s32 536870912, %v1140_v54  ;;  %v1313_v12 = vor.u32 %v1312_v0, %v1311_v55  ;;  %v1316_v14 = vor.u32 %v1315_v59, %v1314_v57 }
  0xc5   :  { %v1319_v15 = vor.u32 %v1318_v60, %v1317_v58  ;;  %v1322_v21 = vor.u32 %v1321_v20, %v1320_v19  ;;  %v1323_v23 = vshll.u32 %v4762_v41, %v1308_v40  ;;  %v1324_v29 = vshrl.u32 %v4763_v52, %v1309_v48 }
  0xc6   :  { %vm1326_vm4 = vcmp.lt.s32.totalorder %v5600_v61, 1  ;;  %v1517_v45 = vshrl.u32 %v1516_v1, 23  ;;  %v929_v25 = vclz %v4432_v53  ;;  %v1302_v32 = vor.u32 8388608, %v1301_v7 }
  0xc7   :  { %vm1328_vm5 = vcmp.lt.s32.totalorder %v5600_v61, 3  ;;  %vm1329_vm6 = vcmp.lt.s32.totalorder %v5600_v61, 4  ;;  %v726_v22 = vor.u32 %v725_v8, %v724_v3  ;;  %v730_v36 = vor.u32 4788187, %v729_v9 }
  0xc8   :  { %v1325_v34 = vor.u32 %v1324_v29, %v1323_v23  ;;  %v1335_v38 = vsel %vm1329_vm6, %v1322_v21, 920167782  ;;  %v5619_v39 = vshrl.u32 %v1141_v10, 30  ;;  %vm1327_vm7 = vcmp.lt.s32.totalorder %v5600_v61, 2 }
  0xc9   :  { %v1334_v47 = vsel %vm1326_vm4, %v1313_v12, %v1316_v14  ;;  %v1336_v43 = vsel %vm1328_vm5, %v1319_v15, %v1335_v38  ;;  %v1338_v40 = vsel %vm1326_vm4, %v1316_v14, %v1319_v15  ;;  %v4455_v17 = vadd.s32 4294967169, %v1517_v45 }
  0xca   :  { %v1339_v42 = vsel %vm1329_vm6, %v1325_v34, 1326507024  ;;  %v4433_v46 = vadd.s32 4294967294, %v929_v25  ;;  %v1342_v31 = vshll.u32 %v1302_v32, 8  ;;  %v1337_v51 = vsel %vm1327_vm7, %v1334_v47, %v1336_v43 }
  0xcb   :  { %v1340_v49 = vsel %vm1328_vm5, %v1322_v21, %v1339_v42  ;;  %v731_v35 = vand.u32 2147483647, %v730_v36  ;;  %v733_v55 = vcvt.s32.f32 %v726_v22  ;;  %v1143_v0 = vshll.u32 %v5619_v39, 30 }
  0xcc   :  { %v1341_v57 = vsel %vm1327_vm7, %v1338_v40, %v1340_v49  ;;  %v1523_v58 = vadd.s32 1, %v4455_v17  ;;  %vm4434_vm8 = vcmp.lt.s32.totalorder %v4433_v46, 0  ;;  %v1310_v19 = vshrl.u32 %v4758_v26, %v1309_v48 }
  0xcd   :  { %v5637_v59 = vmul.u32.u64.low %v1342_v31, %v1337_v51  ;;  %v5638_v60 = vmul.u32.u64.high %v1342_v31, %v1337_v51, %v5637_v59  ;;  %v5642_v20 = vmul.u32.u64.low %v1342_v31, %v1341_v57  ;;  %v5643_v1 = vmul.u32.u64.high %v1342_v31, %v1341_v57, %v5642_v20 }
  0xce   :  { %v734_v3 = vmul.f32 %v733_v55, %v731_v35  ;;  %v5645_v53 = vsub.s32 %v1140_v54, %v1143_v0  ;;  %v1331_v7 = vsel %vm1329_vm6, %v1319_v15, 2102212464  ;;  %v932_v8 = vsel %vm4434_vm8, 0, %v4433_v46  ;;  %v5657_v54 = vld [vmem:[%s7797_s0] sm:$0xff] }
  0xcf   :  { %vm1524_vm9 = vcmp.gt.s32.totalorder %v1523_v58, 0  ;;  %v1330_v9 = vsel %vm1326_vm4, %v1310_v19, %v1313_v12  ;;  %v1332_v10 = vsel %vm1328_vm5, %v1316_v14, %v1331_v7  ;;  %v937_v23 = vsub.s32 4294967266, %v932_v8 }
  0xd0   :  { %v735_v21 = vxor.u32 2147483648, %v734_v3  ;;  %v1146_v48 = vsub.s32 0, %v5645_v53  ;;  %v1525_v29 = vsel %vm1524_vm9, %v1523_v58, 0  ;;  %vm653_vm10 = vcmp.lt.s32.totalorder %v5657_v54, 0 }
  0xd1   :  { %vm5662_vm11 = vcmp.le.f32.partialorder %v651_v56, 0.7853982  ;;  %v1333_v12 = vsel %vm1327_vm7, %v1330_v9, %v1332_v10  ;;  %v1352_v14 = vadd.s32 1, %v5638_v60  ;;  %v917_v45 = vadd.s32 %v5517_v13, %v5524_v27 }
  0xd2   :  { %vm1351_vm12 = vc.u32 %v5643_v1, %v5637_v59  ;;  %v1513_v25 = vand.u32 2147483647, %v5605_v63  ;;  %v1527_v32 = vand.u32 31, %v1525_v29  ;;  %v736_v4 = vsel %vm653_vm10, %v735_v21, %v734_v3 }
  0xd3   :  { %v933_v56 = vsub.s32 32, %v932_v8  ;;  %v938_v22 = vadd.s32 127, %v937_v23  ;;  %v4440_v36 = vmin.u32 %v1146_v48, %v5645_v53  ;;  %v1349_v61 = vmul.u32 %v1342_v31, %v1333_v12 }
  0xd4   :  { %v1353_v34 = vsel %vm1351_vm12, %v1352_v14, %v5638_v60  ;;  %v5678_v38 = vsub.s32 32, %v1527_v32  ;;  %v739_v13 = vsel %vm5662_vm11, %v5657_v54, %v736_v4  ;;  %v934_v27 = vshll.u32 %v5585_v44, %v932_v8 }
  0xd5   :  { %v935_v47 = vshrl.u32 %v917_v45, %v933_v56  ;;  %v939_v43 = vshll.u32 %v938_v22, 23  ;;  %v1148_v40 = vclz %v4440_v36  ;;  %v1520_v42 = vand.u32 8388607, %v1513_v25 }
  0xd6   :  { %v1354_v17 = vadd.s32 %v1353_v34, %v1349_v61  ;;  %v5686_v46 = vshrl.u32 %v1525_v29, 5  ;;  %v1530_v49 = vshll.u32 %v4758_v26, %v1527_v32  ;;  %v1539_v31 = vshll.u32 %v4761_v62, %v1527_v32  ;;  %v5724_v61 = vld [vmem:[%s7797_s0 + $0x28] sm:$0xff] }
  0xd7   :  { %v1531_v51 = vshrl.u32 %v4759_v37, %v5678_v38  ;;  %v1533_v35 = vshll.u32 %v4759_v37, %v1527_v32  ;;  %v1534_v44 = vshrl.u32 %v4760_v24, %v5678_v38  ;;  %v1536_v55 = vshll.u32 %v4760_v24, %v1527_v32 }
  0xd8   :  { %v1537_v0 = vshrl.u32 %v4761_v62, %v5678_v38  ;;  %v1540_v57 = vshrl.u32 %v4762_v41, %v5678_v38  ;;  %v1542_v58 = vshll.u32 %v4762_v41, %v1527_v32  ;;  %v1543_v60 = vshrl.u32 %v4763_v52, %v5678_v38 }
  0xd9   :  { %4629 = vcosq.f32 %v739_v13  ;;  %v936_v19 = vor.u32 %v935_v47, %v934_v27  ;;  %v940_v20 = vor.u32 4788187, %v939_v43  ;;  %v4441_v3 = vadd.s32 4294967294, %v1148_v40 }
  0xda   :  { %v1355_v7 = vadd.s32 536870912, %v1354_v17  ;;  %v1541_v8 = vor.u32 %v1540_v57, %v1539_v31  ;;  %v1544_v9 = vor.u32 %v1543_v60, %v1542_v58  ;;  %v737_v10 = vsub.s32 4, %v5509_v5 }
  0xdb   :  { %4631 = vsinq.f32 %v739_v13  ;;  %vm1548_vm13 = vcmp.lt.s32.totalorder %v5686_v46, 4  ;;  %v1521_v21 = vor.u32 8388608, %v1520_v42  ;;  %v1532_v23 = vor.u32 %v1531_v51, %v1530_v49 }
  0xdc   :  { %v1535_v48 = vor.u32 %v1534_v44, %v1533_v35  ;;  %v1538_v29 = vor.u32 %v1537_v0, %v1536_v55  ;;  %v943_v12 = vcvt.s32.f32 %v936_v19  ;;  %vm1545_vm14 = vcmp.lt.s32.totalorder %v5686_v46, 1 }
  0xdd   :  { %vm1547_vm15 = vcmp.lt.s32.totalorder %v5686_v46, 3  ;;  %v1554_v14 = vsel %vm1548_vm13, %v1541_v8, 920167782  ;;  %v941_v45 = vand.u32 2147483647, %v940_v20  ;;  %vm4442_vm0 = vcmp.lt.s32.totalorder %v4441_v3, 0 }
  0xde   :  { %v5709_v32 = vshrl.u32 %v1355_v7, 30  ;;  %v1558_v4 = vsel %vm1548_vm13, %v1544_v9, 1326507024  ;;  %v738_v56 = vsel %vm653_vm10, %v737_v10, %v5509_v5  ;;  %vm1546_vm1 = vcmp.lt.s32.totalorder %v5686_v46, 2 }
  0xdf   :  { %v1553_v22 = vsel %vm1545_vm14, %v1532_v23, %v1535_v48  ;;  %v1555_v36 = vsel %vm1547_vm15, %v1538_v29, %v1554_v14  ;;  %v1729_v34 = vand.u32 2139095040, %v5724_v61  ;;  %v947_v13 = vsub.s32 4, %v5576_v33 }
  0xe0   :  { %v1151_v27 = vsel %vm4442_vm0, 0, %v4441_v3  ;;  %v1557_v5 = vsel %vm1545_vm14, %v1535_v48, %v1538_v29  ;;  %v1559_v47 = vsel %vm1547_vm15, %v1541_v8, %v1558_v4  ;;  %v740_v43 = vsel %vm5662_vm11, 0, %v738_v56 }
  0xe1   :  { %v944_v40 = vmul.f32 %v943_v12, %v941_v45  ;;  %v1357_v42 = vshll.u32 %v5709_v32, 30  ;;  %v5735_v49 = vshll.u32 %v1521_v21, 8  ;;  %v1556_v51 = vsel %vm1546_vm1, %v1553_v22, %v1555_v36 }
  0xe2   :  { %vm863_vm2 = vcmp.lt.s32.totalorder %v5423_v18, 0  ;;  %v1156_v35 = vsub.s32 4294967266, %v1151_v27  ;;  %v1560_v44 = vsel %vm1546_vm1, %v1557_v5, %v1559_v47  ;;  %v1730_v55 = vshrl.u32 %v1729_v34, 23 }
  0xe3   :  { %v5737_v31 = vpop.eup %4629  ;;  %v744_v15 = vand.u32 3, %v740_v43  ;;  %v847_v57 = vadd.s32 3, %v740_v43  ;;  %v948_v58 = vsel %vm863_vm2, %v947_v13, %v5576_v33  ;;  %v945_v60 = vxor.u32 2147483648, %v944_v40 }
  0xe4   :  { %v5747_v19 = vsub.s32 %v1354_v17, %v1357_v42  ;;  %v5750_v20 = vmul.u32.u64.low %v5735_v49, %v1556_v51  ;;  %v5751_v3 = vmul.u32.u64.high %v5735_v49, %v1556_v51, %v5750_v20  ;;  %v1136_v7 = vadd.s32 %v5567_v16, %v5573_v30 }
  0xe5   :  { %v4632_v0 = vpop.eup %4631  ;;  %v1529_v8 = vshrl.u32 %v4758_v26, %v5678_v38  ;;  %v5759_v9 = vmul.u32.u64.low %v5735_v49, %v1560_v44  ;;  %v5760_v10 = vmul.u32.u64.high %v5735_v49, %v1560_v44, %v5759_v9  ;;  %v1152_v21 = vsub.s32 32, %v1151_v27 }
  0xe6   :  { %v1157_v33 = vadd.s32 127, %v1156_v35  ;;  %v1550_v17 = vsel %vm1548_vm13, %v1538_v29, 2102212464  ;;  %v4463_v12 = vadd.s32 4294967169, %v1730_v55  ;;  %vm745_vm3 = vcmp.lt.s32.totalorder %v744_v15, 2 }
  0xe7   :  { %vm746_vm4 = vcmp.eq.s32.totalorder %v744_v15, 0  ;;  %v5764_v14 = vand.u32 3, %v847_v57  ;;  %vm5768_vm5 = vcmp.le.f32.partialorder %v861_v28, 0.7853982  ;;  %v946_v30 = vsel %vm863_vm2, %v945_v60, %v944_v40 }
  0xe8   :  { %v950_v38 = vsel %vm5768_vm5, 0, %v948_v58  ;;  %vm1082_vm6 = vcmp.lt.s32.totalorder %v5451_v6, 0  ;;  %v1360_v29 = vsub.s32 0, %v5747_v19  ;;  %v1736_v45 = vadd.s32 1, %v4463_v12 }
  0xe9   :  { %v747_v4 = vxor.u32 2147483648, %v4632_v0  ;;  %v750_v56 = vxor.u32 2147483648, %v5737_v31  ;;  %v1549_v28 = vsel %vm1545_vm14, %v1529_v8, %v1532_v23  ;;  %v1551_v22 = vsel %vm1547_vm15, %v1535_v48, %v1550_v17 }
  0xea   :  { %v1153_v36 = vshll.u32 %v5645_v53, %v1151_v27  ;;  %v1154_v34 = vshrl.u32 %v1136_v7, %v1152_v21  ;;  %v1158_v13 = vshll.u32 %v1157_v33, 23  ;;  %vm1737_vm7 = vcmp.gt.s32.totalorder %v1736_v45, 0 }
  0xeb   :  { %vm749_vm8 = vcmp.eq.s32.totalorder %v744_v15, 2  ;;  %v949_v5 = vsel %vm5768_vm5, %v5423_v18, %v946_v30  ;;  %v1057_v47 = vadd.s32 3, %v950_v38  ;;  %v1738_v43 = vsel %vm1737_vm7, %v1736_v45, 0 }
  0xec   :  { %v4448_v40 = vmin.u32 %v1360_v29, %v5747_v19  ;;  %v1552_v23 = vsel %vm1546_vm1, %v1549_v28, %v1551_v22  ;;  %v1571_v42 = vadd.s32 1, %v5751_v3  ;;  %v1740_v48 = vand.u32 31, %v1738_v43 }
  0xed   :  { %vm850_vm9 = vcmp.eq.s32.totalorder %v5764_v14, 0  ;;  %vm853_vm10 = vcmp.eq.s32.totalorder %v5764_v14, 2  ;;  %v1166_v53 = vsub.s32 4, %v5619_v39  ;;  %vm1570_vm11 = vc.u32 %v5760_v10, %v5750_v20 }
  0xee   :  { %vm743_vm12 = vweird.f32 %v5657_v54  ;;  %v748_v27 = vsel %vm746_vm4, %v5737_v31, %v747_v4  ;;  %v751_v51 = vsel %vm749_vm8, %v750_v56, %v4632_v0  ;;  %v1155_v46 = vor.u32 %v1154_v34, %v1153_v36 }
  0xef   :  { %v1159_v35 = vor.u32 4788187, %v1158_v13  ;;  %vm849_vm13 = vcmp.lt.s32.totalorder %v5764_v14, 2  ;;  %4633 = vcosq.f32 %v949_v5  ;;  %vm5802_vm14 = vcmp.le.f32.partialorder %v1080_v11, 0.7853982 }
  0xf0   :  { %v1568_v55 = vmul.u32 %v5735_v49, %v1552_v23  ;;  %v1741_v57 = vsub.s32 32, %v1740_v48  ;;  %v5807_v58 = vand.u32 3, %v950_v38  ;;  %v5809_v60 = vand.u32 3, %v1057_v47 }
  0xf1   :  { %v1362_v7 = vclz %v4448_v40  ;;  %v1572_v8 = vsel %vm1570_vm11, %v1571_v42, %v5751_v3  ;;  %v752_v9 = vsel %vm745_vm3, %v748_v27, %v751_v51  ;;  %v852_v21 = vsel %vm850_vm9, %v5737_v31, %v747_v4 }
  0xf2   :  { %v855_v11 = vsel %vm853_vm10, %v750_v56, %v4632_v0  ;;  %v1167_v49 = vsel %vm1082_vm6, %v1166_v53, %v5619_v39  ;;  %4635 = vsinq.f32 %v949_v5  ;;  %v1160_v33 = vand.u32 2147483647, %v1159_v35  ;;  %v4699_v39 = vld [vmem:[%s7797_s0 + $0x30] sm:$0xff] }
  0xf3   :  { %v1162_v17 = vcvt.s32.f32 %v1155_v46  ;;  %v1726_v12 = vand.u32 2147483647, %v5724_v61  ;;  %v5822_v16 = vadd.s32 %v1572_v8, %v1568_v55  ;;  %v5824_v15 = vshrl.u32 %v1738_v43, 5 }
  0xf4   :  { %v1752_v3 = vshll.u32 %v4761_v62, %v1740_v48  ;;  %v1753_v31 = vshrl.u32 %v4762_v41, %v1741_v57  ;;  %v4449_v30 = vadd.s32 4294967294, %v1362_v7  ;;  %v1755_v0 = vshll.u32 %v4762_v41, %v1740_v48 }
  0xf5   :  { %v1756_v38 = vshrl.u32 %v4763_v52, %v1741_v57  ;;  %v5833_v29 = vmul.f32 0.5, %v4699_v39  ;;  %vm959_vm15 = vcmp.eq.s32.totalorder %v5807_v58, 2  ;;  %v1746_v45 = vshll.u32 %v4759_v37, %v1740_v48 }
  0xf6   :  { %v1747_v4 = vshrl.u32 %v4760_v24, %v1741_v57  ;;  %v1749_v56 = vshll.u32 %v4760_v24, %v1740_v48  ;;  %v1750_v28 = vshrl.u32 %v4761_v62, %v1741_v57  ;;  %v856_v22 = vsel %vm849_vm13, %v852_v21, %v855_v11 }
  0xf7   :  { %v1743_v36 = vshll.u32 %v4758_v26, %v1740_v48  ;;  %v1744_v34 = vshrl.u32 %v4759_v37, %v1741_v57  ;;  %v1757_v13 = vor.u32 %v1756_v38, %v1755_v0  ;;  %v1574_v5 = vadd.s32 536870912, %v5822_v16 }
  0xf8   :  { %v1733_v47 = vand.u32 8388607, %v1726_v12  ;;  %v1754_v43 = vor.u32 %v1753_v31, %v1752_v3  ;;  %vm1761_vm0 = vcmp.lt.s32.totalorder %v5824_v15, 4  ;;  %vm1063_vm1 = vcmp.eq.s32.totalorder %v5809_v60, 2 }
  0xf9   :  { %v1163_v40 = vmul.f32 %v1162_v17, %v1160_v33  ;;  %v1169_v14 = vsel %vm5802_vm14, 0, %v1167_v49  ;;  %vm4450_vm2 = vcmp.lt.s32.totalorder %v4449_v30, 0  ;;  %v1939_v23 = vand.u32 2139095040, %v5833_v29  ;;  %v4634_v42 = vpop.eup %4633 }
  0xfa   :  { %v753_v48 = vsel %vm743_vm12, nan, %v752_v9  ;;  %v857_v53 = vsel %vm743_vm12, nan, %v856_v22  ;;  %vm956_vm3 = vcmp.eq.s32.totalorder %v5807_v58, 0  ;;  %v1748_v27 = vor.u32 %v1747_v4, %v1746_v45 }
  0xfb   :  { %v1751_v51 = vor.u32 %v1750_v28, %v1749_v56  ;;  %vm1060_vm4 = vcmp.eq.s32.totalorder %v5809_v60, 0  ;;  %v1745_v46 = vor.u32 %v1744_v34, %v1743_v36  ;;  %vm1758_vm5 = vcmp.lt.s32.totalorder %v5824_v15, 1 }
  0xfc   :  { %vm1760_vm7 = vcmp.lt.s32.totalorder %v5824_v15, 3  ;;  %v1771_v35 = vsel %vm1761_vm0, %v1757_v13, 1326507024  ;;  %v5862_v55 = vsel %vm4450_vm2, 0, %v4449_v30  ;;  %v5864_v7 = vshrl.u32 %v1574_v5, 30  ;;  %v4636_v9 = vpop.eup %4635 }
  0xfd   :  { %v1734_v54 = vor.u32 8388608, %v1733_v47  ;;  %v1767_v8 = vsel %vm1761_vm0, %v1754_v43, 920167782  ;;  %v960_v21 = vxor.u32 2147483648, %v4634_v42  ;;  %v1164_v11 = vxor.u32 2147483648, %v1163_v40 }
  0xfe   :  { %v5868_v49 = vand.u32 3, %v1169_v14  ;;  %v1940_v33 = vshrl.u32 %v1939_v23, 23  ;;  %v1742_v17 = vshrl.u32 %v4758_v26, %v1741_v57  ;;  %vm1759_vm8 = vcmp.lt.s32.totalorder %v5824_v15, 2 }
  0xff   :  { %v1770_v3 = vsel %vm1758_vm5, %v1748_v27, %v1751_v51  ;;  %v1772_v31 = vsel %vm1760_vm7, %v1754_v43, %v1771_v35  ;;  %vm955_vm9 = vcmp.lt.s32.totalorder %v5807_v58, 2  ;;  %vm1059_vm10 = vcmp.lt.s32.totalorder %v5809_v60, 2 }
 0x100   :  { %v1370_v30 = vsub.s32 4294967266, %v5862_v55  ;;  %v1763_v0 = vsel %vm1761_vm0, %v1751_v51, 2102212464  ;;  %v1766_v57 = vsel %vm1758_vm5, %v1745_v46, %v1748_v27  ;;  %v1768_v38 = vsel %vm1760_vm7, %v1751_v51, %v1767_v8 }
 0x101   :  { %v5885_v39 = vmul.f32 0.70710677, %v753_v48  ;;  %v5887_v45 = vmul.f32 -0.70710677, %v857_v53  ;;  %v1576_v4 = vshll.u32 %v5864_v7, 30  ;;  %v1774_v56 = vshll.u32 %v1734_v54, 8 }
 0x102   :  { %v957_v28 = vxor.u32 2147483648, %v4636_v9  ;;  %v961_v22 = vsel %vm959_vm15, %v960_v21, %v4636_v9  ;;  %v1276_v36 = vadd.s32 3, %v1169_v14  ;;  %v1773_v34 = vsel %vm1759_vm8, %v1770_v3, %v1772_v31 }
 0x103   :  { %v1762_v13 = vsel %vm1758_vm5, %v1742_v17, %v1745_v46  ;;  %v1764_v5 = vsel %vm1760_vm7, %v1748_v27, %v1763_v0  ;;  %v1769_v47 = vsel %vm1759_vm8, %v1766_v57, %v1768_v38  ;;  %v4471_v43 = vadd.s32 4294967169, %v1940_v33  ;;  %v5933_v17 = vld [vmem:[%s7797_s0 + $0x38] sm:$0xff] }
 0x104   :  { %v1165_v23 = vsel %vm1082_vm6, %v1164_v11, %v1163_v40  ;;  %v1350_v48 = vadd.s32 %v5637_v59, %v5643_v1  ;;  %v1366_v14 = vsub.s32 32, %v5862_v55  ;;  %v1371_v53 = vadd.s32 127, %v1370_v30 }
 0x105   :  { %v1065_v51 = vsel %vm1063_vm1, %v960_v21, %v4636_v9  ;;  %v5908_v46 = vsub.s32 %v5822_v16, %v1576_v4  ;;  %v5910_v27 = vmul.u32.u64.low %v1774_v56, %v1773_v34  ;;  %v5911_v35 = vmul.u32.u64.high %v1774_v56, %v1773_v34, %v5910_v27 }
 0x106   :  { %vm953_vm11 = vweird.f32 %v5423_v18  ;;  %v958_v40 = vsel %vm956_vm3, %v4634_v42, %v957_v28  ;;  %v1765_v59 = vsel %vm1759_vm8, %v1762_v13, %v1764_v5  ;;  %v1062_v8 = vsel %vm1060_vm4, %v4634_v42, %v957_v28 }
 0x107   :  { %v5918_v1 = vmul.u32.u64.low %v1774_v56, %v1769_v47  ;;  %v5919_v54 = vmul.u32.u64.high %v1774_v56, %v1769_v47, %v5918_v1  ;;  %v1168_v16 = vsel %vm5802_vm14, %v5451_v6, %v1165_v23  ;;  %v1367_v9 = vshll.u32 %v5747_v19, %v5862_v55 }
 0x108   :  { %v1946_v21 = vadd.s32 1, %v4471_v43  ;;  %v1368_v11 = vshrl.u32 %v1350_v48, %v1366_v14  ;;  %v1372_v33 = vshll.u32 %v1371_v53, 23  ;;  %v1936_v15 = vand.u32 2147483647, %v5833_v29 }
 0x109   :  { %v2158_v3 = vand.u32 2139095040, %v5933_v17  ;;  %v1579_v42 = vsub.s32 0, %v5908_v46  ;;  %v1781_v31 = vmul.u32 %v1774_v56, %v1765_v59  ;;  %vm1783_vm6 = vc.u32 %v5911_v35, %v5918_v1 }
 0x10a   :  { %vm1947_vm12 = vcmp.gt.s32.totalorder %v1946_v21, 0  ;;  %4637 = vcosq.f32 %v1168_v16  ;;  %v5939_v6 = vand.u32 3, %v1276_v36  ;;  %v1784_v19 = vadd.s32 1, %v5919_v54 }
 0x10b   :  { %v1948_v44 = vsel %vm1947_vm12, %v1946_v21, 0  ;;  %v962_v55 = vsel %vm955_vm9, %v958_v40, %v961_v22  ;;  %v1066_v30 = vsel %vm1059_vm10, %v1062_v8, %v1065_v51  ;;  %4639 = vsinq.f32 %v1168_v16 }
 0x10c   :  { %v1950_v0 = vand.u32 31, %v1948_v44  ;;  %v1369_v57 = vor.u32 %v1368_v11, %v1367_v9  ;;  %v1373_v38 = vor.u32 4788187, %v1372_v33  ;;  %v1785_v4 = vsel %vm1783_vm6, %v1784_v19, %v5919_v54 }
 0x10d   :  { %v1943_v56 = vand.u32 8388607, %v1936_v15  ;;  %vm1296_vm13 = vcmp.lt.s32.totalorder %v5530_v2, 0  ;;  %v4456_v28 = vmin.u32 %v1579_v42, %v5908_v46  ;;  %v1786_v36 = vadd.s32 %v1785_v4, %v1781_v31 }
 0x10e   :  { %v1951_v34 = vsub.s32 32, %v1950_v0  ;;  %v2159_v58 = vshrl.u32 %v2158_v3, 23  ;;  %v5951_v22 = vshrl.u32 %v1948_v44, 5  ;;  %v1953_v60 = vshll.u32 %v4758_v26, %v1950_v0 }
 0x10f   :  { %v1956_v13 = vshll.u32 %v4759_v37, %v1950_v0  ;;  %v1962_v5 = vshll.u32 %v4761_v62, %v1950_v0  ;;  %v1787_v47 = vadd.s32 536870912, %v1786_v36  ;;  %v1959_v48 = vshll.u32 %v4760_v24, %v1950_v0 }
 0x110   :  { %v1954_v43 = vshrl.u32 %v4759_v37, %v1951_v34  ;;  %v1957_v23 = vshrl.u32 %v4760_v24, %v1951_v34  ;;  %v1960_v14 = vshrl.u32 %v4761_v62, %v1951_v34  ;;  %v1963_v53 = vshrl.u32 %v4762_v41, %v1951_v34 }
 0x111   :  { %v1965_v51 = vshll.u32 %v4762_v41, %v1950_v0  ;;  %v1966_v27 = vshrl.u32 %v4763_v52, %v1951_v34  ;;  %v5965_v40 = vsel %vm953_vm11, nan, %v962_v55  ;;  %v5969_v59 = vsel %vm953_vm11, nan, %v1066_v30 }
 0x112   :  { %v1380_v54 = vsub.s32 4, %v5709_v32  ;;  %v4479_v8 = vadd.s32 4294967169, %v2159_v58  ;;  %vm5974_vm14 = vcmp.le.f32.partialorder %v1294_v50, 0.7853982  ;;  %v1374_v9 = vand.u32 2147483647, %v1373_v38 }
 0x113   :  { %v1376_v21 = vcvt.s32.f32 %v1369_v57  ;;  %v5978_v11 = vshrl.u32 %v1787_v47, 30  ;;  %v1964_v33 = vor.u32 %v1963_v53, %v1962_v5  ;;  %v1581_v3 = vclz %v4456_v28 }
 0x114   :  { %v1944_v42 = vor.u32 8388608, %v1943_v56  ;;  %v1955_v31 = vor.u32 %v1954_v43, %v1953_v60  ;;  %v1958_v18 = vor.u32 %v1957_v23, %v1956_v13  ;;  %v5980_v19 = vpop.eup %4637  ;;  %v1961_v44 = vor.u32 %v1960_v14, %v1959_v48 }
 0x115   :  { %v1967_v55 = vor.u32 %v1966_v27, %v1965_v51  ;;  %vm1968_vm15 = vcmp.lt.s32.totalorder %v5951_v22, 1  ;;  %vm1971_vm0 = vcmp.lt.s32.totalorder %v5951_v22, 4  ;;  %v5984_v50 = vpop.eup %4639  ;;  %v1068_v30 = vmul.f32 %v5965_v40, %v5885_v39 }
 0x116   :  { %v1069_v0 = vmul.f32 0.70710677, %v5969_v59  ;;  %vm1970_vm1 = vcmp.lt.s32.totalorder %v5951_v22, 3  ;;  %v2165_v57 = vadd.s32 1, %v4479_v8  ;;  %vm1175_vm2 = vcmp.eq.s32.totalorder %v5868_v49, 0 }
 0x117   :  { %vm1178_vm3 = vcmp.eq.s32.totalorder %v5868_v49, 2  ;;  %v1377_v38 = vmul.f32 %v1376_v21, %v1374_v9  ;;  %v1381_v4 = vsel %vm1296_vm13, %v1380_v54, %v5709_v32  ;;  %v1789_v56 = vshll.u32 %v5978_v11, 30 }
 0x118   :  { %v1977_v28 = vsel %vm1971_vm0, %v1964_v33, 920167782  ;;  %v4457_v58 = vadd.s32 4294967294, %v1581_v3  ;;  %vm1969_vm4 = vcmp.lt.s32.totalorder %v5951_v22, 2  ;;  %v1976_v60 = vsel %vm1968_vm15, %v1955_v31, %v1958_v18 }
 0x119   :  { %v6001_v13 = vshll.u32 %v1944_v42, 8  ;;  %vm1279_vm5 = vcmp.eq.s32.totalorder %v5939_v6, 0  ;;  %vm1282_vm7 = vcmp.eq.s32.totalorder %v5939_v6, 2  ;;  %v1952_v5 = vshrl.u32 %v4758_v26, %v1951_v34 }
 0x11a   :  { %v1978_v32 = vsel %vm1970_vm1, %v1961_v44, %v1977_v28  ;;  %v1980_v47 = vsel %vm1968_vm15, %v1958_v18, %v1961_v44  ;;  %v1981_v43 = vsel %vm1971_vm0, %v1967_v55, 1326507024  ;;  %v1071_v23 = vmul.f32 %v5965_v40, %v5887_v45 }
 0x11b   :  { %v1072_v48 = vmul.f32 0.0, %v5969_v59  ;;  %vm1174_vm8 = vcmp.lt.s32.totalorder %v5868_v49, 2  ;;  %v1973_v14 = vsel %vm1971_vm0, %v1961_v44, 2102212464  ;;  %vm2166_vm9 = vcmp.gt.s32.totalorder %v2165_v57, 0 }
 0x11c   :  { %v1378_v34 = vxor.u32 2147483648, %v1377_v38  ;;  %v6018_v53 = vsub.s32 %v1786_v36, %v1789_v56  ;;  %v1979_v51 = vsel %vm1969_vm4, %v1976_v60, %v1978_v32  ;;  %v1982_v27 = vsel %vm1970_vm1, %v1964_v33, %v1981_v43 }
 0x11d   :  { %v1383_v54 = vsel %vm5974_vm14, 0, %v1381_v4  ;;  %v1983_v8 = vsel %vm1969_vm4, %v1980_v47, %v1982_v27  ;;  %v6029_v9 = vmul.u32.u64.low %v6001_v13, %v1979_v51  ;;  %v6030_v21 = vmul.u32.u64.high %v6001_v13, %v1979_v51, %v6029_v9 }
 0x11e   :  { %vm4458_vm10 = vcmp.lt.s32.totalorder %v4457_v58, 0  ;;  %v1972_v36 = vsel %vm1968_vm15, %v1952_v5, %v1955_v31  ;;  %v1974_v3 = vsel %vm1970_vm1, %v1958_v18, %v1973_v14  ;;  %v2167_v42 = vsel %vm2166_vm9, %v2165_v57, 0 }
 0x11f   :  { %v1176_v33 = vxor.u32 2147483648, %v5984_v50  ;;  %v1179_v44 = vxor.u32 2147483648, %v5980_v19  ;;  %v6040_v55 = vmul.u32.u64.low %v6001_v13, %v1983_v8  ;;  %v6041_v4 = vmul.u32.u64.high %v6001_v13, %v1983_v8, %v6040_v55 }
 0x120   :  { %v6045_v56 = vmul.f32 %v5969_v59, %v5885_v39  ;;  %v6048_v28 = vmul.f32 0.70710677, %v5965_v40  ;;  %v1379_v31 = vsel %vm1296_vm13, %v1378_v34, %v1377_v38  ;;  %v1792_v18 = vsub.s32 0, %v6018_v53 }
 0x121   :  { %v1490_v57 = vadd.s32 3, %v1383_v54  ;;  %v6053_v60 = vsel %vm4458_vm10, 0, %v4457_v58  ;;  %v1975_v5 = vsel %vm1969_vm4, %v1972_v36, %v1974_v3  ;;  %v2169_v32 = vand.u32 31, %v2167_v42 }
 0x122   :  { %v6057_v47 = vsub.f32 %v1068_v30, %v1069_v0  ;;  %v6059_v43 = vsub.f32 %v1071_v23, %v1072_v48  ;;  %v6063_v39 = vmul.f32 %v5969_v59, %v5887_v45  ;;  %v6066_v14 = vmul.f32 0.0, %v5965_v40 }
 0x123   :  { %v1177_v38 = vsel %vm1175_vm2, %v5980_v19, %v1176_v33  ;;  %v1180_v22 = vsel %vm1178_vm3, %v1179_v44, %v5984_v50  ;;  %v1382_v30 = vsel %vm5974_vm14, %v5530_v2, %v1379_v31  ;;  %v1994_v0 = vadd.s32 1, %v6030_v21 }
 0x124   :  { %v6078_v58 = vand.u32 3, %v1383_v54  ;;  %v1589_v45 = vsub.s32 4294967266, %v6053_v60  ;;  %v4464_v40 = vmin.u32 %v1792_v18, %v6018_v53  ;;  %v1991_v59 = vmul.u32 %v6001_v13, %v1975_v5 }
 0x125   :  { %vm1278_vm11 = vcmp.lt.s32.totalorder %v5939_v6, 2  ;;  %v1281_v23 = vsel %vm1279_vm5, %v5980_v19, %v1176_v33  ;;  %v1284_v16 = vsel %vm1282_vm7, %v1179_v44, %v5984_v50  ;;  %v6090_v48 = vand.u32 3, %v1490_v57 }
 0x126   :  { %v2170_v34 = vsub.s32 32, %v2169_v32  ;;  %v6094_v51 = vsel %vm1174_vm8, %v1177_v38, %v1180_v22  ;;  %4641 = vcosq.f32 %v1382_v30  ;;  %v1569_v13 = vadd.s32 %v5750_v20, %v5760_v10 }
 0x127   :  { %vm1993_vm6 = vc.u32 %v6041_v4, %v6029_v9  ;;  %4643 = vsinq.f32 %v1382_v30  ;;  %v1585_v19 = vsub.s32 32, %v6053_v60  ;;  %v7802_v50 = vand.u32 2147483647, %v5933_v17 }
 0x128   :  { %v1995_v27 = vsel %vm1993_vm6, %v1994_v0, %v6030_v21  ;;  %v1586_v54 = vshll.u32 %v5908_v46, %v6053_v60  ;;  %v1590_v49 = vadd.s32 127, %v1589_v45  ;;  %v1794_v8 = vclz %v4464_v40  ;;  %v6113_v21 = vld [vmem:[%s7797_s0 + $0x10] sm:$0xff] }
 0x129   :  { %v1996_v36 = vadd.s32 %v1995_v27, %v1991_v59  ;;  %v6105_v3 = vshrl.u32 %v2167_v42, 5  ;;  %v2172_v20 = vshll.u32 %v4758_v26, %v2169_v32  ;;  %v2173_v10 = vshrl.u32 %v4759_v37, %v2170_v34 }
 0x12a   :  { %v2175_v33 = vshll.u32 %v4759_v37, %v2169_v32  ;;  %vm1172_vm12 = vweird.f32 %v6113_v21  ;;  %v2176_v46 = vshrl.u32 %v4760_v24, %v2170_v34  ;;  %v2178_v55 = vshll.u32 %v4760_v24, %v2169_v32 }
 0x12b   :  { %v1997_v44 = vadd.s32 536870912, %v1996_v36  ;;  %v2179_v42 = vshrl.u32 %v4761_v62, %v2170_v34  ;;  %v1587_v31 = vshrl.u32 %v1569_v13, %v1585_v19  ;;  %v2162_v18 = vand.u32 8388607, %v7802_v50 }
 0x12c   :  { %v2181_v57 = vshll.u32 %v4761_v62, %v2169_v32  ;;  %v2182_v60 = vshrl.u32 %v4762_v41, %v2170_v34  ;;  %v1591_v5 = vshll.u32 %v1590_v49, 23  ;;  %v2184_v22 = vshll.u32 %v4762_v41, %v2169_v32 }
 0x12d   :  { %v6123_v38 = vshrl.u32 %v1997_v44, 30  ;;  %v2185_v30 = vshrl.u32 %v4763_v52, %v2170_v34  ;;  %v4465_v0 = vadd.s32 4294967294, %v1794_v8  ;;  %v2174_v45 = vor.u32 %v2173_v10, %v2172_v20 }
 0x12e   :  { %v2183_v40 = vor.u32 %v2182_v60, %v2181_v57  ;;  %vm2190_vm13 = vcmp.lt.s32.totalorder %v6105_v3, 4  ;;  %v2177_v13 = vor.u32 %v2176_v46, %v2175_v33  ;;  %v2180_v19 = vor.u32 %v2179_v42, %v2178_v55 }
 0x12f   :  { %v1999_v59 = vshll.u32 %v6123_v38, 30  ;;  %v2186_v27 = vor.u32 %v2185_v30, %v2184_v22  ;;  %vm1389_vm14 = vcmp.eq.s32.totalorder %v6078_v58, 0  ;;  %vm1392_vm15 = vcmp.eq.s32.totalorder %v6078_v58, 2 }
 0x130   :  { %v2163_v49 = vor.u32 8388608, %v2162_v18  ;;  %vm2187_vm0 = vcmp.lt.s32.totalorder %v6105_v3, 1  ;;  %vm2189_vm1 = vcmp.lt.s32.totalorder %v6105_v3, 3  ;;  %v2196_v32 = vsel %vm2190_vm13, %v2183_v40, 920167782  ;;  %v6135_v8 = vpop.eup %4641  ;;  %v4702_v18 = vld [vmem:[%s7797_s0 + $0x40] sm:$0xff] }
 0x131   :  { %v1285_v20 = vsel %vm1278_vm11, %v1281_v23, %v1284_v16  ;;  %v1588_v10 = vor.u32 %v1587_v31, %v1586_v54  ;;  %v6139_v33 = vsub.s32 %v1996_v36, %v1999_v59  ;;  %v2171_v44 = vshrl.u32 %v4758_v26, %v2170_v34  ;;  %v4644_v46 = vpop.eup %4643 }
 0x132   :  { %vm1515_vm2 = vcmp.lt.s32.totalorder %v5605_v63, 0  ;;  %vm4466_vm3 = vcmp.lt.s32.totalorder %v4465_v0, 0  ;;  %vm2188_vm4 = vcmp.lt.s32.totalorder %v6105_v3, 2  ;;  %v2192_v55 = vsel %vm2190_vm13, %v2180_v19, 2102212464 }
 0x133   :  { %v2200_v42 = vsel %vm2190_vm13, %v2186_v27, 1326507024  ;;  %v2002_v6 = vsub.s32 0, %v6139_v33  ;;  %v2195_v23 = vsel %vm2187_vm0, %v2174_v45, %v2177_v13  ;;  %v2197_v16 = vsel %vm2189_vm1, %v2180_v19, %v2196_v32 }
 0x134   :  { %v2199_v34 = vsel %vm2187_vm0, %v2177_v13, %v2180_v19  ;;  %v1592_v54 = vor.u32 4788187, %v1591_v5  ;;  %v2201_v36 = vsel %vm2189_vm1, %v2183_v40, %v2200_v42  ;;  %v2203_v31 = vshll.u32 %v2163_v49, 8 }
 0x135   :  { %v6160_v57 = vmul.f32 0.5, %v4702_v18  ;;  %vm1388_vm5 = vcmp.lt.s32.totalorder %v6078_v58, 2  ;;  %v6163_v60 = vsel %vm4466_vm3, 0, %v4465_v0  ;;  %v4472_v22 = vmin.u32 %v2002_v6, %v6139_v33 }
 0x136   :  { %v2191_v30 = vsel %vm2187_vm0, %v2171_v44, %v2174_v45  ;;  %v2193_v5 = vsel %vm2189_vm1, %v2177_v13, %v2192_v55  ;;  %v1182_v40 = vsel %vm1172_vm12, nan, %v6094_v51  ;;  %vm6175_vm7 = vcmp.le.f32.partialorder %v1513_v25, 0.7853982 }
 0x137   :  { %v1599_v0 = vsub.s32 4, %v5864_v7  ;;  %v2198_v19 = vsel %vm2188_vm4, %v2195_v23, %v2197_v16  ;;  %v2202_v45 = vsel %vm2188_vm4, %v2199_v34, %v2201_v36  ;;  %v1390_v27 = vxor.u32 2147483648, %v4644_v46 }
 0x138   :  { %v1393_v13 = vxor.u32 2147483648, %v6135_v8  ;;  %vm1492_vm8 = vcmp.lt.s32.totalorder %v6090_v48, 2  ;;  %v6186_v51 = vmul.u32.u64.low %v2203_v31, %v2202_v45  ;;  %v6187_v49 = vmul.u32.u64.high %v2203_v31, %v2202_v45, %v6186_v51 }
 0x139   :  { %v1593_v25 = vand.u32 2147483647, %v1592_v54  ;;  %v1595_v32 = vcvt.s32.f32 %v1588_v10  ;;  %v1802_v44 = vsub.s32 4294967266, %v6163_v60  ;;  %v2194_v55 = vsel %vm2188_vm4, %v2191_v30, %v2193_v5 }
 0x13a   :  { %vm1386_vm9 = vweird.f32 %v5530_v2  ;;  %v2004_v42 = vclz %v4472_v22  ;;  %v6193_v6 = vmul.u32.u64.low %v2203_v31, %v2198_v19  ;;  %v6194_v23 = vmul.u32.u64.high %v2203_v31, %v2198_v19, %v6193_v6 }
 0x13b   :  { %v2372_v16 = vand.u32 2139095040, %v6160_v57  ;;  %v1286_v34 = vsel %vm1172_vm12, nan, %v1285_v20  ;;  %v1287_v54 = vmul.f32 %v1182_v40, %v6057_v47  ;;  %vm1493_vm10 = vcmp.eq.s32.totalorder %v6090_v48, 0 }
 0x13c   :  { %vm1496_vm11 = vcmp.eq.s32.totalorder %v6090_v48, 2  ;;  %v1391_v3 = vsel %vm1389_vm14, %v6135_v8, %v1390_v27  ;;  %v1394_v10 = vsel %vm1392_vm15, %v1393_v13, %v4644_v46  ;;  %v1600_v36 = vsel %vm1515_vm2, %v1599_v0, %v5864_v7 }
 0x13d   :  { %v2373_v18 = vshrl.u32 %v2372_v16, 23  ;;  %v1596_v21 = vmul.f32 %v1595_v32, %v1593_v25  ;;  %v1782_v20 = vadd.s32 %v5918_v1, %v5911_v35  ;;  %v2210_v22 = vmul.u32 %v2203_v31, %v2194_v55 }
 0x13e   :  { %vm2212_vm6 = vc.u32 %v6187_v49, %v6193_v6  ;;  %v1798_v30 = vsub.s32 32, %v6163_v60  ;;  %v1803_v5 = vadd.s32 127, %v1802_v44  ;;  %v4473_v19 = vadd.s32 4294967294, %v2004_v42 }
 0x13f   :  { %v2213_v45 = vadd.s32 1, %v6194_v23  ;;  %v1288_v51 = vmul.f32 %v1286_v34, %v6059_v43  ;;  %v1290_v50 = vmul.f32 %v1182_v40, %v6059_v43  ;;  %v1291_v7 = vmul.f32 %v1286_v34, %v6057_v47 }
 0x140   :  { %v4487_v0 = vadd.s32 4294967169, %v2373_v18  ;;  %v1495_v35 = vsel %vm1493_vm10, %v6135_v8, %v1390_v27  ;;  %v1498_v1 = vsel %vm1496_vm11, %v1393_v13, %v4644_v46  ;;  %v1602_v31 = vsel %vm6175_vm7, 0, %v1600_v36 }
 0x141   :  { %v2214_v25 = vsel %vm2212_vm6, %v2213_v45, %v6194_v23  ;;  %v1395_v32 = vsel %vm1388_vm5, %v1391_v3, %v1394_v10  ;;  %v1597_v44 = vxor.u32 2147483648, %v1596_v21  ;;  %v1799_v47 = vshll.u32 %v6018_v53, %v6163_v60  ;;  %v6263_v10 = vld [vmem:[%s7797_s0 + $0x48] sm:$0xff] }
 0x142   :  { %v2215_v43 = vadd.s32 %v2214_v25, %v2210_v22  ;;  %v2379_v40 = vadd.s32 1, %v4487_v0  ;;  %v1800_v55 = vshrl.u32 %v1782_v20, %v1798_v30  ;;  %v1804_v42 = vshll.u32 %v1803_v5, 23  ;;  %v6286_v5 = vld [vmem:[%s7797_s0 + $0x20] sm:$0xff] }
 0x143   :  { %vm4474_vm12 = vcmp.lt.s32.totalorder %v4473_v19, 0  ;;  %v1076_v8 = vadd.f32 %v6048_v28, %v6045_v56  ;;  %v1499_v46 = vsel %vm1492_vm8, %v1495_v35, %v1498_v1  ;;  %v6238_v58 = vadd.f32 %v6066_v14, %v6063_v39 }
 0x144   :  { %v2216_v27 = vadd.s32 536870912, %v2215_v43  ;;  %vm2380_vm13 = vcmp.gt.s32.totalorder %v2379_v40, 0  ;;  %v1289_v13 = vadd.f32 %v1288_v51, %v1287_v54  ;;  %v6240_v23 = vsub.f32 %v1290_v50, %v1291_v7 }
 0x145   :  { %v1709_v16 = vadd.s32 3, %v1602_v31  ;;  %v6244_v53 = vsel %vm1386_vm9, nan, %v1395_v32  ;;  %v6246_v60 = vsel %vm4474_vm12, 0, %v4473_v19  ;;  %v2381_v28 = vsel %vm2380_vm13, %v2379_v40, 0 }
 0x146   :  { %v6248_v56 = vshrl.u32 %v2216_v27, 30  ;;  %v6252_v48 = vsel %vm1386_vm9, nan, %v1499_v46  ;;  %v1598_v39 = vsel %vm1515_vm2, %v1597_v44, %v1596_v21  ;;  %v1801_v14 = vor.u32 %v1800_v55, %v1799_v47 }
 0x147   :  { %v1805_v50 = vor.u32 4788187, %v1804_v42  ;;  %v6256_v34 = vand.u32 3, %v1602_v31  ;;  %v2369_v3 = vand.u32 2147483647, %v6160_v57  ;;  %v2591_v2 = vand.u32 2139095040, %v6263_v10 }
 0x148   :  { %v2218_v54 = vshll.u32 %v6248_v56, 30  ;;  %v6267_v36 = vmul.f32 %v6244_v53, %v1289_v13  ;;  %v6269_v63 = vand.u32 3, %v1709_v16  ;;  %v2012_v18 = vsub.s32 4294967266, %v6246_v60 }
 0x149   :  { %v2383_v21 = vand.u32 31, %v2381_v28  ;;  %v6273_v20 = vmul.f32 %v6252_v48, %v1076_v8  ;;  %v6277_v22 = vmul.f32 %v6244_v53, %v6240_v23  ;;  %v6281_v30 = vmul.f32 %v6252_v48, %v6238_v58 }
 0x14a   :  { %v1601_v19 = vsel %vm6175_vm7, %v6286_v5, %v1598_v39  ;;  %v6292_v45 = vmul.f32 %v6252_v48, %v1289_v13  ;;  %v1806_v51 = vand.u32 2147483647, %v1805_v50  ;;  %v1808_v7 = vcvt.s32.f32 %v1801_v14 }
 0x14b   :  { %v2384_v0 = vsub.s32 32, %v2383_v21  ;;  %v6295_v35 = vmul.f32 %v6244_v53, %v1076_v8  ;;  %v6297_v1 = vsub.s32 %v2215_v43, %v2218_v54  ;;  %v2376_v31 = vand.u32 8388607, %v2369_v3 }
 0x14c   :  { %v2592_v25 = vshrl.u32 %v2591_v2, 23  ;;  %4645 = vcosq.f32 %v1601_v19  ;;  %v1992_v59 = vadd.s32 %v6029_v9, %v6041_v4  ;;  %v2008_v32 = vsub.s32 32, %v6246_v60 }
 0x14d   :  { %v2013_v44 = vadd.s32 127, %v2012_v18  ;;  %4647 = vsinq.f32 %v1601_v19  ;;  %v1812_v40 = vsub.s32 4, %v5978_v11  ;;  %v2389_v47 = vshll.u32 %v4759_v37, %v2383_v21 }
 0x14e   :  { %v2390_v55 = vshrl.u32 %v4760_v24, %v2384_v0  ;;  %v6307_v43 = vmul.f32 %v1808_v7, %v1806_v51  ;;  %v6309_v42 = vshrl.u32 %v2381_v28, 5  ;;  %v2386_v8 = vshll.u32 %v4758_v26, %v2383_v21 }
 0x14f   :  { %v2387_v46 = vshrl.u32 %v4759_v37, %v2384_v0  ;;  %v2221_v9 = vsub.s32 0, %v6297_v1  ;;  %v2377_v4 = vor.u32 8388608, %v2376_v31  ;;  %v2392_v27 = vshll.u32 %v4760_v24, %v2383_v21 }
 0x150   :  { %v4495_v13 = vadd.s32 4294967169, %v2592_v25  ;;  %vm1728_vm14 = vcmp.lt.s32.totalorder %v5724_v61, 0  ;;  %v2009_v16 = vshll.u32 %v6139_v33, %v6246_v60  ;;  %v2010_v39 = vshrl.u32 %v1992_v59, %v2008_v32 }
 0x151   :  { %v2014_v14 = vshll.u32 %v2013_v44, 23  ;;  %v2393_v28 = vshrl.u32 %v4761_v62, %v2384_v0  ;;  %v2391_v50 = vor.u32 %v2390_v55, %v2389_v47  ;;  %v2395_v54 = vshll.u32 %v4761_v62, %v2383_v21 }
 0x152   :  { %v2396_v2 = vshrl.u32 %v4762_v41, %v2384_v0  ;;  %v2398_v18 = vshll.u32 %v4762_v41, %v2383_v21  ;;  %v2388_v19 = vor.u32 %v2387_v46, %v2386_v8  ;;  %v2399_v7 = vshrl.u32 %v4763_v52, %v2384_v0 }
 0x153   :  { %v2394_v51 = vor.u32 %v2393_v28, %v2392_v27  ;;  %vm2401_vm15 = vcmp.lt.s32.totalorder %v6309_v42, 1  ;;  %v4480_v31 = vmin.u32 %v2221_v9, %v6297_v1  ;;  %vm2404_vm0 = vcmp.lt.s32.totalorder %v6309_v42, 4 }
 0x154   :  { %v2397_v33 = vor.u32 %v2396_v2, %v2395_v54  ;;  %v2598_v60 = vadd.s32 1, %v4495_v13  ;;  %vm1611_vm1 = vcmp.eq.s32.totalorder %v6256_v34, 2  ;;  %vm6329_vm2 = vcmp.le.f32.partialorder %v1726_v12, 0.7853982 }
 0x155   :  { %v2011_v21 = vor.u32 %v2010_v39, %v2009_v16  ;;  %v2400_v59 = vor.u32 %v2399_v7, %v2398_v18  ;;  %vm2403_vm3 = vcmp.lt.s32.totalorder %v6309_v42, 3  ;;  %v6334_v32 = vshll.u32 %v2377_v4, 8 }
 0x156   :  { %vm1608_vm4 = vcmp.eq.s32.totalorder %v6256_v34, 0  ;;  %vm1715_vm5 = vcmp.eq.s32.totalorder %v6269_v63, 2  ;;  %v2015_v44 = vor.u32 4788187, %v2014_v14  ;;  %v2385_v47 = vshrl.u32 %v4758_v26, %v2384_v0  ;;  %v4646_v55 = vpop.eup %4645 }
 0x157   :  { %vm2402_vm7 = vcmp.lt.s32.totalorder %v6309_v42, 2  ;;  %v2413_v12 = vsel %vm2401_vm15, %v2391_v50, %v2394_v51  ;;  %vm1712_vm8 = vcmp.eq.s32.totalorder %v6269_v63, 0  ;;  %v2409_v8 = vsel %vm2401_vm15, %v2388_v19, %v2391_v50  ;;  %v4648_v4 = vpop.eup %4647  ;;  %v6417_v42 = vld [vmem:[%s7797_s0 + $0x28] sm:$0xff] }
 0x158   :  { %v2410_v46 = vsel %vm2404_vm0, %v2397_v33, 920167782  ;;  %v2414_v9 = vsel %vm2404_vm0, %v2400_v59, 1326507024  ;;  %vm2599_vm9 = vcmp.gt.s32.totalorder %v2598_v60, 0  ;;  %v2223_v0 = vclz %v4480_v31 }
 0x159   :  { %v2406_v27 = vsel %vm2404_vm0, %v2394_v51, 2102212464  ;;  %v2411_v13 = vsel %vm2403_vm3, %v2394_v51, %v2410_v46  ;;  %v2415_v16 = vsel %vm2403_vm3, %v2397_v33, %v2414_v9  ;;  %v6357_v39 = vmul.f32 %v6252_v48, %v6240_v23 }
 0x15a   :  { %v1810_v14 = vxor.u32 2147483648, %v6307_v43  ;;  %v2416_v28 = vsel %vm2402_vm7, %v2413_v12, %v2415_v16  ;;  %v2600_v54 = vsel %vm2599_vm9, %v2598_v60, 0  ;;  %v1813_v2 = vsel %vm1728_vm14, %v1812_v40, %v5978_v11 }
 0x15b   :  { %v2016_v18 = vand.u32 2147483647, %v2015_v44  ;;  %v2018_v7 = vcvt.s32.f32 %v2011_v21  ;;  %v2412_v51 = vsel %vm2402_vm7, %v2409_v8, %v2411_v13  ;;  %v2405_v31 = vsel %vm2401_vm15, %v2385_v47, %v2388_v19 }
 0x15c   :  { %v2407_v23 = vsel %vm2403_vm3, %v2391_v50, %v2406_v27  ;;  %v6372_v48 = vmul.u32.u64.low %v6334_v32, %v2416_v28  ;;  %v6373_v33 = vmul.u32.u64.high %v6334_v32, %v2416_v28, %v6372_v48  ;;  %v6377_v60 = vmul.f32 %v6244_v53, %v6238_v58 }
 0x15d   :  { %v1612_v11 = vxor.u32 2147483648, %v4646_v55  ;;  %v4481_v40 = vadd.s32 4294967294, %v2223_v0  ;;  %v2602_v21 = vand.u32 31, %v2600_v54  ;;  %v1609_v59 = vxor.u32 2147483648, %v4648_v4 }
 0x15e   :  { %v1811_v44 = vsel %vm1728_vm14, %v1810_v14, %v6307_v43  ;;  %v6383_v19 = vmul.u32.u64.low %v6334_v32, %v2412_v51  ;;  %v6384_v47 = vmul.u32.u64.high %v6334_v32, %v2412_v51, %v6383_v19  ;;  %v6389_v50 = vsub.f32 %v6267_v36, %v6273_v20 }
 0x15f   :  { %v6393_v58 = vsel %vm6329_vm2, 0, %v1813_v2  ;;  %vm1938_vm10 = vcmp.lt.s32.totalorder %v5833_v29, 0  ;;  %v2408_v53 = vsel %vm2402_vm7, %v2405_v31, %v2407_v23  ;;  %v2588_v61 = vand.u32 2147483647, %v6263_v10 }
 0x160   :  { %v6401_v43 = vsub.f32 %v6277_v22, %v6281_v30  ;;  %v6405_v12 = vadd.f32 %v6295_v35, %v6292_v45  ;;  %v6408_v36 = vand.u32 3, %v6393_v58  ;;  %v2019_v20 = vmul.f32 %v2018_v7, %v2016_v18 }
 0x161   :  { %v6412_v8 = vsel %vm1611_vm1, %v1612_v11, %v4648_v4  ;;  %v1814_v22 = vsel %vm6329_vm2, %v6417_v42, %v1811_v44  ;;  %vm4482_vm11 = vcmp.lt.s32.totalorder %v4481_v40, 0  ;;  %v2603_v30 = vsub.s32 32, %v2602_v21 }
 0x162   :  { %v6424_v45 = vsel %vm1608_vm4, %v4646_v55, %v1609_v59  ;;  %v6428_v35 = vsel %vm1715_vm5, %v1612_v11, %v4648_v4  ;;  %v2424_v46 = vmul.u32 %v6334_v32, %v2408_v53  ;;  %vm2426_vm6 = vc.u32 %v6373_v33, %v6383_v19 }
 0x163   :  { %v6435_v9 = vsel %vm1712_vm8, %v4646_v55, %v1609_v59  ;;  %vm6439_vm12 = vcmp.le.f32.partialorder %v1936_v15, 0.7853982  ;;  %v2022_v0 = vsub.s32 4, %v6123_v38  ;;  %v2427_v4 = vadd.s32 1, %v6384_v47 }
 0x164   :  { %v2595_v32 = vand.u32 8388607, %v2588_v61  ;;  %4649 = vcosq.f32 %v1814_v22  ;;  %v2020_v27 = vxor.u32 2147483648, %v2019_v20  ;;  %v6447_v13 = vsel %vm4482_vm11, 0, %v4481_v40 }
 0x165   :  { %v2605_v55 = vshll.u32 %v4758_v26, %v2602_v21  ;;  %v2428_v16 = vsel %vm2426_vm6, %v2427_v4, %v6384_v47  ;;  %v6451_v14 = vshrl.u32 %v2600_v54, 5  ;;  %v2606_v15 = vshrl.u32 %v4759_v37, %v2603_v30 }
 0x166   :  { %v2608_v28 = vshll.u32 %v4759_v37, %v2602_v21  ;;  %v2429_v2 = vadd.s32 %v2428_v16, %v2424_v46  ;;  %v2609_v18 = vshrl.u32 %v4760_v24, %v2603_v30  ;;  %v2611_v7 = vshll.u32 %v4760_v24, %v2602_v21 }
 0x167   :  { %v2612_v51 = vshrl.u32 %v4761_v62, %v2603_v30  ;;  %4651 = vsinq.f32 %v1814_v22  ;;  %v2596_v31 = vor.u32 8388608, %v2595_v32  ;;  %v2614_v23 = vshll.u32 %v4761_v62, %v2602_v21 }
 0x168   :  { %v2615_v48 = vshrl.u32 %v4762_v41, %v2603_v30  ;;  %v2231_v54 = vsub.s32 4294967266, %v6447_v13  ;;  %v2430_v11 = vadd.s32 536870912, %v2429_v2  ;;  %v2607_v40 = vor.u32 %v2606_v15, %v2605_v55 }
 0x169   :  { %v2610_v59 = vor.u32 %v2609_v18, %v2608_v28  ;;  %vm1607_vm13 = vcmp.lt.s32.totalorder %v6256_v34, 2  ;;  %vm1711_vm14 = vcmp.lt.s32.totalorder %v6269_v63, 2  ;;  %v2613_v44 = vor.u32 %v2612_v51, %v2611_v7 }
 0x16a   :  { %v2616_v47 = vor.u32 %v2615_v48, %v2614_v23  ;;  %v2617_v53 = vshll.u32 %v4762_v41, %v2602_v21  ;;  %v2618_v22 = vshrl.u32 %v4763_v52, %v2603_v30  ;;  %v2021_v46 = vsel %vm1938_vm10, %v2020_v27, %v2019_v20 }
 0x16b   :  { %v2211_v4 = vadd.s32 %v6193_v6, %v6187_v49  ;;  %v6469_v32 = vshrl.u32 %v2430_v11, 30  ;;  %vm2620_vm15 = vcmp.lt.s32.totalorder %v6451_v14, 1  ;;  %v2227_v55 = vsub.s32 32, %v6447_v13 }
 0x16c   :  { %v2619_v16 = vor.u32 %v2618_v22, %v2617_v53  ;;  %vm2622_vm0 = vcmp.lt.s32.totalorder %v6451_v14, 3  ;;  %vm2623_vm1 = vcmp.lt.s32.totalorder %v6451_v14, 4  ;;  %vm1605_vm2 = vweird.f32 %v6286_v5 }
 0x16d   :  { %v2232_v21 = vadd.s32 127, %v2231_v54  ;;  %v2432_v15 = vshll.u32 %v6469_v32, 30  ;;  %vm2621_vm3 = vcmp.lt.s32.totalorder %v6451_v14, 2  ;;  %v2628_v49 = vsel %vm2620_vm15, %v2607_v40, %v2610_v59 }
 0x16e   :  { %v2629_v6 = vsel %vm2623_vm1, %v2616_v47, 920167782  ;;  %v2632_v20 = vsel %vm2620_vm15, %v2610_v59, %v2613_v44  ;;  %v2633_v27 = vsel %vm2623_vm1, %v2619_v16, 1326507024  ;;  %v6486_v28 = vshll.u32 %v2596_v31, 8  ;;  %v6488_v18 = vpop.eup %4649 }
 0x16f   :  { %v2024_v7 = vsel %vm6439_vm12, %v5833_v29, %v2021_v46  ;;  %v2228_v51 = vshll.u32 %v6297_v1, %v6447_v13  ;;  %v6495_v23 = vsub.s32 %v2429_v2, %v2432_v15  ;;  %v2630_v48 = vsel %vm2622_vm0, %v2613_v44, %v2629_v6 }
 0x170   :  { %v2229_v54 = vshrl.u32 %v2211_v4, %v2227_v55  ;;  %v2604_v11 = vshrl.u32 %v4758_v26, %v2603_v30  ;;  %v2631_v31 = vsel %vm2621_vm3, %v2628_v49, %v2630_v48  ;;  %v2634_v53 = vsel %vm2622_vm0, %v2616_v47, %v2633_v27 }
 0x171   :  { %v2233_v22 = vshll.u32 %v2232_v21, 23  ;;  %v2435_v46 = vsub.s32 0, %v6495_v23  ;;  %v2625_v1 = vsel %vm2623_vm1, %v2613_v44, 2102212464  ;;  %v2635_v13 = vsel %vm2621_vm3, %v2632_v20, %v2634_v53  ;;  %v4652_v2 = vpop.eup %4651 }
 0x172   :  { %v6510_v4 = vmul.u32.u64.low %v6486_v28, %v2635_v13  ;;  %v6511_v55 = vmul.u32.u64.high %v6486_v28, %v2635_v13, %v6510_v4  ;;  %v6514_v30 = vmul.u32.u64.low %v6486_v28, %v2631_v31  ;;  %v6515_v16 = vmul.u32.u64.high %v6486_v28, %v2631_v31, %v6514_v30 }
 0x173   :  { %v1922_v47 = vadd.s32 3, %v6393_v58  ;;  %v2023_v44 = vsel %vm1938_vm10, %v2022_v0, %v6123_v38  ;;  %4653 = vcosq.f32 %v2024_v7  ;;  %v4488_v21 = vmin.u32 %v2435_v46, %v6495_v23 }
 0x174   :  { %v6527_v15 = vadd.f32 %v6377_v60, %v6357_v39  ;;  %4655 = vsinq.f32 %v2024_v7  ;;  %v2624_v49 = vsel %vm2620_vm15, %v2604_v11, %v2607_v40  ;;  %v2626_v58 = vsel %vm2622_vm0, %v2610_v59, %v2625_v1  ;;  %v6545_v39 = vld [vmem:[%s7797_s0 + $0x50] sm:$0xff] }
 0x175   :  { %v1614_v6 = vsel %vm1607_vm13, %v6424_v45, %v6412_v8  ;;  %v1718_v38 = vsel %vm1711_vm14, %v6435_v9, %v6428_v35  ;;  %vm1820_vm4 = vcmp.lt.s32.totalorder %v6408_v36, 2  ;;  %v2804_v60 = vand.u32 2139095040, %v6545_v39 }
 0x176   :  { %v2025_v0 = vsel %vm6439_vm12, 0, %v2023_v44  ;;  %v2230_v40 = vor.u32 %v2229_v54, %v2228_v51  ;;  %v2234_v34 = vor.u32 4788187, %v2233_v22  ;;  %v2437_v8 = vclz %v4488_v21 }
 0x177   :  { %vm1821_vm5 = vcmp.eq.s32.totalorder %v6408_v36, 0  ;;  %vm1824_vm7 = vcmp.eq.s32.totalorder %v6408_v36, 2  ;;  %v1923_v63 = vand.u32 3, %v1922_v47  ;;  %v2627_v45 = vsel %vm2621_vm3, %v2624_v49, %v2626_v58 }
 0x178   :  { %v1615_v35 = vsel %vm1605_vm2, nan, %v1614_v6  ;;  %v1719_v9 = vsel %vm1605_vm2, nan, %v1718_v38  ;;  %vm2645_vm8 = vc.u32 %v6511_v55, %v6514_v30  ;;  %v2646_v25 = vadd.s32 1, %v6515_v16 }
 0x179   :  { %vm1818_vm9 = vweird.f32 %v6417_v42  ;;  %v1822_v59 = vxor.u32 2147483648, %v4652_v2  ;;  %v1825_v20 = vxor.u32 2147483648, %v6488_v18  ;;  %v2132_v27 = vadd.s32 3, %v2025_v0 }
 0x17a   :  { %v2805_v7 = vshrl.u32 %v2804_v60, 23  ;;  %vm2157_vm10 = vcmp.lt.s32.totalorder %v5933_v17, 0  ;;  %v2235_v14 = vand.u32 2147483647, %v2234_v34  ;;  %v2237_v51 = vcvt.s32.f32 %v2230_v40 }
 0x17b   :  { %v4489_v48 = vadd.s32 4294967294, %v2437_v8  ;;  %v2643_v5 = vmul.u32 %v6486_v28, %v2627_v45  ;;  %vm1924_vm11 = vcmp.lt.s32.totalorder %v1923_v63, 2  ;;  %vm1925_vm6 = vcmp.eq.s32.totalorder %v1923_v63, 0 }
 0x17c   :  { %vm1928_vm12 = vcmp.eq.s32.totalorder %v1923_v63, 2  ;;  %v2647_v54 = vsel %vm2645_vm8, %v2646_v25, %v6515_v16  ;;  %v6567_v11 = vmul.f32 %v1615_v35, %v6389_v50  ;;  %v6570_v31 = vmul.f32 %v1719_v9, %v6401_v43 }
 0x17d   :  { %v6573_v53 = vmul.f32 %v1615_v35, %v6401_v43  ;;  %v2029_v22 = vand.u32 3, %v2025_v0  ;;  %v4654_v46 = vpop.eup %4653  ;;  %v6576_v1 = vmul.f32 %v1719_v9, %v6389_v50  ;;  %v1823_v28 = vsel %vm1821_vm5, %v6488_v18, %v1822_v59  ;;  %v4707_v35 = vld [vmem:[%s7797_s0 + $0x58] sm:$0xff] }
 0x17e   :  { %v1826_v13 = vsel %vm1824_vm7, %v1825_v20, %v4652_v2  ;;  %v7819_v4 = vand.u32 2147483647, %v5933_v17  ;;  %v4503_v43 = vadd.s32 4294967169, %v2805_v7  ;;  %v4656_v47 = vpop.eup %4655  ;;  %v2133_v44 = vand.u32 3, %v2132_v27 }
 0x17f   :  { %v2238_v21 = vmul.f32 %v2237_v51, %v2235_v14  ;;  %vm4490_vm14 = vcmp.lt.s32.totalorder %v4489_v48, 0  ;;  %v6589_v50 = vadd.s32 %v2647_v54, %v2643_v5  ;;  %v1927_v49 = vsel %vm1925_vm6, %v6488_v18, %v1822_v59 }
 0x180   :  { %vm6585_vm13 = vcmp.le.f32.partialorder %v7819_v4, 0.7853982  ;;  %v1930_v58 = vsel %vm1928_vm12, %v1825_v20, %v4652_v2  ;;  %v2241_v6 = vsub.s32 4, %v6248_v56  ;;  %v2811_v38 = vadd.s32 1, %v4503_v43 }
 0x181   :  { %v1827_v60 = vsel %vm1820_vm4, %v1823_v28, %v1826_v13  ;;  %vm2030_vm15 = vcmp.lt.s32.totalorder %v2029_v22, 2  ;;  %vm2031_vm0 = vcmp.eq.s32.totalorder %v2029_v22, 0  ;;  %vm2034_vm1 = vcmp.eq.s32.totalorder %v2029_v22, 2 }
 0x182   :  { %v2032_v0 = vxor.u32 2147483648, %v4656_v47  ;;  %v2035_v40 = vxor.u32 2147483648, %v4654_v46  ;;  %v2440_v34 = vsel %vm4490_vm14, 0, %v4489_v48  ;;  %vm2812_vm2 = vcmp.gt.s32.totalorder %v2811_v38, 0 }
 0x183   :  { %v1931_v8 = vsel %vm1924_vm11, %v1927_v49, %v1930_v58  ;;  %vm2134_vm3 = vcmp.lt.s32.totalorder %v2133_v44, 2  ;;  %v2239_v45 = vxor.u32 2147483648, %v2238_v21  ;;  %v2649_v18 = vadd.s32 536870912, %v6589_v50 }
 0x184   :  { %vm2138_vm5 = vcmp.eq.s32.totalorder %v2133_v44, 2  ;;  %v2242_v2 = vsel %vm2157_vm10, %v2241_v6, %v6248_v56  ;;  %v2813_v36 = vsel %vm2812_vm2, %v2811_v38, 0  ;;  %v6605_v9 = vmul.f32 0.5, %v4707_v35 }
 0x185   :  { %v6609_v63 = vsel %vm1818_vm9, nan, %v1827_v60  ;;  %vm2135_vm4 = vcmp.eq.s32.totalorder %v2133_v44, 0  ;;  %v2445_v25 = vsub.s32 4294967266, %v2440_v34  ;;  %v2801_v59 = vand.u32 2147483647, %v6545_v39 }
 0x186   :  { %v6614_v20 = vsel %vm1818_vm9, nan, %v1931_v8  ;;  %v2033_v56 = vsel %vm2031_vm0, %v4654_v46, %v2032_v0  ;;  %v2036_v27 = vsel %vm2034_vm1, %v2035_v40, %v4656_v47  ;;  %v2815_v7 = vand.u32 31, %v2813_v36 }
 0x187   :  { %v2140_v14 = vsel %vm2138_vm5, %v2035_v40, %v4656_v47  ;;  %v2240_v51 = vsel %vm2157_vm10, %v2239_v45, %v2238_v21  ;;  %v6622_v48 = vsel %vm6585_vm13, 0, %v2242_v2  ;;  %v6624_v5 = vshrl.u32 %v2649_v18, 30  ;;  %v6638_v21 = vld [vmem:[%s7797_s0 + $0x38] sm:$0xff] }
 0x188   :  { %v2425_v42 = vadd.s32 %v6383_v19, %v6373_v33  ;;  %v2441_v54 = vsub.s32 32, %v2440_v34  ;;  %v2816_v28 = vsub.s32 32, %v2815_v7  ;;  %v3014_v13 = vand.u32 2139095040, %v6605_v9 }
 0x189   :  { %v6630_v4 = vsel %vm2030_vm15, %v2033_v56, %v2036_v27  ;;  %v2137_v43 = vsel %vm2135_vm4, %v4654_v46, %v2032_v0  ;;  %v2446_v17 = vadd.s32 127, %v2445_v25  ;;  %v2808_v47 = vand.u32 8388607, %v2801_v59 }
 0x18a   :  { %v2243_v33 = vsel %vm6585_vm13, %v6638_v21, %v2240_v51  ;;  %v2818_v19 = vshll.u32 %v4758_v26, %v2815_v7  ;;  %v2819_v22 = vshrl.u32 %v4759_v37, %v2816_v28  ;;  %v2821_v49 = vshll.u32 %v4759_v37, %v2815_v7 }
 0x18b   :  { %v2442_v46 = vshll.u32 %v6495_v23, %v2440_v34  ;;  %v2651_v58 = vshll.u32 %v6624_v5, 30  ;;  %v2814_v6 = vshrl.u32 %v2813_v36, 5  ;;  %v2822_v38 = vshrl.u32 %v4760_v24, %v2816_v28 }
 0x18c   :  { %v2443_v60 = vshrl.u32 %v2425_v42, %v2441_v54  ;;  %v2824_v0 = vshll.u32 %v4760_v24, %v2815_v7  ;;  %v2825_v40 = vshrl.u32 %v4761_v62, %v2816_v28  ;;  %v3015_v16 = vshrl.u32 %v3014_v13, 23 }
 0x18d   :  { %v2141_v8 = vsel %vm2134_vm3, %v2137_v43, %v2140_v14  ;;  %4657 = vcosq.f32 %v2243_v33  ;;  %v2447_v45 = vshll.u32 %v2446_v17, 23  ;;  %v2809_v18 = vor.u32 8388608, %v2808_v47 }
 0x18e   :  { %v2820_v2 = vor.u32 %v2819_v22, %v2818_v19  ;;  %v2823_v35 = vor.u32 %v2822_v38, %v2821_v49  ;;  %v2827_v23 = vshll.u32 %v4761_v62, %v2815_v7  ;;  %v2828_v34 = vshrl.u32 %v4762_v41, %v2816_v28 }
 0x18f   :  { %vm2028_vm7 = vweird.f32 %v5833_v29  ;;  %v6656_v36 = vsub.s32 %v6589_v50, %v2651_v58  ;;  %v2830_v25 = vshll.u32 %v4762_v41, %v2815_v7  ;;  %v2831_v56 = vshrl.u32 %v4763_v52, %v2816_v28 }
 0x190   :  { %vm2833_vm8 = vcmp.lt.s32.totalorder %v2814_v6, 1  ;;  %v2444_v44 = vor.u32 %v2443_v60, %v2442_v46  ;;  %v2826_v27 = vor.u32 %v2825_v40, %v2824_v0  ;;  %v2829_v14 = vor.u32 %v2828_v34, %v2827_v23 }
 0x191   :  { %v4511_v51 = vadd.s32 4294967169, %v3015_v16  ;;  %v2448_v42 = vor.u32 4788187, %v2447_v45  ;;  %v2817_v54 = vshrl.u32 %v4758_v26, %v2816_v28  ;;  %v2832_v13 = vor.u32 %v2831_v56, %v2830_v25 }
 0x192   :  { %vm2835_vm9 = vcmp.lt.s32.totalorder %v2814_v6, 3  ;;  %vm2371_vm10 = vcmp.lt.s32.totalorder %v6160_v57, 0  ;;  %vm2834_vm11 = vcmp.lt.s32.totalorder %v2814_v6, 2  ;;  %vm2836_vm6 = vcmp.lt.s32.totalorder %v2814_v6, 4 }
 0x193   :  { %v2841_v50 = vsel %vm2833_vm8, %v2820_v2, %v2823_v35  ;;  %v2849_v43 = vshll.u32 %v2809_v18, 8  ;;  %4659 = vsinq.f32 %v2243_v33  ;;  %v2654_v7 = vsub.s32 0, %v6656_v36 }
 0x194   :  { %v2838_v17 = vsel %vm2836_vm6, %v2826_v27, 2102212464  ;;  %v2842_v47 = vsel %vm2836_vm6, %v2829_v14, 920167782  ;;  %v2845_v22 = vsel %vm2833_vm8, %v2823_v35, %v2826_v27  ;;  %v2846_v49 = vsel %vm2836_vm6, %v2832_v13, 1326507024 }
 0x195   :  { %v2843_v19 = vsel %vm2835_vm9, %v2826_v27, %v2842_v47  ;;  %v3021_v28 = vadd.s32 1, %v4511_v51  ;;  %v2449_v46 = vand.u32 2147483647, %v2448_v42  ;;  %v2451_v58 = vcvt.s32.f32 %v2444_v44 }
 0x196   :  { %v2837_v38 = vsel %vm2833_vm8, %v2817_v54, %v2820_v2  ;;  %v2844_v60 = vsel %vm2834_vm11, %v2841_v50, %v2843_v19  ;;  %v2839_v0 = vsel %vm2835_vm9, %v2823_v35, %v2838_v17  ;;  %v2847_v33 = vsel %vm2835_vm9, %v2829_v14, %v2846_v49 }
 0x197   :  { %v6670_v40 = vmul.u32.u64.low %v2849_v43, %v2844_v60  ;;  %v6671_v16 = vmul.u32.u64.high %v2849_v43, %v2844_v60, %v6670_v40  ;;  %v6674_v45 = vpop.eup %4657  ;;  %v2455_v18 = vsub.s32 4, %v6469_v32  ;;  %v4496_v23 = vmin.u32 %v2654_v7, %v6656_v36 }
 0x198   :  { %v2848_v34 = vsel %vm2834_vm11, %v2845_v22, %v2847_v33  ;;  %vm3022_vm12 = vcmp.gt.s32.totalorder %v3021_v28, 0  ;;  %v1933_v2 = vmul.f32 0.70710677, %v6609_v63  ;;  %v1934_v44 = vmul.f32 -0.70710677, %v6614_v20 }
 0x199   :  { %v6680_v25 = vmul.u32.u64.low %v2849_v43, %v2848_v34  ;;  %v6681_v56 = vmul.u32.u64.high %v2849_v43, %v2848_v34, %v6680_v25  ;;  %v3023_v35 = vsel %vm3022_vm12, %v3021_v28, 0  ;;  %v6685_v27 = vand.u32 3, %v6622_v48 }
 0x19a   :  { %v2351_v14 = vadd.s32 3, %v6622_v48  ;;  %v2840_v51 = vsel %vm2834_vm11, %v2837_v38, %v2839_v0  ;;  %v2038_v42 = vsel %vm2028_vm7, nan, %v6630_v4  ;;  %v2142_v63 = vsel %vm2028_vm7, nan, %v2141_v8 }
 0x19b   :  { %v2452_v54 = vmul.f32 %v2451_v58, %v2449_v46  ;;  %v2859_v13 = vadd.s32 1, %v6671_v16  ;;  %v6697_v20 = vadd.f32 %v6570_v31, %v6567_v11  ;;  %v2456_v48 = vsel %vm2371_vm10, %v2455_v18, %v6469_v32 }
 0x19c   :  { %v2656_v6 = vclz %v4496_v23  ;;  %v3025_v50 = vand.u32 31, %v3023_v35  ;;  %v6704_v7 = vsub.f32 %v6573_v53, %v6576_v1  ;;  %vm6708_vm13 = vcmp.le.f32.partialorder %v2369_v3, 0.7853982 }
 0x19d   :  { %v2856_v4 = vmul.u32 %v2849_v43, %v2840_v51  ;;  %vm2858_vm14 = vc.u32 %v6681_v56, %v6670_v40  ;;  %v6714_v11 = vpop.eup %4659  ;;  %v2143_v31 = vmul.f32 %v2038_v42, %v1933_v2  ;;  %v2144_v32 = vmul.f32 0.70710677, %v2142_v63 }
 0x19e   :  { %v6716_v8 = vand.u32 3, %v2351_v14  ;;  %v2860_v17 = vsel %vm2858_vm14, %v2859_v13, %v6671_v16  ;;  %v6719_v53 = vmul.f32 %v2038_v42, %v1934_v44  ;;  %vm2253_vm15 = vcmp.eq.s32.totalorder %v6685_v27, 2 }
 0x19f   :  { %v2453_v3 = vxor.u32 2147483648, %v2452_v54  ;;  %v2458_v1 = vsel %vm6708_vm13, 0, %v2456_v48  ;;  %v7803_v43 = vand.u32 2147483647, %v6605_v9  ;;  %v6725_v47 = vmul.f32 0.0, %v2142_v63 }
 0x1a0   :  { %v6727_v19 = vmul.f32 %v2142_v63, %v1933_v2  ;;  %v4497_v22 = vadd.s32 4294967294, %v2656_v6  ;;  %v3026_v49 = vsub.s32 32, %v3025_v50  ;;  %v6729_v28 = vmul.f32 0.70710677, %v2038_v42 }
 0x1a1   :  { %v6731_v46 = vmul.f32 %v2142_v63, %v1934_v44  ;;  %v6733_v58 = vmul.f32 0.0, %v2038_v42  ;;  %v2861_v38 = vadd.s32 %v2860_v17, %v2856_v4  ;;  %v6735_v60 = vsub.f32 %v2143_v31, %v2144_v32 }
 0x1a2   :  { %vm2250_vm0 = vcmp.eq.s32.totalorder %v6685_v27, 0  ;;  %v2254_v0 = vxor.u32 2147483648, %v6674_v45  ;;  %v6739_v33 = vand.u32 3, %v2458_v1  ;;  %v2565_v16 = vadd.s32 3, %v2458_v1 }
 0x1a3   :  { %v2251_v18 = vxor.u32 2147483648, %v6714_v11  ;;  %v2454_v23 = vsel %vm2371_vm10, %v2453_v3, %v2452_v54  ;;  %v2862_v34 = vadd.s32 536870912, %v2861_v38  ;;  %v3018_v2 = vand.u32 8388607, %v7803_v43 }
 0x1a4   :  { %vm4498_vm1 = vcmp.lt.s32.totalorder %v4497_v22, 0  ;;  %v3031_v25 = vshll.u32 %v4759_v37, %v3025_v50  ;;  %v3032_v44 = vshrl.u32 %v4760_v24, %v3026_v49  ;;  %v3034_v14 = vshll.u32 %v4760_v24, %v3025_v50 }
 0x1a5   :  { %vm2249_vm2 = vcmp.lt.s32.totalorder %v6685_v27, 2  ;;  %vm2354_vm3 = vcmp.eq.s32.totalorder %v6716_v8, 0  ;;  %vm2357_vm5 = vcmp.eq.s32.totalorder %v6716_v8, 2  ;;  %v6752_v51 = vshrl.u32 %v2862_v34, 30 }
 0x1a6   :  { %v6754_v42 = vshrl.u32 %v3023_v35, 5  ;;  %v3035_v63 = vshrl.u32 %v4761_v62, %v3026_v49  ;;  %v3037_v54 = vshll.u32 %v4761_v62, %v3025_v50  ;;  %v2457_v13 = vsel %vm6708_vm13, %v6160_v57, %v2454_v23 }
 0x1a7   :  { %v3038_v48 = vshrl.u32 %v4762_v41, %v3026_v49  ;;  %v3040_v6 = vshll.u32 %v4762_v41, %v3025_v50  ;;  %v3041_v4 = vshrl.u32 %v4763_v52, %v3026_v49  ;;  %v6764_v31 = vsel %vm4498_vm1, 0, %v4497_v22 }
 0x1a8   :  { %v2864_v32 = vshll.u32 %v6752_v51, 30  ;;  %v3028_v35 = vshll.u32 %v4758_v26, %v3025_v50  ;;  %v3029_v17 = vshrl.u32 %v4759_v37, %v3026_v49  ;;  %vm2353_vm4 = vcmp.lt.s32.totalorder %v6716_v8, 2 }
 0x1a9   :  { %v3033_v3 = vor.u32 %v3032_v44, %v3031_v25  ;;  %v3036_v1 = vor.u32 %v3035_v63, %v3034_v14  ;;  %v3039_v29 = vor.u32 %v3038_v48, %v3037_v54  ;;  %v3042_v23 = vor.u32 %v3041_v4, %v3040_v6 }
 0x1aa   :  { %vm2247_vm7 = vweird.f32 %v6638_v21  ;;  %4661 = vcosq.f32 %v2457_v13  ;;  %v6771_v34 = vsub.s32 %v2861_v38, %v2864_v32  ;;  %vm3043_vm8 = vcmp.lt.s32.totalorder %v6754_v42, 1 }
 0x1ab   :  { %vm3046_vm9 = vcmp.lt.s32.totalorder %v6754_v42, 4  ;;  %v2255_v50 = vsel %vm2253_vm15, %v2254_v0, %v6714_v11  ;;  %4663 = vsinq.f32 %v2457_v13  ;;  %v2664_v22 = vsub.s32 4294967266, %v6764_v31 }
 0x1ac   :  { %v3019_v25 = vor.u32 8388608, %v3018_v2  ;;  %v2644_v44 = vadd.s32 %v6514_v30, %v6511_v55  ;;  %v2867_v38 = vsub.s32 0, %v6771_v34  ;;  %v3030_v14 = vor.u32 %v3029_v17, %v3028_v35 }
 0x1ad   :  { %vm3045_vm10 = vcmp.lt.s32.totalorder %v6754_v42, 3  ;;  %vm3044_vm11 = vcmp.lt.s32.totalorder %v6754_v42, 2  ;;  %v3052_v63 = vsel %vm3046_vm9, %v3039_v29, 920167782  ;;  %v3055_v54 = vsel %vm3043_vm8, %v3033_v3, %v3036_v1 }
 0x1ae   :  { %v3056_v13 = vsel %vm3046_vm9, %v3042_v23, 1326507024  ;;  %v2252_v55 = vsel %vm2250_vm0, %v6674_v45, %v2251_v18  ;;  %v2660_v30 = vsub.s32 32, %v6764_v31  ;;  %v4504_v2 = vmin.u32 %v2867_v38, %v6771_v34 }
 0x1af   :  { %v3027_v48 = vshrl.u32 %v4758_v26, %v3026_v49  ;;  %v2665_v6 = vadd.s32 127, %v2664_v22  ;;  %v3048_v4 = vsel %vm3046_vm9, %v3036_v1, 2102212464  ;;  %v3057_v32 = vsel %vm3045_vm10, %v3039_v29, %v3056_v13 }
 0x1b0   :  { %v6802_v35 = vshll.u32 %v3019_v25, 8  ;;  %v6804_v17 = vand.u32 3, %v2565_v16  ;;  %v3051_v23 = vsel %vm3043_vm8, %v3030_v14, %v3033_v3  ;;  %v3053_v43 = vsel %vm3045_vm10, %v3036_v1, %v3052_v63 }
 0x1b1   :  { %v3058_v49 = vsel %vm3044_vm11, %v3055_v54, %v3057_v32  ;;  %v2256_v22 = vsel %vm2249_vm2, %v2252_v55, %v2255_v50  ;;  %v2356_v29 = vsel %vm2354_vm3, %v6674_v45, %v2251_v18  ;;  %v2359_v16 = vsel %vm2357_vm5, %v2254_v0, %v6714_v11 }
 0x1b2   :  { %v2661_v25 = vshll.u32 %v6656_v36, %v6764_v31  ;;  %vm2590_vm6 = vcmp.lt.s32.totalorder %v6263_v10, 0  ;;  %v2662_v1 = vshrl.u32 %v2644_v44, %v2660_v30  ;;  %v2869_v38 = vclz %v4504_v2 }
 0x1b3   :  { %v3047_v27 = vsel %vm3043_vm8, %v3027_v48, %v3030_v14  ;;  %v3049_v50 = vsel %vm3045_vm10, %v3033_v3, %v3048_v4  ;;  %v2666_v18 = vshll.u32 %v2665_v6, 23  ;;  %v3054_v45 = vsel %vm3044_vm11, %v3051_v23, %v3053_v43  ;;  %v6864_v14 = vld [vmem:[%s7797_s0 + $0x60] sm:$0xff] }
 0x1b4   :  { %v6832_v63 = vmul.u32.u64.low %v6802_v35, %v3058_v49  ;;  %v6833_v11 = vmul.u32.u64.high %v6802_v35, %v3058_v49, %v6832_v63  ;;  %v4662_v0 = vpop.eup %4661  ;;  %v2148_v36 = vsub.f32 %v6719_v53, %v6725_v47  ;;  %v6839_v31 = vadd.f32 %v6729_v28, %v6727_v19 }
 0x1b5   :  { %v2360_v44 = vsel %vm2353_vm4, %v2356_v29, %v2359_v16  ;;  %vm2463_vm12 = vcmp.lt.s32.totalorder %v6739_v33, 2  ;;  %v4664_v3 = vpop.eup %4663  ;;  %v2257_v43 = vsel %vm2247_vm7, nan, %v2256_v22  ;;  %vm2464_vm13 = vcmp.eq.s32.totalorder %v6739_v33, 0 }
 0x1b6   :  { %vm2467_vm14 = vcmp.eq.s32.totalorder %v6739_v33, 2  ;;  %vm6850_vm15 = vcmp.le.f32.partialorder %v2588_v61, 0.7853982  ;;  %v3050_v8 = vsel %vm3044_vm11, %v3047_v27, %v3049_v50  ;;  %v4505_v47 = vadd.s32 4294967294, %v2869_v38 }
 0x1b7   :  { %v6857_v19 = vmul.u32.u64.low %v6802_v35, %v3054_v45  ;;  %v6858_v28 = vmul.u32.u64.high %v6802_v35, %v3054_v45, %v6857_v19  ;;  %v3233_v54 = vand.u32 2139095040, %v6864_v14  ;;  %v2361_v61 = vsel %vm2247_vm7, nan, %v2360_v44 }
 0x1b8   :  { %vm2461_vm0 = vweird.f32 %v6160_v57  ;;  %vm2567_vm1 = vcmp.lt.s32.totalorder %v6804_v17, 2  ;;  %v2663_v42 = vor.u32 %v2662_v1, %v2661_v25  ;;  %v2667_v13 = vor.u32 4788187, %v2666_v18 }
 0x1b9   :  { %v2674_v55 = vsub.s32 4, %v6624_v5  ;;  %v2465_v30 = vxor.u32 2147483648, %v4664_v3  ;;  %v2468_v2 = vxor.u32 2147483648, %v4662_v0  ;;  %vm2568_vm2 = vcmp.eq.s32.totalorder %v6804_v17, 0 }
 0x1ba   :  { %v3234_v48 = vshrl.u32 %v3233_v54, 23  ;;  %v2362_v6 = vmul.f32 %v2257_v43, %v6735_v60  ;;  %vm2571_vm3 = vcmp.eq.s32.totalorder %v6804_v17, 2  ;;  %v3066_v21 = vmul.u32 %v6802_v35, %v3050_v8 }
 0x1bb   :  { %vm3068_vm5 = vc.u32 %v6833_v11, %v6857_v19  ;;  %v2363_v4 = vmul.f32 %v2361_v61, %v2148_v36  ;;  %vm4506_vm4 = vcmp.lt.s32.totalorder %v4505_v47, 0  ;;  %v3069_v32 = vadd.s32 1, %v6858_v28 }
 0x1bc   :  { %v4519_v23 = vadd.s32 4294967169, %v3234_v48  ;;  %v2365_v49 = vmul.f32 %v2257_v43, %v2148_v36  ;;  %v2668_v22 = vand.u32 2147483647, %v2667_v13  ;;  %v2670_v29 = vcvt.s32.f32 %v2663_v42 }
 0x1bd   :  { %v2675_v16 = vsel %vm2590_vm6, %v2674_v55, %v6624_v5  ;;  %v2466_v25 = vsel %vm2464_vm13, %v4662_v0, %v2465_v30  ;;  %v2469_v35 = vsel %vm2467_vm14, %v2468_v2, %v4664_v3  ;;  %v3070_v1 = vsel %vm3068_vm5, %v3069_v32, %v6858_v28 }
 0x1be   :  { %v3240_v38 = vadd.s32 1, %v4519_v23  ;;  %v2366_v27 = vmul.f32 %v2361_v61, %v6735_v60  ;;  %v2872_v50 = vsel %vm4506_vm4, 0, %v4505_v47  ;;  %v3071_v18 = vadd.s32 %v3070_v1, %v3066_v21 }
 0x1bf   :  { %v7804_v45 = vand.u32 2147483647, %v6864_v14  ;;  %v2570_v63 = vsel %vm2568_vm2, %v4662_v0, %v2465_v30  ;;  %v2573_v5 = vsel %vm2571_vm3, %v2468_v2, %v4664_v3  ;;  %v6895_v36 = vsel %vm6850_vm15, 0, %v2675_v16  ;;  %v4710_v3 = vld [vmem:[%s7797_s0 + $0x68] sm:$0xff] }
 0x1c0   :  { %vm3241_vm7 = vcmp.gt.s32.totalorder %v3240_v38, 0  ;;  %v2470_v44 = vsel %vm2463_vm12, %v2466_v25, %v2469_v35  ;;  %v2671_v43 = vmul.f32 %v2670_v29, %v2668_v22  ;;  %v3072_v60 = vadd.s32 536870912, %v3071_v18 }
 0x1c1   :  { %v3242_v8 = vsel %vm3241_vm7, %v3240_v38, 0  ;;  %v6901_v47 = vadd.f32 %v6733_v58, %v6731_v46  ;;  %v2877_v28 = vsub.s32 4294967266, %v2872_v50  ;;  %v6906_v54 = vmul.f32 0.5, %v4710_v3 }
 0x1c2   :  { %v3244_v0 = vand.u32 31, %v3242_v8  ;;  %v6908_v61 = vadd.f32 %v2363_v4, %v2362_v6  ;;  %v6910_v42 = vsub.f32 %v2365_v49, %v2366_v27  ;;  %v6913_v33 = vadd.s32 3, %v6895_v36 }
 0x1c3   :  { %v6915_v13 = vshrl.u32 %v3072_v60, 30  ;;  %v6919_v46 = vsel %vm2461_vm0, nan, %v2470_v44  ;;  %v2574_v58 = vsel %vm2567_vm1, %v2570_v63, %v2573_v5  ;;  %v2857_v55 = vadd.s32 %v6670_v40, %v6681_v56 }
 0x1c4   :  { %v3245_v30 = vsub.s32 32, %v3244_v0  ;;  %v2672_v2 = vxor.u32 2147483648, %v2671_v43  ;;  %v2873_v48 = vsub.s32 32, %v2872_v50  ;;  %v3237_v21 = vand.u32 8388607, %v7804_v45 }
 0x1c5   :  { %v3074_v6 = vshll.u32 %v6915_v13, 30  ;;  %v2878_v4 = vadd.s32 127, %v2877_v28  ;;  %v6928_v32 = vshrl.u32 %v3242_v8, 5  ;;  %v3247_v23 = vshll.u32 %v4758_v26, %v3244_v0 }
 0x1c6   :  { %v3447_v49 = vand.u32 2139095040, %v6906_v54  ;;  %v3248_v22 = vshrl.u32 %v4759_v37, %v3245_v30  ;;  %v3250_v40 = vshll.u32 %v4759_v37, %v3244_v0  ;;  %v3251_v56 = vshrl.u32 %v4760_v24, %v3245_v30 }
 0x1c7   :  { %v6932_v17 = vsub.s32 %v3071_v18, %v3074_v6  ;;  %v3253_v29 = vshll.u32 %v4760_v24, %v3244_v0  ;;  %v3254_v16 = vshrl.u32 %v4761_v62, %v3245_v30  ;;  %v3256_v25 = vshll.u32 %v4761_v62, %v3244_v0 }
 0x1c8   :  { %v3257_v35 = vshrl.u32 %v4762_v41, %v3245_v30  ;;  %v6943_v1 = vsel %vm2461_vm0, nan, %v2574_v58  ;;  %v2874_v38 = vshll.u32 %v6771_v34, %v2872_v50  ;;  %v2875_v27 = vshrl.u32 %v2857_v55, %v2873_v48 }
 0x1c9   :  { %v3077_v18 = vsub.s32 0, %v6932_v17  ;;  %v2673_v63 = vsel %vm2590_vm6, %v2672_v2, %v2671_v43  ;;  %v2879_v5 = vshll.u32 %v2878_v4, 23  ;;  %v3259_v44 = vshll.u32 %v4762_v41, %v3244_v0 }
 0x1ca   :  { %v3448_v60 = vshrl.u32 %v3447_v49, 23  ;;  %v3238_v28 = vor.u32 8388608, %v3237_v21  ;;  %v3249_v3 = vor.u32 %v3248_v22, %v3247_v23  ;;  %v3252_v6 = vor.u32 %v3251_v56, %v3250_v40 }
 0x1cb   :  { %v4512_v8 = vmin.u32 %v3077_v18, %v6932_v17  ;;  %v3255_v57 = vor.u32 %v3254_v16, %v3253_v29  ;;  %v3258_v58 = vor.u32 %v3257_v35, %v3256_v25  ;;  %v3260_v45 = vshrl.u32 %v4763_v52, %v3245_v30 }
 0x1cc   :  { %vm3262_vm8 = vcmp.lt.s32.totalorder %v6928_v32, 1  ;;  %v2876_v34 = vor.u32 %v2875_v27, %v2874_v38  ;;  %v3246_v10 = vshrl.u32 %v4758_v26, %v3245_v30  ;;  %vm3265_vm9 = vcmp.lt.s32.totalorder %v6928_v32, 4 }
 0x1cd   :  { %v3079_v50 = vclz %v4512_v8  ;;  %v2880_v43 = vor.u32 4788187, %v2879_v5  ;;  %v3261_v0 = vor.u32 %v3260_v45, %v3259_v44  ;;  %vm3264_vm10 = vcmp.lt.s32.totalorder %v6928_v32, 3 }
 0x1ce   :  { %v4527_v55 = vadd.s32 4294967169, %v3448_v60  ;;  %vm3263_vm11 = vcmp.lt.s32.totalorder %v6928_v32, 2  ;;  %v3267_v48 = vsel %vm3265_vm9, %v3255_v57, 2102212464  ;;  %v3270_v21 = vsel %vm3262_vm8, %v3249_v3, %v3252_v6 }
 0x1cf   :  { %v4513_v2 = vadd.s32 4294967294, %v3079_v50  ;;  %v3271_v4 = vsel %vm3265_vm9, %v3258_v58, 920167782  ;;  %v3274_v23 = vsel %vm3262_vm8, %v3252_v6, %v3255_v57  ;;  %v3275_v49 = vsel %vm3265_vm9, %v3261_v0, 1326507024 }
 0x1d0   :  { %v3278_v30 = vshll.u32 %v3238_v28, 8  ;;  %v3266_v45 = vsel %vm3262_vm8, %v3246_v10, %v3249_v3  ;;  %v3272_v22 = vsel %vm3264_vm10, %v3255_v57, %v3271_v4  ;;  %v3276_v40 = vsel %vm3264_vm10, %v3258_v58, %v3275_v49  ;;  %v6980_v28 = vld [vmem:[%s7797_s0 + $0x48] sm:$0xff] }
 0x1d1   :  { %vm4514_vm6 = vcmp.lt.s32.totalorder %v4513_v2, 0  ;;  %v3268_v29 = vsel %vm3264_vm10, %v3252_v6, %v3267_v48  ;;  %v3273_v16 = vsel %vm3263_vm11, %v3270_v21, %v3272_v22  ;;  %v3277_v25 = vsel %vm3263_vm11, %v3274_v23, %v3276_v40 }
 0x1d2   :  { %v6963_v56 = vsel %vm4514_vm6, 0, %v4513_v2  ;;  %v2881_v35 = vand.u32 2147483647, %v2880_v43  ;;  %v2883_v38 = vcvt.s32.f32 %v2876_v34  ;;  %v3444_v27 = vand.u32 2147483647, %v6906_v54 }
 0x1d3   :  { %v3454_v18 = vadd.s32 1, %v4527_v55  ;;  %v6970_v5 = vmul.u32.u64.low %v3278_v30, %v3277_v25  ;;  %v6971_v44 = vmul.u32.u64.high %v3278_v30, %v3277_v25, %v6970_v5  ;;  %v2676_v3 = vsel %vm6850_vm15, %v6980_v28, %v2673_v63 }
 0x1d4   :  { %v6973_v60 = vmul.u32.u64.low %v3278_v30, %v3273_v16  ;;  %v6974_v8 = vmul.u32.u64.high %v3278_v30, %v3273_v16, %v6973_v60  ;;  %vm2803_vm12 = vcmp.lt.s32.totalorder %v6545_v39, 0  ;;  %v3087_v6 = vsub.s32 4294967266, %v6963_v56 }
 0x1d5   :  { %v3269_v57 = vsel %vm3263_vm11, %v3266_v45, %v3268_v29  ;;  %v6991_v58 = vmul.f32 %v6919_v46, %v6908_v61  ;;  %v6994_v34 = vand.u32 3, %v6895_v36  ;;  %v6997_v50 = vand.u32 3, %v6913_v33 }
 0x1d6   :  { %vm3455_vm13 = vcmp.gt.s32.totalorder %v3454_v18, 0  ;;  %v7001_v53 = vmul.f32 %v6943_v1, %v6839_v31  ;;  %v7005_v63 = vmul.f32 %v6919_v46, %v6910_v42  ;;  %v2884_v32 = vmul.f32 %v2883_v38, %v2881_v35 }
 0x1d7   :  { %v2887_v10 = vsub.s32 4, %v6752_v51  ;;  %4665 = vcosq.f32 %v2676_v3  ;;  %v3067_v36 = vadd.s32 %v6857_v19, %v6833_v11  ;;  %v3285_v43 = vmul.u32 %v3278_v30, %v3269_v57 }
 0x1d8   :  { %v7012_v33 = vand.u32 8388607, %v3444_v27  ;;  %vm7016_vm14 = vcmp.le.f32.partialorder %v2801_v59, 0.7853982  ;;  %v3083_v55 = vsub.s32 32, %v6963_v56  ;;  %v3088_v2 = vadd.s32 127, %v3087_v6 }
 0x1d9   :  { %vm3287_vm15 = vc.u32 %v6971_v44, %v6973_v60  ;;  %v3456_v48 = vsel %vm3455_vm13, %v3454_v18, 0  ;;  %v7025_v11 = vmul.f32 %v6943_v1, %v6901_v47  ;;  %v7029_v19 = vmul.f32 %v6943_v1, %v6908_v61 }
 0x1da   :  { %v7033_v59 = vmul.f32 %v6919_v46, %v6839_v31  ;;  %v3288_v21 = vadd.s32 1, %v6974_v8  ;;  %v7038_v4 = vmul.f32 %v6943_v1, %v6910_v42  ;;  %4667 = vsinq.f32 %v2676_v3  ;;  %v7048_v31 = vld [vmem:[%s7797_s0 + $0x70] sm:$0xff] }
 0x1db   :  { %v2885_v23 = vxor.u32 2147483648, %v2884_v32  ;;  %v2888_v49 = vsel %vm2803_vm12, %v2887_v10, %v6752_v51  ;;  %v3452_v61 = vor.u32 8388608, %v7012_v33  ;;  %v3458_v45 = vand.u32 31, %v3456_v48 }
 0x1dc   :  { %v3289_v30 = vsel %vm3287_vm15, %v3288_v21, %v6974_v8  ;;  %v3666_v22 = vand.u32 2139095040, %v7048_v31  ;;  %v3084_v42 = vshll.u32 %v6932_v17, %v6963_v56  ;;  %v3085_v1 = vshrl.u32 %v3067_v36, %v3083_v55 }
 0x1dd   :  { %v3089_v40 = vshll.u32 %v3088_v2, 23  ;;  %v3290_v29 = vadd.s32 %v3289_v30, %v3285_v43  ;;  %v7053_v16 = vshrl.u32 %v3456_v48, 5  ;;  %v3459_v51 = vsub.s32 32, %v3458_v45 }
 0x1de   :  { %v3461_v25 = vshll.u32 %v4758_v26, %v3458_v45  ;;  %v3464_v35 = vshll.u32 %v4759_v37, %v3458_v45  ;;  %v2886_v38 = vsel %vm2803_vm12, %v2885_v23, %v2884_v32  ;;  %v3467_v5 = vshll.u32 %v4760_v24, %v3458_v45 }
 0x1df   :  { %v3291_v18 = vadd.s32 536870912, %v3290_v29  ;;  %v3470_v8 = vshll.u32 %v4761_v62, %v3458_v45  ;;  %v3462_v17 = vshrl.u32 %v4759_v37, %v3459_v51  ;;  %v3465_v56 = vshrl.u32 %v4760_v24, %v3459_v51 }
 0x1e0   :  { %v3468_v3 = vshrl.u32 %v4761_v62, %v3459_v51  ;;  %v3473_v6 = vshll.u32 %v4762_v41, %v3458_v45  ;;  %v3086_v57 = vor.u32 %v3085_v1, %v3084_v42  ;;  %v3471_v36 = vshrl.u32 %v4762_v41, %v3459_v51 }
 0x1e1   :  { %v7065_v10 = vshrl.u32 %v3291_v18, 30  ;;  %v3474_v32 = vshrl.u32 %v4763_v52, %v3459_v51  ;;  %v7069_v43 = vpop.eup %4665  ;;  %v3090_v33 = vor.u32 4788187, %v3089_v40  ;;  %v3463_v55 = vor.u32 %v3462_v17, %v3461_v25 }
 0x1e2   :  { %v3466_v2 = vor.u32 %v3465_v56, %v3464_v35  ;;  %vm3476_vm0 = vcmp.lt.s32.totalorder %v7053_v16, 1  ;;  %vm3013_vm1 = vcmp.lt.s32.totalorder %v6605_v9, 0  ;;  %v3469_v21 = vor.u32 %v3468_v3, %v3467_v5 }
 0x1e3   :  { %v3293_v48 = vshll.u32 %v7065_v10, 30  ;;  %v3472_v23 = vor.u32 %v3471_v36, %v3470_v8  ;;  %vm3479_vm2 = vcmp.lt.s32.totalorder %v7053_v16, 4  ;;  %vm2683_vm3 = vcmp.eq.s32.totalorder %v6994_v34, 0 }
 0x1e4   :  { %vm2686_vm5 = vcmp.eq.s32.totalorder %v6994_v34, 2  ;;  %v2889_v30 = vsel %vm7016_vm14, %v6545_v39, %v2886_v38  ;;  %v2890_v45 = vsel %vm7016_vm14, 0, %v2888_v49  ;;  %v3475_v42 = vor.u32 %v3474_v32, %v3473_v6  ;;  %v4668_v1 = vpop.eup %4667 }
 0x1e5   :  { %vm3478_vm4 = vcmp.lt.s32.totalorder %v7053_v16, 3  ;;  %vm2787_vm7 = vcmp.eq.s32.totalorder %v6997_v50, 0  ;;  %vm2790_vm8 = vcmp.eq.s32.totalorder %v6997_v50, 2  ;;  %v7085_v40 = vsub.s32 %v3290_v29, %v3293_v48 }
 0x1e6   :  { %vm3477_vm9 = vcmp.lt.s32.totalorder %v7053_v16, 2  ;;  %v3484_v25 = vsel %vm3476_vm0, %v3463_v55, %v3466_v2  ;;  %v3667_v35 = vshrl.u32 %v3666_v22, 23  ;;  %v2687_v39 = vxor.u32 2147483648, %v7069_v43 }
 0x1e7   :  { %v7828_v0 = vand.u32 2147483647, %v6605_v9  ;;  %v3091_v38 = vand.u32 2147483647, %v3090_v33  ;;  %v3093_v18 = vcvt.s32.f32 %v3086_v57  ;;  %v3485_v29 = vsel %vm3479_vm2, %v3472_v23, 920167782 }
 0x1e8   :  { %vm2682_vm11 = vcmp.lt.s32.totalorder %v6994_v34, 2  ;;  %v3097_v5 = vsub.s32 4, %v6915_v13  ;;  %v3296_v8 = vsub.s32 0, %v7085_v40  ;;  %v3486_v22 = vsel %vm3478_vm4, %v3469_v21, %v3485_v29 }
 0x1e9   :  { %vm7093_vm10 = vcmp.le.f32.partialorder %v7828_v0, 0.7853982  ;;  %v7104_v17 = vshll.u32 %v3452_v61, 8  ;;  %vm2786_vm6 = vcmp.lt.s32.totalorder %v6997_v50, 2  ;;  %4669 = vcosq.f32 %v2889_v30 }
 0x1ea   :  { %v3487_v56 = vsel %vm3477_vm9, %v3484_v25, %v3486_v22  ;;  %v3488_v3 = vsel %vm3476_vm0, %v3466_v2, %v3469_v21  ;;  %v3489_v6 = vsel %vm3479_vm2, %v3475_v42, 1326507024  ;;  %v2684_v57 = vxor.u32 2147483648, %v4668_v1 }
 0x1eb   :  { %4671 = vsinq.f32 %v2889_v30  ;;  %v4520_v36 = vmin.u32 %v3296_v8, %v7085_v40  ;;  %v4535_v32 = vadd.s32 4294967169, %v3667_v35  ;;  %vm2680_vm12 = vweird.f32 %v6980_v28 }
 0x1ec   :  { %v3094_v61 = vmul.f32 %v3093_v18, %v3091_v38  ;;  %v3460_v33 = vshrl.u32 %v4758_v26, %v3459_v51  ;;  %v3481_v48 = vsel %vm3479_vm2, %v3469_v21, 2102212464  ;;  %v3490_v25 = vsel %vm3478_vm4, %v3472_v23, %v3489_v6 }
 0x1ed   :  { %v3298_v0 = vclz %v4520_v36  ;;  %v3491_v42 = vsel %vm3477_vm9, %v3488_v3, %v3490_v25  ;;  %v7123_v30 = vmul.u32.u64.low %v7104_v17, %v3487_v56  ;;  %v7124_v29 = vmul.u32.u64.high %v7104_v17, %v3487_v56, %v7123_v30 }
 0x1ee   :  { %v7129_v35 = vsub.f32 %v6991_v58, %v7001_v53  ;;  %v7133_v51 = vsub.f32 %v7005_v63, %v7025_v11  ;;  %v7137_v21 = vmul.f32 %v6919_v46, %v6901_v47  ;;  %v3098_v23 = vsel %vm3013_vm1, %v3097_v5, %v6915_v13 }
 0x1ef   :  { %v4521_v38 = vadd.s32 4294967294, %v3298_v0  ;;  %v7143_v18 = vmul.u32.u64.low %v7104_v17, %v3491_v42  ;;  %v7144_v8 = vmul.u32.u64.high %v7104_v17, %v3491_v42, %v7143_v18  ;;  %v3673_v22 = vadd.s32 1, %v4535_v32 }
 0x1f0   :  { %v2997_v58 = vadd.s32 3, %v2890_v45  ;;  %v3095_v53 = vxor.u32 2147483648, %v3094_v61  ;;  %v3480_v63 = vsel %vm3476_vm0, %v3460_v33, %v3463_v55  ;;  %v3482_v11 = vsel %vm3478_vm4, %v3466_v2, %v3481_v48 }
 0x1f1   :  { %v2685_v47 = vsel %vm2683_vm3, %v7069_v43, %v2684_v57  ;;  %v2688_v13 = vsel %vm2686_vm5, %v2687_v39, %v4668_v1  ;;  %v3100_v46 = vsel %vm7093_vm10, 0, %v3098_v23  ;;  %vm4522_vm13 = vcmp.lt.s32.totalorder %v4521_v38, 0 }
 0x1f2   :  { %v2789_v5 = vsel %vm2787_vm7, %v7069_v43, %v2684_v57  ;;  %v2792_v55 = vsel %vm2790_vm8, %v2687_v39, %v4668_v1  ;;  %v7162_v56 = vand.u32 3, %v2890_v45  ;;  %v3301_v2 = vsel %vm4522_vm13, 0, %v4521_v38 }
 0x1f3   :  { %v3286_v3 = vadd.s32 %v6973_v60, %v6971_v44  ;;  %v3302_v6 = vsub.s32 32, %v3301_v2  ;;  %v3483_v36 = vsel %vm3477_vm9, %v3480_v63, %v3482_v11  ;;  %vm3674_vm14 = vcmp.gt.s32.totalorder %v3673_v22, 0  ;;  %v7168_v32 = vpop.eup %4669 }
 0x1f4   :  { %v2689_v33 = vsel %vm2682_vm11, %v2685_v47, %v2688_v13  ;;  %v3096_v43 = vsel %vm3013_vm1, %v3095_v53, %v3094_v61  ;;  %v3207_v1 = vadd.s32 3, %v3100_v46  ;;  %v3306_v45 = vsub.s32 4294967266, %v3301_v2 }
 0x1f5   :  { %v7174_v39 = vpop.eup %4671  ;;  %v7178_v44 = vadd.f32 %v7033_v59, %v7029_v19  ;;  %v2793_v60 = vsel %vm2786_vm6, %v2789_v5, %v2792_v55  ;;  %v7182_v16 = vand.u32 3, %v2997_v58  ;;  %v3502_v57 = vadd.s32 1, %v7124_v29 }
 0x1f6   :  { %vm2899_vm15 = vcmp.eq.s32.totalorder %v7162_v56, 2  ;;  %v3499_v34 = vmul.u32 %v7104_v17, %v3483_v36  ;;  %vm3501_vm0 = vc.u32 %v7144_v8, %v7123_v30  ;;  %v3663_v61 = vand.u32 2147483647, %v7048_v31  ;;  %v7227_v36 = vld [vmem:[%s7797_s0 + $0x50] sm:$0xff] }
 0x1f7   :  { %v3675_v48 = vsel %vm3674_vm14, %v3673_v22, 0  ;;  %v7192_v19 = vsel %vm2680_vm12, nan, %v2689_v33  ;;  %vm2896_vm1 = vcmp.eq.s32.totalorder %v7162_v56, 0  ;;  %v3099_v50 = vsel %vm7093_vm10, %v6605_v9, %v3096_v43 }
 0x1f8   :  { %v3303_v59 = vshll.u32 %v7085_v40, %v3301_v2  ;;  %v3304_v25 = vshrl.u32 %v3286_v3, %v3302_v6  ;;  %v7201_v17 = vsel %vm2680_vm12, nan, %v2793_v60  ;;  %v7203_v0 = vand.u32 3, %v3100_v46 }
 0x1f9   :  { %v7205_v42 = vand.u32 3, %v3207_v1  ;;  %v3307_v23 = vadd.s32 127, %v3306_v45  ;;  %v2897_v38 = vxor.u32 2147483648, %v7174_v39  ;;  %v2900_v18 = vxor.u32 2147483648, %v7168_v32 }
 0x1fa   :  { %v3503_v22 = vsel %vm3501_vm0, %v3502_v57, %v7124_v29  ;;  %v3677_v49 = vand.u32 31, %v3675_v48  ;;  %vm3003_vm2 = vcmp.eq.s32.totalorder %v7182_v16, 2  ;;  %4673 = vcosq.f32 %v3099_v50 }
 0x1fb   :  { %v3308_v40 = vshll.u32 %v3307_v23, 23  ;;  %v3504_v58 = vadd.s32 %v3503_v22, %v3499_v34  ;;  %v3670_v28 = vand.u32 8388607, %v3663_v61  ;;  %vm2895_vm3 = vcmp.lt.s32.totalorder %v7162_v56, 2 }
 0x1fc   :  { %vm3000_vm5 = vcmp.eq.s32.totalorder %v7182_v16, 0  ;;  %v3305_v53 = vor.u32 %v3304_v25, %v3303_v59  ;;  %v7215_v63 = vshrl.u32 %v3675_v48, 5  ;;  %v3678_v11 = vsub.s32 32, %v3677_v49 }
 0x1fd   :  { %v3680_v47 = vshll.u32 %v4758_v26, %v3677_v49  ;;  %v3309_v29 = vor.u32 4788187, %v3308_v40  ;;  %v3505_v13 = vadd.s32 536870912, %v3504_v58  ;;  %v3683_v46 = vshll.u32 %v4759_v37, %v3677_v49 }
 0x1fe   :  { %v3689_v5 = vshll.u32 %v4761_v62, %v3677_v49  ;;  %v3681_v55 = vshrl.u32 %v4759_v37, %v3678_v11  ;;  %v3684_v2 = vshrl.u32 %v4760_v24, %v3678_v11  ;;  %v3686_v3 = vshll.u32 %v4760_v24, %v3677_v49 }
 0x1ff   :  { %v3687_v6 = vshrl.u32 %v4761_v62, %v3678_v11  ;;  %vm2893_vm4 = vweird.f32 %v7227_v36  ;;  %vm2999_vm7 = vcmp.lt.s32.totalorder %v7182_v16, 2  ;;  %4675 = vsinq.f32 %v3099_v50 }
 0x200   :  { %v7231_v33 = vshrl.u32 %v3505_v13, 30  ;;  %v3671_v43 = vor.u32 8388608, %v3670_v28  ;;  %v3690_v1 = vshrl.u32 %v4762_v41, %v3678_v11  ;;  %v3310_v45 = vand.u32 2147483647, %v3309_v29 }
 0x201   :  { %v3312_v60 = vcvt.s32.f32 %v3305_v53  ;;  %v3692_v57 = vshll.u32 %v4762_v41, %v3677_v49  ;;  %v3693_v34 = vshrl.u32 %v4763_v52, %v3678_v11  ;;  %v3682_v59 = vor.u32 %v3681_v55, %v3680_v47 }
 0x202   :  { %v3507_v48 = vshll.u32 %v7231_v33, 30  ;;  %v3685_v25 = vor.u32 %v3684_v2, %v3683_v46  ;;  %v3691_v23 = vor.u32 %v3690_v1, %v3689_v5  ;;  %v2901_v50 = vsel %vm2899_vm15, %v2900_v18, %v7174_v39 }
 0x203   :  { %vm3232_vm8 = vcmp.lt.s32.totalorder %v6864_v14, 0  ;;  %v3688_v22 = vor.u32 %v3687_v6, %v3686_v3  ;;  %vm3695_vm9 = vcmp.lt.s32.totalorder %v7215_v63, 1  ;;  %vm3698_vm10 = vcmp.lt.s32.totalorder %v7215_v63, 4 }
 0x204   :  { %v2898_v49 = vsel %vm2896_vm1, %v7168_v32, %v2897_v38  ;;  %v7246_v40 = vsub.s32 %v3504_v58, %v3507_v48  ;;  %v3679_v28 = vshrl.u32 %v4758_v26, %v3678_v11  ;;  %vm3697_vm11 = vcmp.lt.s32.totalorder %v7215_v63, 3  ;;  %v4674_v13 = vpop.eup %4673 }
 0x205   :  { %v3313_v53 = vmul.f32 %v3312_v60, %v3310_v45  ;;  %vm3696_vm6 = vcmp.lt.s32.totalorder %v7215_v63, 2  ;;  %v3704_v47 = vsel %vm3698_vm10, %v3691_v23, 920167782  ;;  %v7253_v29 = vshll.u32 %v3671_v43, 8 }
 0x206   :  { %v3510_v46 = vsub.s32 0, %v7246_v40  ;;  %v3694_v5 = vor.u32 %v3693_v34, %v3692_v57  ;;  %v3700_v58 = vsel %vm3698_vm10, %v3688_v22, 2102212464  ;;  %v3703_v11 = vsel %vm3695_vm9, %v3682_v59, %v3685_v25 }
 0x207   :  { %v3005_v55 = vsel %vm3003_vm2, %v2900_v18, %v7174_v39  ;;  %vm3109_vm12 = vcmp.eq.s32.totalorder %v7203_v0, 2  ;;  %v7831_v2 = vand.u32 2147483647, %v6864_v14  ;;  %v3705_v6 = vsel %vm3697_vm11, %v3688_v22, %v3704_v47 }
 0x208   :  { %v2902_v43 = vsel %vm2895_vm3, %v2898_v49, %v2901_v50  ;;  %v3002_v1 = vsel %vm3000_vm5, %v7168_v32, %v2897_v38  ;;  %vm3106_vm14 = vcmp.eq.s32.totalorder %v7203_v0, 0  ;;  %vm3210_vm15 = vcmp.eq.s32.totalorder %v7205_v42, 0 }
 0x209   :  { %vm7266_vm13 = vcmp.le.f32.partialorder %v7831_v2, 0.7853982  ;;  %v4528_v39 = vmin.u32 %v3510_v46, %v7246_v40  ;;  %v3699_v18 = vsel %vm3695_vm9, %v3679_v28, %v3682_v59  ;;  %v3314_v45 = vxor.u32 2147483648, %v3313_v53  ;;  %v4676_v32 = vpop.eup %4675 }
 0x20a   :  { %v3701_v60 = vsel %vm3697_vm11, %v3685_v25, %v3700_v58  ;;  %v3706_v56 = vsel %vm3696_vm6, %v3703_v11, %v3705_v6  ;;  %v3707_v57 = vsel %vm3695_vm9, %v3685_v25, %v3688_v22  ;;  %v3708_v34 = vsel %vm3698_vm10, %v3694_v5, 1326507024  ;;  %v7316_v11 = vld [vmem:[%s7797_s0 + $0x78] sm:$0xff]  ;;  %s7587_s0 = sld [smem:[#allocation6 + $0xa]] }
 0x20b   :  { %v3512_v38 = vclz %v4528_v39  ;;  %v7291_v48 = vmul.u32.u64.low %v7253_v29, %v3706_v56  ;;  %v7292_v50 = vmul.u32.u64.high %v7253_v29, %v3706_v56, %v7291_v48  ;;  %v2903_v59 = vsel %vm2893_vm4, nan, %v2902_v43 }
 0x20c   :  { %v3006_v49 = vsel %vm2999_vm7, %v3002_v1, %v3005_v55  ;;  %vm3105_vm0 = vcmp.lt.s32.totalorder %v7203_v0, 2  ;;  %vm3209_vm1 = vcmp.lt.s32.totalorder %v7205_v42, 2  ;;  %vm3213_vm2 = vcmp.eq.s32.totalorder %v7205_v42, 2 }
 0x20d   :  { %v3709_v25 = vsel %vm3697_vm11, %v3691_v23, %v3708_v34  ;;  %v3316_v22 = vsub.s32 4, %v7065_v10  ;;  %v4529_v28 = vadd.s32 4294967294, %v3512_v38  ;;  %v3702_v47 = vsel %vm3696_vm6, %v3699_v18, %v3701_v60 }
 0x20e   :  { %v3710_v46 = vsel %vm3696_vm6, %v3707_v57, %v3709_v25  ;;  %v3110_v16 = vxor.u32 2147483648, %v4674_v13  ;;  %v3879_v23 = vand.u32 2139095040, %v7316_v11  ;;  %vm3103_vm3 = vweird.f32 %v6605_v9 }
 0x20f   :  { %v7310_v5 = vmul.u32.u64.low %v7253_v29, %v3710_v46  ;;  %v7311_v58 = vmul.u32.u64.high %v7253_v29, %v3710_v46, %v7310_v5  ;;  %v3315_v55 = vsel %vm3232_vm8, %v3314_v45, %v3313_v53  ;;  %v3500_v63 = vadd.s32 %v7123_v30, %v7144_v8 }
 0x210   :  { %vm4530_vm5 = vcmp.lt.s32.totalorder %v4529_v28, 0  ;;  %v3721_v2 = vadd.s32 1, %v7292_v50  ;;  %v3107_v6 = vxor.u32 2147483648, %v4676_v32  ;;  %v3718_v1 = vmul.u32 %v7253_v29, %v3702_v47 }
 0x211   :  { %v3515_v43 = vsel %vm4530_vm5, 0, %v4529_v28  ;;  %v3880_v39 = vshrl.u32 %v3879_v23, 23  ;;  %v3317_v18 = vsel %vm3232_vm8, %v3316_v22, %v7065_v10  ;;  %v3111_v53 = vsel %vm3109_vm12, %v3110_v16, %v4676_v32 }
 0x212   :  { %v3516_v60 = vsub.s32 32, %v3515_v43  ;;  %v3517_v56 = vshll.u32 %v7246_v40, %v3515_v43  ;;  %v3520_v57 = vsub.s32 4294967266, %v3515_v43  ;;  %v3318_v30 = vsel %vm7266_vm13, %v6864_v14, %v3315_v55 }
 0x213   :  { %vm3720_vm7 = vc.u32 %v7311_v58, %v7291_v48  ;;  %v4543_v8 = vadd.s32 4294967169, %v3880_v39  ;;  %v3215_v29 = vsel %vm3213_vm2, %v3110_v16, %v4676_v32  ;;  %v3108_v40 = vsel %vm3106_vm14, %v4674_v13, %v3107_v6 }
 0x214   :  { %v3518_v45 = vshrl.u32 %v3500_v63, %v3516_v60  ;;  %v3521_v10 = vadd.s32 127, %v3520_v57  ;;  %v3722_v38 = vsel %vm3720_vm7, %v3721_v2, %v7292_v50  ;;  %v3212_v34 = vsel %vm3210_vm15, %v4674_v13, %v3107_v6 }
 0x215   :  { %v3723_v25 = vadd.s32 %v3722_v38, %v3718_v1  ;;  %v3886_v22 = vadd.s32 1, %v4543_v8  ;;  %v3007_v28 = vsel %vm2893_vm4, nan, %v3006_v49  ;;  %4677 = vcosq.f32 %v3318_v30 }
 0x216   :  { %v3519_v47 = vor.u32 %v3518_v45, %v3517_v56  ;;  %v3522_v46 = vshll.u32 %v3521_v10, 23  ;;  %v3319_v32 = vsel %vm7266_vm13, 0, %v3317_v18  ;;  %v3876_v50 = vand.u32 2147483647, %v7316_v11 }
 0x217   :  { %v3724_v16 = vadd.s32 536870912, %v3723_v25  ;;  %vm3887_vm8 = vcmp.gt.s32.totalorder %v3886_v22, 0  ;;  %v3112_v5 = vsel %vm3105_vm0, %v3108_v40, %v3111_v53  ;;  %v3216_v13 = vsel %vm3209_vm1, %v3212_v34, %v3215_v29 }
 0x218   :  { %v3523_v23 = vor.u32 4788187, %v3522_v46  ;;  %v3526_v55 = vcvt.s32.f32 %v3519_v47  ;;  %v7355_v36 = vmul.f32 %v7192_v19, %v7129_v35  ;;  %v7359_v3 = vmul.f32 %v7201_v17, %v7133_v51 }
 0x219   :  { %v7361_v49 = vshrl.u32 %v3724_v16, 30  ;;  %v3888_v63 = vsel %vm3887_vm8, %v3886_v22, 0  ;;  %v7365_v0 = vmul.f32 %v7192_v19, %v7133_v51  ;;  %v7367_v2 = vmul.f32 0.70710677, %v2903_v59 }
 0x21a   :  { %v7369_v42 = vmul.f32 -0.70710677, %v3007_v28  ;;  %v3524_v6 = vand.u32 2147483647, %v3523_v23  ;;  %v7373_v43 = vsel %vm3103_vm3, nan, %v3112_v5  ;;  %v7377_v1 = vsel %vm3103_vm3, nan, %v3216_v13 }
 0x21b   :  { %v3426_v39 = vadd.s32 3, %v3319_v32  ;;  %v3883_v18 = vand.u32 8388607, %v3876_v50  ;;  %v3530_v51 = vsub.s32 4, %v7231_v33  ;;  %v3726_v19 = vshll.u32 %v7361_v49, 30 }
 0x21c   :  { %v3527_v60 = vmul.f32 %v3526_v55, %v3524_v6  ;;  %v3890_v59 = vand.u32 31, %v3888_v63  ;;  %v7385_v56 = vmul.f32 %v7201_v17, %v7129_v35  ;;  %v7387_v57 = vand.u32 3, %v3319_v32 }
 0x21d   :  { %vm7391_vm4 = vcmp.le.f32.partialorder %v3444_v27, 0.7853982  ;;  %vm3446_vm9 = vcmp.lt.s32.totalorder %v6906_v54, 0  ;;  %4679 = vsinq.f32 %v3318_v30  ;;  %v7396_v8 = vsub.s32 %v3723_v25, %v3726_v19 }
 0x21e   :  { %v3528_v53 = vxor.u32 2147483648, %v3527_v60  ;;  %v3891_v29 = vsub.s32 32, %v3890_v59  ;;  %v7400_v45 = vmul.f32 %v7373_v43, %v7367_v2  ;;  %v7403_v35 = vmul.f32 0.70710677, %v7377_v1 }
 0x21f   :  { %v7405_v17 = vand.u32 3, %v3426_v39  ;;  %v3884_v27 = vor.u32 8388608, %v3883_v18  ;;  %v7407_v10 = vpop.eup %4677  ;;  %v7411_v38 = vmul.f32 %v7373_v43, %v7369_v42  ;;  %v3531_v30 = vsel %vm3446_vm9, %v3530_v51, %v7231_v33 }
 0x220   :  { %v3729_v40 = vsub.s32 0, %v7396_v8  ;;  %v7417_v34 = vshrl.u32 %v3888_v63, 5  ;;  %v3893_v25 = vshll.u32 %v4758_v26, %v3890_v59  ;;  %v3894_v22 = vshrl.u32 %v4759_v37, %v3891_v29 }
 0x221   :  { %v3896_v28 = vshll.u32 %v4759_v37, %v3890_v59  ;;  %v3897_v47 = vshrl.u32 %v4760_v24, %v3891_v29  ;;  %v7424_v46 = vmul.f32 0.0, %v7377_v1  ;;  %v3529_v32 = vsel %vm3446_vm9, %v3528_v53, %v3527_v60 }
 0x222   :  { %v4536_v33 = vmin.u32 %v3729_v40, %v7396_v8  ;;  %v3899_v16 = vshll.u32 %v4760_v24, %v3890_v59  ;;  %v3329_v5 = vxor.u32 2147483648, %v7407_v10  ;;  %v3533_v13 = vsel %vm7391_vm4, 0, %v3531_v30 }
 0x223   :  { %v3719_v37 = vadd.s32 %v7291_v48, %v7311_v58  ;;  %v7435_v23 = vshll.u32 %v3884_v27, 8  ;;  %vm3325_vm10 = vcmp.eq.s32.totalorder %v7387_v57, 0  ;;  %vm3328_vm11 = vcmp.eq.s32.totalorder %v7387_v57, 2 }
 0x224   :  { %v3731_v55 = vclz %v4536_v33  ;;  %v3900_v63 = vshrl.u32 %v4761_v62, %v3891_v29  ;;  %v3902_v6 = vshll.u32 %v4761_v62, %v3890_v59  ;;  %vm3908_vm6 = vcmp.lt.s32.totalorder %v7417_v34, 1 }
 0x225   :  { %v3532_v24 = vsel %vm7391_vm4, %v6906_v54, %v3529_v32  ;;  %v3895_v39 = vor.u32 %v3894_v22, %v3893_v25  ;;  %v3898_v18 = vor.u32 %v3897_v47, %v3896_v28  ;;  %v3903_v48 = vshrl.u32 %v4762_v41, %v3891_v29 }
 0x226   :  { %vm3432_vm12 = vcmp.eq.s32.totalorder %v7405_v17, 2  ;;  %v4537_v58 = vadd.s32 4294967294, %v3731_v55  ;;  %v3901_v60 = vor.u32 %v3900_v63, %v3899_v16  ;;  %v3905_v51 = vshll.u32 %v4762_v41, %v3890_v59 }
 0x227   :  { %v3906_v19 = vshrl.u32 %v4763_v52, %v3891_v29  ;;  %vm3324_vm13 = vcmp.lt.s32.totalorder %v7387_v57, 2  ;;  %vm3429_vm14 = vcmp.eq.s32.totalorder %v7405_v17, 0  ;;  %v3892_v62 = vshrl.u32 %v4758_v26, %v3891_v29  ;;  %v4680_v53 = vpop.eup %4679 }
 0x228   :  { %v3904_v9 = vor.u32 %v3903_v48, %v3902_v6  ;;  %vm3909_vm15 = vcmp.lt.s32.totalorder %v7417_v34, 2  ;;  %vm3911_vm0 = vcmp.lt.s32.totalorder %v7417_v34, 4  ;;  %4681 = vcosq.f32 %v3532_v24 }
 0x229   :  { %vm4538_vm1 = vcmp.lt.s32.totalorder %v4537_v58, 0  ;;  %v3907_v27 = vor.u32 %v3906_v19, %v3905_v51  ;;  %vm3910_vm2 = vcmp.lt.s32.totalorder %v7417_v34, 3  ;;  %4683 = vsinq.f32 %v3532_v24 }
 0x22a   :  { %v3734_v41 = vsel %vm4538_vm1, 0, %v4537_v58  ;;  %v3916_v52 = vsel %vm3908_vm6, %v3895_v39, %v3898_v18  ;;  %v3917_v59 = vsel %vm3911_vm0, %v3904_v9, 920167782  ;;  %vm3322_vm3 = vweird.f32 %v6864_v14 }
 0x22b   :  { %vm3428_vm5 = vcmp.lt.s32.totalorder %v7405_v17, 2  ;;  %v3735_v26 = vsub.s32 32, %v3734_v41  ;;  %v3736_v29 = vshll.u32 %v7396_v8, %v3734_v41  ;;  %v3739_v30 = vsub.s32 4294967266, %v3734_v41 }
 0x22c   :  { %v3920_v40 = vsel %vm3908_vm6, %v3898_v18, %v3901_v60  ;;  %v3326_v25 = vxor.u32 2147483648, %v4680_v53  ;;  %v3913_v22 = vsel %vm3911_vm0, %v3901_v60, 2102212464  ;;  %v3918_v28 = vsel %vm3910_vm2, %v3901_v60, %v3917_v59 }
 0x22d   :  { %v3921_v47 = vsel %vm3911_vm0, %v3907_v27, 1326507024  ;;  %v3737_v32 = vshrl.u32 %v3719_v37, %v3735_v26  ;;  %v3740_v33 = vadd.s32 127, %v3739_v30  ;;  %v3919_v16 = vsel %vm3909_vm15, %v3916_v52, %v3918_v28 }
 0x22e   :  { %v3922_v8 = vsel %vm3910_vm2, %v3904_v9, %v3921_v47  ;;  %v3640_v55 = vadd.s32 3, %v3533_v13  ;;  %vm3665_vm7 = vcmp.lt.s32.totalorder %v7048_v31, 0  ;;  %v3912_v58 = vsel %vm3908_vm6, %v3892_v62, %v3895_v39 }
 0x22f   :  { %v3923_v63 = vsel %vm3909_vm15, %v3920_v40, %v3922_v8  ;;  %v7478_v6 = vmul.u32.u64.low %v7435_v23, %v3919_v16  ;;  %v7479_v24 = vmul.u32.u64.high %v7435_v23, %v3919_v16, %v7478_v6  ;;  %v3738_v48 = vor.u32 %v3737_v32, %v3736_v29 }
 0x230   :  { %v3741_v37 = vshll.u32 %v3740_v33, 23  ;;  %v3914_v60 = vsel %vm3910_vm2, %v3898_v18, %v3913_v22  ;;  %v3327_v51 = vsel %vm3325_vm10, %v7407_v10, %v3326_v25  ;;  %v3330_v19 = vsel %vm3328_vm11, %v3329_v5, %v4680_v53 }
 0x231   :  { %vm7495_vm8 = vcmp.le.f32.partialorder %v3663_v61, 0.7853982  ;;  %v7500_v39 = vmul.u32.u64.low %v7435_v23, %v3923_v63  ;;  %v7501_v62 = vmul.u32.u64.high %v7435_v23, %v3923_v63, %v7500_v39  ;;  %v7505_v18 = vmul.f32 %v7377_v1, %v7367_v2 }
 0x232   :  { %v3225_v27 = vmul.f32 0.70710677, %v7373_v43  ;;  %v3537_v41 = vand.u32 3, %v3533_v13  ;;  %v3742_v52 = vor.u32 4788187, %v3741_v37  ;;  %v3434_v61 = vsel %vm3432_vm12, %v3329_v5, %v4680_v53  ;;  %v4682_v30 = vpop.eup %4681 }
 0x233   :  { %v3641_v59 = vand.u32 3, %v3640_v55  ;;  %v3745_v26 = vcvt.s32.f32 %v3738_v48  ;;  %v3915_v29 = vsel %vm3909_vm15, %v3912_v58, %v3914_v60  ;;  %v3331_v40 = vsel %vm3324_vm13, %v3327_v51, %v3330_v19  ;;  %v4684_v28 = vpop.eup %4683 }
 0x234   :  { %v3431_v2 = vsel %vm3429_vm14, %v7407_v10, %v3326_v25  ;;  %v3743_v13 = vand.u32 2147483647, %v3742_v52  ;;  %v3749_v22 = vsub.s32 4, %v7361_v49  ;;  %v3220_v5 = vsub.f32 %v7400_v45, %v7403_v35 }
 0x235   :  { %v3227_v53 = vmul.f32 %v7377_v1, %v7369_v42  ;;  %v3228_v34 = vmul.f32 0.0, %v7373_v43  ;;  %v3934_v47 = vadd.s32 1, %v7479_v24  ;;  %v3223_v57 = vsub.f32 %v7411_v38, %v7424_v46 }
 0x236   :  { %vm3538_vm4 = vcmp.lt.s32.totalorder %v3537_v41, 2  ;;  %vm3542_vm9 = vcmp.eq.s32.totalorder %v3537_v41, 2  ;;  %v3931_v10 = vmul.u32 %v7435_v23, %v3915_v29  ;;  %v3332_v25 = vsel %vm3322_vm3, nan, %v3331_v40 }
 0x237   :  { %v3435_v45 = vsel %vm3428_vm5, %v3431_v2, %v3434_v61  ;;  %v3543_v35 = vxor.u32 2147483648, %v4682_v30  ;;  %v3746_v32 = vmul.f32 %v3745_v26, %v3743_v13  ;;  %v3540_v42 = vxor.u32 2147483648, %v4684_v28 }
 0x238   :  { %vm3646_vm10 = vcmp.eq.s32.totalorder %v3641_v59, 2  ;;  %v3750_v43 = vsel %vm3665_vm7, %v3749_v22, %v7361_v49  ;;  %vm3933_vm11 = vc.u32 %v7501_v62, %v7478_v6  ;;  %vm3539_vm6 = vcmp.eq.s32.totalorder %v3537_v41, 0 }
 0x239   :  { %vm3643_vm12 = vcmp.eq.s32.totalorder %v3641_v59, 0  ;;  %v3747_v1 = vxor.u32 2147483648, %v3746_v32  ;;  %v3935_v38 = vsel %vm3933_vm11, %v3934_v47, %v7479_v24  ;;  %v3436_v17 = vsel %vm3322_vm3, nan, %v3435_v45 }
 0x23a   :  { %v3437_v46 = vmul.f32 %v3332_v25, %v3220_v5  ;;  %vm3642_vm13 = vcmp.lt.s32.totalorder %v3641_v59, 2  ;;  %v3936_v23 = vadd.s32 %v3935_v38, %v3931_v10  ;;  %v3544_v33 = vsel %vm3542_vm9, %v3543_v35, %v4684_v28 }
 0x23b   :  { %v3648_v16 = vsel %vm3646_vm10, %v3543_v35, %v4684_v28  ;;  %v3748_v49 = vsel %vm3665_vm7, %v3747_v1, %v3746_v32  ;;  %v3752_v8 = vsel %vm7495_vm8, 0, %v3750_v43  ;;  %v3541_v55 = vsel %vm3539_vm6, %v4682_v30, %v3540_v42 }
 0x23c   :  { %v3645_v63 = vsel %vm3643_vm12, %v4682_v30, %v3540_v42  ;;  %v3751_v24 = vsel %vm7495_vm8, %v7048_v31, %v3748_v49  ;;  %v3937_v14 = vadd.s32 536870912, %v3936_v23  ;;  %v3438_v48 = vmul.f32 %v3436_v17, %v3223_v57 }
 0x23d   :  { %v3440_v37 = vmul.f32 %v3332_v25, %v3223_v57  ;;  %v3441_v58 = vmul.f32 %v3436_v17, %v3220_v5  ;;  %4685 = vcosq.f32 %v3751_v24  ;;  %vm3536_vm14 = vweird.f32 %v6906_v54 }
 0x23e   :  { %4687 = vsinq.f32 %v3751_v24  ;;  %v7550_v60 = vshrl.u32 %v3937_v14, 30  ;;  %v4085_v51 = vmul.f32 %v6697_v20, %v6697_v20  ;;  %v3545_v19 = vsel %vm3538_vm4, %v3541_v55, %v3544_v33 }
 0x23f   :  { %v3649_v39 = vsel %vm3642_vm13, %v3645_v63, %v3648_v16  ;;  %v3859_v52 = vadd.s32 3, %v3752_v8  ;;  %v4086_v9 = vmul.f32 %v6704_v7, %v6704_v7  ;;  %v7560_v61 = vadd.f32 %v7137_v21, %v7038_v4 }
 0x240   :  { %v7564_v26 = vadd.f32 %v7359_v3, %v7355_v36  ;;  %v7568_v29 = vsub.f32 %v7365_v0, %v7385_v56  ;;  %v3939_v41 = vshll.u32 %v7550_v60, 30  ;;  %v3226_v59 = vadd.f32 %v3225_v27, %v7505_v18 }
 0x241   :  { %v3229_v30 = vadd.f32 %v3228_v34, %v3227_v53  ;;  %v3439_v40 = vadd.f32 %v3438_v48, %v3437_v46  ;;  %v3442_v2 = vsub.f32 %v3440_v37, %v3441_v58  ;;  %v3546_v13 = vsel %vm3536_vm14, nan, %v3545_v19 }
 0x242   :  { %v3650_v4 = vsel %vm3536_vm14, nan, %v3649_v39  ;;  %v3756_v21 = vand.u32 3, %v3752_v8  ;;  %v7576_v36 = vsub.s32 %v3936_v23, %v3939_v41  ;;  %vm3755_vm15 = vweird.f32 %v7048_v31 }
 0x243   :  { %v3860_v3 = vand.u32 3, %v3859_v52  ;;  %v7579_v0 = vadd.f32 %v4086_v9, %v4085_v51  ;;  %v4088_v56 = vmul.f32 %v6405_v12, %v6405_v12  ;;  %v3657_v18 = vmul.f32 %v3650_v4, %v3439_v40 }
 0x244   :  { %v3658_v27 = vmul.f32 %v3546_v13, %v3226_v59  ;;  %v3942_v22 = vsub.s32 0, %v7576_v36  ;;  %v4089_v28 = vmul.f32 %v6527_v15, %v6527_v15  ;;  %v3651_v54 = vmul.f32 %v3546_v13, %v3439_v40 }
 0x245   :  { %v3652_v5 = vmul.f32 %v3650_v4, %v3226_v59  ;;  %v3660_v53 = vmul.f32 %v3650_v4, %v3442_v2  ;;  %v3661_v34 = vmul.f32 %v3546_v13, %v3229_v30  ;;  %v3654_v47 = vmul.f32 %v3546_v13, %v3442_v2 }
 0x246   :  { %v3655_v57 = vmul.f32 %v3650_v4, %v3229_v30  ;;  %vm3757_vm0 = vcmp.lt.s32.totalorder %v3756_v21, 2  ;;  %v4544_v10 = vmin.u32 %v3942_v22, %v7576_v36  ;;  %vm3758_vm1 = vcmp.eq.s32.totalorder %v3756_v21, 0 }
 0x247   :  { %v4686_v25 = vpop.eup %4685  ;;  %vm3761_vm2 = vcmp.eq.s32.totalorder %v3756_v21, 2  ;;  %vm3861_vm3 = vcmp.lt.s32.totalorder %v3860_v3, 2  ;;  %vm3865_vm5 = vcmp.eq.s32.totalorder %v3860_v3, 2  ;;  %v7589_v35 = vadd.f32 %v3658_v27, %v3657_v18 }
 0x248   :  { %v4688_v45 = vpop.eup %4687  ;;  %v3762_v32 = vxor.u32 2147483648, %v4686_v25  ;;  %vm3862_vm7 = vcmp.eq.s32.totalorder %v3860_v3, 0  ;;  %v3944_v42 = vclz %v4544_v10  ;;  %v3653_v43 = vsub.f32 %v3651_v54, %v3652_v5 }
 0x249   :  { %v7591_v1 = vadd.f32 %v3661_v34, %v3660_v53  ;;  %v3759_v38 = vxor.u32 2147483648, %v4688_v45  ;;  %v7593_v17 = vadd.f32 %v4089_v28, %v4088_v56  ;;  %v3656_v46 = vsub.f32 %v3654_v47, %v3655_v57 }
 0x24a   :  { %v3763_v23 = vsel %vm3761_vm2, %v3762_v32, %v4688_v45  ;;  %v3867_v33 = vsel %vm3865_vm5, %v3762_v32, %v4688_v45  ;;  %v4545_v16 = vadd.s32 4294967294, %v3944_v42  ;;  %v3932_v55 = vadd.s32 %v7478_v6, %v7501_v62 }
 0x24b   :  { %v3760_v49 = vsel %vm3758_vm1, %v4686_v25, %v3759_v38  ;;  %v3864_v8 = vsel %vm3862_vm7, %v4686_v25, %v3759_v38  ;;  %v4099_v63 = vmul.f32 %v7564_v26, %v7564_v26  ;;  %v4116_v48 = vmul.f32 %v7589_v35, %v7589_v35 }
 0x24c   :  { %v3764_v24 = vsel %vm3757_vm0, %v3760_v49, %v3763_v23  ;;  %v3868_v14 = vsel %vm3861_vm3, %v3864_v8, %v3867_v33  ;;  %vm4546_vm8 = vcmp.lt.s32.totalorder %v4545_v16, 0  ;;  %v4117_v58 = vmul.f32 %v7591_v1, %v7591_v1 }
 0x24d   :  { %v3765_v37 = vsel %vm3755_vm15, nan, %v3764_v24  ;;  %v3869_v6 = vsel %vm3755_vm15, nan, %v3868_v14  ;;  %v3947_v62 = vsel %vm4546_vm8, 0, %v4545_v16  ;;  %v4167_v30 = vstv %s7587_s0 }
 0x24e   :  { %v3870_v51 = vmul.f32 %v3765_v37, %v3653_v43  ;;  %v3871_v19 = vmul.f32 %v3869_v6, %v3656_v46  ;;  %v3873_v39 = vmul.f32 %v3765_v37, %v3656_v46  ;;  %v3874_v52 = vmul.f32 %v3869_v6, %v3653_v43 }
 0x24f   :  { %v3948_v9 = vsub.s32 32, %v3947_v62  ;;  %v3949_v41 = vshll.u32 %v7576_v36, %v3947_v62  ;;  %v3952_v59 = vsub.s32 4294967266, %v3947_v62  ;;  %v4100_v31 = vmul.f32 %v7568_v29, %v7568_v29 }
 0x250   :  { %v7618_v40 = vadd.f32 %v3871_v19, %v3870_v51  ;;  %v7620_v2 = vsub.f32 %v3873_v39, %v3874_v52  ;;  %v4102_v13 = vmul.f32 %v7178_v44, %v7178_v44  ;;  %v4103_v3 = vmul.f32 %v7560_v61, %v7560_v61 }
 0x251   :  { %v3950_v4 = vshrl.u32 %v3932_v55, %v3948_v9  ;;  %v3953_v21 = vadd.s32 127, %v3952_v59  ;;  %v4107_v36 = vmul.f32 %v7564_v26, %v7178_v44  ;;  %v7634_v27 = vadd.f32 %v4117_v58, %v4116_v48 }
 0x252   :  { %v4113_v56 = vmul.f32 %v7618_v40, %v7618_v40  ;;  %v4114_v18 = vmul.f32 %v7620_v2, %v7620_v2  ;;  %v4168_v22 = vmul.f32 %v4167_v30, %v7593_v17  ;;  %v4108_v5 = vmul.f32 %v7568_v29, %v7560_v61 }
 0x253   :  { %v3951_v28 = vor.u32 %v3950_v4, %v3949_v41  ;;  %v3954_v54 = vshll.u32 %v3953_v21, 23  ;;  %v4170_v53 = vstv %s7595_s24  ;;  %v3962_v34 = vsub.s32 4, %v7550_v60 }
 0x254   :  { %v4110_v47 = vmul.f32 %v7564_v26, %v7560_v61  ;;  %v4111_v57 = vmul.f32 %v7568_v29, %v7178_v44  ;;  %v7645_v10 = vadd.f32 %v4114_v18, %v4113_v56  ;;  %v4163_v32 = vstv %s7602_s25 }
 0x255   :  { %v3955_v25 = vor.u32 4788187, %v3954_v54  ;;  %v3958_v45 = vcvt.s32.f32 %v3951_v28  ;;  %v4165_v42 = vstv %s7608_s27  ;;  %v4169_v61 = vadd.f32 %v4168_v22, %v7579_v0 }
 0x256   :  { %v7653_v43 = vsub.f32 %v7645_v10, %v7634_v27  ;;  %v4120_v38 = vadd.f32 %v7634_v27, %v7645_v10  ;;  %v4171_v26 = vmul.f32 %v4170_v53, %v7593_v17  ;;  %vm3878_vm4 = vcmp.lt.s32.totalorder %v7316_v11, 0 }
 0x257   :  { %v3956_v44 = vand.u32 2147483647, %v3955_v25  ;;  %v7662_v29 = vadd.f32 %v4100_v31, %v4099_v63  ;;  %v7664_v46 = vadd.f32 %v4103_v3, %v4102_v13  ;;  %v3963_v49 = vsel %vm3878_vm4, %v3962_v34, %v7550_v60 }
 0x258   :  { %v4164_v23 = vmul.f32 %v4163_v32, %v4120_v38  ;;  %v4166_v33 = vmul.f32 %v4165_v42, %v7653_v43  ;;  %v4109_v8 = vadd.f32 %v4108_v5, %v4107_v36  ;;  %v4112_v55 = vsub.f32 %v4110_v47, %v4111_v57 }
 0x259   :  { %v3959_v16 = vmul.f32 %v3958_v45, %v3956_v44  ;;  %vm3877_vm9 = vcmp.le.f32.partialorder %v3876_v50, 0.7853982  ;;  %v4181_v51 = vstv %s7647_s28  ;;  %v4105_v50 = vsub.f32 %v7662_v29, %v7664_v46 }
 0x25a   :  { %v4172_v24 = vmul.f32 %v4169_v61, %v4164_v23  ;;  %v4173_v14 = vmul.f32 %v4171_v26, %v4166_v33  ;;  %v4175_v48 = vmul.f32 %v4171_v26, %v4164_v23  ;;  %v4176_v63 = vmul.f32 %v4169_v61, %v4166_v33 }
 0x25b   :  { %v3960_v37 = vxor.u32 2147483648, %v3959_v16  ;;  %v3965_v58 = vsel %vm3877_vm9, 0, %v3963_v49  ;;  %v4183_v9 = vstv %s7659_s29  ;;  %v4182_v30 = vmul.f32 %v4181_v51, %v4105_v50 }
 0x25c   :  { %v4174_v6 = vsub.f32 %v4172_v24, %v4173_v14  ;;  %v4177_v62 = vadd.f32 %v4176_v63, %v4175_v48  ;;  %v4072_v41 = vadd.s32 3, %v3965_v58  ;;  %v4217_v13 = vstv %s7670_s3 }
 0x25d   :  { %v3961_v60 = vsel %vm3878_vm4, %v3960_v37, %v3959_v16  ;;  %v4093_v4 = vmul.f32 %v6697_v20, %v6405_v12  ;;  %v4094_v21 = vmul.f32 %v6704_v7, %v6527_v15  ;;  %v7702_v3 = vmul.f32 %v6697_v20, %v6527_v15 }
 0x25e   :  { %v3964_v19 = vsel %vm3877_vm9, %v7316_v11, %v3961_v60  ;;  %v4178_v39 = vmul.f32 %v4174_v6, %v4109_v8  ;;  %v4179_v52 = vmul.f32 %v4177_v62, %v4112_v55  ;;  %v7706_v36 = vmul.f32 %v6704_v7, %v6405_v12 }
 0x25f   :  { %4689 = vcosq.f32 %v3964_v19  ;;  %v3969_v56 = vand.u32 3, %v3965_v58  ;;  %v4073_v18 = vand.u32 3, %v4072_v41  ;;  %v7710_v28 = vsub.f32 %v7579_v0, %v7593_v17 }
 0x260   :  { %4691 = vsinq.f32 %v3964_v19  ;;  %v4180_v59 = vsub.f32 %v4178_v39, %v4179_v52  ;;  %v4092_v54 = vadd.f32 %v7593_v17, %v7579_v0  ;;  %v4218_v15 = vmul.f32 %v4217_v13, %v7634_v27 }
 0x261   :  { %v4106_v12 = vadd.f32 %v7664_v46, %v7662_v29  ;;  %v4213_v20 = vstv %s7674_s30  ;;  %v4215_v7 = vstv %s7679_s5  ;;  %v4220_v5 = vstv %s7681_s6 }
 0x262   :  { %v4184_v31 = vmul.f32 %v4183_v9, %v4180_v59  ;;  %vm3968_vm10 = vweird.f32 %v7316_v11  ;;  %v7726_v53 = vadd.f32 %v4094_v21, %v4093_v4  ;;  %v4098_v0 = vsub.f32 %v7702_v3, %v7706_v36 }
 0x263   :  { %v4138_v17 = vstv %s7686_s7  ;;  %vm3974_vm11 = vcmp.eq.s32.totalorder %v3969_v56, 2  ;;  %vm4078_vm6 = vcmp.eq.s32.totalorder %v4073_v18, 2  ;;  %v4140_v34 = vstv %s7689_s8 }
 0x264   :  { %v4185_v22 = vsub.f32 %v4182_v30, %v4184_v31  ;;  %v4145_v47 = vstv %s7691_s9  ;;  %v4214_v25 = vmul.f32 %v4213_v20, %v4092_v54  ;;  %v4216_v45 = vmul.f32 %v4215_v7, %v7710_v28 }
 0x265   :  { %v4219_v32 = vadd.f32 %v4218_v15, %v7645_v10  ;;  %v4221_v42 = vmul.f32 %v4220_v5, %v7634_v27  ;;  %vm3971_vm12 = vcmp.eq.s32.totalorder %v3969_v56, 0  ;;  %vm4075_vm13 = vcmp.eq.s32.totalorder %v4073_v18, 0 }
 0x266   :  { %4553 = vst [vmem:[%s7801_s4 + $0x48] sm:$0xff] %v4185_v22  ;;  %v4139_v26 = vmul.f32 %v4138_v17, %v4106_v12  ;;  %vm3970_vm14 = vcmp.lt.s32.totalorder %v3969_v56, 2  ;;  %vm4074_vm15 = vcmp.lt.s32.totalorder %v4073_v18, 2  ;;  %v4142_v23 = vstv %s7694_s26 }
 0x267   :  { %v4141_v49 = vmul.f32 %v4140_v34, %v4105_v50  ;;  %v4146_v10 = vmul.f32 0.49999997, %v4145_v47  ;;  %v4222_v55 = vmul.f32 %v4219_v32, %v4214_v25  ;;  %v4223_v24 = vmul.f32 %v4221_v42, %v4216_v45 }
 0x268   :  { %v4143_v63 = vmul.f32 0.49999997, %v4142_v23  ;;  %v4192_v37 = vstv %s7715_s10  ;;  %v4225_v60 = vmul.f32 %v4221_v42, %v4214_v25  ;;  %v4226_v58 = vmul.f32 %v4219_v32, %v4216_v45 }
 0x269   :  { %v4690_v57 = vpop.eup %4689  ;;  %v4148_v50 = vmul.f32 %v4146_v10, %v4141_v49  ;;  %v4150_v39 = vmul.f32 %v4146_v10, %v4139_v26  ;;  %v4188_v52 = vstv %s7733_s13  ;;  %v4193_v9 = vmul.f32 %v4192_v37, %v7664_v46 }
 0x26a   :  { %v4692_v38 = vpop.eup %4691  ;;  %v3975_v61 = vxor.u32 2147483648, %v4690_v57  ;;  %v4195_v41 = vstv %s7735_s14  ;;  %v4224_v59 = vsub.f32 %v4222_v55, %v4223_v24  ;;  %v4190_v56 = vstv %s7740_s15 }
 0x26b   :  { %v3972_v44 = vxor.u32 2147483648, %v4692_v38  ;;  %v4227_v18 = vadd.f32 %v4226_v58, %v4225_v60  ;;  %v4121_v22 = vmul.f32 %v7618_v40, %v7589_v35  ;;  %v4196_v12 = vmul.f32 %v4195_v41, %v7664_v46 }
 0x26c   :  { %v3976_v33 = vsel %vm3974_vm11, %v3975_v61, %v4692_v38  ;;  %v4080_v16 = vsel %vm4078_vm6, %v3975_v61, %v4692_v38  ;;  %v4122_v20 = vmul.f32 %v7620_v2, %v7591_v1  ;;  %v4194_v5 = vadd.f32 %v4193_v9, %v7662_v29 }
 0x26d   :  { %v3973_v27 = vsel %vm3971_vm12, %v4690_v57, %v3972_v44  ;;  %v4077_v8 = vsel %vm4075_vm13, %v4690_v57, %v3972_v44  ;;  %v4231_v17 = vstv %s7745_s16  ;;  %v4124_v45 = vmul.f32 %v7618_v40, %v7591_v1 }
 0x26e   :  { %v3977_v14 = vsel %vm3970_vm14, %v3973_v27, %v3976_v33  ;;  %v4081_v48 = vsel %vm4074_vm15, %v4077_v8, %v4080_v16  ;;  %v4125_v46 = vmul.f32 %v7620_v2, %v7589_v35  ;;  %v4233_v42 = vstv %s7748_s17 }
 0x26f   :  { %v3978_v6 = vsel %vm3968_vm10, nan, %v3977_v14  ;;  %v4082_v62 = vsel %vm3968_vm10, nan, %v4081_v48  ;;  %v4123_v23 = vadd.f32 %v4122_v20, %v4121_v22  ;;  %v4156_v33 = vstv %s7754_s18 }
 0x270   :  { %v4083_v51 = vmul.f32 0.70710677, %v3978_v6  ;;  %v4084_v19 = vmul.f32 -0.70710677, %v4082_v62  ;;  %v4126_v55 = vsub.f32 %v4124_v45, %v4125_v46  ;;  %v4158_v48 = vstv %s7763_s19 }
 0x271   :  { %v4157_v62 = vmul.f32 %v4156_v33, %v7710_v28  ;;  %v4206_v58 = vstv %s7769_s20 }
 0x272   :  { %v4127_v30 = vmul.f32 %v4083_v51, %v4083_v51  ;;  %v4128_v31 = vmul.f32 %v4084_v19, %v4084_v19  ;;  %v4132_v13 = vmul.f32 0.70710677, %v4083_v51  ;;  %v4133_v11 = vmul.f32 0.0, %v4084_v19 }
 0x273   :  { %v4135_v4 = vmul.f32 0.0, %v4083_v51  ;;  %v4136_v21 = vmul.f32 0.70710677, %v4084_v19  ;;  %v4207_v3 = vmul.f32 %v4206_v58, %v7653_v43 }
 0x274   :  { %v4129_v54 = vadd.f32 %v4128_v31, %v4127_v30  ;;  %v4134_v15 = vadd.f32 %v4133_v11, %v4132_v13 }
 0x275   :  { %v4137_v7 = vsub.f32 %v4135_v4, %v4136_v21 }
 0x276   :  { %v4551_v34 = vadd.f32 -0.49999997, %v4129_v54  ;;  %v4131_v47 = vadd.f32 0.49999997, %v4129_v54  ;;  %v4144_v57 = vadd.f32 %v4143_v63, %v4129_v54  ;;  %v4228_v25 = vmul.f32 %v4224_v59, %v4134_v15 }
 0x277   :  { %v4229_v32 = vmul.f32 %v4227_v18, %v4137_v7 }
 0x278   :  { %v4147_v38 = vmul.f32 %v4144_v57, %v4139_v26  ;;  %v4151_v29 = vmul.f32 %v4144_v57, %v4141_v49  ;;  %v4189_v61 = vmul.f32 %v4188_v52, %v4131_v47  ;;  %v4191_v44 = vmul.f32 %v4551_v34, %v4190_v56 }
 0x279   :  { %v4230_v16 = vsub.f32 %v4228_v25, %v4229_v32  ;;  %v4232_v10 = vmul.f32 %v4551_v34, %v4231_v17 }
 0x27a   :  { %v4149_v27 = vsub.f32 %v4147_v38, %v4148_v50  ;;  %v4152_v8 = vadd.f32 %v4151_v29, %v4150_v39  ;;  %v4197_v1 = vmul.f32 %v4194_v5, %v4189_v61  ;;  %v4198_v40 = vmul.f32 %v4196_v12, %v4191_v44 }
 0x27b   :  { %v4200_v35 = vmul.f32 %v4196_v12, %v4189_v61  ;;  %v4201_v2 = vmul.f32 %v4194_v5, %v4191_v44  ;;  %v4234_v24 = vmul.f32 %v4233_v42, %v4230_v16 }
 0x27c   :  { %v4153_v26 = vmul.f32 %v4149_v27, %v7726_v53  ;;  %v4154_v49 = vmul.f32 %v4152_v8, %v4098_v0  ;;  %v4199_v14 = vsub.f32 %v4197_v1, %v4198_v40  ;;  %v4208_v53 = vstv %s7776_s21 }
 0x27d   :  { %v4202_v63 = vadd.f32 %v4201_v2, %v4200_v35  ;;  %v4235_v37 = vsub.f32 %v4232_v10, %v4234_v24 }
 0x27e   :  { %v4155_v6 = vsub.f32 %v4153_v26, %v4154_v49  ;;  %v4203_v60 = vmul.f32 %v4199_v14, %v4123_v23 }
 0x27f   :  { %v4204_v51 = vmul.f32 %v4202_v63, %v4126_v55  ;;  %4555 = vst [vmem:[%s7801_s4 + $0x58] sm:$0xff] %v4235_v37 }
 0x280   :  { %v4159_v19 = vmul.f32 %v4158_v48, %v4155_v6 }
 0x281   :  { %v4205_v50 = vsub.f32 %v4203_v60, %v4204_v51 }
 0x282   :  { %v4160_v36 = vsub.f32 %v4157_v62, %v4159_v19 }
 0x283   :  { %v4209_v0 = vmul.f32 %v4208_v53, %v4205_v50 }
 0x284   :  { %4552 = vst [vmem:[%s7801_s4 + $0x40] sm:$0xff] %v4160_v36 }
 0x285   :  { %v4210_v39 = vsub.f32 %v4207_v3, %v4209_v0 }
 0x287   :  { %4554 = vst [vmem:[%s7801_s4 + $0x50] sm:$0xff] %v4210_v39 }
 0x288   :  { %4242 = vsyncpa [#allocation3], 1 }
 0x289   :  { %4243 = vsyncpa [#allocation5], 1 }

// kernel: inception_net_forward.3
= control target key start
LH: loop header
LB: loop body
LE: loop exit
PB: predicated region body
PF: predicated region fallthrough
CT: control target
= control target key end

     0   :  { %v1985_v3 = vmov 0.0|0.0   ;;  %v1986_v18 = vmov 1983009808   ;;  %v337_v20 = vlaneseq  ;;  %vm343_vm2 = vcmask 334848   ;;  %s3141_s0 = inlined_call_operand.vmem [shape: f32[12,2,169], index: 0, kind: input, shape index: {}]   ;;  %s3142_s1 = inlined_call_operand.vmem [shape: f32[12,169,64], index: 1, kind: input, shape index: {}]   ;;  %s3143_s2 = inlined_call_operand.vmem [shape: f32[1,64], index: 2, kind: input, shape index: {}]   ;;  %s3144_s3 = inlined_call_operand.vmem [shape: f32[64,128], index: 3, kind: input, shape index: {}]   ;;  %s3145_s4 = inlined_call_operand.vmem [shape: f32[1,128], index: 4, kind: input, shape index: {}]   ;;  %s3146_s5 = inlined_call_operand.hbm [shape: f32[2,128], index: 5, kind: output, shape index: {}]  }
   0x1   :  { %v91_v0 = vld [vmem:[%s3142_s1 + $0xb0] sm:$0xff]  ;;  %v92_v1 = vld [vmem:[%s3142_s1 + $0xb8] sm:$0xff]  ;;  %v69_v2 = vld [vmem:[%s3142_s1] sm:$0xff]  ;;  %1535 = vmatprep.subr.bf16.mxu0 %v1985_v3  ;;  %1569 = vmatprep.subr.bf16.mxu1 %v1985_v3  ;;  %v335_v19 = vunpack.c.l.s4 %v1986_v18  ;;  %vm346_vm5 = vcmask 1040384   ;;  %vm1987_vm6 = vmmov 1  }
   0x2   :  { %v1536_v4 = vpack.c.bf16 %v92_v1, %v91_v0  ;;  %v70_v5 = vld [vmem:[%s3142_s1 + $0x8] sm:$0xff]  ;;  %v93_v6 = vld [vmem:[%s3142_s1 + $0xc0] sm:$0xff]  ;;  %v71_v9 = vld [vmem:[%s3142_s1 + $0x10] sm:$0xff]  ;;  %v338_v29 = vshrl.u32 %v337_v20, 7 }
   0x3   :  { %v94_v7 = vld [vmem:[%s3142_s1 + $0xc8] sm:$0xff]  ;;  %v1570_v8 = vpack.c.bf16 %v70_v5, %v69_v2  ;;  %v72_v10 = vld [vmem:[%s3142_s1 + $0x18] sm:$0xff]  ;;  %v95_v13 = vld [vmem:[%s3142_s1 + $0xd0] sm:$0xff]  ;;  %v336_v28 = vunpack.c.0.s8 %v335_v19 }
   0x4   :  { %1537 = vmatpush1.bf16.msra.mxu0 %v1536_v4  ;;  %v1539_v11 = vpack.c.bf16 %v94_v7, %v93_v6  ;;  %v1573_v12 = vpack.c.bf16 %v72_v10, %v71_v9  ;;  %v96_v14 = vld [vmem:[%s3142_s1 + $0xd8] sm:$0xff]  ;;  %v73_v15 = vld [vmem:[%s3142_s1 + $0x20] sm:$0xff]  ;;  %v74_v16 = vld [vmem:[%s3142_s1 + $0x28] sm:$0xff] }
   0x5   :  { %1571 = vmatpush1.bf16.msra.mxu1 %v1570_v8  ;;  %1538 = vmatprep.subr.bf16.mxu0 %v1985_v3  ;;  %v1542_v17 = vpack.c.bf16 %v96_v14, %v95_v13  ;;  %v1576_v21 = vpack.c.bf16 %v74_v16, %v73_v15  ;;  %v97_v22 = vld [vmem:[%s3142_s1 + $0xe0] sm:$0xff]  ;;  %v98_v23 = vld [vmem:[%s3142_s1 + $0xe8] sm:$0xff]  ;;  %v75_v24 = vld [vmem:[%s3142_s1 + $0x30] sm:$0xff]  ;;  %v2098_v39 = vsub.s32 %v336_v28, %v338_v29 }
   0x6   :  { %1572 = vmatprep.subr.bf16.mxu1 %v1985_v3  ;;  %v76_v25 = vld [vmem:[%s3142_s1 + $0x38] sm:$0xff]  ;;  %v1545_v26 = vpack.c.bf16 %v98_v23, %v97_v22  ;;  %v99_v27 = vld [vmem:[%s3142_s1 + $0xf0] sm:$0xff]  ;;  %v77_v32 = vld [vmem:[%s3142_s1 + $0x40] sm:$0xff] }
   0x7   :  { %v1579_v30 = vpack.c.bf16 %v76_v25, %v75_v24  ;;  %v100_v31 = vld [vmem:[%s3142_s1 + $0xf8] sm:$0xff]  ;;  %v78_v33 = vld [vmem:[%s3142_s1 + $0x48] sm:$0xff]  ;;  %v101_v34 = vld [vmem:[%s3142_s1 + $0x100] sm:$0xff] }
   0x8   :  { %1540 = vmatpush1.bf16.msra.mxu0 %v1539_v11  ;;  %v1548_v35 = vpack.c.bf16 %v100_v31, %v99_v27  ;;  %v1582_v36 = vpack.c.bf16 %v78_v33, %v77_v32  ;;  %v102_v37 = vld [vmem:[%s3142_s1 + $0x108] sm:$0xff]  ;;  %v22_v38 = vld [vmem:[%s3141_s0 + $0x4] sm:$0xf]  ;;  %v21_v40 = vld [vmem:[%s3141_s0] sm:$0xf] }
   0x9   :  { %1574 = vmatpush1.bf16.msra.mxu1 %v1573_v12  ;;  %1541 = vmatprep.subr.bf16.mxu0 %v1985_v3  ;;  %vm34_vm0 = vcmp.gt.f32.partialorder %v22_v38, 0.0  ;;  %v46_v41 = vmul.f32 0.1, %v22_v38  ;;  %vm33_vm1 = vcmp.gt.f32.partialorder %v21_v40, 0.0  ;;  %v45_v42 = vmul.f32 0.1, %v21_v40  ;;  %vm2200_vm7 = vmpackc.low %vm346_vm5, %vm1987_vm6 }
   0xa   :  { %1575 = vmatprep.subr.bf16.mxu1 %v1985_v3  ;;  %v79_v43 = vld [vmem:[%s3142_s1 + $0x50] sm:$0xff]  ;;  %v80_v44 = vld [vmem:[%s3142_s1 + $0x58] sm:$0xff]  ;;  %v1551_v47 = vpack.c.bf16 %v102_v37, %v101_v34  ;;  %v81_v53 = vld [vmem:[%s3142_s1 + $0x60] sm:$0xff] }
   0xb   :  { %v58_v45 = vsel %vm34_vm0, %v22_v38, %v46_v41  ;;  %v57_v46 = vsel %vm33_vm1, %v21_v40, %v45_v42  ;;  %v1585_v50 = vpack.c.bf16 %v80_v44, %v79_v43  ;;  %v103_v51 = vld [vmem:[%s3142_s1 + $0x110] sm:$0xff]  ;;  %v104_v52 = vld [vmem:[%s3142_s1 + $0x118] sm:$0xff]  ;;  %v82_v54 = vld [vmem:[%s3142_s1 + $0x68] sm:$0xff] }
   0xc   :  { %1543 = vmatpush1.bf16.msra.mxu0 %v1542_v17  ;;  %v2112_v48 = vrot.slane %v58_v45, %v2098_v39  ;;  %v2115_v49 = vrot.slane %v57_v46, %v2098_v39  ;;  %v1554_v57 = vpack.c.bf16 %v104_v52, %v103_v51  ;;  %v1588_v58 = vpack.c.bf16 %v82_v54, %v81_v53  ;;  %v105_v59 = vld [vmem:[%s3142_s1 + $0x120] sm:$0xff]  ;;  %v106_v60 = vld [vmem:[%s3142_s1 + $0x128] sm:$0xff]  ;;  %v83_v61 = vld [vmem:[%s3142_s1 + $0x70] sm:$0xff] }
   0xd   :  { %1577 = vmatpush1.bf16.msra.mxu1 %v1576_v21  ;;  %1544 = vmatprep.subr.bf16.mxu0 %v1985_v3  ;;  %v84_v62 = vld [vmem:[%s3142_s1 + $0x78] sm:$0xff]  ;;  %v1557_v63 = vpack.c.bf16 %v106_v60, %v105_v59  ;;  %v107_v1 = vld [vmem:[%s3142_s1 + $0x130] sm:$0xff]  ;;  %v85_v4 = vld [vmem:[%s3142_s1 + $0x80] sm:$0xff] }
   0xe   :  { %1578 = vmatprep.subr.bf16.mxu1 %v1985_v3  ;;  %v341_v55 = vcombine.high %v2112_v48, %v2112_v48  ;;  %v428_v56 = vcombine.high %v2115_v49, %v2115_v49  ;;  %v1591_v0 = vpack.c.bf16 %v84_v62, %v83_v61  ;;  %v108_v2 = vld [vmem:[%s3142_s1 + $0x138] sm:$0xff]  ;;  %v86_v5 = vld [vmem:[%s3142_s1 + $0x88] sm:$0xff]  ;;  %v109_v9 = vld [vmem:[%s3142_s1 + $0x140] sm:$0xff] }
   0xf   :  { %v1560_v6 = vpack.c.bf16 %v108_v2, %v107_v1  ;;  %v23_v7 = vld [vmem:[%s3141_s0 + $0x8] sm:$0xf]  ;;  %v1594_v8 = vpack.c.bf16 %v86_v5, %v85_v4  ;;  %v24_v11 = vld [vmem:[%s3141_s0 + $0xc] sm:$0xf]  ;;  %v87_v12 = vld [vmem:[%s3142_s1 + $0x90] sm:$0xff] }
  0x10   :  { %1546 = vmatpush1.bf16.msra.mxu0 %v1545_v26  ;;  %1481 = vmatprep.mubr.msk.f32.mxu0 %vm343_vm2, %v341_v55  ;;  %v110_v10 = vld [vmem:[%s3142_s1 + $0x148] sm:$0xff]  ;;  %v88_v13 = vld [vmem:[%s3142_s1 + $0x98] sm:$0xff]  ;;  %v47_v14 = vmul.f32 0.1, %v23_v7  ;;  %vm35_vm3 = vcmp.gt.f32.partialorder %v23_v7, 0.0  ;;  %v111_v18 = vld [vmem:[%s3142_s1 + $0x150] sm:$0xff] }
  0x11   :  { %1580 = vmatpush1.bf16.msra.mxu1 %v1579_v30  ;;  %1547 = vmatprep.subr.bf16.mxu0 %v1985_v3  ;;  %v1563_v15 = vpack.c.bf16 %v110_v10, %v109_v9  ;;  %v48_v16 = vmul.f32 0.1, %v24_v11  ;;  %v1597_v17 = vpack.c.bf16 %v88_v13, %v87_v12  ;;  %v112_v19 = vld [vmem:[%s3142_s1 + $0x158] sm:$0x1]  ;;  %vm36_vm4 = vcmp.gt.f32.partialorder %v24_v11, 0.0  ;;  %v89_v20 = vld [vmem:[%s3142_s1 + $0xa0] sm:$0xff] }
  0x12   :  { %1581 = vmatprep.subr.bf16.mxu1 %v1985_v3  ;;  %1483 = vmatprep.mubr.msk.f32.mxu1 %vm343_vm2, %v428_v56  ;;  %v90_v21 = vld [vmem:[%s3142_s1 + $0xa8] sm:$0x1]  ;;  %v59_v22 = vsel %vm35_vm3, %v23_v7, %v47_v14  ;;  %v1566_v23 = vpack.c.bf16 %v112_v19, %v111_v18  ;;  %v113_v27 = vld [vmem:[%s3142_s1 + $0x160] sm:$0xff]  ;;  %v135_v29 = vld [vmem:[%s3142_s1 + $0x210] sm:$0xff] }
  0x13   :  { %v60_v24 = vsel %vm36_vm4, %v24_v11, %v48_v16  ;;  %v1600_v26 = vpack.c.bf16 %v90_v21, %v89_v20  ;;  %v114_v28 = vld [vmem:[%s3142_s1 + $0x168] sm:$0xff]  ;;  %v136_v30 = vld [vmem:[%s3142_s1 + $0x218] sm:$0xff]  ;;  %v2218_v31 = vrot.slane %v59_v22, %v2098_v39  ;;  %v137_v37 = vld [vmem:[%s3142_s1 + $0x220] sm:$0xff] }
  0x14   :  { %1549 = vmatpush1.bf16.msra.mxu0 %v1548_v35  ;;  %v2221_v32 = vrot.slane %v60_v24, %v2098_v39  ;;  %v1604_v33 = vpack.c.bf16 %v114_v28, %v113_v27  ;;  %v1638_v34 = vpack.c.bf16 %v136_v30, %v135_v29  ;;  %v115_v35 = vld [vmem:[%s3142_s1 + $0x170] sm:$0xff]  ;;  %v138_v38 = vld [vmem:[%s3142_s1 + $0x228] sm:$0xff]  ;;  %v117_v44 = vld [vmem:[%s3142_s1 + $0x180] sm:$0xff] }
  0x15   :  { %1583 = vmatpush1.bf16.msra.mxu1 %v1582_v36  ;;  %1550 = vmatprep.subr.bf16.mxu0 %v1985_v3  ;;  %v116_v36 = vld [vmem:[%s3142_s1 + $0x178] sm:$0xff]  ;;  %v513_v40 = vcombine.high %v2218_v31, %v2218_v31  ;;  %v1641_v43 = vpack.c.bf16 %v138_v38, %v137_v37  ;;  %v118_v45 = vld [vmem:[%s3142_s1 + $0x188] sm:$0xff]  ;;  %v139_v46 = vld [vmem:[%s3142_s1 + $0x230] sm:$0xff] }
  0x16   :  { %1584 = vmatprep.subr.bf16.mxu1 %v1985_v3  ;;  %v599_v41 = vcombine.high %v2221_v32, %v2221_v32  ;;  %v1607_v42 = vpack.c.bf16 %v116_v36, %v115_v35  ;;  %v120_v51 = vld [vmem:[%s3142_s1 + $0x198] sm:$0xff]  ;;  %v141_v52 = vld [vmem:[%s3142_s1 + $0x240] sm:$0xff]  ;;  %v142_v53 = vld [vmem:[%s3142_s1 + $0x248] sm:$0xff] }
  0x17   :  { %v1647_v55 = vpack.c.bf16 %v142_v53, %v141_v52  ;;  %v121_v56 = vld [vmem:[%s3142_s1 + $0x1a0] sm:$0xff]  ;;  %v144_v59 = vld [vmem:[%s3142_s1 + $0x258] sm:$0xff]  ;;  %v123_v62 = vld [vmem:[%s3142_s1 + $0x1b0] sm:$0xff] }
  0x18   :  { %1552 = vmatpush1.bf16.msra.mxu0 %v1551_v47  ;;  %v140_v47 = vld [vmem:[%s3142_s1 + $0x238] sm:$0xff]  ;;  %v146_v1 = vld [vmem:[%s3142_s1 + $0x268] sm:$0xff]  ;;  %v125_v5 = vld [vmem:[%s3142_s1 + $0x1c0] sm:$0xff] }
  0x19   :  { %1586 = vmatpush1.bf16.msra.mxu1 %v1585_v50  ;;  %1553 = vmatprep.subr.bf16.mxu0 %v1985_v3  ;;  %v119_v50 = vld [vmem:[%s3142_s1 + $0x190] sm:$0xff]  ;;  %v128_v12 = vld [vmem:[%s3142_s1 + $0x1d8] sm:$0xff]  ;;  %v149_v13 = vld [vmem:[%s3142_s1 + $0x280] sm:$0xff] }
  0x1a   :  { %1587 = vmatprep.subr.bf16.mxu1 %v1985_v3  ;;  %v1613_v54 = vpack.c.bf16 %v120_v51, %v119_v50  ;;  %v147_v7 = vld [vmem:[%s3142_s1 + $0x270] sm:$0xff]  ;;  %v150_v14 = vld [vmem:[%s3142_s1 + $0x288] sm:$0xff]  ;;  %v152_v20 = vld [vmem:[%s3142_s1 + $0x298] sm:$0xff] }
  0x1b   :  { %v127_v11 = vld [vmem:[%s3142_s1 + $0x1d0] sm:$0xff]  ;;  %v1659_v16 = vpack.c.bf16 %v150_v14, %v149_v13  ;;  %v130_v18 = vld [vmem:[%s3142_s1 + $0x1e8] sm:$0xff] }
  0x1c   :  { %1555 = vmatpush1.bf16.msra.mxu0 %v1554_v57  ;;  %v122_v57 = vld [vmem:[%s3142_s1 + $0x1a8] sm:$0xff]  ;;  %v151_v19 = vld [vmem:[%s3142_s1 + $0x290] sm:$0xff] }
  0x1d   :  { %1589 = vmatpush1.bf16.msra.mxu1 %v1588_v58  ;;  %1556 = vmatprep.subr.bf16.mxu0 %v1985_v3  ;;  %v143_v58 = vld [vmem:[%s3142_s1 + $0x250] sm:$0xff]  ;;  %v1616_v60 = vpack.c.bf16 %v122_v57, %v121_v56 }
  0x1e   :  { %1590 = vmatprep.subr.bf16.mxu1 %v1985_v3  ;;  %v1650_v61 = vpack.c.bf16 %v144_v59, %v143_v58 }
  0x20   :  { %1558 = vmatpush1.bf16.msra.mxu0 %v1557_v63  ;;  %v124_v63 = vld [vmem:[%s3142_s1 + $0x1b8] sm:$0xff] }
  0x21   :  { %1592 = vmatpush1.bf16.msra.mxu1 %v1591_v0  ;;  %1559 = vmatprep.subr.bf16.mxu0 %v1985_v3  ;;  %v145_v0 = vld [vmem:[%s3142_s1 + $0x260] sm:$0xff]  ;;  %v1619_v2 = vpack.c.bf16 %v124_v63, %v123_v62 }
  0x22   :  { %1593 = vmatprep.subr.bf16.mxu1 %v1985_v3  ;;  %v1653_v4 = vpack.c.bf16 %v146_v1, %v145_v0 }
  0x24   :  { %1561 = vmatpush1.bf16.msra.mxu0 %v1560_v6  ;;  %v126_v6 = vld [vmem:[%s3142_s1 + $0x1c8] sm:$0xff] }
  0x25   :  { %1595 = vmatpush1.bf16.msra.mxu1 %v1594_v8  ;;  %1562 = vmatprep.subr.bf16.mxu0 %v1985_v3  ;;  %v148_v8 = vld [vmem:[%s3142_s1 + $0x278] sm:$0xff]  ;;  %v1622_v9 = vpack.c.bf16 %v126_v6, %v125_v5 }
  0x26   :  { %1596 = vmatprep.subr.bf16.mxu1 %v1985_v3  ;;  %v1656_v10 = vpack.c.bf16 %v148_v8, %v147_v7 }
  0x28   :  { %1564 = vmatpush1.bf16.msra.mxu0 %v1563_v15  ;;  %v1625_v15 = vpack.c.bf16 %v128_v12, %v127_v11 }
  0x29   :  { %1598 = vmatpush1.bf16.msra.mxu1 %v1597_v17  ;;  %1565 = vmatprep.subr.bf16.mxu0 %v1985_v3  ;;  %v129_v17 = vld [vmem:[%s3142_s1 + $0x1e0] sm:$0xff] }
  0x2a   :  { %1599 = vmatprep.subr.bf16.mxu1 %v1985_v3 }
  0x2c   :  { %1568 = vmatpush1.bf16.msk.msra.mxu0 %vm2200_vm7, %v1566_v23 }
  0x2d   :  { %1602 = vmatpush1.bf16.msk.msra.mxu1 %vm2200_vm7, %v1600_v26  ;;  %1603 = vmatprep.subr.bf16.mxu0 %v1985_v3 }
  0x2e   :  { %1637 = vmatprep.subr.bf16.mxu1 %v1985_v3 }
  0x2f   :  { %415 = vmatmul.mubr.f32.vlgmr.msra.gmra.mrb[0].mxu0 %v2112_v48  ;;  %v1610_v48 = vpack.c.bf16 %v118_v45, %v117_v44 }
  0x30   :  { %500 = vmatmul.mubr.f32.vlgmr.msra.gmra.mrb[0].mxu1 %v2115_v49  ;;  %1605 = vmatpush1.bf16.msra.mxu0 %v1604_v33  ;;  %v1644_v49 = vpack.c.bf16 %v140_v47, %v139_v46 }
  0x31   :  { %1639 = vmatpush1.bf16.msra.mxu1 %v1638_v34  ;;  %1606 = vmatprep.subr.bf16.mxu0 %v1985_v3 }
  0x32   :  { %1640 = vmatprep.subr.bf16.mxu1 %v1985_v3  ;;  %1485 = vmatprep.mubr.msk.f32.mxu0 %vm343_vm2, %v513_v40 }
  0x33   :  { %1487 = vmatprep.mubr.msk.f32.mxu1 %vm343_vm2, %v599_v41 }
  0x34   :  { %1608 = vmatpush1.bf16.msra.mxu0 %v1607_v42 }
  0x35   :  { %1642 = vmatpush1.bf16.msra.mxu1 %v1641_v43  ;;  %1609 = vmatprep.subr.bf16.mxu0 %v1985_v3 }
  0x36   :  { %1643 = vmatprep.subr.bf16.mxu1 %v1985_v3 }
  0x38   :  { %1611 = vmatpush1.bf16.msra.mxu0 %v1610_v48 }
  0x39   :  { %1645 = vmatpush1.bf16.msra.mxu1 %v1644_v49  ;;  %1612 = vmatprep.subr.bf16.mxu0 %v1985_v3 }
  0x3a   :  { %1646 = vmatprep.subr.bf16.mxu1 %v1985_v3 }
  0x3c   :  { %1614 = vmatpush1.bf16.msra.mxu0 %v1613_v54 }
  0x3d   :  { %1648 = vmatpush1.bf16.msra.mxu1 %v1647_v55  ;;  %1615 = vmatprep.subr.bf16.mxu0 %v1985_v3 }
  0x3e   :  { %1649 = vmatprep.subr.bf16.mxu1 %v1985_v3 }
  0x40   :  { %1617 = vmatpush1.bf16.msra.mxu0 %v1616_v60 }
  0x41   :  { %1651 = vmatpush1.bf16.msra.mxu1 %v1650_v61  ;;  %1618 = vmatprep.subr.bf16.mxu0 %v1985_v3 }
  0x42   :  { %1652 = vmatprep.subr.bf16.mxu1 %v1985_v3 }
  0x44   :  { %1620 = vmatpush1.bf16.msra.mxu0 %v1619_v2 }
  0x45   :  { %1654 = vmatpush1.bf16.msra.mxu1 %v1653_v4  ;;  %1621 = vmatprep.subr.bf16.mxu0 %v1985_v3 }
  0x46   :  { %1655 = vmatprep.subr.bf16.mxu1 %v1985_v3 }
  0x48   :  { %1623 = vmatpush1.bf16.msra.mxu0 %v1622_v9 }
  0x49   :  { %1657 = vmatpush1.bf16.msra.mxu1 %v1656_v10  ;;  %1624 = vmatprep.subr.bf16.mxu0 %v1985_v3 }
  0x4a   :  { %1658 = vmatprep.subr.bf16.mxu1 %v1985_v3 }
  0x4b   :  { %10 = vsyncpa [#allocation3], 0  ;;  %v1628_v21 = vpack.c.bf16 %v130_v18, %v129_v17  ;;  %v25_v22 = vld [vmem:[%s3141_s0 + $0x10] sm:$0xf]  ;;  %v1662_v23 = vpack.c.bf16 %v152_v20, %v151_v19  ;;  %v132_v26 = vld [vmem:[%s3142_s1 + $0x1f8] sm:$0xff]  ;;  %vm1988_vm0 = vmmov 0  }
  0x4c   :  { %1626 = vmatpush1.bf16.msra.mxu0 %v1625_v15  ;;  %v131_v24 = vld [vmem:[%s3142_s1 + $0x1f0] sm:$0xff]  ;;  %v153_v28 = vld [vmem:[%s3142_s1 + $0x2a0] sm:$0xff]  ;;  %v154_v29 = vld [vmem:[%s3142_s1 + $0x2a8] sm:$0xff]  ;;  %v49_v30 = vmul.f32 0.1, %v25_v22  ;;  %vm37_vm8 = vcmp.gt.f32.partialorder %v25_v22, 0.0 }
  0x4d   :  { %1660 = vmatpush1.bf16.msra.mxu1 %v1659_v16  ;;  %1627 = vmatprep.subr.bf16.mxu0 %v1985_v3  ;;  %v26_v27 = vld [vmem:[%s3141_s0 + $0x14] sm:$0xf]  ;;  %v1631_v33 = vpack.c.bf16 %v132_v26, %v131_v24  ;;  %v1665_v35 = vpack.c.bf16 %v154_v29, %v153_v28  ;;  %v133_v36 = vld [vmem:[%s3142_s1 + $0x200] sm:$0xff]  ;;  %v134_v37 = vld [vmem:[%s3142_s1 + $0x208] sm:$0x1]  ;;  %s1990_s8 = smov [#allocation2]  }
  0x4e   :  { %1661 = vmatprep.subr.bf16.mxu1 %v1985_v3  ;;  %v50_v34 = vmul.f32 0.1, %v26_v27  ;;  %vm38_vm9 = vcmp.gt.f32.partialorder %v26_v27, 0.0  ;;  %v155_v38 = vld [vmem:[%s3142_s1 + $0x2b0] sm:$0xff]  ;;  %v156_v40 = vld [vmem:[%s3142_s1 + $0x2b8] sm:$0x1]  ;;  %v61_v41 = vsel %vm37_vm8, %v25_v22, %v49_v30  ;;  %v1634_v42 = vpack.c.bf16 %v134_v37, %v133_v36 }
  0x4f   :  { %v1668_v44 = vpack.c.bf16 %v156_v40, %v155_v38  ;;  %v157_v45 = vld [vmem:[%s3142_s1 + $0x2c0] sm:$0xff]  ;;  %v158_v46 = vld [vmem:[%s3142_s1 + $0x2c8] sm:$0xff]  ;;  %v179_v47 = vld [vmem:[%s3142_s1 + $0x370] sm:$0xff]  ;;  %v2396_v49 = vrot.slane %v61_v41, %v2098_v39  ;;  %s1472_s9 = sshll.u32 %s1990_s8, 4  ;;  %s1473_s9 = int_to_ptr.vmem [resolvable:$true] %s1472_s9 }
  0x50   :  { %1629 = vmatpush1.bf16.msra.mxu0 %v1628_v21  ;;  %v62_v43 = vsel %vm38_vm9, %v26_v27, %v50_v34  ;;  %v180_v48 = vld [vmem:[%s3142_s1 + $0x378] sm:$0xff]  ;;  %v1672_v51 = vpack.c.bf16 %v158_v46, %v157_v45  ;;  %v159_v53 = vld [vmem:[%s3142_s1 + $0x2d0] sm:$0xff]  ;;  %v181_v55 = vld [vmem:[%s3142_s1 + $0x380] sm:$0xff]  ;;  %p1966_p1 = scmp.lt.s32.totalorder %s1473_s9, %s1473_s9 }
  0x51   :  { %1663 = vmatpush1.bf16.msra.mxu1 %v1662_v23  ;;  %1630 = vmatprep.subr.bf16.mxu0 %v1985_v3  ;;  %v2399_v50 = vrot.slane %v62_v43, %v2098_v39  ;;  %v1706_v52 = vpack.c.bf16 %v180_v48, %v179_v47  ;;  %v160_v54 = vld [vmem:[%s3142_s1 + $0x2d8] sm:$0xff]  ;;  %v182_v56 = vld [vmem:[%s3142_s1 + $0x388] sm:$0xff]  ;;  %v685_v57 = vcombine.high %v2396_v49, %v2396_v49  ;;  %v161_v61 = vld [vmem:[%s3142_s1 + $0x2e0] sm:$0xff] }
  0x52   :  { %1664 = vmatprep.subr.bf16.mxu1 %v1985_v3  ;;  %v1675_v59 = vpack.c.bf16 %v160_v54, %v159_v53  ;;  %v1709_v60 = vpack.c.bf16 %v182_v56, %v181_v55  ;;  %v162_v62 = vld [vmem:[%s3142_s1 + $0x2e8] sm:$0xff]  ;;  %v163_v1 = vld [vmem:[%s3142_s1 + $0x2f0] sm:$0xff]  ;;  %v164_v2 = vld [vmem:[%s3142_s1 + $0x2f8] sm:$0xff] }
  0x53   :  { %v771_v58 = vcombine.high %v2399_v50, %v2399_v50  ;;  %v1678_v63 = vpack.c.bf16 %v162_v62, %v161_v61  ;;  %v185_v4 = vld [vmem:[%s3142_s1 + $0x3a0] sm:$0xff]  ;;  %v186_v5 = vld [vmem:[%s3142_s1 + $0x3a8] sm:$0xff]  ;;  %v1681_v6 = vpack.c.bf16 %v164_v2, %v163_v1  ;;  %v187_v10 = vld [vmem:[%s3142_s1 + $0x3b0] sm:$0xff] }
  0x54   :  { %1632 = vmatpush1.bf16.msra.mxu0 %v1631_v33  ;;  %v1715_v7 = vpack.c.bf16 %v186_v5, %v185_v4  ;;  %v165_v8 = vld [vmem:[%s3142_s1 + $0x300] sm:$0xff]  ;;  %v166_v9 = vld [vmem:[%s3142_s1 + $0x308] sm:$0xff]  ;;  %v188_v11 = vld [vmem:[%s3142_s1 + $0x3b8] sm:$0xff] }
  0x55   :  { %1666 = vmatpush1.bf16.msra.mxu1 %v1665_v35  ;;  %1633 = vmatprep.subr.bf16.mxu0 %v1985_v3  ;;  %v1684_v12 = vpack.c.bf16 %v166_v9, %v165_v8  ;;  %v1718_v13 = vpack.c.bf16 %v188_v11, %v187_v10  ;;  %v167_v14 = vld [vmem:[%s3142_s1 + $0x310] sm:$0xff]  ;;  %v168_v15 = vld [vmem:[%s3142_s1 + $0x318] sm:$0xff]  ;;  %v189_v16 = vld [vmem:[%s3142_s1 + $0x3c0] sm:$0xff] }
  0x56   :  { %1667 = vmatprep.subr.bf16.mxu1 %v1985_v3  ;;  %v190_v17 = vld [vmem:[%s3142_s1 + $0x3c8] sm:$0xff]  ;;  %v1687_v18 = vpack.c.bf16 %v168_v15, %v167_v14  ;;  %v169_v20 = vld [vmem:[%s3142_s1 + $0x320] sm:$0xff]  ;;  %v191_v22 = vld [vmem:[%s3142_s1 + $0x3d0] sm:$0xff] }
  0x57   :  { %v1721_v19 = vpack.c.bf16 %v190_v17, %v189_v16  ;;  %v170_v21 = vld [vmem:[%s3142_s1 + $0x328] sm:$0xff]  ;;  %v192_v23 = vld [vmem:[%s3142_s1 + $0x3d8] sm:$0xff]  ;;  %v171_v27 = vld [vmem:[%s3142_s1 + $0x330] sm:$0xff] }
  0x58   :  { %1636 = vmatpush1.bf16.msk.msra.mxu0 %vm2200_vm7, %v1634_v42  ;;  %v1690_v24 = vpack.c.bf16 %v170_v21, %v169_v20  ;;  %v1724_v26 = vpack.c.bf16 %v192_v23, %v191_v22  ;;  %v172_v28 = vld [vmem:[%s3142_s1 + $0x338] sm:$0xff]  ;;  %v193_v29 = vld [vmem:[%s3142_s1 + $0x3e0] sm:$0xff]  ;;  %v194_v30 = vld [vmem:[%s3142_s1 + $0x3e8] sm:$0xff] }
  0x59   :  { %1670 = vmatpush1.bf16.msk.msra.mxu1 %vm2200_vm7, %v1668_v44  ;;  %1671 = vmatprep.subr.bf16.mxu0 %v1985_v3  ;;  %v1693_v33 = vpack.c.bf16 %v172_v28, %v171_v27  ;;  %v1727_v34 = vpack.c.bf16 %v194_v30, %v193_v29  ;;  %v173_v35 = vld [vmem:[%s3142_s1 + $0x340] sm:$0xff]  ;;  %v174_v36 = vld [vmem:[%s3142_s1 + $0x348] sm:$0xff]  ;;  %v195_v37 = vld [vmem:[%s3142_s1 + $0x3f0] sm:$0xff] }
  0x5a   :  { %1705 = vmatprep.subr.bf16.mxu1 %v1985_v3  ;;  %v196_v38 = vld [vmem:[%s3142_s1 + $0x3f8] sm:$0xff]  ;;  %v1696_v40 = vpack.c.bf16 %v174_v36, %v173_v35  ;;  %v175_v43 = vld [vmem:[%s3142_s1 + $0x350] sm:$0xff]  ;;  %v197_v46 = vld [vmem:[%s3142_s1 + $0x400] sm:$0xff] }
  0x5b   :  { %585 = vmatmul.mubr.f32.vlgmr.msra.gmra.mrb[2].mxu0 %v2218_v31  ;;  %v183_v31 = vld [vmem:[%s3142_s1 + $0x390] sm:$0xff]  ;;  %v27_v41 = vld [vmem:[%s3141_s0 + $0x18] sm:$0xf]  ;;  %v1730_v42 = vpack.c.bf16 %v196_v38, %v195_v37  ;;  %v28_v45 = vld [vmem:[%s3141_s0 + $0x1c] sm:$0xf] }
  0x5c   :  { %1673 = vmatpush1.bf16.msra.mxu0 %v1672_v51  ;;  %671 = vmatmul.mubr.f32.vlgmr.msra.gmra.mrb[2].mxu1 %v2221_v32  ;;  %v184_v32 = vld [vmem:[%s3142_s1 + $0x398] sm:$0xff]  ;;  %v198_v47 = vld [vmem:[%s3142_s1 + $0x408] sm:$0xff]  ;;  %v51_v48 = vmul.f32 0.1, %v27_v41  ;;  %vm39_vm10 = vcmp.gt.f32.partialorder %v27_v41, 0.0  ;;  %v177_v54 = vld [vmem:[%s3142_s1 + $0x360] sm:$0xff] }
  0x5d   :  { %1707 = vmatpush1.bf16.msra.mxu1 %v1706_v52  ;;  %1674 = vmatprep.subr.bf16.mxu0 %v1985_v3  ;;  %v1712_v0 = vpack.c.bf16 %v184_v32, %v183_v31  ;;  %v176_v44 = vld [vmem:[%s3142_s1 + $0x358] sm:$0xff]  ;;  %v52_v52 = vmul.f32 0.1, %v28_v45  ;;  %v1733_v53 = vpack.c.bf16 %v198_v47, %v197_v46  ;;  %v178_v55 = vld [vmem:[%s3142_s1 + $0x368] sm:$0x1]  ;;  %vm40_vm11 = vcmp.gt.f32.partialorder %v28_v45, 0.0 }
  0x5e   :  { %1708 = vmatprep.subr.bf16.mxu1 %v1985_v3  ;;  %1489 = vmatprep.mubr.msk.f32.mxu0 %vm343_vm2, %v685_v57  ;;  %v1699_v51 = vpack.c.bf16 %v176_v44, %v175_v43  ;;  %v199_v56 = vld [vmem:[%s3142_s1 + $0x410] sm:$0xff]  ;;  %v200_v57 = vld [vmem:[%s3142_s1 + $0x418] sm:$0x1]  ;;  %v201_v62 = vld [vmem:[%s3142_s1 + $0x420] sm:$0xff] }
  0x5f   :  { %1491 = vmatprep.mubr.msk.f32.mxu1 %vm343_vm2, %v771_v58  ;;  %v63_v58 = vsel %vm39_vm10, %v27_v41, %v51_v48  ;;  %v1736_v61 = vpack.c.bf16 %v200_v57, %v199_v56  ;;  %v202_v31 = vld [vmem:[%s3142_s1 + $0x428] sm:$0xff]  ;;  %v223_v32 = vld [vmem:[%s3142_s1 + $0x4d0] sm:$0xff]  ;;  %v209_v23 = vld [vmem:[%s3142_s1 + $0x460] sm:$0xff] }
  0x60   :  { %1676 = vmatpush1.bf16.msra.mxu0 %v1675_v59  ;;  %v1702_v59 = vpack.c.bf16 %v178_v55, %v177_v54  ;;  %v1740_v2 = vpack.c.bf16 %v202_v31, %v201_v62  ;;  %v203_v5 = vld [vmem:[%s3142_s1 + $0x430] sm:$0xff]  ;;  %v226_v8 = vld [vmem:[%s3142_s1 + $0x4e8] sm:$0xff]  ;;  %v232_v27 = vld [vmem:[%s3142_s1 + $0x518] sm:$0xff] }
  0x61   :  { %1710 = vmatpush1.bf16.msra.mxu1 %v1709_v60  ;;  %1677 = vmatprep.subr.bf16.mxu0 %v1985_v3  ;;  %v64_v60 = vsel %vm40_vm11, %v28_v45, %v52_v52  ;;  %v206_v14 = vld [vmem:[%s3142_s1 + $0x448] sm:$0xff]  ;;  %v207_v17 = vld [vmem:[%s3142_s1 + $0x450] sm:$0xff]  ;;  %v213_v38 = vld [vmem:[%s3142_s1 + $0x480] sm:$0xff] }
  0x62   :  { %1711 = vmatprep.subr.bf16.mxu1 %v1985_v3  ;;  %v2577_v1 = vrot.slane %v64_v60, %v2098_v39  ;;  %v230_v20 = vld [vmem:[%s3142_s1 + $0x508] sm:$0xff]  ;;  %v211_v30 = vld [vmem:[%s3142_s1 + $0x470] sm:$0xff]  ;;  %v216_v46 = vld [vmem:[%s3142_s1 + $0x498] sm:$0xff] }
  0x63   :  { %v234_v35 = vld [vmem:[%s3142_s1 + $0x528] sm:$0xff]  ;;  %v235_v41 = vld [vmem:[%s3142_s1 + $0x530] sm:$0xff]  ;;  %v237_v47 = vld [vmem:[%s3142_s1 + $0x540] sm:$0xff] }
  0x64   :  { %1679 = vmatpush1.bf16.msra.mxu0 %v1678_v63  ;;  %v224_v63 = vld [vmem:[%s3142_s1 + $0x4d8] sm:$0xff]  ;;  %v943_v10 = vcombine.high %v2577_v1, %v2577_v1  ;;  %v215_v45 = vld [vmem:[%s3142_s1 + $0x490] sm:$0xff]  ;;  %v238_v48 = vld [vmem:[%s3142_s1 + $0x548] sm:$0xff] }
  0x65   :  { %1713 = vmatpush1.bf16.msra.mxu1 %v1712_v0  ;;  %1680 = vmatprep.subr.bf16.mxu0 %v1985_v3  ;;  %v2574_v0 = vrot.slane %v63_v58, %v2098_v39  ;;  %v1774_v4 = vpack.c.bf16 %v224_v63, %v223_v32  ;;  %v1795_v52 = vpack.c.bf16 %v238_v48, %v237_v47  ;;  %v218_v54 = vld [vmem:[%s3142_s1 + $0x4a8] sm:$0xff]  ;;  %v239_v55 = vld [vmem:[%s3142_s1 + $0x550] sm:$0xff]  ;;  %v240_v56 = vld [vmem:[%s3142_s1 + $0x558] sm:$0xff] }
  0x66   :  { %1714 = vmatprep.subr.bf16.mxu1 %v1985_v3  ;;  %v29_v58 = vld [vmem:[%s3141_s0 + $0x20] sm:$0xf]  ;;  %v219_v60 = vld [vmem:[%s3142_s1 + $0x4b0] sm:$0xff]  ;;  %v30_v62 = vld [vmem:[%s3141_s0 + $0x24] sm:$0xf] }
  0x67   :  { %v857_v9 = vcombine.high %v2574_v0, %v2574_v0  ;;  %v241_v31 = vld [vmem:[%s3142_s1 + $0x560] sm:$0xff]  ;;  %v242_v32 = vld [vmem:[%s3142_s1 + $0x568] sm:$0xff]  ;;  %v53_v63 = vmul.f32 0.1, %v29_v58  ;;  %vm41_vm12 = vcmp.gt.f32.partialorder %v29_v58, 0.0  ;;  %vm42_vm13 = vcmp.gt.f32.partialorder %v30_v62, 0.0 }
  0x68   :  { %1682 = vmatpush1.bf16.msra.mxu0 %v1681_v6  ;;  %v204_v6 = vld [vmem:[%s3142_s1 + $0x438] sm:$0xff]  ;;  %v255_v48 = vld [vmem:[%s3142_s1 + $0x5d0] sm:$0xff]  ;;  %v1377_v25 = vld [vmem:[%s3144_s3 + $0x8] sm:$0xff] }
  0x69   :  { %1716 = vmatpush1.bf16.msra.mxu1 %v1715_v7  ;;  %1683 = vmatprep.subr.bf16.mxu0 %v1985_v3  ;;  %v225_v7 = vld [vmem:[%s3142_s1 + $0x4e0] sm:$0xff]  ;;  %v1743_v11 = vpack.c.bf16 %v204_v6, %v203_v5  ;;  %v1801_v5 = vpack.c.bf16 %v242_v32, %v241_v31  ;;  %v260_v31 = vld [vmem:[%s3142_s1 + $0x5f8] sm:$0xff] }
  0x6a   :  { %1717 = vmatprep.subr.bf16.mxu1 %v1985_v3  ;;  %v221_v6 = vld [vmem:[%s3142_s1 + $0x4c0] sm:$0xff] }
  0x6b   :  { %v281_v32 = vld [vmem:[%s3142_s1 + $0x6a0] sm:$0xff] }
  0x6c   :  { %1685 = vmatpush1.bf16.msra.mxu0 %v1684_v12  ;;  %v1777_v12 = vpack.c.bf16 %v226_v8, %v225_v7  ;;  %v222_v7 = vld [vmem:[%s3142_s1 + $0x4c8] sm:$0x1]  ;;  %v243_v8 = vld [vmem:[%s3142_s1 + $0x570] sm:$0xff] }
  0x6d   :  { %1719 = vmatpush1.bf16.msra.mxu1 %v1718_v13  ;;  %1686 = vmatprep.subr.bf16.mxu0 %v1985_v3  ;;  %v205_v13 = vld [vmem:[%s3142_s1 + $0x440] sm:$0xff] }
  0x6e   :  { %1720 = vmatprep.subr.bf16.mxu1 %v1985_v3  ;;  %v1746_v15 = vpack.c.bf16 %v206_v14, %v205_v13  ;;  %v245_v14 = vld [vmem:[%s3142_s1 + $0x580] sm:$0xff] }
  0x70   :  { %1688 = vmatpush1.bf16.msra.mxu0 %v1687_v18  ;;  %v208_v18 = vld [vmem:[%s3142_s1 + $0x458] sm:$0xff] }
  0x71   :  { %1722 = vmatpush1.bf16.msra.mxu1 %v1721_v19  ;;  %1689 = vmatprep.subr.bf16.mxu0 %v1985_v3  ;;  %v229_v19 = vld [vmem:[%s3142_s1 + $0x500] sm:$0xff]  ;;  %v1749_v21 = vpack.c.bf16 %v208_v18, %v207_v17 }
  0x72   :  { %1723 = vmatprep.subr.bf16.mxu1 %v1985_v3  ;;  %v1783_v22 = vpack.c.bf16 %v230_v20, %v229_v19  ;;  %v247_v20 = vld [vmem:[%s3142_s1 + $0x590] sm:$0xff] }
  0x74   :  { %1691 = vmatpush1.bf16.msra.mxu0 %v1690_v24  ;;  %v210_v24 = vld [vmem:[%s3142_s1 + $0x468] sm:$0xff] }
  0x75   :  { %1725 = vmatpush1.bf16.msra.mxu1 %v1724_v26  ;;  %1692 = vmatprep.subr.bf16.mxu0 %v1985_v3  ;;  %v231_v26 = vld [vmem:[%s3142_s1 + $0x510] sm:$0xff]  ;;  %v1752_v28 = vpack.c.bf16 %v210_v24, %v209_v23  ;;  %v270_v23 = vld [vmem:[%s3142_s1 + $0x648] sm:$0xff] }
  0x76   :  { %1726 = vmatprep.subr.bf16.mxu1 %v1985_v3  ;;  %v1786_v29 = vpack.c.bf16 %v232_v27, %v231_v26 }
  0x78   :  { %1694 = vmatpush1.bf16.msra.mxu0 %v1693_v33  ;;  %v212_v33 = vld [vmem:[%s3142_s1 + $0x478] sm:$0xff] }
  0x79   :  { %1728 = vmatpush1.bf16.msra.mxu1 %v1727_v34  ;;  %1695 = vmatprep.subr.bf16.mxu0 %v1985_v3  ;;  %v233_v34 = vld [vmem:[%s3142_s1 + $0x520] sm:$0xff]  ;;  %v1755_v36 = vpack.c.bf16 %v212_v33, %v211_v30  ;;  %v250_v30 = vld [vmem:[%s3142_s1 + $0x5a8] sm:$0xff] }
  0x7a   :  { %1729 = vmatprep.subr.bf16.mxu1 %v1985_v3  ;;  %v1789_v37 = vpack.c.bf16 %v234_v35, %v233_v34  ;;  %v251_v35 = vld [vmem:[%s3142_s1 + $0x5b0] sm:$0xff] }
  0x7c   :  { %1697 = vmatpush1.bf16.msra.mxu0 %v1696_v40  ;;  %v214_v40 = vld [vmem:[%s3142_s1 + $0x488] sm:$0xff] }
  0x7d   :  { %1731 = vmatpush1.bf16.msra.mxu1 %v1730_v42  ;;  %1698 = vmatprep.subr.bf16.mxu0 %v1985_v3  ;;  %v236_v42 = vld [vmem:[%s3142_s1 + $0x538] sm:$0xff]  ;;  %v1758_v43 = vpack.c.bf16 %v214_v40, %v213_v38  ;;  %v274_v38 = vld [vmem:[%s3142_s1 + $0x668] sm:$0xff] }
  0x7e   :  { %1732 = vmatprep.subr.bf16.mxu1 %v1985_v3  ;;  %v1792_v44 = vpack.c.bf16 %v236_v42, %v235_v41  ;;  %v253_v42 = vld [vmem:[%s3142_s1 + $0x5c0] sm:$0xff] }
  0x80   :  { %1700 = vmatpush1.bf16.msra.mxu0 %v1699_v51  ;;  %v1761_v51 = vpack.c.bf16 %v216_v46, %v215_v45  ;;  %v276_v45 = vld [vmem:[%s3142_s1 + $0x678] sm:$0xff] }
  0x81   :  { %1734 = vmatpush1.bf16.msra.mxu1 %v1733_v53  ;;  %1701 = vmatprep.subr.bf16.mxu0 %v1985_v3  ;;  %v217_v53 = vld [vmem:[%s3142_s1 + $0x4a0] sm:$0xff] }
  0x82   :  { %1735 = vmatprep.subr.bf16.mxu1 %v1985_v3  ;;  %v1764_v57 = vpack.c.bf16 %v218_v54, %v217_v53  ;;  %v278_v53 = vld [vmem:[%s3142_s1 + $0x688] sm:$0xff] }
  0x84   :  { %1704 = vmatpush1.bf16.msk.msra.mxu0 %vm2200_vm7, %v1702_v59  ;;  %v1798_v59 = vpack.c.bf16 %v240_v56, %v239_v55  ;;  %v257_v56 = vld [vmem:[%s3142_s1 + $0x5e0] sm:$0xff] }
  0x85   :  { %1738 = vmatpush1.bf16.msk.msra.mxu1 %vm2200_vm7, %v1736_v61  ;;  %1739 = vmatprep.subr.bf16.mxu0 %v1985_v3  ;;  %v220_v61 = vld [vmem:[%s3142_s1 + $0x4b8] sm:$0xff] }
  0x86   :  { %1773 = vmatprep.subr.bf16.mxu1 %v1985_v3 }
  0x87   :  { %757 = vmatmul.mubr.f32.vlgmr.msra.gmra.mrb[4].mxu0 %v2396_v49  ;;  %v227_v49 = vld [vmem:[%s3142_s1 + $0x4f0] sm:$0xff] }
  0x88   :  { %1741 = vmatpush1.bf16.msra.mxu0 %v1740_v2  ;;  %843 = vmatmul.mubr.f32.vlgmr.msra.gmra.mrb[4].mxu1 %v2399_v50  ;;  %v228_v50 = vld [vmem:[%s3142_s1 + $0x4f8] sm:$0xff]  ;;  %v1767_v2 = vpack.c.bf16 %v220_v61, %v219_v60 }
  0x89   :  { %1775 = vmatpush1.bf16.msra.mxu1 %v1774_v4  ;;  %1742 = vmatprep.subr.bf16.mxu0 %v1985_v3  ;;  %v1780_v16 = vpack.c.bf16 %v228_v50, %v227_v49  ;;  %v54_v4 = vmul.f32 0.1, %v30_v62  ;;  %v246_v49 = vld [vmem:[%s3142_s1 + $0x588] sm:$0xff]  ;;  %v267_v50 = vld [vmem:[%s3142_s1 + $0x630] sm:$0xff] }
  0x8a   :  { %1776 = vmatprep.subr.bf16.mxu1 %v1985_v3  ;;  %1493 = vmatprep.mubr.msk.f32.mxu0 %vm343_vm2, %v857_v9  ;;  %v244_v9 = vld [vmem:[%s3142_s1 + $0x578] sm:$0x1]  ;;  %v1808_v18 = vpack.c.bf16 %v246_v49, %v245_v14  ;;  %v32_v14 = vld [vmem:[%s3141_s0 + $0x2c] sm:$0xf]  ;;  %v285_v49 = vld [vmem:[%s3142_s1 + $0x6c0] sm:$0xff] }
  0x8b   :  { %1495 = vmatprep.mubr.msk.f32.mxu1 %vm343_vm2, %v943_v10  ;;  %v65_v10 = vsel %vm41_vm12, %v29_v58, %v53_v63  ;;  %v1804_v13 = vpack.c.bf16 %v244_v9, %v243_v8  ;;  %v279_v58 = vld [vmem:[%s3142_s1 + $0x690] sm:$0xff]  ;;  %v282_v63 = vld [vmem:[%s3142_s1 + $0x6a8] sm:$0xff]  ;;  %v284_v8 = vld [vmem:[%s3142_s1 + $0x6b8] sm:$0xff]  ;;  %vm44_vm15 = vcmp.gt.f32.partialorder %v32_v14, 0.0 }
  0x8c   :  { %1744 = vmatpush1.bf16.msra.mxu0 %v1743_v11  ;;  %v1770_v11 = vpack.c.bf16 %v222_v7, %v221_v6  ;;  %v262_v6 = vld [vmem:[%s3142_s1 + $0x608] sm:$0xff]  ;;  %v283_v7 = vld [vmem:[%s3142_s1 + $0x6b0] sm:$0xff] }
  0x8d   :  { %1778 = vmatpush1.bf16.msra.mxu1 %v1777_v12  ;;  %1745 = vmatprep.subr.bf16.mxu0 %v1985_v3  ;;  %v66_v12 = vsel %vm42_vm13, %v30_v62, %v54_v4  ;;  %v259_v62 = vld [vmem:[%s3142_s1 + $0x5f0] sm:$0xff]  ;;  %v1863_v4 = vpack.c.bf16 %v282_v63, %v281_v32  ;;  %v300_v63 = vld [vmem:[%s3142_s1 + $0x738] sm:$0xff] }
  0x8e   :  { %1779 = vmatprep.subr.bf16.mxu1 %v1985_v3  ;;  %v2755_v17 = vrot.slane %v66_v12, %v2098_v39  ;;  %v263_v12 = vld [vmem:[%s3142_s1 + $0x610] sm:$0xff] }
  0x8f   :  { %v299_v32 = vld [vmem:[%s3142_s1 + $0x730] sm:$0xff] }
  0x90   :  { %1747 = vmatpush1.bf16.msra.mxu0 %v1746_v15  ;;  %v268_v15 = vld [vmem:[%s3142_s1 + $0x638] sm:$0xff]  ;;  %v1115_v26 = vcombine.high %v2755_v17, %v2755_v17 }
  0x91   :  { %1781 = vmatpush1.bf16.msra.mxu1 %v1780_v16  ;;  %1748 = vmatprep.subr.bf16.mxu0 %v1985_v3  ;;  %v2752_v16 = vrot.slane %v65_v10, %v2098_v39  ;;  %v1842_v19 = vpack.c.bf16 %v268_v15, %v267_v50  ;;  %v31_v10 = vld [vmem:[%s3141_s0 + $0x28] sm:$0xf] }
  0x92   :  { %1782 = vmatprep.subr.bf16.mxu1 %v1985_v3  ;;  %v286_v50 = vld [vmem:[%s3142_s1 + $0x6c8] sm:$0xff]  ;;  %v55_v15 = vmul.f32 0.1, %v31_v10  ;;  %vm43_vm14 = vcmp.gt.f32.partialorder %v31_v10, 0.0 }
  0x93   :  { %v1029_v24 = vcombine.high %v2752_v16, %v2752_v16 }
  0x94   :  { %1750 = vmatpush1.bf16.msra.mxu0 %v1749_v21  ;;  %v248_v21 = vld [vmem:[%s3142_s1 + $0x598] sm:$0xff] }
  0x95   :  { %1784 = vmatpush1.bf16.msra.mxu1 %v1783_v22  ;;  %1751 = vmatprep.subr.bf16.mxu0 %v1985_v3  ;;  %v269_v22 = vld [vmem:[%s3142_s1 + $0x640] sm:$0xff]  ;;  %v1811_v27 = vpack.c.bf16 %v248_v21, %v247_v20  ;;  %v1869_v20 = vpack.c.bf16 %v286_v50, %v285_v49  ;;  %v326_v50 = vld [vmem:[%s3142_s1 + $0x808] sm:$0xff] }
  0x96   :  { %1785 = vmatprep.subr.bf16.mxu1 %v1985_v3  ;;  %v265_v21 = vld [vmem:[%s3142_s1 + $0x620] sm:$0xff] }
  0x97   :  { %v325_v49 = vld [vmem:[%s3142_s1 + $0x800] sm:$0xff] }
  0x98   :  { %1753 = vmatpush1.bf16.msra.mxu0 %v1752_v28  ;;  %v1845_v28 = vpack.c.bf16 %v270_v23, %v269_v22  ;;  %v266_v22 = vld [vmem:[%s3142_s1 + $0x628] sm:$0x1]  ;;  %v287_v23 = vld [vmem:[%s3142_s1 + $0x6d0] sm:$0xff] }
  0x99   :  { %1787 = vmatpush1.bf16.msra.mxu1 %v1786_v29  ;;  %1754 = vmatprep.subr.bf16.mxu0 %v1985_v3  ;;  %v249_v29 = vld [vmem:[%s3142_s1 + $0x5a0] sm:$0xff] }
  0x9a   :  { %1788 = vmatprep.subr.bf16.mxu1 %v1985_v3  ;;  %v1814_v33 = vpack.c.bf16 %v250_v30, %v249_v29  ;;  %v289_v30 = vld [vmem:[%s3142_s1 + $0x6e0] sm:$0xff] }
  0x9c   :  { %1756 = vmatpush1.bf16.msra.mxu0 %v1755_v36  ;;  %v252_v36 = vld [vmem:[%s3142_s1 + $0x5b8] sm:$0xff] }
  0x9d   :  { %1790 = vmatpush1.bf16.msra.mxu1 %v1789_v37  ;;  %1757 = vmatprep.subr.bf16.mxu0 %v1985_v3  ;;  %v273_v37 = vld [vmem:[%s3142_s1 + $0x660] sm:$0xff]  ;;  %v1817_v40 = vpack.c.bf16 %v252_v36, %v251_v35 }
  0x9e   :  { %1791 = vmatprep.subr.bf16.mxu1 %v1985_v3  ;;  %v1851_v41 = vpack.c.bf16 %v274_v38, %v273_v37  ;;  %v291_v38 = vld [vmem:[%s3142_s1 + $0x6f0] sm:$0xff] }
  0xa0   :  { %1759 = vmatpush1.bf16.msra.mxu0 %v1758_v43  ;;  %v254_v43 = vld [vmem:[%s3142_s1 + $0x5c8] sm:$0xff] }
  0xa1   :  { %1793 = vmatpush1.bf16.msra.mxu1 %v1792_v44  ;;  %1760 = vmatprep.subr.bf16.mxu0 %v1985_v3  ;;  %v275_v44 = vld [vmem:[%s3142_s1 + $0x670] sm:$0xff]  ;;  %v1820_v46 = vpack.c.bf16 %v254_v43, %v253_v42 }
  0xa2   :  { %1794 = vmatprep.subr.bf16.mxu1 %v1985_v3  ;;  %v1854_v47 = vpack.c.bf16 %v276_v45, %v275_v44 }
  0xa4   :  { %1762 = vmatpush1.bf16.msra.mxu0 %v1761_v51  ;;  %v256_v51 = vld [vmem:[%s3142_s1 + $0x5d8] sm:$0xff] }
  0xa5   :  { %1796 = vmatpush1.bf16.msra.mxu1 %v1795_v52  ;;  %1763 = vmatprep.subr.bf16.mxu0 %v1985_v3  ;;  %v277_v52 = vld [vmem:[%s3142_s1 + $0x680] sm:$0xff]  ;;  %v1823_v54 = vpack.c.bf16 %v256_v51, %v255_v48 }
  0xa6   :  { %1797 = vmatprep.subr.bf16.mxu1 %v1985_v3  ;;  %v1857_v55 = vpack.c.bf16 %v278_v53, %v277_v52  ;;  %v295_v52 = vld [vmem:[%s3142_s1 + $0x710] sm:$0xff]  ;;  %v296_v53 = vld [vmem:[%s3142_s1 + $0x718] sm:$0xff] }
  0xa8   :  { %1765 = vmatpush1.bf16.msra.mxu0 %v1764_v57  ;;  %v258_v57 = vld [vmem:[%s3142_s1 + $0x5e8] sm:$0xff] }
  0xa9   :  { %1799 = vmatpush1.bf16.msra.mxu1 %v1798_v59  ;;  %1766 = vmatprep.subr.bf16.mxu0 %v1985_v3  ;;  %v280_v59 = vld [vmem:[%s3142_s1 + $0x698] sm:$0xff]  ;;  %v1826_v60 = vpack.c.bf16 %v258_v57, %v257_v56  ;;  %v1885_v56 = vpack.c.bf16 %v296_v53, %v295_v52 }
  0xaa   :  { %1800 = vmatprep.subr.bf16.mxu1 %v1985_v3  ;;  %v1860_v61 = vpack.c.bf16 %v280_v59, %v279_v58  ;;  %v297_v58 = vld [vmem:[%s3142_s1 + $0x720] sm:$0xff]  ;;  %v298_v59 = vld [vmem:[%s3142_s1 + $0x728] sm:$0xff] }
  0xac   :  { %1768 = vmatpush1.bf16.msra.mxu0 %v1767_v2  ;;  %v1829_v2 = vpack.c.bf16 %v260_v31, %v259_v62  ;;  %v1888_v62 = vpack.c.bf16 %v298_v59, %v297_v58 }
  0xad   :  { %1802 = vmatpush1.bf16.msra.mxu1 %v1801_v5  ;;  %1769 = vmatprep.subr.bf16.mxu0 %v1985_v3  ;;  %v261_v5 = vld [vmem:[%s3142_s1 + $0x600] sm:$0xff] }
  0xae   :  { %1803 = vmatprep.subr.bf16.mxu1 %v1985_v3  ;;  %v1832_v9 = vpack.c.bf16 %v262_v6, %v261_v5  ;;  %v1891_v5 = vpack.c.bf16 %v300_v63, %v299_v32  ;;  %v1383_v32 = vld [vmem:[%s3144_s3 + $0x38] sm:$0xff] }
  0xb0   :  { %1772 = vmatpush1.bf16.msk.msra.mxu0 %vm2200_vm7, %v1770_v11  ;;  %v1866_v11 = vpack.c.bf16 %v284_v8, %v283_v7  ;;  %v301_v7 = vld [vmem:[%s3142_s1 + $0x740] sm:$0xff]  ;;  %v302_v8 = vld [vmem:[%s3142_s1 + $0x748] sm:$0xff] }
  0xb1   :  { %1806 = vmatpush1.bf16.msk.msra.mxu1 %vm2200_vm7, %v1804_v13  ;;  %1807 = vmatprep.subr.bf16.mxu0 %v1985_v3  ;;  %v264_v13 = vld [vmem:[%s3142_s1 + $0x618] sm:$0xff] }
  0xb2   :  { %1841 = vmatprep.subr.bf16.mxu1 %v1985_v3 }
  0xb3   :  { %929 = vmatmul.mubr.f32.vlgmr.msra.gmra.mrb[6].mxu0 %v2574_v0  ;;  %v271_v0 = vld [vmem:[%s3142_s1 + $0x650] sm:$0xff] }
  0xb4   :  { %1809 = vmatpush1.bf16.msra.mxu0 %v1808_v18  ;;  %1015 = vmatmul.mubr.f32.vlgmr.msra.gmra.mrb[6].mxu1 %v2577_v1  ;;  %v272_v1 = vld [vmem:[%s3142_s1 + $0x658] sm:$0xff]  ;;  %v1835_v18 = vpack.c.bf16 %v264_v13, %v263_v12  ;;  %v303_v13 = vld [vmem:[%s3142_s1 + $0x750] sm:$0xff] }
  0xb5   :  { %1843 = vmatpush1.bf16.msra.mxu1 %v1842_v19  ;;  %1810 = vmatprep.subr.bf16.mxu0 %v1985_v3  ;;  %v1848_v34 = vpack.c.bf16 %v272_v1, %v271_v0  ;;  %v56_v19 = vmul.f32 0.1, %v32_v14  ;;  %v290_v0 = vld [vmem:[%s3142_s1 + $0x6e8] sm:$0xff]  ;;  %v311_v1 = vld [vmem:[%s3142_s1 + $0x790] sm:$0xff] }
  0xb6   :  { %1844 = vmatprep.subr.bf16.mxu1 %v1985_v3  ;;  %1497 = vmatprep.mubr.msk.f32.mxu0 %vm343_vm2, %v1029_v24  ;;  %v288_v24 = vld [vmem:[%s3142_s1 + $0x6d8] sm:$0x1]  ;;  %v1876_v36 = vpack.c.bf16 %v290_v0, %v289_v30 }
  0xb7   :  { %1499 = vmatprep.mubr.msk.f32.mxu1 %vm343_vm2, %v1115_v26  ;;  %v67_v26 = vsel %vm43_vm14, %v31_v10, %v55_v15  ;;  %v1872_v29 = vpack.c.bf16 %v288_v24, %v287_v23  ;;  %v324_v10 = vld [vmem:[%s3142_s1 + $0x7f8] sm:$0xff] }
  0xb8   :  { %1812 = vmatpush1.bf16.msra.mxu0 %v1811_v27  ;;  %v1838_v27 = vpack.c.bf16 %v266_v22, %v265_v21  ;;  %v327_v21 = vld [vmem:[%s3142_s1 + $0x810] sm:$0xff]  ;;  %v328_v22 = vld [vmem:[%s3142_s1 + $0x818] sm:$0xff] }
  0xb9   :  { %1846 = vmatpush1.bf16.msra.mxu1 %v1845_v28  ;;  %1813 = vmatprep.subr.bf16.mxu0 %v1985_v3  ;;  %v68_v28 = vsel %vm44_vm15, %v32_v14, %v56_v19  ;;  %v304_v14 = vld [vmem:[%s3142_s1 + $0x758] sm:$0xff]  ;;  %v305_v19 = vld [vmem:[%s3142_s1 + $0x760] sm:$0xff]  ;;  %v1934_v24 = vpack.c.bf16 %v328_v22, %v327_v21 }
  0xba   :  { %1847 = vmatprep.subr.bf16.mxu1 %v1985_v3  ;;  %v2933_v35 = vrot.slane %v68_v28, %v2098_v39  ;;  %v1897_v15 = vpack.c.bf16 %v304_v14, %v303_v13  ;;  %v329_v28 = vld [vmem:[%s3142_s1 + $0x820] sm:$0xff] }
  0xbc   :  { %1815 = vmatpush1.bf16.msra.mxu0 %v1814_v33  ;;  %v312_v33 = vld [vmem:[%s3142_s1 + $0x798] sm:$0xff]  ;;  %v1287_v43 = vcombine.high %v2933_v35, %v2933_v35 }
  0xbd   :  { %1849 = vmatpush1.bf16.msra.mxu1 %v1848_v34  ;;  %1816 = vmatprep.subr.bf16.mxu0 %v1985_v3  ;;  %v2930_v34 = vrot.slane %v67_v26, %v2098_v39  ;;  %v1910_v37 = vpack.c.bf16 %v312_v33, %v311_v1  ;;  %v313_v39 = vld [vmem:[%s3142_s1 + $0x7a0] sm:$0xff]  ;;  %v307_v26 = vld [vmem:[%s3142_s1 + $0x770] sm:$0xff]  ;;  %v310_v33 = vld [vmem:[%s3142_s1 + $0x788] sm:$0x1] }
  0xbe   :  { %1850 = vmatprep.subr.bf16.mxu1 %v1985_v3  ;;  %v309_v1 = vld [vmem:[%s3142_s1 + $0x780] sm:$0xff] }
  0xbf   :  { %v1201_v42 = vcombine.high %v2930_v34, %v2930_v34 }
  0xc0   :  { %1818 = vmatpush1.bf16.msra.mxu0 %v1817_v40  ;;  %v292_v40 = vld [vmem:[%s3142_s1 + $0x6f8] sm:$0xff] }
  0xc1   :  { %1852 = vmatpush1.bf16.msra.mxu1 %v1851_v41  ;;  %1819 = vmatprep.subr.bf16.mxu0 %v1985_v3  ;;  %v314_v41 = vld [vmem:[%s3142_s1 + $0x7a8] sm:$0xff]  ;;  %v1879_v44 = vpack.c.bf16 %v292_v40, %v291_v38  ;;  %v332_v38 = vld [vmem:[%s3142_s1 + $0x838] sm:$0x1] }
  0xc2   :  { %1853 = vmatprep.subr.bf16.mxu1 %v1985_v3  ;;  %v1913_v45 = vpack.c.bf16 %v314_v41, %v313_v39 }
  0xc4   :  { %1821 = vmatpush1.bf16.msra.mxu0 %v1820_v46  ;;  %v293_v46 = vld [vmem:[%s3142_s1 + $0x700] sm:$0xff] }
  0xc5   :  { %1855 = vmatpush1.bf16.msra.mxu1 %v1854_v47  ;;  %1822 = vmatprep.subr.bf16.mxu0 %v1985_v3  ;;  %v294_v47 = vld [vmem:[%s3142_s1 + $0x708] sm:$0xff] }
  0xc6   :  { %1856 = vmatprep.subr.bf16.mxu1 %v1985_v3  ;;  %v1882_v48 = vpack.c.bf16 %v294_v47, %v293_v46 }
  0xc8   :  { %1824 = vmatpush1.bf16.msra.mxu0 %v1823_v54  ;;  %v317_v54 = vld [vmem:[%s3142_s1 + $0x7c0] sm:$0xff] }
  0xc9   :  { %1858 = vmatpush1.bf16.msra.mxu1 %v1857_v55  ;;  %1825 = vmatprep.subr.bf16.mxu0 %v1985_v3  ;;  %v318_v55 = vld [vmem:[%s3142_s1 + $0x7c8] sm:$0xff] }
  0xca   :  { %1859 = vmatprep.subr.bf16.mxu1 %v1985_v3  ;;  %v1919_v57 = vpack.c.bf16 %v318_v55, %v317_v54 }
  0xcc   :  { %1827 = vmatpush1.bf16.msra.mxu0 %v1826_v60  ;;  %v319_v60 = vld [vmem:[%s3142_s1 + $0x7d0] sm:$0xff] }
  0xcd   :  { %1861 = vmatpush1.bf16.msra.mxu1 %v1860_v61  ;;  %1828 = vmatprep.subr.bf16.mxu0 %v1985_v3  ;;  %v320_v61 = vld [vmem:[%s3142_s1 + $0x7d8] sm:$0xff] }
  0xce   :  { %1862 = vmatprep.subr.bf16.mxu1 %v1985_v3  ;;  %v1922_v31 = vpack.c.bf16 %v320_v61, %v319_v60  ;;  %v1380_v60 = vld [vmem:[%s3144_s3 + $0x20] sm:$0xff]  ;;  %v1381_v61 = vld [vmem:[%s3144_s3 + $0x28] sm:$0xff] }
  0xd0   :  { %1830 = vmatpush1.bf16.msra.mxu0 %v1829_v2  ;;  %v321_v2 = vld [vmem:[%s3142_s1 + $0x7e0] sm:$0xff] }
  0xd1   :  { %1864 = vmatpush1.bf16.msra.mxu1 %v1863_v4  ;;  %1831 = vmatprep.subr.bf16.mxu0 %v1985_v3  ;;  %v322_v4 = vld [vmem:[%s3142_s1 + $0x7e8] sm:$0xff] }
  0xd2   :  { %1865 = vmatprep.subr.bf16.mxu1 %v1985_v3  ;;  %v1925_v6 = vpack.c.bf16 %v322_v4, %v321_v2  ;;  %v1989_v2 = vmov 0.0  }
  0xd4   :  { %1833 = vmatpush1.bf16.msra.mxu0 %v1832_v9  ;;  %v323_v9 = vld [vmem:[%s3142_s1 + $0x7f0] sm:$0xff] }
  0xd5   :  { %1867 = vmatpush1.bf16.msra.mxu1 %v1866_v11  ;;  %1834 = vmatprep.subr.bf16.mxu0 %v1985_v3  ;;  %v1894_v11 = vpack.c.bf16 %v302_v8, %v301_v7  ;;  %v1928_v12 = vpack.c.bf16 %v324_v10, %v323_v9 }
  0xd6   :  { %1868 = vmatprep.subr.bf16.mxu1 %v1985_v3 }
  0xd8   :  { %1836 = vmatpush1.bf16.msra.mxu0 %v1835_v18  ;;  %v1931_v18 = vpack.c.bf16 %v326_v50, %v325_v49 }
  0xd9   :  { %1870 = vmatpush1.bf16.msra.mxu1 %v1869_v20  ;;  %1837 = vmatprep.subr.bf16.mxu0 %v1985_v3  ;;  %v306_v20 = vld [vmem:[%s3142_s1 + $0x768] sm:$0xff] }
  0xda   :  { %1871 = vmatprep.subr.bf16.mxu1 %v1985_v3  ;;  %v1900_v23 = vpack.c.bf16 %v306_v20, %v305_v19  ;;  %v1504_v19 = vld [vmem:[%s3143_s2] ss:$0 sm:$0xff]  ;;  %s1961_s2 = scalar_lea.vmem %s1473_s9, 32 }
  0xdb   :  { %p1962_p0 = scmp.ne.s32.totalorder %s1473_s9, %s1961_s2  ;;  %p1967_p2 = scmp.lt.s32.totalorder %s1961_s2, %s1961_s2 }
  0xdc   :  { %1840 = vmatpush1.bf16.msk.msra.mxu0 %vm2200_vm7, %v1838_v27  ;;  %v308_v27 = vld [vmem:[%s3142_s1 + $0x778] sm:$0xff] }
  0xdd   :  { %1874 = vmatpush1.bf16.msk.msra.mxu1 %vm2200_vm7, %v1872_v29  ;;  %1875 = vmatprep.subr.bf16.mxu0 %v1985_v3  ;;  %v330_v29 = vld [vmem:[%s3142_s1 + $0x828] sm:$0xff]  ;;  %v1903_v30 = vpack.c.bf16 %v308_v27, %v307_v26  ;;  %v1505_v26 = vld [vmem:[%s3145_s4] ss:$0 sm:$0xff]  ;;  %p1968_p3 = por %p1967_p2, %p1966_p1 }
  0xde   :  { %1909 = vmatprep.subr.bf16.mxu1 %v1985_v3  ;;  %v1937_v0 = vpack.c.bf16 %v330_v29, %v329_v28 }
  0xdf   :  { %1101 = vmatmul.mubr.f32.vlgmr.msra.gmra.mrb[8].mxu0 %v2752_v16  ;;  %v315_v16 = vld [vmem:[%s3142_s1 + $0x7b0] sm:$0xff]  ;;  %p1969_p4 = pnand %p1968_p3, %p1962_p0 }
  0xe0   :  { %1877 = vmatpush1.bf16.msra.mxu0 %v1876_v36  ;;  %1187 = vmatmul.mubr.f32.vlgmr.msra.gmra.mrb[8].mxu1 %v2755_v17  ;;  %v316_v17 = vld [vmem:[%s3142_s1 + $0x7b8] sm:$0xff] }
  0xe1   :  { %1911 = vmatpush1.bf16.msra.mxu1 %v1910_v37  ;;  %1878 = vmatprep.subr.bf16.mxu0 %v1985_v3  ;;  %v1916_v51 = vpack.c.bf16 %v316_v17, %v315_v16  ;;  %v331_v37 = vld [vmem:[%s3142_s1 + $0x830] sm:$0xff] }
  0xe2   :  { %1912 = vmatprep.subr.bf16.mxu1 %v1985_v3  ;;  %1501 = vmatprep.mubr.msk.f32.mxu0 %vm343_vm2, %v1201_v42 }
  0xe3   :  { %1503 = vmatprep.mubr.msk.f32.mxu1 %vm343_vm2, %v1287_v43  ;;  %v1906_v43 = vpack.c.bf16 %v310_v33, %v309_v1  ;;  %vm1391_vm2 = vcmask 523264  }
  0xe4   :  { %1880 = vmatpush1.bf16.msra.mxu0 %v1879_v44  ;;  %v1940_v44 = vpack.c.bf16 %v332_v38, %v331_v37 }
  0xe5   :  { %1914 = vmatpush1.bf16.msra.mxu1 %v1913_v45  ;;  %1881 = vmatprep.subr.bf16.mxu0 %v1985_v3 }
  0xe6   :  { %1915 = vmatprep.subr.bf16.mxu1 %v1985_v3 }
  0xe8   :  { %1883 = vmatpush1.bf16.msra.mxu0 %v1882_v48 }
  0xe9   :  { %1917 = vmatpush1.bf16.msra.mxu1 %v1916_v51  ;;  %1884 = vmatprep.subr.bf16.mxu0 %v1985_v3  ;;  %v1376_v51 = vld [vmem:[%s3144_s3] sm:$0xff] }
  0xea   :  { %1918 = vmatprep.subr.bf16.mxu1 %v1985_v3  ;;  %v1944_v52 = vpack.c.bf16 %v1377_v25, %v1376_v51 }
  0xec   :  { %1886 = vmatpush1.bf16.msra.mxu0 %v1885_v56 }
  0xed   :  { %1920 = vmatpush1.bf16.msra.mxu1 %v1919_v57  ;;  %1887 = vmatprep.subr.bf16.mxu0 %v1985_v3 }
  0xee   :  { %1921 = vmatprep.subr.bf16.mxu1 %v1985_v3 }
  0xf0   :  { %1889 = vmatpush1.bf16.msra.mxu0 %v1888_v62  ;;  %v1950_v62 = vpack.c.bf16 %v1381_v61, %v1380_v60 }
  0xf1   :  { %1923 = vmatpush1.bf16.msra.mxu1 %v1922_v31  ;;  %1890 = vmatprep.subr.bf16.mxu0 %v1985_v3  ;;  %v1382_v31 = vld [vmem:[%s3144_s3 + $0x30] sm:$0xff] }
  0xf2   :  { %1924 = vmatprep.subr.bf16.mxu1 %v1985_v3  ;;  %v1953_v63 = vpack.c.bf16 %v1383_v32, %v1382_v31 }
  0xf4   :  { %1892 = vmatpush1.bf16.msra.mxu0 %v1891_v5 }
  0xf5   :  { %1926 = vmatpush1.bf16.msra.mxu1 %v1925_v6  ;;  %1893 = vmatprep.subr.bf16.mxu0 %v1985_v3 }
  0xf6   :  { %1927 = vmatprep.subr.bf16.mxu1 %v1985_v3 }
  0xf8   :  { %1895 = vmatpush1.bf16.msra.mxu0 %v1894_v11 }
  0xf9   :  { %1929 = vmatpush1.bf16.msra.mxu1 %v1928_v12  ;;  %1896 = vmatprep.subr.bf16.mxu0 %v1985_v3 }
  0xfa   :  { %1930 = vmatprep.subr.bf16.mxu1 %v1985_v3 }
  0xfc   :  { %1898 = vmatpush1.bf16.msra.mxu0 %v1897_v15 }
  0xfd   :  { %1932 = vmatpush1.bf16.msra.mxu1 %v1931_v18  ;;  %1899 = vmatprep.subr.bf16.mxu0 %v1985_v3 }
  0xfe   :  { %1933 = vmatprep.subr.bf16.mxu1 %v1985_v3 }
 0x100   :  { %1901 = vmatpush1.bf16.msra.mxu0 %v1900_v23 }
 0x101   :  { %1935 = vmatpush1.bf16.msra.mxu1 %v1934_v24  ;;  %1902 = vmatprep.subr.bf16.mxu0 %v1985_v3 }
 0x102   :  { %v416_v36 = vpop.f32.mrb[0].mxu0  ;;  %1936 = vmatprep.subr.bf16.mxu1 %v1985_v3 }
 0x103   :  { %v418_v40 = vpop.f32.mrb[1].mxu0  ;;  %v501_v39 = vpop.f32.mrb[0].mxu1 }
 0x104   :  { %v502_v41 = vadd.f32 %v501_v39, %v416_v36  ;;  %1904 = vmatpush1.bf16.msra.mxu0 %v1903_v30  ;;  %v503_v42 = vpop.f32.mrb[1].mxu1 }
 0x105   :  { %1938 = vmatpush1.bf16.msra.mxu1 %v1937_v0  ;;  %1905 = vmatprep.subr.bf16.mxu0 %v1985_v3 }
 0x106   :  { %1939 = vmatprep.subr.bf16.mxu1 %v1985_v3 }
 0x108   :  { %1908 = vmatpush1.bf16.msk.msra.mxu0 %vm2200_vm7, %v1906_v43 }
 0x109   :  { %1942 = vmatpush1.bf16.msk.msra.mxu1 %vm2200_vm7, %v1940_v44  ;;  %1943 = vmatprep.subr.bf16.mxu0 %v1985_v3 }
 0x10b   :  { %1273 = vmatmul.mubr.f32.vlgmr.msra.gmra.mrb[10].mxu0 %v2930_v34  ;;  %v1378_v34 = vld [vmem:[%s3144_s3 + $0x10] sm:$0xff] }
 0x10c   :  { %1359 = vmatmul.mubr.f32.vlgmr.msra.gmra.mrb[10].mxu1 %v2933_v35  ;;  %v1379_v35 = vld [vmem:[%s3144_s3 + $0x18] sm:$0xff]  ;;  %1945 = vmatpush3.bf16.msra.mxu0 %v1944_v52 }
 0x10d   :  { %v1947_v53 = vpack.c.bf16 %v1379_v35, %v1378_v34  ;;  %1946 = vmatprep.subr.bf16.mxu0 %v1985_v3  ;;  %1532 = vmatprep.mubr.msk.f32.mxu0 %vm1988_vm0, %v1989_v2 }
 0x110   :  { %1948 = vmatpush3.bf16.msra.mxu0 %v1947_v53 }
 0x111   :  { %1949 = vmatprep.subr.bf16.mxu0 %v1985_v3 }
 0x114   :  { %1951 = vmatpush3.bf16.msra.mxu0 %v1950_v62 }
 0x115   :  { %1952 = vmatprep.subr.bf16.mxu0 %v1985_v3 }
 0x118   :  { %1954 = vmatpush3.bf16.msra.mxu0 %v1953_v63 }
 0x12e   :  { %v586_v45 = vpop.f32.mrb[2].mxu0 }
 0x12f   :  { %v590_v46 = vadd.f32 %v586_v45, %v502_v41  ;;  %v588_v47 = vpop.f32.mrb[3].mxu0  ;;  %v672_v16 = vpop.f32.mrb[2].mxu1 }
 0x130   :  { %v674_v17 = vpop.f32.mrb[3].mxu1 }
 0x131   :  { %v676_v48 = vadd.f32 %v672_v16, %v590_v46 }
 0x15a   :  { %v758_v54 = vpop.f32.mrb[4].mxu0 }
 0x15b   :  { %v762_v55 = vadd.f32 %v758_v54, %v676_v48  ;;  %v760_v56 = vpop.f32.mrb[5].mxu0  ;;  %v844_v57 = vpop.f32.mrb[4].mxu1 }
 0x15c   :  { %v846_v58 = vpop.f32.mrb[5].mxu1 }
 0x15d   :  { %v848_v59 = vadd.f32 %v844_v57, %v762_v55 }
 0x186   :  { %v930_v4 = vpop.f32.mrb[6].mxu0 }
 0x187   :  { %v934_v5 = vadd.f32 %v930_v4, %v848_v59  ;;  %v932_v6 = vpop.f32.mrb[7].mxu0  ;;  %v1016_v7 = vpop.f32.mrb[6].mxu1 }
 0x188   :  { %v1018_v8 = vpop.f32.mrb[7].mxu1 }
 0x189   :  { %v1020_v9 = vadd.f32 %v1016_v7, %v934_v5 }
 0x1b2   :  { %v1102_v3 = vpop.f32.mrb[8].mxu0 }
 0x1b3   :  { %v1106_v10 = vadd.f32 %v1102_v3, %v1020_v9  ;;  %v1104_v11 = vpop.f32.mrb[9].mxu0  ;;  %v1188_v12 = vpop.f32.mrb[8].mxu1 }
 0x1b4   :  { %v1190_v13 = vpop.f32.mrb[9].mxu1 }
 0x1b5   :  { %v1192_v14 = vadd.f32 %v1188_v12, %v1106_v10 }
 0x1de   :  { %v1274_v49 = vpop.f32.mrb[10].mxu0 }
 0x1df   :  { %v1278_v50 = vadd.f32 %v1274_v49, %v1192_v14  ;;  %v1276_v15 = vpop.f32.mrb[11].mxu0  ;;  %v1360_v18 = vpop.f32.mrb[10].mxu1 }
 0x1e0   :  { %v1362_v20 = vpop.f32.mrb[11].mxu1 }
 0x1e1   :  { %v1364_v21 = vadd.f32 %v1360_v18, %v1278_v50 }
 0x1e3   :  { %v1372_v22 = vadd.f32 %v1504_v19, %v1364_v21 }
 0x1e5   :  { %vm1373_vm1 = vcmp.gt.f32.partialorder %v1372_v22, 0.0  ;;  %v1374_v23 = vmul.f32 0.1, %v1372_v22 }
 0x1e7   :  { %v1375_v24 = vsel %vm1373_vm1, %v1372_v22, %v1374_v23 }
 0x1e8   :  { %1533 = vmatmul.mubr.msk.f32.vlgmr.msra.gmra.mrb[12].mxu0 %vm1391_vm2, %v1375_v24 }
 0x2bb   :  { %v1461_v27 = vpop.f32.mrb[12].mxu0 }
 0x2bc   :  { %v1462_v28 = vadd.f32 %v1505_v26, %v1461_v27  ;;  %v1534_v29 = vpop.f32.mrb[13].mxu0 }
 0x2be   :  { %1465 = vst [vmem:[#allocation2] sm:$0x3] %v1462_v28 }
 0x2bf   :  { %1972 = shalt.err (!%p1969_p4)
}
 0x2c0   :  { %s1973_s12 = scalar_lea.hbm %s3146_s5, 32 }
 0x2c1   :  { %p1974_p5 = scmp.ne.s32.totalorder %s3146_s5, %s1973_s12  ;;  %p1977_p6 = scmp.lt.u32.totalorder %s1973_s12, %s3146_s5 }
 0x2c3   :  { %p1979_p7 = pnand %p1977_p6, %p1974_p5 }
 0x2c5   :  { %1982 = shalt.err (!%p1979_p7)
}
 0x2c6   :  { %1475 = dma.vmem_to_hbm [thread:$0]  %s1473_s9, 32, %s3146_s5, [#allocation3]  }
 0x2c7   :  { %1983 = dma.done.wait [#allocation3], 32  }
 0x2c8   :  { %1984 = vsyncadd [#allocation3], 4294967264 }
 0x2c9   :  { %1479 = vsyncpa [#allocation3], 1 }

</bundles_post_ra>
